<compile_context>
chip_gen: v6e
topology: v6e:2x2x1
jax: 0.10.0
libtpu: 0.0.40
codegen_flags: <defaults>
</compile_context>

<pallas_src>
import functools

import jax
import jax.numpy as jnp
from jax import lax
from jax.experimental import pallas as pl
from jax.experimental.pallas import tpu as pltpu

BN_EPS = 1e-5
MXU_DTYPE = jnp.bfloat16  # matmul operand dtype (accumulation stays f32)


# ----------------------------------------------------------------------------
# Kernel 1: conv (KH*KW shifted matmuls, bf16 MXU / f32 acc) + BN partial stats
# ----------------------------------------------------------------------------
def _conv_stats_kernel(x_ref, w_ref, mask_ref, y_ref, s1_ref, s2_ref,
                       *, KH, KW, Wp, Rw):
    # x_ref:    (1, R, Cin)       f32  flattened zero-padded image (+ tail pad)
    # w_ref:    (KH*KW, Cin, Co)  bf16
    # mask_ref: (1, Rw, 1)        f32  1.0 on valid (non-garbage) wide rows
    # y_ref:    (1, Rw, Co)       f32  pre-BN conv output, "wide" rows
    # s1/s2:    (1, 1, Co)        f32  per-image masked sum / sum-of-squares
    x = x_ref[0]                                       # (R, Cin)
    cout = w_ref.shape[-1]
    acc = jnp.zeros((Rw, cout), jnp.float32)
    for k in range(KH * KW):                           # static unroll: 9 taps
        off = (k // KW) * Wp + (k % KW)
        xs = x[off:off + Rw, :].astype(MXU_DTYPE)      # shifted window (Rw, Cin)
        acc += jnp.dot(xs, w_ref[k], preferred_element_type=jnp.float32)
    y_ref[0] = acc
    m = mask_ref[0]                                    # (Rw, 1)
    accm = acc * m                                     # garbage columns -> 0
    s1_ref[0] = jnp.sum(accm, axis=0, keepdims=True)
    s2_ref[0] = jnp.sum(accm * acc, axis=0, keepdims=True)


def conv2d_wide_with_stats(x_nhwc, w_hwio):
    """'same' conv; returns wide pre-BN output (N, H*Wp, Cout) f32 plus
    per-image per-channel sum / sumsq over valid output positions."""
    N, H, W, Cin = x_nhwc.shape
    KH, KW, _, Cout = w_hwio.shape
    ph0, ph1 = KH // 2, KH - 1 - KH // 2
    pw0, pw1 = KW // 2, KW - 1 - KW // 2
    Hp, Wp = H + KH - 1, W + KW - 1
    Rw = H * Wp                        # wide output rows (garbage cols included)
    R = Hp * Wp + (KW - 1)             # padded flat rows (+tail keeps slices in range)

    xp = jnp.pad(x_nhwc.astype(jnp.float32),
                 ((0, 0), (ph0, ph1), (pw0, pw1), (0, 0)))
    xflat = jnp.pad(xp.reshape(N, Hp * Wp, Cin), ((0, 0), (0, KW - 1), (0, 0)))
    wk = w_hwio.reshape(KH * KW, Cin, Cout).astype(MXU_DTYPE)
    mask = (jnp.arange(Rw, dtype=jnp.int32) % Wp < W).astype(jnp.float32)
    mask = mask.reshape(1, Rw, 1)

    flops = 2 * N * Rw * KH * KW * Cin * Cout
    bytes_accessed = (N * R * Cin * 4 + KH * KW * Cin * Cout * 2 + Rw * 4
                      + N * Rw * Cout * 4 + 2 * N * Cout * 4)

    y, s1, s2 = pl.pallas_call(
        functools.partial(_conv_stats_kernel, KH=KH, KW=KW, Wp=Wp, Rw=Rw),
        grid=(N,),
        out_shape=(jax.ShapeDtypeStruct((N, Rw, Cout), jnp.float32),
                   jax.ShapeDtypeStruct((N, 1, Cout), jnp.float32),
                   jax.ShapeDtypeStruct((N, 1, Cout), jnp.float32)),
        in_specs=[pl.BlockSpec((1, R, Cin), lambda n: (n, 0, 0)),
                  pl.BlockSpec((KH * KW, Cin, Cout), lambda n: (0, 0, 0)),
                  pl.BlockSpec((1, Rw, 1), lambda n: (0, 0, 0))],
        out_specs=(pl.BlockSpec((1, Rw, Cout), lambda n: (n, 0, 0)),
                   pl.BlockSpec((1, 1, Cout), lambda n: (n, 0, 0)),
                   pl.BlockSpec((1, 1, Cout), lambda n: (n, 0, 0))),
        compiler_params=pltpu.CompilerParams(dimension_semantics=("parallel",)),
        cost_estimate=pl.CostEstimate(flops=flops, transcendentals=0,
                                      bytes_accessed=bytes_accessed),
    )(xflat, wk, mask)

    count = N * H * W
    mean = jnp.sum(s1, axis=(0, 1)) / count
    var = jnp.sum(s2, axis=(0, 1)) / count - mean * mean   # biased (training BN)
    return y, mean, var, (H, W, Wp)


def _bn_fold(mean, var, gamma, beta):
    # fold gamma/beta/rsqrt/mean into a single per-channel scale & shift
    scale = gamma * lax.rsqrt(var + BN_EPS)
    shift = beta - mean * scale
    c = scale.shape[0]
    return (scale.reshape(1, c).astype(jnp.float32),
            shift.reshape(1, c).astype(jnp.float32))


# ----------------------------------------------------------------------------
# Kernel 2a: BN apply (scale/shift) + ReLU, tiled over (image, row-block)
# ----------------------------------------------------------------------------
def _bn_relu_kernel(y_ref, scale_ref, shift_ref, o_ref):
    y = y_ref[0]                                       # (TR, C) f32
    a = jnp.maximum(y * scale_ref[...] + shift_ref[...], 0.0)
    o_ref[0] = a.astype(o_ref.dtype)


def _pick_row_tile(rows, cap=256):
    # largest divisor of `rows` that is a multiple of 8 and <= cap
    for d in range(min(rows, cap), 7, -1):
        if rows % d == 0 and d % 8 == 0:
            return d
    return rows


def bn_relu_apply(y_wide, scale, shift, out_dtype=jnp.float32):
    N, Rw, C = y_wide.shape
    TR = _pick_row_tile(Rw)
    grid = (N, Rw // TR)
    return pl.pallas_call(
        _bn_relu_kernel,
        grid=grid,
        out_shape=jax.ShapeDtypeStruct((N, Rw, C), out_dtype),
        in_specs=[pl.BlockSpec((1, TR, C), lambda n, r: (n, r, 0)),
                  pl.BlockSpec((1, C), lambda n, r: (0, 0)),
                  pl.BlockSpec((1, C), lambda n, r: (0, 0))],
        out_specs=pl.BlockSpec((1, TR, C), lambda n, r: (n, r, 0)),
        compiler_params=pltpu.CompilerParams(
            dimension_semantics=("parallel", "parallel")),
    )(y_wide, scale, shift)


# ----------------------------------------------------------------------------
# Kernel 2b: fused BN apply + ReLU + MaxPool2d(2,2) with first-max indices
# ----------------------------------------------------------------------------
def _bn_relu_maxpool_kernel(t00_ref, t01_ref, t10_ref, t11_ref,
                            scale_ref, shift_ref, i00_ref, o_ref, idx_ref,
                            *, W_in):
    s = scale_ref[...]
    b = shift_ref[...]

    def act(t_ref):
        return jnp.maximum(t_ref[0] * s + b, 0.0)

    x00, x01, x10, x11 = act(t00_ref), act(t01_ref), act(t10_ref), act(t11_ref)
    m = jnp.maximum(jnp.maximum(x00, x01), jnp.maximum(x10, x11))
    i00 = i00_ref[0]                                   # precomputed h*W + w of tap 00
    # first-max in row-major window order (matches torch.nn.MaxPool2d ties)
    idx = jnp.where(x00 == m, i00,
          jnp.where(x01 == m, i00 + 1,
          jnp.where(x10 == m, i00 + W_in, i00 + W_in + 1)))
    o_ref[0] = m
    idx_ref[0] = idx


def bn_relu_maxpool(y_wide, scale, shift, H, W, Wp):
    N, Rw, C = y_wide.shape
    Ho, Wo = H // 2, W // 2
    # Drop garbage columns and form the four 2x2 taps (small XLA layout glue on
    # the ~tens-of-KB pre-BN conv output; the full-res post-BN activation is
    # never materialized in HBM).
    yv = y_wide.reshape(N, H, Wp, C)[:, :, :W, :]
    taps = [yv[:, dh::2, dw::2, :].reshape(N, Ho * Wo, C)
            for dh in (0, 1) for dw in (0, 1)]
    ho = jnp.arange(Ho, dtype=jnp.int32)
    wo = jnp.arange(Wo, dtype=jnp.int32)
    i00 = (2 * ho[:, None] * W + 2 * wo[None, :]).reshape(1, Ho * Wo, 1)
    i00 = jnp.broadcast_to(i00, (1, Ho * Wo, C)).astype(jnp.int32)

    tap_spec = pl.BlockSpec((1, Ho * Wo, C), lambda n: (n, 0, 0))
    par_spec = pl.BlockSpec((1, C), lambda n: (0, 0))
    i00_spec = pl.BlockSpec((1, Ho * Wo, C), lambda n: (0, 0, 0))

    vals, idx = pl.pallas_call(
        functools.partial(_bn_relu_maxpool_kernel, W_in=W),
        grid=(N,),
        out_shape=(jax.ShapeDtypeStruct((N, Ho * Wo, C), jnp.float32),
                   jax.ShapeDtypeStruct((N, Ho * Wo, C), jnp.int32)),
        in_specs=[tap_spec, tap_spec, tap_spec, tap_spec,
                  par_spec, par_spec, i00_spec],
        out_specs=(tap_spec, tap_spec),
        compiler_params=pltpu.CompilerParams(dimension_semantics=("parallel",)),
    )(taps[0], taps[1], taps[2], taps[3], scale, shift, i00)
    return vals.reshape(N, Ho, Wo, C), idx.reshape(N, Ho, Wo, C)


# ----------------------------------------------------------------------------
# Encoder wrapper (NCHW in / NCHW out, like the PyTorch module)
# ----------------------------------------------------------------------------
def encoder_forward(x_nchw, params):
    gamma, beta = params["gamma"], params["beta"]
    x = jnp.transpose(x_nchw, (0, 2, 3, 1)).astype(jnp.float32)  # NCHW -> NHWC
    n_layers = len(params["convs"])
    vals = idx = None
    for li, (w, _b) in enumerate(params["convs"]):
        # conv bias is dropped: training-mode BN mean subtraction cancels it.
        y_wide, mean, var, (H, W, Wp) = conv2d_wide_with_stats(x, w)
        scale, shift = _bn_fold(mean, var, gamma, beta)
        if li < n_layers - 1:
            a_wide = bn_relu_apply(y_wide, scale, shift, jnp.float32)
            N, C = x.shape[0], w.shape[-1]
            x = a_wide.reshape(N, H, Wp, C)[:, :, :W, :]   # next layer's input
        else:
            vals, idx = bn_relu_maxpool(y_wide, scale, shift, H, W, Wp)
    # TODO(synk): PyTorch returns int64 indices; TPU kernel emits int32.
    return (jnp.transpose(vals, (0, 3, 1, 2)),
            jnp.transpose(idx, (0, 3, 1, 2)))


def init_params(key, in_filters, out_filters, kernelsize=(3, 3), n=2):
    convs = []
    cin = in_filters
    for _ in range(n):
        key, k1, k2 = jax.random.split(key, 3)
        fan_in = cin * kernelsize[0] * kernelsize[1]
        bound = 1.0 / (fan_in ** 0.5)
        w = jax.random.uniform(k1, (kernelsize[0], kernelsize[1], cin, out_filters),
                               jnp.float32, -bound, bound)
        b = jax.random.uniform(k2, (out_filters,), jnp.float32, -bound, bound)
        convs.append((w, b))
        cin = out_filters
    gamma = jnp.ones((out_filters,), jnp.float32)
    beta = jnp.zeros((out_filters,), jnp.float32)
    return {"convs": convs, "gamma": gamma, "beta": beta}


# ----------------------------------------------------------------------------
# Pure-JAX reference (correctness check only) — mirrors bf16 MXU inputs.
# Also returns the per-window top-2 gap so the index check can skip windows
# that are numerically tied (bf16 accumulation-order noise can flip those).
# ----------------------------------------------------------------------------
def reference_forward(x_nchw, params):
    gamma, beta = params["gamma"], params["beta"]
    x = jnp.transpose(x_nchw, (0, 2, 3, 1)).astype(jnp.float32)
    for (w, b) in params["convs"]:
        y = lax.conv_general_dilated(
            x.astype(MXU_DTYPE), w.astype(MXU_DTYPE), (1, 1), "SAME",
            dimension_numbers=("NHWC", "HWIO", "NHWC"),
            preferred_element_type=jnp.float32) + b      # bias cancels in BN
        mean = jnp.mean(y, axis=(0, 1, 2), keepdims=True)
        var = jnp.mean((y - mean) ** 2, axis=(0, 1, 2), keepdims=True)
        x = jnp.maximum((y - mean) * lax.rsqrt(var + BN_EPS) * gamma + beta, 0.0)
    N, H, W, C = x.shape
    x00 = x[:, 0::2, 0::2, :]
    x01 = x[:, 0::2, 1::2, :]
    x10 = x[:, 1::2, 0::2, :]
    x11 = x[:, 1::2, 1::2, :]
    stacked = jnp.stack([x00, x01, x10, x11], axis=0)
    m = jnp.max(stacked, axis=0)
    srt = jnp.sort(stacked, axis=0)
    gap = srt[3] - srt[2]
    oh = lax.broadcasted_iota(jnp.int32, x00.shape, 1)
    ow = lax.broadcasted_iota(jnp.int32, x00.shape, 2)
    i00 = (2 * oh) * W + 2 * ow
    idx = jnp.where(x00 == m, i00,
          jnp.where(x01 == m, i00 + 1,
          jnp.where(x10 == m, i00 + W, i00 + W + 1)))
    to_nchw = lambda t: jnp.transpose(t, (0, 3, 1, 2))
    return to_nchw(m), to_nchw(idx), to_nchw(gap)


if __name__ == "__main__":
    key = jax.random.PRNGKey(0)
    key, kx, kp = jax.random.split(key, 3)

    in_filters, out_filters = 4, 8
    x = jax.random.normal(kx, (2, in_filters, 16, 16), jnp.float32)  # NCHW
    params = init_params(kp, in_filters, out_filters)

    fwd = jax.jit(encoder_forward)
    pooled, indices = fwd(x, params)
    pooled = jax.block_until_ready(pooled)
    indices = jax.block_until_ready(indices)

    ref_pooled, ref_indices, ref_gap = reference_forward(x, params)

    assert pooled.shape == (2, out_filters, 8, 8)
    assert indices.shape == (2, out_filters, 8, 8)
    assert pooled.dtype == jnp.float32 and indices.dtype == jnp.int32
    # values: both paths use bf16 MXU operands with f32 accumulation; small
    # accumulation-order noise is expected.
    assert jnp.allclose(pooled, ref_pooled, atol=1e-2, rtol=1e-2), \
        float(jnp.max(jnp.abs(pooled - ref_pooled)))
    # indices: exact match wherever the pool window is not numerically tied.
    strict = ref_gap > 1e-2
    assert bool(jnp.all(jnp.where(strict, indices == ref_indices, True)))

    print("KERNEL_OK")
</pallas_src>

<mosaic_0001>
module attributes {stable_mosaic.version = 11 : i64} {
  func.func @_bn_relu_kernel(%arg0: i32, %arg1: i32, %arg2: memref<1x144x8xf32, #tpu.memory_space<vmem>>, %arg3: memref<1x8xf32, #tpu.memory_space<vmem>>, %arg4: memref<1x8xf32, #tpu.memory_space<vmem>>, %arg5: memref<1x144x8xf32, #tpu.memory_space<vmem>>) attributes {dimension_semantics = [#tpu.dimension_semantics<parallel>, #tpu.dimension_semantics<parallel>], iteration_bounds = array<i64: 2, 2>, scalar_prefetch = 0 : i64, scratch_operands = 0 : i64, tpu.core_type = #tpu.core_type<tc>, window_params = [{transform_indices = @transform_0, window_bounds = array<i64: 1, 144, 8>}, {pipeline_mode = #tpu.pipeline_mode<synchronous>, transform_indices = @transform_1, window_bounds = array<i64: 1, 8>}, {pipeline_mode = #tpu.pipeline_mode<synchronous>, transform_indices = @transform_2, window_bounds = array<i64: 1, 8>}, {transform_indices = @transform_3, window_bounds = array<i64: 1, 144, 8>}]} {
    %c0 = arith.constant 0 : index
    %c0_0 = arith.constant 0 : index
    %c0_1 = arith.constant 0 : index
    %0 = vector.load %arg2[%c0, %c0_0, %c0_1] : memref<1x144x8xf32, #tpu.memory_space<vmem>>, vector<1x144x8xf32>
    %1 = vector.shape_cast %0 : vector<1x144x8xf32> to vector<144x8xf32>
    %c0_2 = arith.constant 0 : index
    %c0_3 = arith.constant 0 : index
    %2 = vector.load %arg3[%c0_2, %c0_3] : memref<1x8xf32, #tpu.memory_space<vmem>>, vector<1x8xf32>
    %3 = vector.broadcast %2 : vector<1x8xf32> to vector<144x8xf32>
    %4 = arith.mulf %1, %3 : vector<144x8xf32>
    %c0_4 = arith.constant 0 : index
    %c0_5 = arith.constant 0 : index
    %5 = vector.load %arg4[%c0_4, %c0_5] : memref<1x8xf32, #tpu.memory_space<vmem>>, vector<1x8xf32>
    %6 = vector.broadcast %5 : vector<1x8xf32> to vector<144x8xf32>
    %7 = arith.addf %4, %6 : vector<144x8xf32>
    %cst = arith.constant 0.000000e+00 : f32
    %8 = vector.broadcast %cst : f32 to vector<144x8xf32>
    %9 = arith.maximumf %7, %8 : vector<144x8xf32>
    %c0_6 = arith.constant 0 : index
    %c0_7 = arith.constant 0 : index
    %c0_8 = arith.constant 0 : index
    %10 = vector.load %arg5[%c0_6, %c0_7, %c0_8] : memref<1x144x8xf32, #tpu.memory_space<vmem>>, vector<1x144x8xf32>
    %11 = vector.shape_cast %10 : vector<1x144x8xf32> to vector<144x8xf32>
    %12 = vector.shape_cast %9 : vector<144x8xf32> to vector<1x144x8xf32>
    tpu.vector_store %arg5[%c0_6, %c0_7, %c0_8], %12 {strides = array<i32>} : memref<1x144x8xf32, #tpu.memory_space<vmem>>, vector<1x144x8xf32>,
    return
  }
  func.func @transform_0(%arg0: i32, %arg1: i32) -> (i32, i32, i32) {
    %c0_i32 = arith.constant 0 : i32
    %c0_i32_0 = arith.constant 0 : i32
    return %arg0, %arg1, %c0_i32 : i32, i32, i32
  }
  func.func @transform_1(%arg0: i32, %arg1: i32) -> (i32, i32) {
    %c0_i32 = arith.constant 0 : i32
    %c0_i32_0 = arith.constant 0 : i32
    %c0_i32_1 = arith.constant 0 : i32
    return %c0_i32, %c0_i32_0 : i32, i32
  }
  func.func @transform_2(%arg0: i32, %arg1: i32) -> (i32, i32) {
    %c0_i32 = arith.constant 0 : i32
    %c0_i32_0 = arith.constant 0 : i32
    %c0_i32_1 = arith.constant 0 : i32
    return %c0_i32, %c0_i32_0 : i32, i32
  }
  func.func @transform_3(%arg0: i32, %arg1: i32) -> (i32, i32, i32) {
    %c0_i32 = arith.constant 0 : i32
    %c0_i32_0 = arith.constant 0 : i32
    return %arg0, %arg1, %c0_i32 : i32, i32, i32
  }
}

module attributes {stable_mosaic.version = 11 : i64} {
  func.func @_conv_stats_kernel(%arg0: i32, %arg1: memref<1x326x4xf32, #tpu.memory_space<vmem>>, %arg2: memref<9x4x8xbf16, #tpu.memory_space<vmem>>, %arg3: memref<1x288x1xf32, #tpu.memory_space<vmem>>, %arg4: memref<1x288x8xf32, #tpu.memory_space<vmem>>, %arg5: memref<1x1x8xf32, #tpu.memory_space<vmem>>, %arg6: memref<1x1x8xf32, #tpu.memory_space<vmem>>) attributes {dimension_semantics = [#tpu.dimension_semantics<parallel>], iteration_bounds = array<i64: 2>, scalar_prefetch = 0 : i64, scratch_operands = 0 : i64, tpu.core_type = #tpu.core_type<tc>, window_params = [{transform_indices = @transform_0, window_bounds = array<i64: 1, 326, 4>}, {pipeline_mode = #tpu.pipeline_mode<synchronous>, transform_indices = @transform_1, window_bounds = array<i64: 9, 4, 8>}, {pipeline_mode = #tpu.pipeline_mode<synchronous>, transform_indices = @transform_2, window_bounds = array<i64: 1, 288, 1>}, {transform_indices = @transform_3, window_bounds = array<i64: 1, 288, 8>}, {transform_indices = @transform_4, window_bounds = array<i64: 1, 1, 8>}, {transform_indices = @transform_5, window_bounds = array<i64: 1, 1, 8>}]} {
    %c0 = arith.constant 0 : index
    %c0_0 = arith.constant 0 : index
    %c0_1 = arith.constant 0 : index
    %0 = vector.load %arg1[%c0, %c0_0, %c0_1] : memref<1x326x4xf32, #tpu.memory_space<vmem>>, vector<1x326x4xf32>
    %1 = vector.shape_cast %0 : vector<1x326x4xf32> to vector<326x4xf32>
    %cst = arith.constant 0.000000e+00 : f32
    %2 = vector.broadcast %cst : f32 to vector<288x8xf32>
    %3 = vector.extract_strided_slice %1 {offsets = [0, 0], sizes = [288, 4], strides = [1, 1]} : vector<326x4xf32> to vector<288x4xf32>
    %4 = arith.truncf %3 : vector<288x4xf32> to vector<288x4xbf16>
    %c0_2 = arith.constant 0 : index
    %c0_3 = arith.constant 0 : index
    %c0_4 = arith.constant 0 : index
    %5 = vector.load %arg2[%c0_2, %c0_3, %c0_4] : memref<9x4x8xbf16, #tpu.memory_space<vmem>>, vector<1x4x8xbf16>
    %6 = vector.shape_cast %5 : vector<1x4x8xbf16> to vector<4x8xbf16>
    %cst_5 = arith.constant dense<0.000000e+00> : vector<288x8xf32>
    %7 = tpu.matmul %4, %6, %cst_5 {dimension_numbers = #tpu.dot_dimension_numbers<[1], [0], [0], [1], [0, 0, 1, 1], [], []>} : vector<288x4xbf16>, vector<4x8xbf16>, vector<288x8xf32> -> vector<288x8xf32>
    %8 = arith.addf %2, %7 : vector<288x8xf32>
    %9 = vector.extract_strided_slice %1 {offsets = [1, 0], sizes = [288, 4], strides = [1, 1]} : vector<326x4xf32> to vector<288x4xf32>
    %10 = arith.truncf %9 : vector<288x4xf32> to vector<288x4xbf16>
    %c1 = arith.constant 1 : index
    %c0_6 = arith.constant 0 : index
    %c0_7 = arith.constant 0 : index
    %11 = vector.load %arg2[%c1, %c0_6, %c0_7] : memref<9x4x8xbf16, #tpu.memory_space<vmem>>, vector<1x4x8xbf16>
    %12 = vector.shape_cast %11 : vector<1x4x8xbf16> to vector<4x8xbf16>
    %cst_8 = arith.constant dense<0.000000e+00> : vector<288x8xf32>
    %13 = tpu.matmul %10, %12, %cst_8 {dimension_numbers = #tpu.dot_dimension_numbers<[1], [0], [0], [1], [0, 0, 1, 1], [], []>} : vector<288x4xbf16>, vector<4x8xbf16>, vector<288x8xf32> -> vector<288x8xf32>
    %14 = arith.addf %8, %13 : vector<288x8xf32>
    %15 = vector.extract_strided_slice %1 {offsets = [2, 0], sizes = [288, 4], strides = [1, 1]} : vector<326x4xf32> to vector<288x4xf32>
    %16 = arith.truncf %15 : vector<288x4xf32> to vector<288x4xbf16>
    %c2 = arith.constant 2 : index
    %c0_9 = arith.constant 0 : index
    %c0_10 = arith.constant 0 : index
    %17 = vector.load %arg2[%c2, %c0_9, %c0_10] : memref<9x4x8xbf16, #tpu.memory_space<vmem>>, vector<1x4x8xbf16>
    %18 = vector.shape_cast %17 : vector<1x4x8xbf16> to vector<4x8xbf16>
    %cst_11 = arith.constant dense<0.000000e+00> : vector<288x8xf32>
    %19 = tpu.matmul %16, %18, %cst_11 {dimension_numbers = #tpu.dot_dimension_numbers<[1], [0], [0], [1], [0, 0, 1, 1], [], []>} : vector<288x4xbf16>, vector<4x8xbf16>, vector<288x8xf32> -> vector<288x8xf32>
    %20 = arith.addf %14, %19 : vector<288x8xf32>
    %21 = vector.extract_strided_slice %1 {offsets = [18, 0], sizes = [288, 4], strides = [1, 1]} : vector<326x4xf32> to vector<288x4xf32>
    %22 = arith.truncf %21 : vector<288x4xf32> to vector<288x4xbf16>
    %c3 = arith.constant 3 : index
    %c0_12 = arith.constant 0 : index
    %c0_13 = arith.constant 0 : index
    %23 = vector.load %arg2[%c3, %c0_12, %c0_13] : memref<9x4x8xbf16, #tpu.memory_space<vmem>>, vector<1x4x8xbf16>
    %24 = vector.shape_cast %23 : vector<1x4x8xbf16> to vector<4x8xbf16>
    %cst_14 = arith.constant dense<0.000000e+00> : vector<288x8xf32>
    %25 = tpu.matmul %22, %24, %cst_14 {dimension_numbers = #tpu.dot_dimension_numbers<[1], [0], [0], [1], [0, 0, 1, 1], [], []>} : vector<288x4xbf16>, vector<4x8xbf16>, vector<288x8xf32> -> vector<288x8xf32>
    %26 = arith.addf %20, %25 : vector<288x8xf32>
    %27 = vector.extract_strided_slice %1 {offsets = [19, 0], sizes = [288, 4], strides = [1, 1]} : vector<326x4xf32> to vector<288x4xf32>
    %28 = arith.truncf %27 : vector<288x4xf32> to vector<288x4xbf16>
    %c4 = arith.constant 4 : index
    %c0_15 = arith.constant 0 : index
    %c0_16 = arith.constant 0 : index
    %29 = vector.load %arg2[%c4, %c0_15, %c0_16] : memref<9x4x8xbf16, #tpu.memory_space<vmem>>, vector<1x4x8xbf16>
    %30 = vector.shape_cast %29 : vector<1x4x8xbf16> to vector<4x8xbf16>
    %cst_17 = arith.constant dense<0.000000e+00> : vector<288x8xf32>
    %31 = tpu.matmul %28, %30, %cst_17 {dimension_numbers = #tpu.dot_dimension_numbers<[1], [0], [0], [1], [0, 0, 1, 1], [], []>} : vector<288x4xbf16>, vector<4x8xbf16>, vector<288x8xf32> -> vector<288x8xf32>
    %32 = arith.addf %26, %31 : vector<288x8xf32>
    %33 = vector.extract_strided_slice %1 {offsets = [20, 0], sizes = [288, 4], strides = [1, 1]} : vector<326x4xf32> to vector<288x4xf32>
    %34 = arith.truncf %33 : vector<288x4xf32> to vector<288x4xbf16>
    %c5 = arith.constant 5 : index
    %c0_18 = arith.constant 0 : index
    %c0_19 = arith.constant 0 : index
    %35 = vector.load %arg2[%c5, %c0_18, %c0_19] : memref<9x4x8xbf16, #tpu.memory_space<vmem>>, vector<1x4x8xbf16>
    %36 = vector.shape_cast %35 : vector<1x4x8xbf16> to vector<4x8xbf16>
    %cst_20 = arith.constant dense<0.000000e+00> : vector<288x8xf32>
    %37 = tpu.matmul %34, %36, %cst_20 {dimension_numbers = #tpu.dot_dimension_numbers<[1], [0], [0], [1], [0, 0, 1, 1], [], []>} : vector<288x4xbf16>, vector<4x8xbf16>, vector<288x8xf32> -> vector<288x8xf32>
    %38 = arith.addf %32, %37 : vector<288x8xf32>
    %39 = vector.extract_strided_slice %1 {offsets = [36, 0], sizes = [288, 4], strides = [1, 1]} : vector<326x4xf32> to vector<288x4xf32>
    %40 = arith.truncf %39 : vector<288x4xf32> to vector<288x4xbf16>
    %c6 = arith.constant 6 : index
    %c0_21 = arith.constant 0 : index
    %c0_22 = arith.constant 0 : index
    %41 = vector.load %arg2[%c6, %c0_21, %c0_22] : memref<9x4x8xbf16, #tpu.memory_space<vmem>>, vector<1x4x8xbf16>
    %42 = vector.shape_cast %41 : vector<1x4x8xbf16> to vector<4x8xbf16>
    %cst_23 = arith.constant dense<0.000000e+00> : vector<288x8xf32>
    %43 = tpu.matmul %40, %42, %cst_23 {dimension_numbers = #tpu.dot_dimension_numbers<[1], [0], [0], [1], [0, 0, 1, 1], [], []>} : vector<288x4xbf16>, vector<4x8xbf16>, vector<288x8xf32> -> vector<288x8xf32>
    %44 = arith.addf %38, %43 : vector<288x8xf32>
    %45 = vector.extract_strided_slice %1 {offsets = [37, 0], sizes = [288, 4], strides = [1, 1]} : vector<326x4xf32> to vector<288x4xf32>
    %46 = arith.truncf %45 : vector<288x4xf32> to vector<288x4xbf16>
    %c7 = arith.constant 7 : index
    %c0_24 = arith.constant 0 : index
    %c0_25 = arith.constant 0 : index
    %47 = vector.load %arg2[%c7, %c0_24, %c0_25] : memref<9x4x8xbf16, #tpu.memory_space<vmem>>, vector<1x4x8xbf16>
    %48 = vector.shape_cast %47 : vector<1x4x8xbf16> to vector<4x8xbf16>
    %cst_26 = arith.constant dense<0.000000e+00> : vector<288x8xf32>
    %49 = tpu.matmul %46, %48, %cst_26 {dimension_numbers = #tpu.dot_dimension_numbers<[1], [0], [0], [1], [0, 0, 1, 1], [], []>} : vector<288x4xbf16>, vector<4x8xbf16>, vector<288x8xf32> -> vector<288x8xf32>
    %50 = arith.addf %44, %49 : vector<288x8xf32>
    %51 = vector.extract_strided_slice %1 {offsets = [38, 0], sizes = [288, 4], strides = [1, 1]} : vector<326x4xf32> to vector<288x4xf32>
    %52 = arith.truncf %51 : vector<288x4xf32> to vector<288x4xbf16>
    %c8 = arith.constant 8 : index
    %c0_27 = arith.constant 0 : index
    %c0_28 = arith.constant 0 : index
    %53 = vector.load %arg2[%c8, %c0_27, %c0_28] : memref<9x4x8xbf16, #tpu.memory_space<vmem>>, vector<1x4x8xbf16>
    %54 = vector.shape_cast %53 : vector<1x4x8xbf16> to vector<4x8xbf16>
    %cst_29 = arith.constant dense<0.000000e+00> : vector<288x8xf32>
    %55 = tpu.matmul %52, %54, %cst_29 {dimension_numbers = #tpu.dot_dimension_numbers<[1], [0], [0], [1], [0, 0, 1, 1], [], []>} : vector<288x4xbf16>, vector<4x8xbf16>, vector<288x8xf32> -> vector<288x8xf32>
    %56 = arith.addf %50, %55 : vector<288x8xf32>
    %c0_30 = arith.constant 0 : index
    %c0_31 = arith.constant 0 : index
    %c0_32 = arith.constant 0 : index
    %57 = vector.load %arg4[%c0_30, %c0_31, %c0_32] : memref<1x288x8xf32, #tpu.memory_space<vmem>>, vector<1x288x8xf32>
    %58 = vector.shape_cast %57 : vector<1x288x8xf32> to vector<288x8xf32>
    %59 = vector.shape_cast %56 : vector<288x8xf32> to vector<1x288x8xf32>
    tpu.vector_store %arg4[%c0_30, %c0_31, %c0_32], %59 {strides = array<i32>} : memref<1x288x8xf32, #tpu.memory_space<vmem>>, vector<1x288x8xf32>,
    %c0_33 = arith.constant 0 : index
    %c0_34 = arith.constant 0 : index
    %c0_35 = arith.constant 0 : index
    %60 = vector.load %arg3[%c0_33, %c0_34, %c0_35] : memref<1x288x1xf32, #tpu.memory_space<vmem>>, vector<1x288x1xf32>
    %61 = vector.shape_cast %60 : vector<1x288x1xf32> to vector<288x1xf32>
    %62 = vector.broadcast %61 : vector<288x1xf32> to vector<288x8xf32>
    %63 = arith.mulf %56, %62 : vector<288x8xf32>
    %cst_36 = arith.constant dense<0.000000e+00> : vector<8xf32>
    %64 = vector.multi_reduction <add>, %63, %cst_36 [0] : vector<288x8xf32> to vector<8xf32>
    %65 = vector.shape_cast %64 : vector<8xf32> to vector<1x8xf32>
    %c0_37 = arith.constant 0 : index
    %c0_38 = arith.constant 0 : index
    %c0_39 = arith.constant 0 : index
    %66 = vector.load %arg5[%c0_37, %c0_38, %c0_39] : memref<1x1x8xf32, #tpu.memory_space<vmem>>, vector<1x1x8xf32>
    %67 = vector.shape_cast %66 : vector<1x1x8xf32> to vector<1x8xf32>
    %68 = vector.shape_cast %65 : vector<1x8xf32> to vector<1x1x8xf32>
    tpu.vector_store %arg5[%c0_37, %c0_38, %c0_39], %68 {strides = array<i32>} : memref<1x1x8xf32, #tpu.memory_space<vmem>>, vector<1x1x8xf32>,
    %69 = arith.mulf %63, %56 : vector<288x8xf32>
    %cst_40 = arith.constant dense<0.000000e+00> : vector<8xf32>
    %70 = vector.multi_reduction <add>, %69, %cst_40 [0] : vector<288x8xf32> to vector<8xf32>
    %71 = vector.shape_cast %70 : vector<8xf32> to vector<1x8xf32>
    %c0_41 = arith.constant 0 : index
    %c0_42 = arith.constant 0 : index
    %c0_43 = arith.constant 0 : index
    %72 = vector.load %arg6[%c0_41, %c0_42, %c0_43] : memref<1x1x8xf32, #tpu.memory_space<vmem>>, vector<1x1x8xf32>
    %73 = vector.shape_cast %72 : vector<1x1x8xf32> to vector<1x8xf32>
    %74 = vector.shape_cast %71 : vector<1x8xf32> to vector<1x1x8xf32>
    tpu.vector_store %arg6[%c0_41, %c0_42, %c0_43], %74 {strides = array<i32>} : memref<1x1x8xf32, #tpu.memory_space<vmem>>, vector<1x1x8xf32>,
    return
  }
  func.func @transform_0(%arg0: i32) -> (i32, i32, i32) {
    %c0_i32 = arith.constant 0 : i32
    %c0_i32_0 = arith.constant 0 : i32
    %c0_i32_1 = arith.constant 0 : i32
    return %arg0, %c0_i32, %c0_i32_0 : i32, i32, i32
  }
  func.func @transform_1(%arg0: i32) -> (i32, i32, i32) {
    %c0_i32 = arith.constant 0 : i32
    %c0_i32_0 = arith.constant 0 : i32
    %c0_i32_1 = arith.constant 0 : i32
    %c0_i32_2 = arith.constant 0 : i32
    return %c0_i32, %c0_i32_0, %c0_i32_1 : i32, i32, i32
  }
  func.func @transform_2(%arg0: i32) -> (i32, i32, i32) {
    %c0_i32 = arith.constant 0 : i32
    %c0_i32_0 = arith.constant 0 : i32
    %c0_i32_1 = arith.constant 0 : i32
    %c0_i32_2 = arith.constant 0 : i32
    return %c0_i32, %c0_i32_0, %c0_i32_1 : i32, i32, i32
  }
  func.func @transform_3(%arg0: i32) -> (i32, i32, i32) {
    %c0_i32 = arith.constant 0 : i32
    %c0_i32_0 = arith.constant 0 : i32
    %c0_i32_1 = arith.constant 0 : i32
    return %arg0, %c0_i32, %c0_i32_0 : i32, i32, i32
  }
  func.func @transform_4(%arg0: i32) -> (i32, i32, i32) {
    %c0_i32 = arith.constant 0 : i32
    %c0_i32_0 = arith.constant 0 : i32
    %c0_i32_1 = arith.constant 0 : i32
    return %arg0, %c0_i32, %c0_i32_0 : i32, i32, i32
  }
  func.func @transform_5(%arg0: i32) -> (i32, i32, i32) {
    %c0_i32 = arith.constant 0 : i32
    %c0_i32_0 = arith.constant 0 : i32
    %c0_i32_1 = arith.constant 0 : i32
    return %arg0, %c0_i32, %c0_i32_0 : i32, i32, i32
  }
}

module attributes {stable_mosaic.version = 11 : i64} {
  func.func @_conv_stats_kernel(%arg0: i32, %arg1: memref<1x326x8xf32, #tpu.memory_space<vmem>>, %arg2: memref<9x8x8xbf16, #tpu.memory_space<vmem>>, %arg3: memref<1x288x1xf32, #tpu.memory_space<vmem>>, %arg4: memref<1x288x8xf32, #tpu.memory_space<vmem>>, %arg5: memref<1x1x8xf32, #tpu.memory_space<vmem>>, %arg6: memref<1x1x8xf32, #tpu.memory_space<vmem>>) attributes {dimension_semantics = [#tpu.dimension_semantics<parallel>], iteration_bounds = array<i64: 2>, scalar_prefetch = 0 : i64, scratch_operands = 0 : i64, tpu.core_type = #tpu.core_type<tc>, window_params = [{transform_indices = @transform_0, window_bounds = array<i64: 1, 326, 8>}, {pipeline_mode = #tpu.pipeline_mode<synchronous>, transform_indices = @transform_1, window_bounds = array<i64: 9, 8, 8>}, {pipeline_mode = #tpu.pipeline_mode<synchronous>, transform_indices = @transform_2, window_bounds = array<i64: 1, 288, 1>}, {transform_indices = @transform_3, window_bounds = array<i64: 1, 288, 8>}, {transform_indices = @transform_4, window_bounds = array<i64: 1, 1, 8>}, {transform_indices = @transform_5, window_bounds = array<i64: 1, 1, 8>}]} {
    %c0 = arith.constant 0 : index
    %c0_0 = arith.constant 0 : index
    %c0_1 = arith.constant 0 : index
    %0 = vector.load %arg1[%c0, %c0_0, %c0_1] : memref<1x326x8xf32, #tpu.memory_space<vmem>>, vector<1x326x8xf32>
    %1 = vector.shape_cast %0 : vector<1x326x8xf32> to vector<326x8xf32>
    %cst = arith.constant 0.000000e+00 : f32
    %2 = vector.broadcast %cst : f32 to vector<288x8xf32>
    %3 = vector.extract_strided_slice %1 {offsets = [0, 0], sizes = [288, 8], strides = [1, 1]} : vector<326x8xf32> to vector<288x8xf32>
    %4 = arith.truncf %3 : vector<288x8xf32> to vector<288x8xbf16>
    %c0_2 = arith.constant 0 : index
    %c0_3 = arith.constant 0 : index
    %c0_4 = arith.constant 0 : index
    %5 = vector.load %arg2[%c0_2, %c0_3, %c0_4] : memref<9x8x8xbf16, #tpu.memory_space<vmem>>, vector<1x8x8xbf16>
    %6 = vector.shape_cast %5 : vector<1x8x8xbf16> to vector<8x8xbf16>
    %cst_5 = arith.constant dense<0.000000e+00> : vector<288x8xf32>
    %7 = tpu.matmul %4, %6, %cst_5 {dimension_numbers = #tpu.dot_dimension_numbers<[1], [0], [0], [1], [0, 0, 1, 1], [], []>} : vector<288x8xbf16>, vector<8x8xbf16>, vector<288x8xf32> -> vector<288x8xf32>
    %8 = arith.addf %2, %7 : vector<288x8xf32>
    %9 = vector.extract_strided_slice %1 {offsets = [1, 0], sizes = [288, 8], strides = [1, 1]} : vector<326x8xf32> to vector<288x8xf32>
    %10 = arith.truncf %9 : vector<288x8xf32> to vector<288x8xbf16>
    %c1 = arith.constant 1 : index
    %c0_6 = arith.constant 0 : index
    %c0_7 = arith.constant 0 : index
    %11 = vector.load %arg2[%c1, %c0_6, %c0_7] : memref<9x8x8xbf16, #tpu.memory_space<vmem>>, vector<1x8x8xbf16>
    %12 = vector.shape_cast %11 : vector<1x8x8xbf16> to vector<8x8xbf16>
    %cst_8 = arith.constant dense<0.000000e+00> : vector<288x8xf32>
    %13 = tpu.matmul %10, %12, %cst_8 {dimension_numbers = #tpu.dot_dimension_numbers<[1], [0], [0], [1], [0, 0, 1, 1], [], []>} : vector<288x8xbf16>, vector<8x8xbf16>, vector<288x8xf32> -> vector<288x8xf32>
    %14 = arith.addf %8, %13 : vector<288x8xf32>
    %15 = vector.extract_strided_slice %1 {offsets = [2, 0], sizes = [288, 8], strides = [1, 1]} : vector<326x8xf32> to vector<288x8xf32>
    %16 = arith.truncf %15 : vector<288x8xf32> to vector<288x8xbf16>
    %c2 = arith.constant 2 : index
    %c0_9 = arith.constant 0 : index
    %c0_10 = arith.constant 0 : index
    %17 = vector.load %arg2[%c2, %c0_9, %c0_10] : memref<9x8x8xbf16, #tpu.memory_space<vmem>>, vector<1x8x8xbf16>
    %18 = vector.shape_cast %17 : vector<1x8x8xbf16> to vector<8x8xbf16>
    %cst_11 = arith.constant dense<0.000000e+00> : vector<288x8xf32>
    %19 = tpu.matmul %16, %18, %cst_11 {dimension_numbers = #tpu.dot_dimension_numbers<[1], [0], [0], [1], [0, 0, 1, 1], [], []>} : vector<288x8xbf16>, vector<8x8xbf16>, vector<288x8xf32> -> vector<288x8xf32>
    %20 = arith.addf %14, %19 : vector<288x8xf32>
    %21 = vector.extract_strided_slice %1 {offsets = [18, 0], sizes = [288, 8], strides = [1, 1]} : vector<326x8xf32> to vector<288x8xf32>
    %22 = arith.truncf %21 : vector<288x8xf32> to vector<288x8xbf16>
    %c3 = arith.constant 3 : index
    %c0_12 = arith.constant 0 : index
    %c0_13 = arith.constant 0 : index
    %23 = vector.load %arg2[%c3, %c0_12, %c0_13] : memref<9x8x8xbf16, #tpu.memory_space<vmem>>, vector<1x8x8xbf16>
    %24 = vector.shape_cast %23 : vector<1x8x8xbf16> to vector<8x8xbf16>
    %cst_14 = arith.constant dense<0.000000e+00> : vector<288x8xf32>
    %25 = tpu.matmul %22, %24, %cst_14 {dimension_numbers = #tpu.dot_dimension_numbers<[1], [0], [0], [1], [0, 0, 1, 1], [], []>} : vector<288x8xbf16>, vector<8x8xbf16>, vector<288x8xf32> -> vector<288x8xf32>
    %26 = arith.addf %20, %25 : vector<288x8xf32>
    %27 = vector.extract_strided_slice %1 {offsets = [19, 0], sizes = [288, 8], strides = [1, 1]} : vector<326x8xf32> to vector<288x8xf32>
    %28 = arith.truncf %27 : vector<288x8xf32> to vector<288x8xbf16>
    %c4 = arith.constant 4 : index
    %c0_15 = arith.constant 0 : index
    %c0_16 = arith.constant 0 : index
    %29 = vector.load %arg2[%c4, %c0_15, %c0_16] : memref<9x8x8xbf16, #tpu.memory_space<vmem>>, vector<1x8x8xbf16>
    %30 = vector.shape_cast %29 : vector<1x8x8xbf16> to vector<8x8xbf16>
    %cst_17 = arith.constant dense<0.000000e+00> : vector<288x8xf32>
    %31 = tpu.matmul %28, %30, %cst_17 {dimension_numbers = #tpu.dot_dimension_numbers<[1], [0], [0], [1], [0, 0, 1, 1], [], []>} : vector<288x8xbf16>, vector<8x8xbf16>, vector<288x8xf32> -> vector<288x8xf32>
    %32 = arith.addf %26, %31 : vector<288x8xf32>
    %33 = vector.extract_strided_slice %1 {offsets = [20, 0], sizes = [288, 8], strides = [1, 1]} : vector<326x8xf32> to vector<288x8xf32>
    %34 = arith.truncf %33 : vector<288x8xf32> to vector<288x8xbf16>
    %c5 = arith.constant 5 : index
    %c0_18 = arith.constant 0 : index
    %c0_19 = arith.constant 0 : index
    %35 = vector.load %arg2[%c5, %c0_18, %c0_19] : memref<9x8x8xbf16, #tpu.memory_space<vmem>>, vector<1x8x8xbf16>
    %36 = vector.shape_cast %35 : vector<1x8x8xbf16> to vector<8x8xbf16>
    %cst_20 = arith.constant dense<0.000000e+00> : vector<288x8xf32>
    %37 = tpu.matmul %34, %36, %cst_20 {dimension_numbers = #tpu.dot_dimension_numbers<[1], [0], [0], [1], [0, 0, 1, 1], [], []>} : vector<288x8xbf16>, vector<8x8xbf16>, vector<288x8xf32> -> vector<288x8xf32>
    %38 = arith.addf %32, %37 : vector<288x8xf32>
    %39 = vector.extract_strided_slice %1 {offsets = [36, 0], sizes = [288, 8], strides = [1, 1]} : vector<326x8xf32> to vector<288x8xf32>
    %40 = arith.truncf %39 : vector<288x8xf32> to vector<288x8xbf16>
    %c6 = arith.constant 6 : index
    %c0_21 = arith.constant 0 : index
    %c0_22 = arith.constant 0 : index
    %41 = vector.load %arg2[%c6, %c0_21, %c0_22] : memref<9x8x8xbf16, #tpu.memory_space<vmem>>, vector<1x8x8xbf16>
    %42 = vector.shape_cast %41 : vector<1x8x8xbf16> to vector<8x8xbf16>
    %cst_23 = arith.constant dense<0.000000e+00> : vector<288x8xf32>
    %43 = tpu.matmul %40, %42, %cst_23 {dimension_numbers = #tpu.dot_dimension_numbers<[1], [0], [0], [1], [0, 0, 1, 1], [], []>} : vector<288x8xbf16>, vector<8x8xbf16>, vector<288x8xf32> -> vector<288x8xf32>
    %44 = arith.addf %38, %43 : vector<288x8xf32>
    %45 = vector.extract_strided_slice %1 {offsets = [37, 0], sizes = [288, 8], strides = [1, 1]} : vector<326x8xf32> to vector<288x8xf32>
    %46 = arith.truncf %45 : vector<288x8xf32> to vector<288x8xbf16>
    %c7 = arith.constant 7 : index
    %c0_24 = arith.constant 0 : index
    %c0_25 = arith.constant 0 : index
    %47 = vector.load %arg2[%c7, %c0_24, %c0_25] : memref<9x8x8xbf16, #tpu.memory_space<vmem>>, vector<1x8x8xbf16>
    %48 = vector.shape_cast %47 : vector<1x8x8xbf16> to vector<8x8xbf16>
    %cst_26 = arith.constant dense<0.000000e+00> : vector<288x8xf32>
    %49 = tpu.matmul %46, %48, %cst_26 {dimension_numbers = #tpu.dot_dimension_numbers<[1], [0], [0], [1], [0, 0, 1, 1], [], []>} : vector<288x8xbf16>, vector<8x8xbf16>, vector<288x8xf32> -> vector<288x8xf32>
    %50 = arith.addf %44, %49 : vector<288x8xf32>
    %51 = vector.extract_strided_slice %1 {offsets = [38, 0], sizes = [288, 8], strides = [1, 1]} : vector<326x8xf32> to vector<288x8xf32>
    %52 = arith.truncf %51 : vector<288x8xf32> to vector<288x8xbf16>
    %c8 = arith.constant 8 : index
    %c0_27 = arith.constant 0 : index
    %c0_28 = arith.constant 0 : index
    %53 = vector.load %arg2[%c8, %c0_27, %c0_28] : memref<9x8x8xbf16, #tpu.memory_space<vmem>>, vector<1x8x8xbf16>
    %54 = vector.shape_cast %53 : vector<1x8x8xbf16> to vector<8x8xbf16>
    %cst_29 = arith.constant dense<0.000000e+00> : vector<288x8xf32>
    %55 = tpu.matmul %52, %54, %cst_29 {dimension_numbers = #tpu.dot_dimension_numbers<[1], [0], [0], [1], [0, 0, 1, 1], [], []>} : vector<288x8xbf16>, vector<8x8xbf16>, vector<288x8xf32> -> vector<288x8xf32>
    %56 = arith.addf %50, %55 : vector<288x8xf32>
    %c0_30 = arith.constant 0 : index
    %c0_31 = arith.constant 0 : index
    %c0_32 = arith.constant 0 : index
    %57 = vector.load %arg4[%c0_30, %c0_31, %c0_32] : memref<1x288x8xf32, #tpu.memory_space<vmem>>, vector<1x288x8xf32>
    %58 = vector.shape_cast %57 : vector<1x288x8xf32> to vector<288x8xf32>
    %59 = vector.shape_cast %56 : vector<288x8xf32> to vector<1x288x8xf32>
    tpu.vector_store %arg4[%c0_30, %c0_31, %c0_32], %59 {strides = array<i32>} : memref<1x288x8xf32, #tpu.memory_space<vmem>>, vector<1x288x8xf32>,
    %c0_33 = arith.constant 0 : index
    %c0_34 = arith.constant 0 : index
    %c0_35 = arith.constant 0 : index
    %60 = vector.load %arg3[%c0_33, %c0_34, %c0_35] : memref<1x288x1xf32, #tpu.memory_space<vmem>>, vector<1x288x1xf32>
    %61 = vector.shape_cast %60 : vector<1x288x1xf32> to vector<288x1xf32>
    %62 = vector.broadcast %61 : vector<288x1xf32> to vector<288x8xf32>
    %63 = arith.mulf %56, %62 : vector<288x8xf32>
    %cst_36 = arith.constant dense<0.000000e+00> : vector<8xf32>
    %64 = vector.multi_reduction <add>, %63, %cst_36 [0] : vector<288x8xf32> to vector<8xf32>
    %65 = vector.shape_cast %64 : vector<8xf32> to vector<1x8xf32>
    %c0_37 = arith.constant 0 : index
    %c0_38 = arith.constant 0 : index
    %c0_39 = arith.constant 0 : index
    %66 = vector.load %arg5[%c0_37, %c0_38, %c0_39] : memref<1x1x8xf32, #tpu.memory_space<vmem>>, vector<1x1x8xf32>
    %67 = vector.shape_cast %66 : vector<1x1x8xf32> to vector<1x8xf32>
    %68 = vector.shape_cast %65 : vector<1x8xf32> to vector<1x1x8xf32>
    tpu.vector_store %arg5[%c0_37, %c0_38, %c0_39], %68 {strides = array<i32>} : memref<1x1x8xf32, #tpu.memory_space<vmem>>, vector<1x1x8xf32>,
    %69 = arith.mulf %63, %56 : vector<288x8xf32>
    %cst_40 = arith.constant dense<0.000000e+00> : vector<8xf32>
    %70 = vector.multi_reduction <add>, %69, %cst_40 [0] : vector<288x8xf32> to vector<8xf32>
    %71 = vector.shape_cast %70 : vector<8xf32> to vector<1x8xf32>
    %c0_41 = arith.constant 0 : index
    %c0_42 = arith.constant 0 : index
    %c0_43 = arith.constant 0 : index
    %72 = vector.load %arg6[%c0_41, %c0_42, %c0_43] : memref<1x1x8xf32, #tpu.memory_space<vmem>>, vector<1x1x8xf32>
    %73 = vector.shape_cast %72 : vector<1x1x8xf32> to vector<1x8xf32>
    %74 = vector.shape_cast %71 : vector<1x8xf32> to vector<1x1x8xf32>
    tpu.vector_store %arg6[%c0_41, %c0_42, %c0_43], %74 {strides = array<i32>} : memref<1x1x8xf32, #tpu.memory_space<vmem>>, vector<1x1x8xf32>,
    return
  }
  func.func @transform_0(%arg0: i32) -> (i32, i32, i32) {
    %c0_i32 = arith.constant 0 : i32
    %c0_i32_0 = arith.constant 0 : i32
    %c0_i32_1 = arith.constant 0 : i32
    return %arg0, %c0_i32, %c0_i32_0 : i32, i32, i32
  }
  func.func @transform_1(%arg0: i32) -> (i32, i32, i32) {
    %c0_i32 = arith.constant 0 : i32
    %c0_i32_0 = arith.constant 0 : i32
    %c0_i32_1 = arith.constant 0 : i32
    %c0_i32_2 = arith.constant 0 : i32
    return %c0_i32, %c0_i32_0, %c0_i32_1 : i32, i32, i32
  }
  func.func @transform_2(%arg0: i32) -> (i32, i32, i32) {
    %c0_i32 = arith.constant 0 : i32
    %c0_i32_0 = arith.constant 0 : i32
    %c0_i32_1 = arith.constant 0 : i32
    %c0_i32_2 = arith.constant 0 : i32
    return %c0_i32, %c0_i32_0, %c0_i32_1 : i32, i32, i32
  }
  func.func @transform_3(%arg0: i32) -> (i32, i32, i32) {
    %c0_i32 = arith.constant 0 : i32
    %c0_i32_0 = arith.constant 0 : i32
    %c0_i32_1 = arith.constant 0 : i32
    return %arg0, %c0_i32, %c0_i32_0 : i32, i32, i32
  }
  func.func @transform_4(%arg0: i32) -> (i32, i32, i32) {
    %c0_i32 = arith.constant 0 : i32
    %c0_i32_0 = arith.constant 0 : i32
    %c0_i32_1 = arith.constant 0 : i32
    return %arg0, %c0_i32, %c0_i32_0 : i32, i32, i32
  }
  func.func @transform_5(%arg0: i32) -> (i32, i32, i32) {
    %c0_i32 = arith.constant 0 : i32
    %c0_i32_0 = arith.constant 0 : i32
    %c0_i32_1 = arith.constant 0 : i32
    return %arg0, %c0_i32, %c0_i32_0 : i32, i32, i32
  }
}

module attributes {stable_mosaic.version = 11 : i64} {
  func.func @_bn_relu_maxpool_kernel(%arg0: i32, %arg1: memref<1x64x8xf32, #tpu.memory_space<vmem>>, %arg2: memref<1x64x8xf32, #tpu.memory_space<vmem>>, %arg3: memref<1x64x8xf32, #tpu.memory_space<vmem>>, %arg4: memref<1x64x8xf32, #tpu.memory_space<vmem>>, %arg5: memref<1x8xf32, #tpu.memory_space<vmem>>, %arg6: memref<1x8xf32, #tpu.memory_space<vmem>>, %arg7: memref<1x64x8xi32, #tpu.memory_space<vmem>>, %arg8: memref<1x64x8xf32, #tpu.memory_space<vmem>>, %arg9: memref<1x64x8xi32, #tpu.memory_space<vmem>>) attributes {dimension_semantics = [#tpu.dimension_semantics<parallel>], iteration_bounds = array<i64: 2>, scalar_prefetch = 0 : i64, scratch_operands = 0 : i64, tpu.core_type = #tpu.core_type<tc>, window_params = [{transform_indices = @transform_0, window_bounds = array<i64: 1, 64, 8>}, {transform_indices = @transform_1, window_bounds = array<i64: 1, 64, 8>}, {transform_indices = @transform_2, window_bounds = array<i64: 1, 64, 8>}, {transform_indices = @transform_3, window_bounds = array<i64: 1, 64, 8>}, {pipeline_mode = #tpu.pipeline_mode<synchronous>, transform_indices = @transform_4, window_bounds = array<i64: 1, 8>}, {pipeline_mode = #tpu.pipeline_mode<synchronous>, transform_indices = @transform_5, window_bounds = array<i64: 1, 8>}, {pipeline_mode = #tpu.pipeline_mode<synchronous>, transform_indices = @transform_6, window_bounds = array<i64: 1, 64, 8>}, {transform_indices = @transform_7, window_bounds = array<i64: 1, 64, 8>}, {transform_indices = @transform_8, window_bounds = array<i64: 1, 64, 8>}]} {
    %c0 = arith.constant 0 : index
    %c0_0 = arith.constant 0 : index
    %0 = vector.load %arg5[%c0, %c0_0] : memref<1x8xf32, #tpu.memory_space<vmem>>, vector<1x8xf32>
    %c0_1 = arith.constant 0 : index
    %c0_2 = arith.constant 0 : index
    %1 = vector.load %arg6[%c0_1, %c0_2] : memref<1x8xf32, #tpu.memory_space<vmem>>, vector<1x8xf32>
    %c0_3 = arith.constant 0 : index
    %c0_4 = arith.constant 0 : index
    %c0_5 = arith.constant 0 : index
    %2 = vector.load %arg1[%c0_3, %c0_4, %c0_5] : memref<1x64x8xf32, #tpu.memory_space<vmem>>, vector<1x64x8xf32>
    %3 = vector.shape_cast %2 : vector<1x64x8xf32> to vector<64x8xf32>
    %4 = vector.broadcast %0 : vector<1x8xf32> to vector<64x8xf32>
    %5 = arith.mulf %3, %4 : vector<64x8xf32>
    %6 = vector.broadcast %1 : vector<1x8xf32> to vector<64x8xf32>
    %7 = arith.addf %5, %6 : vector<64x8xf32>
    %cst = arith.constant 0.000000e+00 : f32
    %8 = vector.broadcast %cst : f32 to vector<64x8xf32>
    %9 = arith.maximumf %7, %8 : vector<64x8xf32>
    %c0_6 = arith.constant 0 : index
    %c0_7 = arith.constant 0 : index
    %c0_8 = arith.constant 0 : index
    %10 = vector.load %arg2[%c0_6, %c0_7, %c0_8] : memref<1x64x8xf32, #tpu.memory_space<vmem>>, vector<1x64x8xf32>
    %11 = vector.shape_cast %10 : vector<1x64x8xf32> to vector<64x8xf32>
    %12 = vector.broadcast %0 : vector<1x8xf32> to vector<64x8xf32>
    %13 = arith.mulf %11, %12 : vector<64x8xf32>
    %14 = vector.broadcast %1 : vector<1x8xf32> to vector<64x8xf32>
    %15 = arith.addf %13, %14 : vector<64x8xf32>
    %cst_9 = arith.constant 0.000000e+00 : f32
    %16 = vector.broadcast %cst_9 : f32 to vector<64x8xf32>
    %17 = arith.maximumf %15, %16 : vector<64x8xf32>
    %c0_10 = arith.constant 0 : index
    %c0_11 = arith.constant 0 : index
    %c0_12 = arith.constant 0 : index
    %18 = vector.load %arg3[%c0_10, %c0_11, %c0_12] : memref<1x64x8xf32, #tpu.memory_space<vmem>>, vector<1x64x8xf32>
    %19 = vector.shape_cast %18 : vector<1x64x8xf32> to vector<64x8xf32>
    %20 = vector.broadcast %0 : vector<1x8xf32> to vector<64x8xf32>
    %21 = arith.mulf %19, %20 : vector<64x8xf32>
    %22 = vector.broadcast %1 : vector<1x8xf32> to vector<64x8xf32>
    %23 = arith.addf %21, %22 : vector<64x8xf32>
    %cst_13 = arith.constant 0.000000e+00 : f32
    %24 = vector.broadcast %cst_13 : f32 to vector<64x8xf32>
    %25 = arith.maximumf %23, %24 : vector<64x8xf32>
    %c0_14 = arith.constant 0 : index
    %c0_15 = arith.constant 0 : index
    %c0_16 = arith.constant 0 : index
    %26 = vector.load %arg4[%c0_14, %c0_15, %c0_16] : memref<1x64x8xf32, #tpu.memory_space<vmem>>, vector<1x64x8xf32>
    %27 = vector.shape_cast %26 : vector<1x64x8xf32> to vector<64x8xf32>
    %28 = vector.broadcast %0 : vector<1x8xf32> to vector<64x8xf32>
    %29 = arith.mulf %27, %28 : vector<64x8xf32>
    %30 = vector.broadcast %1 : vector<1x8xf32> to vector<64x8xf32>
    %31 = arith.addf %29, %30 : vector<64x8xf32>
    %cst_17 = arith.constant 0.000000e+00 : f32
    %32 = vector.broadcast %cst_17 : f32 to vector<64x8xf32>
    %33 = arith.maximumf %31, %32 : vector<64x8xf32>
    %34 = arith.maximumf %9, %17 : vector<64x8xf32>
    %35 = arith.maximumf %25, %33 : vector<64x8xf32>
    %36 = arith.maximumf %34, %35 : vector<64x8xf32>
    %c0_18 = arith.constant 0 : index
    %c0_19 = arith.constant 0 : index
    %c0_20 = arith.constant 0 : index
    %37 = vector.load %arg7[%c0_18, %c0_19, %c0_20] : memref<1x64x8xi32, #tpu.memory_space<vmem>>, vector<1x64x8xi32>
    %38 = vector.shape_cast %37 : vector<1x64x8xi32> to vector<64x8xi32>
    %39 = arith.cmpf oeq, %9, %36 : vector<64x8xf32>
    %40 = arith.cmpf oeq, %17, %36 : vector<64x8xf32>
    %c1_i32 = arith.constant 1 : i32
    %41 = vector.broadcast %c1_i32 : i32 to vector<64x8xi32>
    %42 = arith.addi %38, %41 : vector<64x8xi32>
    %43 = arith.cmpf oeq, %25, %36 : vector<64x8xf32>
    %c16_i32 = arith.constant 16 : i32
    %44 = vector.broadcast %c16_i32 : i32 to vector<64x8xi32>
    %45 = arith.addi %38, %44 : vector<64x8xi32>
    %c16_i32_21 = arith.constant 16 : i32
    %46 = vector.broadcast %c16_i32_21 : i32 to vector<64x8xi32>
    %47 = arith.addi %38, %46 : vector<64x8xi32>
    %c1_i32_22 = arith.constant 1 : i32
    %48 = vector.broadcast %c1_i32_22 : i32 to vector<64x8xi32>
    %49 = arith.addi %47, %48 : vector<64x8xi32>
    %50 = arith.select %43, %45, %49 : vector<64x8xi1>, vector<64x8xi32>
    %51 = arith.select %40, %42, %50 : vector<64x8xi1>, vector<64x8xi32>
    %52 = arith.select %39, %38, %51 : vector<64x8xi1>, vector<64x8xi32>
    %c0_23 = arith.constant 0 : index
    %c0_24 = arith.constant 0 : index
    %c0_25 = arith.constant 0 : index
    %53 = vector.load %arg8[%c0_23, %c0_24, %c0_25] : memref<1x64x8xf32, #tpu.memory_space<vmem>>, vector<1x64x8xf32>
    %54 = vector.shape_cast %53 : vector<1x64x8xf32> to vector<64x8xf32>
    %55 = vector.shape_cast %36 : vector<64x8xf32> to vector<1x64x8xf32>
    tpu.vector_store %arg8[%c0_23, %c0_24, %c0_25], %55 {strides = array<i32>} : memref<1x64x8xf32, #tpu.memory_space<vmem>>, vector<1x64x8xf32>,
    %c0_26 = arith.constant 0 : index
    %c0_27 = arith.constant 0 : index
    %c0_28 = arith.constant 0 : index
    %56 = vector.load %arg9[%c0_26, %c0_27, %c0_28] : memref<1x64x8xi32, #tpu.memory_space<vmem>>, vector<1x64x8xi32>
    %57 = vector.shape_cast %56 : vector<1x64x8xi32> to vector<64x8xi32>
    %58 = vector.shape_cast %52 : vector<64x8xi32> to vector<1x64x8xi32>
    tpu.vector_store %arg9[%c0_26, %c0_27, %c0_28], %58 {strides = array<i32>} : memref<1x64x8xi32, #tpu.memory_space<vmem>>, vector<1x64x8xi32>,
    return
  }
  func.func @transform_0(%arg0: i32) -> (i32, i32, i32) {
    %c0_i32 = arith.constant 0 : i32
    %c0_i32_0 = arith.constant 0 : i32
    %c0_i32_1 = arith.constant 0 : i32
    return %arg0, %c0_i32, %c0_i32_0 : i32, i32, i32
  }
  func.func @transform_1(%arg0: i32) -> (i32, i32, i32) {
    %c0_i32 = arith.constant 0 : i32
    %c0_i32_0 = arith.constant 0 : i32
    %c0_i32_1 = arith.constant 0 : i32
    return %arg0, %c0_i32, %c0_i32_0 : i32, i32, i32
  }
  func.func @transform_2(%arg0: i32) -> (i32, i32, i32) {
    %c0_i32 = arith.constant 0 : i32
    %c0_i32_0 = arith.constant 0 : i32
    %c0_i32_1 = arith.constant 0 : i32
    return %arg0, %c0_i32, %c0_i32_0 : i32, i32, i32
  }
  func.func @transform_3(%arg0: i32) -> (i32, i32, i32) {
    %c0_i32 = arith.constant 0 : i32
    %c0_i32_0 = arith.constant 0 : i32
    %c0_i32_1 = arith.constant 0 : i32
    return %arg0, %c0_i32, %c0_i32_0 : i32, i32, i32
  }
  func.func @transform_4(%arg0: i32) -> (i32, i32) {
    %c0_i32 = arith.constant 0 : i32
    %c0_i32_0 = arith.constant 0 : i32
    %c0_i32_1 = arith.constant 0 : i32
    return %c0_i32, %c0_i32_0 : i32, i32
  }
  func.func @transform_5(%arg0: i32) -> (i32, i32) {
    %c0_i32 = arith.constant 0 : i32
    %c0_i32_0 = arith.constant 0 : i32
    %c0_i32_1 = arith.constant 0 : i32
    return %c0_i32, %c0_i32_0 : i32, i32
  }
  func.func @transform_6(%arg0: i32) -> (i32, i32, i32) {
    %c0_i32 = arith.constant 0 : i32
    %c0_i32_0 = arith.constant 0 : i32
    %c0_i32_1 = arith.constant 0 : i32
    %c0_i32_2 = arith.constant 0 : i32
    return %c0_i32, %c0_i32_0, %c0_i32_1 : i32, i32, i32
  }
  func.func @transform_7(%arg0: i32) -> (i32, i32, i32) {
    %c0_i32 = arith.constant 0 : i32
    %c0_i32_0 = arith.constant 0 : i32
    %c0_i32_1 = arith.constant 0 : i32
    return %arg0, %c0_i32, %c0_i32_0 : i32, i32, i32
  }
  func.func @transform_8(%arg0: i32) -> (i32, i32, i32) {
    %c0_i32 = arith.constant 0 : i32
    %c0_i32_0 = arith.constant 0 : i32
    %c0_i32_1 = arith.constant 0 : i32
    return %arg0, %c0_i32, %c0_i32_0 : i32, i32, i32
  }
}

</mosaic_0001>

<bundles_post_ra>
// kernel: encoder_forward.5
= control target key start
LH: loop header
LB: loop body
LE: loop exit
PB: predicated region body
PF: predicated region fallthrough
CT: control target
= control target key end

     0   :  { %s517_s12 = smov 0   ;;  %s519_s13 = smov 0   ;;  %s672_s0 = inlined_call_operand.vmem [shape: f32[2,288,8], index: 0, kind: input, shape index: {}]   ;;  %s673_s1 = inlined_call_operand.vmem [shape: f32[1,8], index: 1, kind: input, shape index: {}]   ;;  %s674_s2 = inlined_call_operand.vmem [shape: f32[1,8], index: 2, kind: input, shape index: {}]   ;;  %s675_s3 = inlined_call_operand.vmem [shape: f32[2,288,8], index: 3, kind: output, shape index: {}]  }
   0x1   :  { %s521_s14 = smov 0   ;;  %s523_s15 = smov 0  }
   0x2   :  { %s525_s16 = smov 0  }
   0x3 LB: > { %s22_s17 = sadd.s32 1, %s487_s14  ;;  %s25_s18 = sadd.s32 1, %s491_s15  ;;  %s495_s16 = sphi %s525_s16, %s13_s16   ;;  %s491_s15 = sphi %s523_s15, %s679_s15   ;;  %s487_s14 = sphi %s521_s14, %s678_s14   ;;  %s483_s13 = sphi %s519_s13, %s677_s13   ;;  %s479_s12 = sphi %s517_s12, %s676_s12  }
   0x4   : > { %p23_p0 = scmp.ge.s32.totalorder %s22_s17, 2  ;;  %p409_p1 = scmp.ge.s32.totalorder %s495_s16, 1 }
   0x5   : > { %p158_p2 = scmp.lt.s32.totalorder %s495_s16, 5 }
   0x6   : > { %s681_s17 = smov (%p23_p0, %s22_s17), 0  ;;  %s683_s18 = smov (!%p23_p0, %s25_s18), %s491_s15 }
   0x7   : > { %p159_p3 = pnand %p409_p1, %p158_p2  ;;  %p27_p4 = scmp.ge.s32.totalorder %s683_s18, 2 }
   0x8   : > { %s190_s19 = smul.u32 (!%p159_p3), 18, %s479_s12  ;;  %p191_p5 = scmp.lt.s32.totalorder (!%p159_p3), %s483_s13, 1 }
   0x9   : > { %s685_s18 = smov (%p27_p4, %s683_s18), 0  ;;  %162 = sbr.rel (%p159_p3) target bundleno = 40 (0x28), region = 32 }
   0xa   : > { %p193_p6 = scmp.lt.s32.totalorder (!%p159_p3), %s190_s19, 35 }
   0xe   : > { %s687_s13 = smov (!%p191_p5, %s483_s13), 1  ;;  %s689_s19 = smov (!%p193_p6, %s190_s19), 35  ;;  %v550_v0 = vld [vmem:[%s673_s1] ss:$0 sm:$0xff]  ;;  %vm296_vm0 = vcmask 64512  }
   0xf   : > { %s416_s20 = smul.u32 36, %s687_s13  ;;  %v560_v1 = vld [vmem:[%s674_s2] ss:$0 sm:$0xff] }
  0x11   : > { %s196_s21 = sadd.s32 %s416_s20, %s689_s19 }
  0x12   : > { %s410_s22 = sshll.u32 %s196_s21, 3 }
  0x13   : > { %s555_s27 = scalar_lea.vmem %s672_s0, %s410_s22  ;;  %s583_s5 = scalar_lea.vmem %s675_s3, %s410_s22 }
  0x14   : > { %v210_v2 = vld [vmem:[%s555_s27] sm:$0xff]  ;;  %v211_v3 = vld [vmem:[%s555_s27 + $0x8] sm:$0xff]  ;;  %v212_v4 = vld [vmem:[%s555_s27 + $0x10] sm:$0xff] }
  0x15   : > { %v235_v5 = vmul.f32 %v550_v0, %v210_v2  ;;  %v236_v6 = vmul.f32 %v550_v0, %v211_v3  ;;  %v237_v7 = vmul.f32 %v550_v0, %v212_v4  ;;  %v213_v8 = vld [vmem:[%s555_s27 + $0x18] sm:$0xff]  ;;  %v214_v9 = vld [vmem:[%s555_s27 + $0x20] sm:$0xff]  ;;  %v215_v10 = vld [vmem:[%s555_s27 + $0x28] sm:$0xff] }
  0x16   : > { %v238_v11 = vmul.f32 %v550_v0, %v213_v8  ;;  %v239_v12 = vmul.f32 %v550_v0, %v214_v9  ;;  %v240_v13 = vmul.f32 %v550_v0, %v215_v10  ;;  %v216_v14 = vld [vmem:[%s555_s27 + $0x30] sm:$0xff]  ;;  %v217_v15 = vld [vmem:[%s555_s27 + $0x38] sm:$0xff]  ;;  %v218_v24 = vld [vmem:[%s555_s27 + $0x40] sm:$0xff] }
  0x17   : > { %v260_v16 = vadd.f32 %v560_v1, %v235_v5  ;;  %v261_v17 = vadd.f32 %v560_v1, %v236_v6  ;;  %v262_v18 = vadd.f32 %v560_v1, %v237_v7  ;;  %v241_v19 = vmul.f32 %v550_v0, %v216_v14  ;;  %v219_v25 = vld [vmem:[%s555_s27 + $0x48] sm:$0xff]  ;;  %v220_v26 = vld [vmem:[%s555_s27 + $0x50] sm:$0xff]  ;;  %v221_v31 = vld [vmem:[%s555_s27 + $0x58] sm:$0xff] }
  0x18   : > { %v263_v20 = vadd.f32 %v560_v1, %v238_v11  ;;  %v264_v21 = vadd.f32 %v560_v1, %v239_v12  ;;  %v265_v22 = vadd.f32 %v560_v1, %v240_v13  ;;  %v242_v23 = vmul.f32 %v550_v0, %v217_v15  ;;  %v222_v32 = vld [vmem:[%s555_s27 + $0x60] sm:$0xff]  ;;  %v223_v33 = vld [vmem:[%s555_s27 + $0x68] sm:$0xff]  ;;  %v224_v38 = vld [vmem:[%s555_s27 + $0x70] sm:$0xff] }
  0x19   : > { %v278_v27 = vmax.f32 %v260_v16, 0.0  ;;  %v279_v28 = vmax.f32 %v261_v17, 0.0  ;;  %v280_v29 = vmax.f32 %v262_v18, 0.0  ;;  %v266_v30 = vadd.f32 %v560_v1, %v241_v19  ;;  %v225_v43 = vld [vmem:[%s555_s27 + $0x78] sm:$0xff]  ;;  %v226_v56 = vld [vmem:[%s555_s27 + $0x80] sm:$0xff]  ;;  %v227_v57 = vld [vmem:[%s555_s27 + $0x88] sm:$0xff] }
  0x1a   : > { %v281_v34 = vmax.f32 %v263_v20, 0.0  ;;  %v282_v35 = vmax.f32 %v264_v21, 0.0  ;;  %v283_v36 = vmax.f32 %v265_v22, 0.0  ;;  %v267_v37 = vadd.f32 %v560_v1, %v242_v23 }
  0x1b   : > { %297 = vst.msk [vmem:[%s583_s5] sm:$0xff] %vm296_vm0, %v278_v27  ;;  %298 = vst.msk [vmem:[%s583_s5 + $0x8] sm:$0xff] %vm296_vm0, %v279_v28  ;;  %v284_v39 = vmax.f32 %v266_v30, 0.0  ;;  %v243_v40 = vmul.f32 %v550_v0, %v218_v24  ;;  %v244_v41 = vmul.f32 %v550_v0, %v219_v25  ;;  %v245_v42 = vmul.f32 %v550_v0, %v220_v26 }
  0x1c   : > { %299 = vst.msk [vmem:[%s583_s5 + $0x10] sm:$0xff] %vm296_vm0, %v280_v29  ;;  %300 = vst.msk [vmem:[%s583_s5 + $0x18] sm:$0xff] %vm296_vm0, %v281_v34  ;;  %v285_v44 = vmax.f32 %v267_v37, 0.0  ;;  %v246_v45 = vmul.f32 %v550_v0, %v221_v31  ;;  %v247_v46 = vmul.f32 %v550_v0, %v222_v32  ;;  %v248_v47 = vmul.f32 %v550_v0, %v223_v33 }
  0x1d   : > { %301 = vst.msk [vmem:[%s583_s5 + $0x20] sm:$0xff] %vm296_vm0, %v282_v35  ;;  %302 = vst.msk [vmem:[%s583_s5 + $0x28] sm:$0xff] %vm296_vm0, %v283_v36  ;;  %v268_v48 = vadd.f32 %v560_v1, %v243_v40  ;;  %v269_v49 = vadd.f32 %v560_v1, %v244_v41  ;;  %v270_v50 = vadd.f32 %v560_v1, %v245_v42 }
  0x1e   : > { %303 = vst.msk [vmem:[%s583_s5 + $0x30] sm:$0xff] %vm296_vm0, %v284_v39  ;;  %v249_v51 = vmul.f32 %v550_v0, %v224_v38  ;;  %304 = vst.msk [vmem:[%s583_s5 + $0x38] sm:$0xff] %vm296_vm0, %v285_v44  ;;  %v271_v52 = vadd.f32 %v560_v1, %v246_v45  ;;  %v272_v53 = vadd.f32 %v560_v1, %v247_v46 }
  0x1f   : > { %v273_v54 = vadd.f32 %v560_v1, %v248_v47  ;;  %v250_v55 = vmul.f32 %v550_v0, %v225_v43  ;;  %v286_v58 = vmax.f32 %v268_v48, 0.0  ;;  %v287_v59 = vmax.f32 %v269_v49, 0.0 }
  0x20   : > { %v288_v60 = vmax.f32 %v270_v50, 0.0  ;;  %v274_v61 = vadd.f32 %v560_v1, %v249_v51  ;;  %v289_v62 = vmax.f32 %v271_v52, 0.0  ;;  %v290_v63 = vmax.f32 %v272_v53, 0.0 }
  0x21   : > { %v291_v2 = vmax.f32 %v273_v54, 0.0  ;;  %v275_v3 = vadd.f32 %v560_v1, %v250_v55  ;;  %305 = vst.msk [vmem:[%s583_s5 + $0x40] sm:$0xff] %vm296_vm0, %v286_v58  ;;  %306 = vst.msk [vmem:[%s583_s5 + $0x48] sm:$0xff] %vm296_vm0, %v287_v59  ;;  %v251_v5 = vmul.f32 %v550_v0, %v226_v56  ;;  %v252_v6 = vmul.f32 %v550_v0, %v227_v57 }
  0x22   : > { %307 = vst.msk [vmem:[%s583_s5 + $0x50] sm:$0xff] %vm296_vm0, %v288_v60  ;;  %v292_v4 = vmax.f32 %v274_v61, 0.0  ;;  %308 = vst.msk [vmem:[%s583_s5 + $0x58] sm:$0xff] %vm296_vm0, %v289_v62 }
  0x23   : > { %309 = vst.msk [vmem:[%s583_s5 + $0x60] sm:$0xff] %vm296_vm0, %v290_v63  ;;  %310 = vst.msk [vmem:[%s583_s5 + $0x68] sm:$0xff] %vm296_vm0, %v291_v2  ;;  %v293_v7 = vmax.f32 %v275_v3, 0.0  ;;  %v276_v8 = vadd.f32 %v560_v1, %v251_v5  ;;  %v277_v9 = vadd.f32 %v560_v1, %v252_v6 }
  0x24   : > { %311 = vst.msk [vmem:[%s583_s5 + $0x70] sm:$0xff] %vm296_vm0, %v292_v4 }
  0x25   : > { %312 = vst.msk [vmem:[%s583_s5 + $0x78] sm:$0xff] %vm296_vm0, %v293_v7  ;;  %v294_v10 = vmax.f32 %v276_v8, 0.0  ;;  %v295_v11 = vmax.f32 %v277_v9, 0.0 }
  0x27   : > { %313 = vst.msk [vmem:[%s583_s5 + $0x80] sm:$0xff] %vm296_vm0, %v294_v10  ;;  %314 = vst.msk [vmem:[%s583_s5 + $0x88] sm:$0xff] %vm296_vm0, %v295_v11 }
  0x28 PF: > { %s13_s16 = sadd.s32 1, %s495_s16   ;;  %s676_s12 = smov %s487_s14 }
  0x29   : > { %p10_p7 = scmp.ge.s32.totalorder %s13_s16, 6   ;;  %s677_s13 = smov %s491_s15 }
  0x2a   : > { %s678_s14 = smov %s681_s17  ;;  %s679_s15 = smov %s685_s18 }
  0x2b   :  { %12 = sbr.rel (!%p10_p7) target bundleno = 3 (0x3), region = 62 }

// kernel: encoder_forward.4
= control target key start
LH: loop header
LB: loop body
LE: loop exit
PB: predicated region body
PF: predicated region fallthrough
CT: control target
= control target key end

     0   :  { %s4379_s18 = smov 0   ;;  %s6017_s0 = inlined_call_operand.vmem [shape: f32[2,326,4], index: 0, kind: input, shape index: {}]   ;;  %s6018_s1 = inlined_call_operand.vmem [shape: bf16[9,4,8], index: 1, kind: input, shape index: {}]   ;;  %s6019_s2 = inlined_call_operand.vmem [shape: f32[1,288,1], index: 2, kind: input, shape index: {}]   ;;  %s6020_s3 = inlined_call_operand.vmem [shape: f32[2,288,8], index: 3, kind: output, shape index: {0}]   ;;  %s6021_s4 = inlined_call_operand.vmem [shape: f32[2,1,8], index: 4, kind: output, shape index: {1}]   ;;  %s6022_s5 = inlined_call_operand.vmem [shape: f32[2,1,8], index: 5, kind: output, shape index: {2}]  }
   0x1 LB: > { %s3623_s19 = sadd.s32 4294967295, %s4346_s18   ;;  %p3627_p0 = scmp.ge.s32.totalorder %s4346_s18, 1  ;;  %s4346_s18 = sphi %s4379_s18, %s16_s18  }
   0x2   : > { %p192_p1 = scmp.lt.s32.totalorder %s4346_s18, 3 }
   0x4   : > { %p193_p2 = pnand %p3627_p0, %p192_p1 }
   0x6   : > { %196 = sbr.rel (%p193_p2) target bundleno = 574 (0x23e), region = 32 }
   0xb   : > { %v3630_v0 = vld [vmem:[%s6018_s1 + $0x2] sm:$0x3]  ;;  %vm510_vm0 = vcmask 1041408   ;;  %p226_p3 = scmp.lt.s32.totalorder %s3623_s19, 1  ;;  %v3667_v2 = vld [vmem:[%s6018_s1 + $0x4] sm:$0x3] }
   0xc   : > { %4317 = vmatprep.subr.msk.bf16.mxu0 %vm510_vm0, %v3630_v0  ;;  %4318 = vmatprep.subr.msk.bf16.mxu1 %vm510_vm0, %v3630_v0  ;;  %v512_v1 = vsel %vm510_vm0, %v3630_v0, 0  ;;  %v302_v3 = vld [vmem:[%s6018_s1] sm:$0x3]  ;;  %vm306_vm1 = vsmask.f32 7424  ;;  %vm455_vm2 = vcmask 31744  }
   0xd   : > { %3974 = vmatpush3.bf16.msra.mxu0 %v512_v1  ;;  %4316 = vmatpush3.bf16.msra.mxu1 %v512_v1  ;;  %s6196_s19 = smov (!%p226_p3, %s3623_s19), 1  ;;  %v1021_v22 = vsel %vm510_vm0, %v3667_v2, 0  ;;  %v728_v36 = vsel %vm510_vm0, %v302_v3, 0  ;;  %v4504_v1 = vld [vmem:[%s6018_s1 + $0x6] sm:$0x3]  ;;  %vm928_vm3 = vcmask 1046528  }
   0xe   : > { %4320 = vmatprep.subr.msk.bf16.mxu0 %vm510_vm0, %v3667_v2  ;;  %4319 = vmatprep.subr.msk.bf16.mxu1 %vm510_vm0, %v302_v3  ;;  %s4327_s26 = smul.u32 328, %s6196_s19  ;;  %vm1470_vm4 = vsmask.f32 6400  ;;  %vm1828_vm5 = vcmask 1045504   ;;  %vm2370_vm6 = vsmask.f32 5376  ;;  %s238_s6 = scalar_lea.vmem %s6021_s4, %s6196_s19 }
   0xf   : > { %vm2728_vm7 = vcmask 1044480   ;;  %vm3036_vm8 = vcmask 64512   ;;  %vm3402_vm9 = vcmask 57344   ;;  %s241_s9 = scalar_lea.vmem %s6022_s5, %s6196_s19 }
  0x10   : > { %s4407_s29 = scalar_lea.vmem %s6017_s0, %s4327_s26 }
  0x11   : > { %v243_v4 = vld [vmem:[%s4407_s29] sm:$0xff]  ;;  %v244_v5 = vld [vmem:[%s4407_s29 + $0x8] sm:$0xff]  ;;  %v245_v6 = vld [vmem:[%s4407_s29 + $0x10] sm:$0xff] }
  0x12   : > { %v246_v7 = vld [vmem:[%s4407_s29 + $0x18] sm:$0xff]  ;;  %v4413_v8 = vpack.c.bf16 %v244_v5, %v243_v4  ;;  %v263_v9 = vld [vmem:[%s4407_s29 + $0xa0] sm:$0xff]  ;;  %v264_v10 = vld [vmem:[%s4407_s29 + $0xa8] sm:$0xff] }
  0x13   : > { %v4417_v11 = vpack.c.bf16 %v246_v7, %v245_v6  ;;  %v265_v12 = vld [vmem:[%s4407_s29 + $0xb0] sm:$0xff]  ;;  %v266_v13 = vld [vmem:[%s4407_s29 + $0xb8] sm:$0xff]  ;;  %v4421_v14 = vpack.c.bf16 %v264_v10, %v263_v9  ;;  %v247_v15 = vld [vmem:[%s4407_s29 + $0x20] sm:$0xff] }
  0x14   : > { %v308_v16 = vshrl.u32 %v4413_v8, 16  ;;  %v310_v17 = vshll.u32 %v4413_v8, 16  ;;  %v4426_v18 = vpack.c.bf16 %v266_v13, %v265_v12  ;;  %v248_v19 = vld [vmem:[%s4407_s29 + $0x28] sm:$0xff]  ;;  %v267_v20 = vld [vmem:[%s4407_s29 + $0xc0] sm:$0xff]  ;;  %v249_v27 = vld [vmem:[%s4407_s29 + $0x30] sm:$0xff] }
  0x15   : > { %6076 = vst [vmem:[#allocation2_spill] sm:$0xff] %v4421_v14  ;;  %v268_v21 = vld [vmem:[%s4407_s29 + $0xc8] sm:$0xff]  ;;  %v6025_v23 = vshll.u32 %v4417_v11, 16  ;;  %v6024_v24 = vshrl.u32 %v4417_v11, 16  ;;  %v4435_v25 = vshll.u32 %v4421_v14, 16  ;;  %v4438_v26 = vshrl.u32 %v4421_v14, 16 }
  0x16   : > { %6077 = vst [vmem:[#allocation3_spill] sm:$0xff] %v4426_v18  ;;  %v250_v28 = vld [vmem:[%s4407_s29 + $0x38] sm:$0xff]  ;;  %v312_v29 = vrot.slane %v310_v17, 1  ;;  %v4443_v30 = vshll.u32 %v4426_v18, 16  ;;  %v4446_v31 = vshrl.u32 %v4426_v18, 16  ;;  %v4448_v32 = vpack.c.bf16 %v248_v19, %v247_v15  ;;  %v269_v41 = vld [vmem:[%s4407_s29 + $0xd0] sm:$0xff] }
  0x17   : > { %v317_v33 = vrot.slane %v6025_v23, 1  ;;  %v6023_v34 = vrot.slane %v4435_v25, 1  ;;  %v4453_v35 = vpack.c.bf16 %v268_v21, %v267_v20  ;;  %v4460_v40 = vpack.c.bf16 %v250_v28, %v249_v27  ;;  %v270_v42 = vld [vmem:[%s4407_s29 + $0xd8] sm:$0xff]  ;;  %v251_v47 = vld [vmem:[%s4407_s29 + $0x40] sm:$0xff]  ;;  %v252_v48 = vld [vmem:[%s4407_s29 + $0x48] sm:$0xff] }
  0x18   : > { %v313_v37 = vor.u32 %v312_v29, %v308_v16  ;;  %v397_v38 = vrot.slane %v4443_v30, 1  ;;  %v4458_v39 = vshll.u32 %v4448_v32, 16  ;;  %v4473_v46 = vshrl.u32 %v4448_v32, 16  ;;  %v271_v57 = vld [vmem:[%s4407_s29 + $0xe0] sm:$0xff]  ;;  %v272_v58 = vld [vmem:[%s4407_s29 + $0xe8] sm:$0xff]  ;;  %v253_v63 = vld [vmem:[%s4407_s29 + $0x50] sm:$0xff] }
  0x19   : > { %6078 = vst [vmem:[#allocation4_spill] sm:$0xff] %v4453_v35  ;;  %v321_v43 = vor.u32 %v6024_v24, %v317_v33  ;;  %v393_v44 = vor.u32 %v4438_v26, %v6023_v34  ;;  %v4470_v45 = vshll.u32 %v4453_v35, 16  ;;  %v4481_v52 = vshll.u32 %v4460_v40, 16  ;;  %v254_v0 = vld [vmem:[%s4407_s29 + $0x58] sm:$0xff]  ;;  %v273_v6 = vld [vmem:[%s4407_s29 + $0xf0] sm:$0xff]  ;;  %v255_v28 = vld [vmem:[%s4407_s29 + $0x60] sm:$0xff] }
  0x1a   : > { %6079 = vst [vmem:[#allocation5_spill] sm:$0xff] %v4458_v39  ;;  %6081 = vst [vmem:[#allocation7_spill] sm:$0xff] %v4473_v46  ;;  %v318_v49 = vsel %vm306_vm1, %v313_v37, %v317_v33  ;;  %v401_v50 = vor.u32 %v4446_v31, %v397_v38  ;;  %v325_v51 = vrot.slane %v4458_v39, 1  ;;  %v4486_v55 = vpack.c.bf16 %v270_v42, %v269_v41  ;;  %v274_v7 = vld [vmem:[%s4407_s29 + $0xf8] sm:$0xff]  ;;  %v4520_v9 = vld [vmem:[%s6018_s1 + $0x8] sm:$0x3] }
  0x1b   : > { %6080 = vst [vmem:[#allocation6_spill] sm:$0xff] %v4470_v45  ;;  %3975 = vmatprep.mubr.msk.bf16.mxu0 %vm455_vm2, %v318_v49  ;;  %v398_v53 = vsel %vm306_vm1, %v393_v44, %v397_v38  ;;  %v405_v54 = vrot.slane %v4470_v45, 1  ;;  %v4489_v56 = vshrl.u32 %v4453_v35, 16  ;;  %v333_v61 = vrot.slane %v4481_v52, 1  ;;  %v256_v29 = vld [vmem:[%s4407_s29 + $0x68] sm:$0xff]  ;;  %v275_v38 = vld [vmem:[%s4407_s29 + $0x100] sm:$0xff] }
  0x1c   : > { %6082 = vst [vmem:[#allocation8_spill] sm:$0xff] %v4486_v55  ;;  %3995 = vmatprep.mubr.msk.bf16.mxu1 %vm455_vm2, %v398_v53  ;;  %v326_v59 = vsel %vm306_vm1, %v321_v43, %v325_v51  ;;  %v329_v60 = vor.u32 %v4473_v46, %v325_v51  ;;  %v4497_v62 = vpack.c.bf16 %v252_v48, %v251_v47  ;;  %v4510_v4 = vshll.u32 %v4486_v55, 16  ;;  %v276_v41 = vld [vmem:[%s4407_s29 + $0x108] sm:$0xff]  ;;  %v257_v48 = vld [vmem:[%s4407_s29 + $0x70] sm:$0xff] }
  0x1d   : > { %6083 = vst [vmem:[#allocation9_spill] sm:$0xff] %v4489_v56  ;;  %3976 = vmatmul.mubr.msk.bf16.vlgmr.msra.gmra.mxu0 %vm455_vm2, %v326_v59  ;;  %v406_v2 = vsel %vm306_vm1, %v401_v50, %v405_v54  ;;  %v409_v3 = vor.u32 %v4489_v56, %v405_v54  ;;  %v4513_v5 = vshrl.u32 %v4460_v40, 16  ;;  %v4527_v13 = vpack.c.bf16 %v272_v58, %v271_v57  ;;  %v258_v54 = vld [vmem:[%s4407_s29 + $0x78] sm:$0xff]  ;;  %v277_v57 = vld [vmem:[%s4407_s29 + $0x110] sm:$0xff] }
  0x1e   : > { %6084 = vst [vmem:[#allocation10_spill] sm:$0xff] %v4497_v62  ;;  %6085 = vst [vmem:[#allocation11_spill] sm:$0xff] %v4510_v4  ;;  %3996 = vmatmul.mubr.msk.bf16.vlgmr.msra.gmra.mxu1 %vm455_vm2, %v406_v2  ;;  %4050 = vmatpush3.bf16.msra.mxu0 %v1021_v22  ;;  %v334_v10 = vsel %vm306_vm1, %v329_v60, %v333_v61  ;;  %v4525_v12 = vshll.u32 %v4497_v62, 16  ;;  %v4530_v15 = vshrl.u32 %v4486_v55, 16  ;;  %v413_v16 = vrot.slane %v4510_v4, 1  ;;  %v278_v58 = vld [vmem:[%s4407_s29 + $0x118] sm:$0xff] }
  0x1f   : > { %6086 = vst [vmem:[#allocation12_spill] sm:$0xff] %v4527_v13  ;;  %4012 = vmatpush3.bf16.msra.mxu1 %v728_v36  ;;  %3979 = vmatprep.mubr.msk.bf16.mxu0 %vm455_vm2, %v334_v10  ;;  %v337_v17 = vor.u32 %v4513_v5, %v333_v61  ;;  %v4535_v19 = vpack.c.bf16 %v254_v0, %v253_v63  ;;  %v4538_v20 = vshrl.u32 %v4497_v62, 16  ;;  %v4542_v22 = vshll.u32 %v4527_v13, 16  ;;  %v260_v10 = vld [vmem:[%s4407_s29 + $0x88] sm:$0xff] }
  0x20   : > { %6087 = vst [vmem:[#allocation13_spill] sm:$0xff] %v4530_v15  ;;  %v341_v21 = vrot.slane %v4525_v12, 1  ;;  %v4544_v27 = vpack.c.bf16 %v274_v7, %v273_v6  ;;  %4321 = vmatprep.subr.msk.bf16.mxu1 %vm510_vm0, %v4504_v1  ;;  %4322 = vmatprep.subr.msk.bf16.mxu0 %vm510_vm0, %v4520_v9  ;;  %v414_v33 = vsel %vm306_vm1, %v409_v3, %v413_v16  ;;  %v4564_v47 = vshrl.u32 %v4527_v13, 16  ;;  %v259_v7 = vld [vmem:[%s4407_s29 + $0x80] sm:$0xff] }
  0x21   : > { %6088 = vst [vmem:[#allocation14_spill] sm:$0xff] %v4535_v19  ;;  %6089 = vst [vmem:[#allocation15_spill] sm:$0xff] %v4542_v22  ;;  %v417_v36 = vor.u32 %v4530_v15, %v413_v16  ;;  %v4555_v37 = vshll.u32 %v4535_v19, 16  ;;  %3999 = vmatprep.mubr.msk.bf16.mxu1 %vm455_vm2, %v414_v33  ;;  %v421_v43 = vrot.slane %v4542_v22, 1  ;;  %v4571_v51 = vpack.c.bf16 %v256_v29, %v255_v28  ;;  %v4608_v29 = vld [vmem:[%s4407_s29 + $0x120] sm:$0xff] }
  0x22   : > { %6090 = vst [vmem:[#allocation16_spill] sm:$0xff] %v4544_v27  ;;  %v342_v42 = vsel %vm306_vm1, %v337_v17, %v341_v21  ;;  %v345_v44 = vor.u32 %v4538_v20, %v341_v21  ;;  %6091 = vst [vmem:[#allocation17_spill] sm:$0xff] %v4564_v47  ;;  %v4569_v50 = vshll.u32 %v4544_v27, 16  ;;  %v4574_v53 = vshrl.u32 %v4535_v19, 16 }
  0x23   : > { %v349_v49 = vrot.slane %v4555_v37, 1  ;;  %6093 = vst [vmem:[#allocation19_spill] sm:$0xff] %v4571_v51  ;;  %v422_v59 = vsel %vm306_vm1, %v417_v36, %v421_v43  ;;  %v425_v60 = vor.u32 %v4564_v47, %v421_v43  ;;  %v4581_v61 = vpack.c.bf16 %v276_v41, %v275_v38 }
  0x24   : > { %6092 = vst [vmem:[#allocation18_spill] sm:$0xff] %v4569_v50  ;;  %v4584_v63 = vshrl.u32 %v4544_v27, 16  ;;  %v429_v2 = vrot.slane %v4569_v50, 1  ;;  %v4591_v6 = vshll.u32 %v4571_v51, 16  ;;  %v4600_v17 = vpack.c.bf16 %v258_v54, %v257_v48 }
  0x25   : > { %6094 = vst [vmem:[#allocation20_spill] sm:$0xff] %v4581_v61  ;;  %3980 = vmatmul.mubr.msk.bf16.gmra.mxu0 %vm455_vm2, %v342_v42  ;;  %v350_v0 = vsel %vm306_vm1, %v345_v44, %v349_v49  ;;  %v353_v3 = vor.u32 %v4574_v53, %v349_v49  ;;  %v4598_v16 = vshll.u32 %v4581_v61, 16  ;;  %v4603_v21 = vshrl.u32 %v4571_v51, 16 }
  0x26   : > { %6095 = vst [vmem:[#allocation21_spill] sm:$0xff] %v4584_v63  ;;  %4000 = vmatmul.mubr.msk.bf16.gmra.mxu1 %vm455_vm2, %v422_v59  ;;  %3983 = vmatprep.mubr.msk.bf16.mxu0 %vm455_vm2, %v350_v0  ;;  %6097 = vst [vmem:[#allocation23_spill] sm:$0xff] %v4600_v17  ;;  %v4605_v28 = vpack.c.bf16 %v278_v58, %v277_v57  ;;  %v430_v33 = vsel %vm306_vm1, %v425_v60, %v429_v2  ;;  %v357_v36 = vrot.slane %v4591_v6, 1  ;;  %v261_v58 = vld [vmem:[%s4407_s29 + $0x90] sm:$0xff]  ;;  %v262_v59 = vld [vmem:[%s4407_s29 + $0x98] sm:$0xff] }
  0x27   : > { %6096 = vst [vmem:[#allocation22_spill] sm:$0xff] %v4598_v16  ;;  %v433_v38 = vor.u32 %v4584_v63, %v429_v2  ;;  %v4614_v41 = vshrl.u32 %v4581_v61, 16  ;;  %4003 = vmatprep.mubr.msk.bf16.mxu1 %vm455_vm2, %v430_v33  ;;  %v437_v42 = vrot.slane %v4598_v16, 1  ;;  %v4619_v43 = vshll.u32 %v4600_v17, 16 }
  0x28   : > { %6098 = vst [vmem:[#allocation24_spill] sm:$0xff] %v4605_v28  ;;  %v4622_v44 = vshll.u32 %v4605_v28, 16  ;;  %v4624_v48 = vpack.c.bf16 %v260_v10, %v259_v7  ;;  %v358_v49 = vsel %vm306_vm1, %v353_v3, %v357_v36  ;;  %v361_v54 = vor.u32 %v4603_v21, %v357_v36 }
  0x29   : > { %6099 = vst [vmem:[#allocation25_spill] sm:$0xff] %v4614_v41  ;;  %v303_v57 = vpack.c.bf16 %v4608_v29, %v4608_v29  ;;  %v365_v60 = vrot.slane %v4619_v43, 1  ;;  %v441_v0 = vor.u32 %v4614_v41, %v437_v42  ;;  %v4636_v33 = vshrl.u32 %v4600_v17, 16 }
  0x2a   : > { %6100 = vst [vmem:[#allocation26_spill] sm:$0xff] %v4622_v44  ;;  %6101 = vst [vmem:[#allocation27_spill] sm:$0xff] %v4624_v48  ;;  %v445_v2 = vrot.slane %v4622_v44, 1  ;;  %v438_v7 = vsel %vm306_vm1, %v433_v38, %v437_v42  ;;  %v4640_v3 = vshll.u32 %v4624_v48, 16  ;;  %v4643_v10 = vshrl.u32 %v4605_v28, 16 }
  0x2b   : > { %v451_v36 = vshll.u32 %v303_v57, 16  ;;  %v366_v34 = vsel %vm306_vm1, %v361_v54, %v365_v60  ;;  %v4647_v23 = vpack.c.bf16 %v262_v59, %v261_v58  ;;  %v4652_v16 = vshrl.u32 %v4624_v48, 16 }
  0x2c   : > { %6102 = vst [vmem:[#allocation28_spill] sm:$0xff] %v4643_v10  ;;  %v446_v24 = vsel %vm306_vm1, %v441_v0, %v445_v2  ;;  %v373_v44 = vrot.slane %v4640_v3, 1  ;;  %v369_v38 = vor.u32 %v4636_v33, %v365_v60  ;;  %v449_v54 = vor.u32 %v4643_v10, %v445_v2 }
  0x2d   : > { %6103 = vst [vmem:[#allocation29_spill] sm:$0xff] %v4647_v23  ;;  %3984 = vmatmul.mubr.msk.bf16.gmra.mxu0 %vm455_vm2, %v358_v49  ;;  %v4658_v42 = vshll.u32 %v4647_v23, 16  ;;  %v453_v58 = vrot.slane %v451_v36, 1  ;;  %v930_v36 = vrot.slane %v4417_v11, 1 }
  0x2e   : > { %4004 = vmatmul.mubr.msk.bf16.gmra.mxu1 %vm455_vm2, %v438_v7  ;;  %3987 = vmatprep.mubr.msk.bf16.mxu0 %vm455_vm2, %v366_v34  ;;  %v377_v49 = vor.u32 %v4652_v16, %v373_v44  ;;  %v374_v0 = vsel %vm306_vm1, %v369_v38, %v373_v44  ;;  %v4666_v7 = vshrl.u32 %v4647_v23, 16  ;;  %v929_v44 = vrot.slane %v4413_v8, 1 }
  0x2f   : > { %4007 = vmatprep.mubr.msk.bf16.mxu1 %vm455_vm2, %v446_v24  ;;  %v381_v59 = vrot.slane %v4658_v42, 1  ;;  %v454_v34 = vsel %vm306_vm1, %v449_v54, %v453_v58  ;;  %v6104_v24 = vshll.u32 %v4417_v11, 16  ;;  %v4683_v38 = vrot.slane %v4605_v28, 1 }
  0x30   : > { %v964_v54 = vrot.slane %v303_v57, 1  ;;  %v6105_v58 = vshrl.u32 %v4417_v11, 16  ;;  %v1483_v57 = vrot.slane %v4525_v12, 2 }
  0x31   : > { %v382_v60 = vsel %vm306_vm1, %v377_v49, %v381_v59  ;;  %v4673_v41 = vrot.slane %v6104_v24, 2  ;;  %v385_v2 = vor.u32 %v4666_v7, %v381_v59  ;;  %v931_v24 = vsel %vm928_vm3, %v929_v44, %v930_v36 }
  0x32   : > { %v4687_v49 = vrot.slane %v6105_v58, 1  ;;  %v1253_v58 = vsel %vm510_vm0, %v4504_v1, 0  ;;  %v932_v44 = vrot.slane %v4448_v32, 1  ;;  %v934_v1 = vrot.slane %v4460_v40, 1 }
  0x35   : > { %3988 = vmatmul.mubr.msk.bf16.gmra.mxu0 %vm455_vm2, %v374_v0  ;;  %v6106_v0 = vrot.slane %v4435_v25, 1 }
  0x36   : > { %4008 = vmatmul.mubr.msk.bf16.gmra.mxu1 %vm455_vm2, %v454_v34  ;;  %3991 = vmatprep.mubr.msk.bf16.mxu0 %vm455_vm2, %v382_v60  ;;  %v4694_v34 = vsel %vm928_vm3, %v4683_v38, %v964_v54  ;;  %v1482_v60 = vrot.slane %v4538_v20, 1 }
  0x37   : > { %4013 = vmatprep.mubr.msk.bf16.mxu1 %vm455_vm2, %v4413_v8  ;;  %v390_v59 = vsel %vm306_vm1, %v385_v2, %v6106_v0  ;;  %v4707_v2 = vld [vmem:[%s6018_s1 + $0xa] sm:$0x3]  ;;  %v940_v8 = vrot.slane %v4571_v51, 1 }
  0x38   : > { %v4709_v54 = vor.u32 %v1483_v57, %v1482_v60  ;;  %v280_v0 = vld [vmem:[%s4407_s29 + $0x128] sm:$0xff]  ;;  %v4725_v60 = vsel %vm928_vm3, %v930_v36, %v932_v44  ;;  %v4730_v57 = vsel %vm928_vm3, %v932_v44, %v934_v1 }
  0x3d   : > { %3992 = vmatmul.mubr.msk.bf16.gmra.mxu0 %vm455_vm2, %v390_v59  ;;  %v4722_v59 = vpack.c.bf16 %v280_v0, %v4608_v29  ;;  %v936_v29 = vrot.slane %v4497_v62, 1 }
  0x3e   : > { %4014 = vmatmul.mubr.msk.bf16.vlgmr.msra.gmra.mxu1 %vm455_vm2, %v4417_v11  ;;  %4051 = vmatprep.mubr.msk.bf16.mxu0 %vm455_vm2, %v931_v24  ;;  %v1611_v24 = vsel %vm510_vm0, %v4520_v9, 0  ;;  %v938_v9 = vrot.slane %v4535_v19, 1 }
  0x3f   : > { %4088 = vmatpush3.bf16.msra.mxu1 %v1253_v58  ;;  %4017 = vmatprep.mubr.msk.bf16.mxu1 %vm455_vm2, %v4448_v32  ;;  %6107 = vst [vmem:[#allocation30_spill] sm:$0xff] %v4722_v59  ;;  %v4737_v58 = vld [vmem:[%s6018_s1 + $0xc] sm:$0x3]  ;;  %v6032_v36 = vrot.slane %v4722_v59, 1  ;;  %v4757_v0 = vsel %vm928_vm3, %v934_v1, %v936_v29  ;;  %v942_v1 = vrot.slane %v4600_v17, 1 }
  0x40   : > { %4323 = vmatprep.subr.msk.bf16.mxu1 %vm510_vm0, %v4707_v2 }
  0x41   : > { %v4754_v44 = vsel %vm928_vm3, %v4683_v38, %v6032_v36  ;;  %v4773_v36 = vsel %vm928_vm3, %v938_v9, %v940_v8 }
  0x45   : > { %4052 = vmatmul.mubr.msk.bf16.vlgmr.msra.gmra.mxu0 %vm455_vm2, %v4725_v60 }
  0x46   : > { %4018 = vmatmul.mubr.msk.bf16.gmra.mxu1 %vm455_vm2, %v4460_v40  ;;  %4126 = vmatpush3.bf16.msra.mxu0 %v1611_v24  ;;  %v4760_v24 = vsel %vm928_vm3, %v936_v29, %v938_v9  ;;  %v4776_v29 = vsel %vm928_vm3, %v940_v8, %v942_v1  ;;  %v946_v9 = vrot.slane %v4647_v23, 1 }
  0x47   : > { %4021 = vmatprep.mubr.msk.bf16.mxu1 %vm455_vm2, %v4497_v62  ;;  %4055 = vmatprep.mubr.msk.bf16.mxu0 %vm455_vm2, %v4730_v57  ;;  %v1475_v62 = vrot.slane %v4458_v39, 2  ;;  %v6108_v39 = vor.u32 %v4673_v41, %v4687_v49  ;;  %v1486_v41 = vrot.slane %v4574_v53, 1  ;;  %v1487_v49 = vrot.slane %v4555_v37, 2 }
  0x48   : > { %4324 = vmatprep.subr.msk.bf16.mxu0 %vm510_vm0, %v4737_v58 }
  0x4d   : > { %4056 = vmatmul.mubr.msk.bf16.gmra.mxu0 %vm455_vm2, %v4757_v0 }
  0x4e   : > { %4022 = vmatmul.mubr.msk.bf16.gmra.mxu1 %vm455_vm2, %v4535_v19  ;;  %4059 = vmatprep.mubr.msk.bf16.mxu0 %vm455_vm2, %v4760_v24  ;;  %v944_v19 = vrot.slane %v4624_v48, 1 }
  0x4f   : > { %4025 = vmatprep.mubr.msk.bf16.mxu1 %vm455_vm2, %v4571_v51 }
  0x50   : > { %v4789_v51 = vsel %vm928_vm3, %v942_v1, %v944_v19  ;;  %v4792_v8 = vsel %vm928_vm3, %v944_v19, %v946_v9  ;;  %v950_v1 = vrot.slane %v4426_v18, 1 }
  0x55   : > { %4060 = vmatmul.mubr.msk.bf16.gmra.mxu0 %vm455_vm2, %v4773_v36 }
  0x56   : > { %4026 = vmatmul.mubr.msk.bf16.gmra.mxu1 %vm455_vm2, %v4600_v17  ;;  %4063 = vmatprep.mubr.msk.bf16.mxu0 %vm455_vm2, %v4776_v29  ;;  %v948_v17 = vrot.slane %v4421_v14, 1 }
  0x57   : > { %4029 = vmatprep.mubr.msk.bf16.mxu1 %vm455_vm2, %v4624_v48 }
  0x58   : > { %v4805_v48 = vsel %vm928_vm3, %v946_v9, %v948_v17  ;;  %v4808_v19 = vsel %vm928_vm3, %v948_v17, %v950_v1  ;;  %v954_v9 = vrot.slane %v4486_v55, 1 }
  0x5d   : > { %4064 = vmatmul.mubr.msk.bf16.gmra.mxu0 %vm455_vm2, %v4789_v51 }
  0x5e   : > { %4030 = vmatmul.mubr.msk.bf16.gmra.mxu1 %vm455_vm2, %v4647_v23  ;;  %4067 = vmatprep.mubr.msk.bf16.mxu0 %vm455_vm2, %v4792_v8  ;;  %v952_v23 = vrot.slane %v4453_v35, 1 }
  0x5f   : > { %4033 = vmatprep.mubr.msk.bf16.mxu1 %vm455_vm2, %v4421_v14 }
  0x60   : > { %v4821_v14 = vsel %vm928_vm3, %v950_v1, %v952_v23  ;;  %v4824_v17 = vsel %vm928_vm3, %v952_v23, %v954_v9  ;;  %v958_v1 = vrot.slane %v4544_v27, 1 }
  0x65   : > { %4068 = vmatmul.mubr.msk.bf16.gmra.mxu0 %vm455_vm2, %v4805_v48 }
  0x66   : > { %4034 = vmatmul.mubr.msk.bf16.gmra.mxu1 %vm455_vm2, %v4426_v18  ;;  %4071 = vmatprep.mubr.msk.bf16.mxu0 %vm455_vm2, %v4808_v19  ;;  %v956_v18 = vrot.slane %v4527_v13, 1 }
  0x67   : > { %4037 = vmatprep.mubr.msk.bf16.mxu1 %vm455_vm2, %v4453_v35 }
  0x68   : > { %v4837_v35 = vsel %vm928_vm3, %v954_v9, %v956_v18  ;;  %v4840_v23 = vsel %vm928_vm3, %v956_v18, %v958_v1 }
  0x6d   : > { %4072 = vmatmul.mubr.msk.bf16.gmra.mxu0 %vm455_vm2, %v4821_v14 }
  0x6e   : > { %4038 = vmatmul.mubr.msk.bf16.gmra.mxu1 %vm455_vm2, %v4486_v55  ;;  %4075 = vmatprep.mubr.msk.bf16.mxu0 %vm455_vm2, %v4824_v17  ;;  %v960_v55 = vrot.slane %v4581_v61, 1 }
  0x6f   : > { %4041 = vmatprep.mubr.msk.bf16.mxu1 %vm455_vm2, %v4527_v13  ;;  %v1474_v13 = vrot.slane %v4473_v46, 1 }
  0x70   : > { %v4852_v9 = vsel %vm928_vm3, %v958_v1, %v960_v55  ;;  %v4856_v18 = vsel %vm928_vm3, %v960_v55, %v4683_v38  ;;  %v1478_v55 = vrot.slane %v4513_v5, 1  ;;  %v1479_v38 = vrot.slane %v4481_v52, 2 }
  0x71   : > { %v1476_v1 = vor.u32 %v1475_v62, %v1474_v13  ;;  %v4881_v62 = vld [vmem:[%s6018_s1 + $0xe] sm:$0x3] }
  0x72   : > { %v1480_v13 = vor.u32 %v1479_v38, %v1478_v55  ;;  %v1495_v38 = vrot.slane %v4619_v43, 2 }
  0x73   : > { %v1477_v46 = vsel %vm1470_vm4, %v6108_v39, %v1476_v1 }
  0x74   : > { %v1481_v39 = vsel %vm1470_vm4, %v1476_v1, %v1480_v13 }
  0x75   : > { %4076 = vmatmul.mubr.msk.bf16.gmra.mxu0 %vm455_vm2, %v4837_v35 }
  0x76   : > { %4042 = vmatmul.mubr.msk.bf16.gmra.mxu1 %vm455_vm2, %v4544_v27  ;;  %4079 = vmatprep.mubr.msk.bf16.mxu0 %vm455_vm2, %v4840_v23 }
  0x77   : > { %4045 = vmatprep.mubr.msk.bf16.mxu1 %vm455_vm2, %v4581_v61 }
  0x7d   : > { %4080 = vmatmul.mubr.msk.bf16.gmra.mxu0 %vm455_vm2, %v4852_v9 }
  0x7e   : > { %4046 = vmatmul.mubr.msk.bf16.gmra.mxu1 %vm455_vm2, %v4605_v28  ;;  %4083 = vmatprep.mubr.msk.bf16.mxu0 %vm455_vm2, %v4856_v18  ;;  %v1921_v28 = vsel %vm510_vm0, %v4707_v2, 0  ;;  %v1490_v2 = vrot.slane %v4603_v21, 1 }
  0x7f   : > { %4089 = vmatprep.mubr.msk.bf16.mxu1 %vm455_vm2, %v4725_v60  ;;  %v4903_v60 = vld [vmem:[%s6018_s1 + $0x10] sm:$0x3] }
  0x85   : > { %4084 = vmatmul.mubr.msk.bf16.gmra.mxu0 %vm455_vm2, %v4694_v34  ;;  %v2153_v34 = vsel %vm510_vm0, %v4737_v58, 0  ;;  %v2379_v58 = vrot.slane %v4525_v12, 3 }
  0x86   : > { %4090 = vmatmul.mubr.msk.bf16.vlgmr.msra.gmra.mxu1 %vm455_vm2, %v4730_v57  ;;  %4127 = vmatprep.mubr.msk.bf16.mxu0 %vm455_vm2, %v1477_v46  ;;  %v1491_v46 = vrot.slane %v4591_v6, 2  ;;  %v1488_v57 = vor.u32 %v1487_v49, %v1486_v41  ;;  %v1502_v49 = vrot.slane %v4666_v7, 1 }
  0x87   : > { %4164 = vmatpush3.bf16.msra.mxu1 %v1921_v28  ;;  %4093 = vmatprep.mubr.msk.bf16.mxu1 %vm455_vm2, %v4757_v0  ;;  %v1485_v28 = vsel %vm1470_vm4, %v1480_v13, %v4709_v54  ;;  %v2378_v0 = vrot.slane %v4538_v20, 2  ;;  %v1498_v20 = vrot.slane %v4652_v16, 1  ;;  %v1499_v13 = vrot.slane %v4640_v3, 2 }
  0x88   : > { %4325 = vmatprep.subr.msk.bf16.mxu1 %vm510_vm0, %v4881_v62  ;;  %v1492_v1 = vor.u32 %v1491_v46, %v1490_v2  ;;  %v1489_v55 = vsel %vm1470_vm4, %v4709_v54, %v1488_v57  ;;  %v1506_v46 = vrot.slane %v4438_v26, 1 }
  0x8a   : > { %v1493_v12 = vsel %vm1470_vm4, %v1488_v57, %v1492_v1 }
  0x8d   : > { %4128 = vmatmul.mubr.msk.bf16.vlgmr.msra.gmra.mxu0 %vm455_vm2, %v1481_v39  ;;  %v1500_v39 = vor.u32 %v1499_v13, %v1498_v20  ;;  %v3074_v20 = vld [vmem:[%s6019_s2 + $0x8] sm:$0xff] }
  0x8e   : > { %4094 = vmatmul.mubr.msk.bf16.gmra.mxu1 %vm455_vm2, %v4760_v24  ;;  %4202 = vmatpush3.bf16.msra.mxu0 %v2153_v34  ;;  %v1494_v24 = vrot.slane %v4636_v33, 1  ;;  %v1503_v34 = vrot.slane %v4658_v42, 2 }
  0x8f   : > { %4097 = vmatprep.mubr.msk.bf16.mxu1 %vm455_vm2, %v4773_v36  ;;  %4131 = vmatprep.mubr.msk.bf16.mxu0 %vm455_vm2, %v1485_v28  ;;  %v4921_v36 = vor.u32 %v2379_v58, %v2378_v0  ;;  %v1507_v28 = vrot.slane %v4435_v25, 2  ;;  %v1510_v58 = vrot.slane %v4446_v31, 1  ;;  %v1511_v0 = vrot.slane %v4443_v30, 2 }
  0x90   : > { %4326 = vmatprep.subr.msk.bf16.mxu0 %vm510_vm0, %v4903_v60  ;;  %v1496_v54 = vor.u32 %v1495_v38, %v1494_v24  ;;  %v1514_v24 = vrot.slane %v4489_v56, 1  ;;  %v2375_v56 = vrot.slane %v4481_v52, 3 }
  0x91   : > { %v1512_v38 = vor.u32 %v1511_v0, %v1510_v58  ;;  %v1527_v58 = vrot.slane %v4569_v50, 2  ;;  %v3080_v0 = vld [vmem:[%s6019_s2 + $0x38] sm:$0xff] }
  0x92   : > { %v1497_v41 = vsel %vm1470_vm4, %v1492_v1, %v1496_v54  ;;  %v1501_v2 = vsel %vm1470_vm4, %v1496_v54, %v1500_v39  ;;  %v4348_v1 = vmov 0  }
  0x93   : > { %4338 = vset.pattern.permute.xlu0 %v4348_v1  ;;  %4339 = vset.pattern.permute.xlu1 %v4348_v1  ;;  %v3081_v1 = vld [vmem:[%s6019_s2 + $0x40] sm:$0xff] }
  0x95   : > { %4132 = vmatmul.mubr.msk.bf16.gmra.mxu0 %vm455_vm2, %v1489_v55  ;;  %v3073_v55 = vld [vmem:[%s6019_s2] sm:$0xff] }
  0x96   : > { %4098 = vmatmul.mubr.msk.bf16.gmra.mxu1 %vm455_vm2, %v4776_v29  ;;  %4135 = vmatprep.mubr.msk.bf16.mxu0 %vm455_vm2, %v1493_v12  ;;  %v1508_v29 = vor.u32 %v1507_v28, %v1506_v46  ;;  %v3075_v12 = vld [vmem:[%s6019_s2 + $0x10] sm:$0xff]  ;;  %v3078_v28 = vld [vmem:[%s6019_s2 + $0x28] sm:$0xff] }
  0x97   : > { %4101 = vmatprep.mubr.msk.bf16.mxu1 %vm455_vm2, %v4789_v51  ;;  %v1504_v51 = vor.u32 %v1503_v34, %v1502_v49  ;;  %3111 = vperm.xlu0 %4338, %v3073_v55   ;;  %v3077_v49 = vld [vmem:[%s6019_s2 + $0x20] sm:$0xff] }
  0x98   : > { %3121 = vperm.xlu1 %4339, %v3075_v12   ;;  %v1513_v54 = vsel %vm1470_vm4, %v1508_v29, %v1512_v38  ;;  %v3082_v12 = vld [vmem:[%s6019_s2 + $0x48] sm:$0xff] }
  0x99   : > { %v1505_v57 = vsel %vm1470_vm4, %v1500_v39, %v1504_v51  ;;  %v1519_v39 = vrot.slane %v4510_v4, 2 }
  0x9b   : > { %3116 = vperm.xlu0 %4338, %v3074_v20   ;;  %v3083_v20 = vld [vmem:[%s6019_s2 + $0x50] sm:$0xff] }
  0x9d   : > { %4136 = vmatmul.mubr.msk.bf16.gmra.mxu0 %vm455_vm2, %v1497_v41  ;;  %v3076_v41 = vld [vmem:[%s6019_s2 + $0x18] sm:$0xff] }
  0x9e   : > { %4102 = vmatmul.mubr.msk.bf16.gmra.mxu1 %vm455_vm2, %v4792_v8  ;;  %4139 = vmatprep.mubr.msk.bf16.mxu0 %vm455_vm2, %v1501_v2  ;;  %v1509_v8 = vsel %vm1470_vm4, %v1504_v51, %v1508_v29  ;;  %v1523_v2 = vrot.slane %v4542_v22, 2  ;;  %v3079_v51 = vld [vmem:[%s6019_s2 + $0x30] sm:$0xff] }
  0x9f   : > { %4105 = vmatprep.mubr.msk.bf16.mxu1 %vm455_vm2, %v4805_v48  ;;  %v1515_v48 = vrot.slane %v4470_v45, 2  ;;  %3126 = vperm.xlu1 %4339, %v3076_v41   ;;  %v1534_v41 = vrot.slane %v4643_v10, 1  ;;  %v3108_v10 = vld [vmem:[%s6019_s2 + $0x118] sm:$0xff] }
  0xa0   : > { %3131 = vperm.xlu0 %4338, %v3077_v49   ;;  %v6111_v49 = vld [vmem:[#allocation26_spill] sm:$0xff]  ;;  %v6143_v45 = vld [vmem:[#allocation5_spill] sm:$0xff] }
  0xa1   : > { %v1516_v13 = vor.u32 %v1515_v48, %v1514_v24  ;;  %v6110_v24 = vld [vmem:[#allocation22_spill] sm:$0xff] }
  0xa2   : > { %v1531_v48 = vrot.slane %v6110_v24, 2 }
  0xa3   : > { %v1517_v34 = vsel %vm1470_vm4, %v1512_v38, %v1516_v13  ;;  %3136 = vperm.xlu1 %4339, %v3078_v28  }
  0xa4   : > { %3141 = vperm.xlu0 %4338, %v3079_v51  }
  0xa5   : > { %4140 = vmatmul.mubr.msk.bf16.gmra.mxu0 %vm455_vm2, %v1505_v57 }
  0xa6   : > { %4106 = vmatmul.mubr.msk.bf16.gmra.mxu1 %vm455_vm2, %v4808_v19  ;;  %4143 = vmatprep.mubr.msk.bf16.mxu0 %vm455_vm2, %v1509_v8  ;;  %v1518_v19 = vrot.slane %v4530_v15, 1 }
  0xa7   : > { %4109 = vmatprep.mubr.msk.bf16.mxu1 %vm455_vm2, %v4821_v14  ;;  %v1522_v14 = vrot.slane %v4564_v47, 1  ;;  %3146 = vperm.xlu1 %4339, %v3080_v0   ;;  %v3087_v0 = vld [vmem:[%s6019_s2 + $0x70] sm:$0xff] }
  0xa8   : > { %v1520_v46 = vor.u32 %v1519_v39, %v1518_v19  ;;  %3151 = vperm.xlu0 %4338, %v3081_v1   ;;  %v6059_v19 = vshll.u32 %v4722_v59, 16 }
  0xa9   : > { %v1524_v29 = vor.u32 %v1523_v2, %v1522_v14  ;;  %v3084_v14 = vld [vmem:[%s6019_s2 + $0x58] sm:$0xff] }
  0xaa   : > { %v1521_v57 = vsel %vm1470_vm4, %v1516_v13, %v1520_v46  ;;  %v1544_v51 = vrot.slane %v6059_v19, 2  ;;  %v6127_v19 = vld [vmem:[#allocation4_spill] sm:$0xff] }
  0xab   : > { %v1525_v55 = vsel %vm1470_vm4, %v1520_v46, %v1524_v29  ;;  %3156 = vperm.xlu1 %4339, %v3082_v12  }
  0xac   : > { %3161 = vperm.xlu0 %4338, %v3083_v20   ;;  %v3088_v20 = vld [vmem:[%s6019_s2 + $0x78] sm:$0xff] }
  0xad   : > { %4144 = vmatmul.mubr.msk.bf16.gmra.mxu0 %vm455_vm2, %v1513_v54  ;;  %v6060_v54 = vshrl.u32 %v4722_v59, 16 }
  0xae   : > { %4110 = vmatmul.mubr.msk.bf16.gmra.mxu1 %vm455_vm2, %v4824_v17  ;;  %4147 = vmatprep.mubr.msk.bf16.mxu0 %vm455_vm2, %v1517_v34  ;;  %v1526_v17 = vrot.slane %v4584_v63, 1  ;;  %v1535_v34 = vrot.slane %v6111_v49, 2 }
  0xaf   : > { %4113 = vmatprep.mubr.msk.bf16.mxu1 %vm455_vm2, %v4837_v35  ;;  %v6109_v35 = vld [vmem:[#allocation25_spill] sm:$0xff]  ;;  %v1541_v28 = vrot.slane %v6060_v54, 1  ;;  %3166 = vperm.xlu1 %4339, %v3084_v14   ;;  %v3090_v14 = vld [vmem:[%s6019_s2 + $0x88] sm:$0xff]  ;;  %v1850_v54 = vrot.slane %v6127_v19, 2 }
  0xb0   : > { %v1530_v8 = vrot.slane %v6109_v35, 1  ;;  %v1528_v38 = vor.u32 %v1527_v58, %v1526_v17  ;;  %v3086_v58 = vld [vmem:[%s6019_s2 + $0x68] sm:$0xff] }
  0xb1   : > { %v1545_v1 = vor.u32 %v1544_v51, %v1541_v28  ;;  %v6113_v28 = vld [vmem:[#allocation10_spill] sm:$0xff] }
  0xb2   : > { %v1532_v13 = vor.u32 %v1531_v48, %v1530_v8  ;;  %v1529_v39 = vsel %vm1470_vm4, %v1524_v29, %v1528_v38  ;;  %v1536_v29 = vor.u32 %v1535_v34, %v1534_v41  ;;  %v1830_v8 = vrot.slane %v4448_v32, 2 }
  0xb3   : > { %3176 = vperm.xlu1 %4339, %v3086_v58   ;;  %v1834_v51 = vrot.slane %v6113_v28, 2 }
  0xb4   : > { %v1533_v2 = vsel %vm1470_vm4, %v1528_v38, %v1532_v13  ;;  %v1537_v48 = vsel %vm1470_vm4, %v1532_v13, %v1536_v29  ;;  %v1546_v41 = vsel %vm1470_vm4, %v1536_v29, %v1545_v1 }
  0xb5   : > { %4148 = vmatmul.mubr.msk.bf16.gmra.mxu0 %vm455_vm2, %v1521_v57 }
  0xb6   : > { %4114 = vmatmul.mubr.msk.bf16.gmra.mxu1 %vm455_vm2, %v4840_v23  ;;  %4151 = vmatprep.mubr.msk.bf16.mxu0 %vm455_vm2, %v1525_v55  ;;  %v5013_v23 = vld [vmem:[%s4407_s29 + $0x130] sm:$0xff]  ;;  %v1829_v55 = vrot.slane %v4417_v11, 2 }
  0xb7   : > { %4117 = vmatprep.mubr.msk.bf16.mxu1 %vm455_vm2, %v4852_v9  ;;  %v3085_v9 = vld [vmem:[%s6019_s2 + $0x60] sm:$0xff]  ;;  %v5027_v46 = vpack.c.bf16 %v5013_v23, %v5013_v23  ;;  %3186 = vperm.xlu1 %4339, %v3088_v20  }
  0xb8   : > { %3171 = vperm.xlu0 %4338, %v3085_v9   ;;  %v1831_v34 = vsel %vm1828_vm5, %v1829_v55, %v1830_v8  ;;  %v3091_v9 = vld [vmem:[%s6019_s2 + $0x90] sm:$0xff]  ;;  %v3097_v20 = vld [vmem:[%s6019_s2 + $0xc0] sm:$0xff] }
  0xb9   : > { %v1548_v57 = vshrl.u32 %v5027_v46, 16  ;;  %v1551_v17 = vshll.u32 %v5027_v46, 16  ;;  %v3095_v55 = vld [vmem:[%s6019_s2 + $0xb0] sm:$0xff] }
  0xbb   : > { %v1550_v38 = vrot.slane %v1548_v57, 1  ;;  %v1553_v12 = vrot.slane %v1551_v17, 2  ;;  %3196 = vperm.xlu1 %4339, %v3090_v14   ;;  %v3092_v57 = vld [vmem:[%s6019_s2 + $0x98] sm:$0xff]  ;;  %v3093_v17 = vld [vmem:[%s6019_s2 + $0xa0] sm:$0xff]  ;;  %v6117_v14 = vld [vmem:[#allocation27_spill] sm:$0xff] }
  0xbc   : > { %3181 = vperm.xlu0 %4338, %v3087_v0   ;;  %v2511_v0 = vsel %vm510_vm0, %v4881_v62, 0  ;;  %v6114_v62 = vld [vmem:[#allocation14_spill] sm:$0xff] }
  0xbd   : > { %4152 = vmatmul.mubr.msk.bf16.gmra.mxu0 %vm455_vm2, %v1529_v39  ;;  %v6112_v39 = vrot.slane %v4722_v59, 1  ;;  %v1554_v13 = vor.u32 %v1553_v12, %v1550_v38  ;;  %v3096_v12 = vld [vmem:[%s6019_s2 + $0xb8] sm:$0xff] }
  0xbe   : > { %4118 = vmatmul.mubr.msk.bf16.gmra.mxu1 %vm455_vm2, %v4856_v18  ;;  %4155 = vmatprep.mubr.msk.bf16.mxu0 %vm455_vm2, %v1533_v2  ;;  %v1244_v18 = vrot.slane %v5027_v46, 1  ;;  %v1832_v2 = vrot.slane %v4460_v40, 2 }
  0xbf   : > { %4121 = vmatprep.mubr.msk.bf16.mxu1 %vm455_vm2, %v4754_v44  ;;  %v3089_v44 = vld [vmem:[%s6019_s2 + $0x80] sm:$0xff]  ;;  %v1555_v29 = vsel %vm1470_vm4, %v1545_v1, %v1554_v13  ;;  %3206 = vperm.xlu1 %4339, %v3092_v57   ;;  %v3094_v1 = vld [vmem:[%s6019_s2 + $0xa8] sm:$0xff] }
  0xc0   : > { %v1245_v11 = vsel %vm928_vm3, %v6112_v39, %v1244_v18  ;;  %3191 = vperm.xlu0 %4338, %v3089_v44   ;;  %v1833_v58 = vsel %vm1828_vm5, %v1830_v8, %v1832_v2  ;;  %v1835_v18 = vsel %vm1828_vm5, %v1832_v2, %v1834_v51  ;;  %v1836_v8 = vrot.slane %v6114_v62, 2  ;;  %v3100_v2 = vld [vmem:[%s6019_s2 + $0xd8] sm:$0xff] }
  0xc1   : > { %v2821_v39 = vsel %vm510_vm0, %v4903_v60, 0  ;;  %v6116_v60 = vld [vmem:[#allocation23_spill] sm:$0xff] }
  0xc2   : > { %v1837_v44 = vsel %vm1828_vm5, %v1834_v51, %v1836_v8  ;;  %v1840_v13 = vrot.slane %v6116_v60, 2  ;;  %v3101_v51 = vld [vmem:[%s6019_s2 + $0xe0] sm:$0xff] }
  0xc3   : > { %3216 = vperm.xlu1 %4339, %v3094_v1  }
  0xc4   : > { %3201 = vperm.xlu0 %4338, %v3091_v9   ;;  %v1842_v9 = vrot.slane %v6117_v14, 2 }
  0xc5   : > { %4156 = vmatmul.mubr.msk.bf16.gmra.mxu0 %vm455_vm2, %v1537_v48  ;;  %v6115_v48 = vld [vmem:[#allocation19_spill] sm:$0xff] }
  0xc6   : > { %4122 = vmatmul.mubr.msk.bf16.gmra.mxu1 %vm455_vm2, %v1245_v11  ;;  %4159 = vmatprep.mubr.msk.bf16.mxu0 %vm455_vm2, %v1546_v41  ;;  %v1838_v38 = vrot.slane %v6115_v48, 2  ;;  %v3098_v41 = vld [vmem:[%s6019_s2 + $0xc8] sm:$0xff]  ;;  %v1843_v57 = vsel %vm1828_vm5, %v1840_v13, %v1842_v9 }
  0xc7   : > { %4165 = vmatprep.mubr.msk.bf16.mxu1 %vm455_vm2, %v1831_v34  ;;  %3226 = vperm.xlu1 %4339, %v3096_v12   ;;  %v3099_v34 = vld [vmem:[%s6019_s2 + $0xd0] sm:$0xff]  ;;  %v6121_v12 = vld [vmem:[#allocation2_spill] sm:$0xff] }
  0xc8   : > { %3211 = vperm.xlu0 %4338, %v3093_v17   ;;  %v1839_v11 = vsel %vm1828_vm5, %v1836_v8, %v1838_v38 }
  0xcb   : > { %3236 = vperm.xlu1 %4339, %v3098_v41   ;;  %v3105_v41 = vld [vmem:[%s6019_s2 + $0x100] sm:$0xff] }
  0xcc   : > { %3221 = vperm.xlu0 %4338, %v3095_v55   ;;  %v6119_v55 = vld [vmem:[#allocation29_spill] sm:$0xff] }
  0xcd   : > { %4160 = vmatmul.mubr.msk.bf16.gmra.mxu0 %vm455_vm2, %v1555_v29  ;;  %v1841_v29 = vsel %vm1828_vm5, %v1838_v38, %v1840_v13  ;;  %v1844_v8 = vrot.slane %v6119_v55, 2 }
  0xce   : > { %4166 = vmatmul.mubr.msk.bf16.vlgmr.msra.gmra.mxu1 %vm455_vm2, %v1833_v58  ;;  %4203 = vmatprep.mubr.msk.bf16.mxu0 %vm455_vm2, %v1833_v58 }
  0xcf   : > { %4240 = vmatpush3.bf16.msra.mxu1 %v2511_v0  ;;  %4169 = vmatprep.mubr.msk.bf16.mxu1 %vm455_vm2, %v1835_v18  ;;  %v3102_v0 = vld [vmem:[%s6019_s2 + $0xe8] sm:$0xff]  ;;  %v1845_v13 = vsel %vm1828_vm5, %v1842_v9, %v1844_v8 }
  0xd0   : > { %3231 = vperm.xlu0 %4338, %v3097_v20   ;;  %3246 = vperm.xlu1 %4339, %v3100_v2   ;;  %v1846_v20 = vrot.slane %v6121_v12, 2  ;;  %v3106_v9 = vld [vmem:[%s6019_s2 + $0x108] sm:$0xff] }
  0xd4   : > { %3241 = vperm.xlu0 %4338, %v3099_v34   ;;  %3256 = vperm.xlu1 %4339, %v3102_v0  }
  0xd5   : > { %4204 = vmatmul.mubr.msk.bf16.vlgmr.msra.gmra.mxu0 %vm455_vm2, %v1835_v18  ;;  %v3103_v18 = vld [vmem:[%s6019_s2 + $0xf0] sm:$0xff] }
  0xd6   : > { %4170 = vmatmul.mubr.msk.bf16.gmra.mxu1 %vm455_vm2, %v1837_v44  ;;  %4278 = vmatpush3.bf16.msra.mxu0 %v2821_v39 }
  0xd7   : > { %4173 = vmatprep.mubr.msk.bf16.mxu1 %vm455_vm2, %v1839_v11  ;;  %4207 = vmatprep.mubr.msk.bf16.mxu0 %vm455_vm2, %v1837_v44 }
  0xd8   : > { %3251 = vperm.xlu0 %4338, %v3101_v51   ;;  %v1847_v51 = vsel %vm1828_vm5, %v1844_v8, %v1846_v20 }
  0xdc   : > { %3261 = vperm.xlu0 %4338, %v3103_v18   ;;  %v3107_v18 = vld [vmem:[%s6019_s2 + $0x110] sm:$0xff] }
  0xdd   : > { %v5127_v17 = vpop.f32.mrf.mxu0  ;;  %4208 = vmatmul.mubr.msk.bf16.gmra.mxu0 %vm455_vm2, %v1839_v11  ;;  %v3104_v11 = vld [vmem:[%s6019_s2 + $0xf8] sm:$0xff] }
  0xde   : > { %v5130_v58 = vpop.f32.mrf.mxu1  ;;  %4174 = vmatmul.mubr.msk.bf16.gmra.mxu1 %vm455_vm2, %v1841_v29  ;;  %4211 = vmatprep.mubr.msk.bf16.mxu0 %vm455_vm2, %v1841_v29 }
  0xdf   : > { %6118 = vst [vmem:[#allocation10_spill] sm:$0xff] %v5130_v58  ;;  %v5140_v1 = vpop.f32.mrf.mxu0  ;;  %4177 = vmatprep.mubr.msk.bf16.mxu1 %vm455_vm2, %v1843_v57  ;;  %3266 = vperm.xlu1 %4339, %v3104_v11   ;;  %v6125_v11 = vld [vmem:[#allocation3_spill] sm:$0xff] }
  0xe0   : > { %v5144_v38 = vpop.f32.mrf.mxu1  ;;  %3271 = vperm.xlu0 %4338, %v3105_v41  }
  0xe1   : > { %6120 = vst [vmem:[#allocation14_spill] sm:$0xff] %v5144_v38  ;;  %v5147_v44 = vpop.f32.mrf.mxu0 }
  0xe2   : > { %v5149_v39 = vpop.f32.mrf.mxu1 }
  0xe3   : > { %6122 = vst [vmem:[#allocation19_spill] sm:$0xff] %v5149_v39  ;;  %v5157_v34 = vpop.f32.mrf.mxu0  ;;  %3276 = vperm.xlu1 %4339, %v3106_v9  }
  0xe4   : > { %v5160_v2 = vpop.f32.mrf.mxu1  ;;  %3281 = vperm.xlu0 %4338, %v3107_v18  }
  0xe5   : > { %6123 = vst [vmem:[#allocation23_spill] sm:$0xff] %v5160_v2  ;;  %v5163_v29 = vpop.f32.mrf.mxu0  ;;  %4212 = vmatmul.mubr.msk.bf16.gmra.mxu0 %vm455_vm2, %v1843_v57  ;;  %v1848_v57 = vrot.slane %v6125_v11, 2  ;;  %v282_v11 = vld [vmem:[%s4407_s29 + $0x138] sm:$0xff] }
  0xe6   : > { %v5166_v0 = vpop.f32.mrf.mxu1  ;;  %4178 = vmatmul.mubr.msk.bf16.gmra.mxu1 %vm455_vm2, %v1845_v13  ;;  %4215 = vmatprep.mubr.msk.bf16.mxu0 %vm455_vm2, %v1845_v13  ;;  %v5265_v4 = vpack.c.bf16 %v282_v11, %v5013_v23 }
  0xe7   : > { %6124 = vst [vmem:[#allocation27_spill] sm:$0xff] %v5166_v0  ;;  %v5176_v8 = vpop.f32.mrf.mxu0  ;;  %4181 = vmatprep.mubr.msk.bf16.mxu1 %vm455_vm2, %v1847_v51  ;;  %v1849_v35 = vsel %vm1828_vm5, %v1846_v20, %v1848_v57  ;;  %3286 = vperm.xlu1 %4339, %v3108_v10   ;;  %v6131_v20 = vld [vmem:[#allocation8_spill] sm:$0xff] }
  0xe8   : > { %v5180_v41 = vpop.f32.mrf.mxu1  ;;  %6141 = vst [vmem:[#allocation42_spill] sm:$0xff] %v5265_v4  ;;  %v2142_v52 = vrot.slane %v5265_v4, 2 }
  0xe9   : > { %6126 = vst [vmem:[#allocation31_spill] sm:$0xff] %v5180_v41  ;;  %v5183_v13 = vpop.f32.mrf.mxu0  ;;  %v1851_v41 = vsel %vm1828_vm5, %v1848_v57, %v1850_v54  ;;  %v6133_v57 = vld [vmem:[#allocation12_spill] sm:$0xff] }
  0xea   : > { %v5185_v49 = vpop.f32.mrf.mxu1  ;;  %v1854_v10 = vrot.slane %v6133_v57, 2 }
  0xeb   : > { %6128 = vst [vmem:[#allocation32_spill] sm:$0xff] %v5185_v49  ;;  %v5190_v24 = vpop.f32.mrf.mxu0  ;;  %v1852_v49 = vrot.slane %v6131_v20, 2 }
  0xec   : > { %v5193_v50 = vpop.f32.mrf.mxu1 }
  0xed   : > { %6129 = vst [vmem:[#allocation33_spill] sm:$0xff] %v5193_v50  ;;  %v5196_v19 = vpop.f32.mrf.mxu0  ;;  %4216 = vmatmul.mubr.msk.bf16.gmra.mxu0 %vm455_vm2, %v1847_v51 }
  0xee   : > { %v5199_v9 = vpop.f32.mrf.mxu1  ;;  %4182 = vmatmul.mubr.msk.bf16.gmra.mxu1 %vm455_vm2, %v1849_v35  ;;  %4219 = vmatprep.mubr.msk.bf16.mxu0 %vm455_vm2, %v1849_v35  ;;  %v1855_v35 = vsel %vm1828_vm5, %v1852_v49, %v1854_v10 }
  0xef   : > { %6130 = vst [vmem:[#allocation34_spill] sm:$0xff] %v5199_v9  ;;  %v5203_v18 = vpop.f32.mrf.mxu0  ;;  %4185 = vmatprep.mubr.msk.bf16.mxu1 %vm455_vm2, %v1851_v41  ;;  %v1853_v9 = vsel %vm1828_vm5, %v1850_v54, %v1852_v49  ;;  %v1856_v54 = vrot.slane %v4544_v27, 2  ;;  %v1858_v49 = vrot.slane %v4581_v61, 2 }
  0xf0   : > { %v5207_v50 = vpop.f32.mrf.mxu1 }
  0xf1   : > { %6132 = vst [vmem:[#allocation35_spill] sm:$0xff] %v5207_v50  ;;  %v5210_v63 = vpop.f32.mrf.mxu0  ;;  %v1859_v47 = vsel %vm1828_vm5, %v1856_v54, %v1858_v49 }
  0xf2   : > { %v5212_v0 = vpop.f32.mrf.mxu1 }
  0xf3   : > { %6134 = vst [vmem:[#allocation36_spill] sm:$0xff] %v5212_v0  ;;  %v5214_v51 = vpop.f32.mrf.mxu0 }
  0xf4   : > { %v5217_v2 = vpop.f32.mrf.mxu1 }
  0xf5   : > { %6135 = vst [vmem:[#allocation37_spill] sm:$0xff] %v5217_v2  ;;  %v5220_v22 = vpop.f32.mrf.mxu0  ;;  %4220 = vmatmul.mubr.msk.bf16.gmra.mxu0 %vm455_vm2, %v1851_v41 }
  0xf6   : > { %v5223_v20 = vpop.f32.mrf.mxu1  ;;  %4186 = vmatmul.mubr.msk.bf16.gmra.mxu1 %vm455_vm2, %v1853_v9  ;;  %4223 = vmatprep.mubr.msk.bf16.mxu0 %vm455_vm2, %v1853_v9 }
  0xf7   : > { %6136 = vst [vmem:[#allocation38_spill] sm:$0xff] %v5223_v20  ;;  %v5227_v50 = vpop.f32.mrf.mxu0  ;;  %4189 = vmatprep.mubr.msk.bf16.mxu1 %vm455_vm2, %v1855_v35  ;;  %v1857_v20 = vsel %vm1828_vm5, %v1854_v10, %v1856_v54  ;;  %v6140_v10 = vld [vmem:[#allocation24_spill] sm:$0xff] }
  0xf8   : > { %v5231_v0 = vpop.f32.mrf.mxu1  ;;  %v1860_v27 = vrot.slane %v6140_v10, 2 }
  0xf9   : > { %6137 = vst [vmem:[#allocation39_spill] sm:$0xff] %v5231_v0  ;;  %v5234_v2 = vpop.f32.mrf.mxu0 }
  0xfa   : > { %v5236_v57 = vpop.f32.mrf.mxu1 }
  0xfb   : > { %6138 = vst [vmem:[#allocation40_spill] sm:$0xff] %v5236_v57  ;;  %v5238_v41 = vpop.f32.mrf.mxu0 }
  0xfc   : > { %v5241_v9 = vpop.f32.mrf.mxu1 }
  0xfd   : > { %6139 = vst [vmem:[#allocation41_spill] sm:$0xff] %v5241_v9  ;;  %v5244_v39 = vpop.f32.mrf.mxu0  ;;  %4224 = vmatmul.mubr.msk.bf16.gmra.mxu0 %vm455_vm2, %v1855_v35  ;;  %v1862_v9 = vrot.slane %v4722_v59, 2  ;;  %v6142_v59 = vld [vmem:[#allocation7_spill] sm:$0xff] }
  0xfe   : > { %v4015_v0 = vpop.f32.mrf.mxu1  ;;  %4190 = vmatmul.mubr.msk.bf16.gmra.mxu1 %vm455_vm2, %v1857_v20  ;;  %4227 = vmatprep.mubr.msk.bf16.mxu0 %vm455_vm2, %v1857_v20  ;;  %v2371_v15 = vrot.slane %v6142_v59, 2 }
  0xff   : > { %v773_v57 = vadd.f32 %v4015_v0, %v5127_v17  ;;  %v5250_v61 = vpop.f32.mrf.mxu0  ;;  %4193 = vmatprep.mubr.msk.bf16.mxu1 %vm455_vm2, %v1859_v47  ;;  %v1861_v17 = vsel %vm1828_vm5, %v1858_v49, %v1860_v27  ;;  %v1863_v0 = vsel %vm1828_vm5, %v1860_v27, %v1862_v9  ;;  %v2143_v55 = vsel %vm1828_vm5, %v1862_v9, %v2142_v52 }
 0x100   : > { %v764_v54 = vpop.f32.mrf.mxu1 }
 0x101   : > { %v765_v12 = vadd.f32 %v764_v54, %v5140_v1  ;;  %v5257_v35 = vpop.f32.mrf.mxu0  ;;  %v2372_v1 = vrot.slane %v6143_v45, 3  ;;  %v2374_v54 = vrot.slane %v4513_v5, 2  ;;  %v1864_v45 = vrot.slane %v5027_v46, 2  ;;  %v283_v5 = vld [vmem:[%s4407_s29 + $0x140] sm:$0x3f]  ;;  %s4328_s29 = smul.u32 288, %s6196_s19 }
 0x102   : > { %v4016_v38 = vpop.f32.mrf.mxu1 }
 0x103   : > { %v776_v58 = vadd.f32 %v4016_v38, %v5147_v44  ;;  %v5260_v20 = vpop.f32.mrf.mxu0  ;;  %v1865_v4 = vsel %vm1828_vm5, %v1862_v9, %v1864_v45  ;;  %s5763_s27 = scalar_lea.vmem %s6020_s3, %s4328_s29 }
 0x104   : > { %v767_v10 = vpop.f32.mrf.mxu1 }
 0x105   : > { %v768_v38 = vadd.f32 %v767_v10, %v5157_v34  ;;  %v4053_v44 = vpop.f32.mrf.mxu0  ;;  %4228 = vmatmul.mubr.msk.bf16.gmra.mxu0 %vm455_vm2, %v1859_v47  ;;  %v2373_v47 = vor.u32 %v2372_v1, %v2371_v15  ;;  %v2382_v15 = vrot.slane %v4574_v53, 2  ;;  %v2730_v53 = vrot.slane %v4460_v40, 3 }
 0x106   : > { %v4019_v49 = vpop.f32.mrf.mxu1  ;;  %v5273_v27 = vadd.f32 %v4053_v44, %v773_v57  ;;  %4194 = vmatmul.mubr.msk.bf16.gmra.mxu1 %vm455_vm2, %v1861_v17  ;;  %4231 = vmatprep.mubr.msk.bf16.mxu0 %vm455_vm2, %v1861_v17  ;;  %v2376_v57 = vor.u32 %v2375_v56, %v2374_v54 }
 0x107   : > { %v789_v59 = vadd.f32 %v4019_v49, %v5163_v29  ;;  %v1057_v23 = vpop.f32.mrf.mxu0  ;;  %4197 = vmatprep.mubr.msk.bf16.mxu1 %vm455_vm2, %v1863_v0  ;;  %v5287_v29 = vpack.c.bf16 %v283_v5, %v283_v5 }
 0x108   : > { %6144 = vst [vmem:[#allocation7_spill] sm:$0xff] %v5273_v27  ;;  %v780_v34 = vpop.f32.mrf.mxu1  ;;  %v5282_v11 = vadd.f32 %v1057_v23, %v765_v12  ;;  %v2377_v56 = vsel %vm2370_vm6, %v2373_v47, %v2376_v57  ;;  %v2386_v47 = vrot.slane %v4603_v21, 2  ;;  %v2391_v21 = vrot.slane %v4619_v43, 3 }
 0x109   : > { %v781_v10 = vadd.f32 %v780_v34, %v5176_v8  ;;  %v4054_v44 = vpop.f32.mrf.mxu0  ;;  %v2383_v8 = vrot.slane %v4555_v37, 3  ;;  %v2144_v9 = vrot.slane %v5287_v29, 2  ;;  %v2729_v37 = vrot.slane %v4448_v32, 3 }
 0x10a   : > { %v4020_v17 = vpop.f32.mrf.mxu1  ;;  %v5285_v27 = vadd.f32 %v4054_v44, %v776_v58  ;;  %v2387_v44 = vrot.slane %v4591_v6, 3  ;;  %v2734_v43 = vrot.slane %v6114_v62, 3  ;;  %v2394_v62 = vrot.slane %v4652_v16, 2 }
 0x10b   : > { %v792_v49 = vadd.f32 %v4020_v17, %v5183_v13  ;;  %v1060_v46 = vpop.f32.mrf.mxu0  ;;  %v2731_v17 = vsel %vm2728_vm7, %v2729_v37, %v2730_v53  ;;  %v2736_v16 = vrot.slane %v6115_v48, 3 }
 0x10c   : > { %v783_v12 = vpop.f32.mrf.mxu1  ;;  %v5292_v23 = vadd.f32 %v1060_v46, %v768_v38 }
 0x10d   : > { %v784_v58 = vadd.f32 %v783_v12, %v5190_v24  ;;  %v4057_v1 = vpop.f32.mrf.mxu0  ;;  %4232 = vmatmul.mubr.msk.bf16.gmra.mxu0 %vm455_vm2, %v1863_v0  ;;  %v2737_v48 = vsel %vm2728_vm7, %v2734_v43, %v2736_v16 }
 0x10e   : > { %v4023_v13 = vpop.f32.mrf.mxu1  ;;  %v5299_v54 = vadd.f32 %v4057_v1, %v789_v59  ;;  %4198 = vmatmul.mubr.msk.bf16.gmra.mxu1 %vm455_vm2, %v1865_v4  ;;  %4235 = vmatprep.mubr.msk.bf16.mxu0 %vm455_vm2, %v2143_v55  ;;  %v2384_v59 = vor.u32 %v2383_v8, %v2382_v15  ;;  %v2732_v15 = vrot.slane %v6113_v28, 3 }
 0x10f   : > { %v805_v38 = vadd.f32 %v4023_v13, %v5196_v19  ;;  %v1073_v45 = vpop.f32.mrf.mxu0  ;;  %4241 = vmatprep.mubr.msk.bf16.mxu1 %vm455_vm2, %v2377_v56  ;;  %v2145_v19 = vsel %vm1828_vm5, %v2142_v52, %v2144_v9  ;;  %v2390_v52 = vrot.slane %v4636_v33, 2 }
 0x110   : > { %v796_v24 = vpop.f32.mrf.mxu1  ;;  %v5308_v0 = vadd.f32 %v1073_v45, %v781_v10  ;;  %v2381_v10 = vsel %vm2370_vm6, %v2376_v57, %v4921_v36  ;;  %v2388_v57 = vor.u32 %v2387_v44, %v2386_v47  ;;  %v2733_v28 = vsel %vm2728_vm7, %v2730_v53, %v2732_v15 }
 0x111   : > { %v797_v4 = vadd.f32 %v796_v24, %v5203_v18  ;;  %v4058_v5 = vpop.f32.mrf.mxu0  ;;  %v2735_v24 = vsel %vm2728_vm7, %v2732_v15, %v2734_v43 }
 0x112   : > { %v4024_v55 = vpop.f32.mrf.mxu1  ;;  %v5311_v34 = vadd.f32 %v4058_v5, %v792_v49  ;;  %v2385_v49 = vsel %vm2370_vm6, %v4921_v36, %v2384_v59  ;;  %v2389_v45 = vsel %vm2370_vm6, %v2384_v59, %v2388_v57  ;;  %v2399_v59 = vrot.slane %v4658_v42, 3 }
 0x113   : > { %v808_v32 = vadd.f32 %v4024_v55, %v5210_v63  ;;  %v1076_v40 = vpop.f32.mrf.mxu0 }
 0x114   : > { %v799_v46 = vpop.f32.mrf.mxu1  ;;  %v5320_v18 = vadd.f32 %v1076_v40, %v784_v58  ;;  %v2392_v58 = vor.u32 %v2391_v21, %v2390_v52  ;;  %v2403_v21 = vrot.slane %v4435_v25, 3 }
 0x115   : > { %v800_v6 = vadd.f32 %v799_v46, %v5214_v51  ;;  %v4061_v12 = vpop.f32.mrf.mxu0  ;;  %4236 = vmatmul.mubr.msk.bf16.gmra.mxu0 %vm455_vm2, %v2145_v19  ;;  %v2398_v19 = vrot.slane %v4666_v7, 2  ;;  %v2738_v7 = vrot.slane %v6116_v60, 3 }
 0x116   : > { %v4027_v63 = vpop.f32.mrf.mxu1  ;;  %v5328_v56 = vadd.f32 %v4061_v12, %v805_v38  ;;  %4242 = vmatmul.mubr.msk.bf16.vlgmr.msra.gmra.mxu1 %vm455_vm2, %v2381_v10  ;;  %4279 = vmatprep.mubr.msk.bf16.mxu0 %vm455_vm2, %v2731_v17 }
 0x117   : > { %v821_v36 = vadd.f32 %v4027_v63, %v5220_v22  ;;  %v1089_v33 = vpop.f32.mrf.mxu0  ;;  %4245 = vmatprep.mubr.msk.bf16.mxu1 %vm455_vm2, %v2385_v49  ;;  %v2400_v10 = vor.u32 %v2399_v59, %v2398_v19  ;;  %v2739_v63 = vsel %vm2728_vm7, %v2736_v16, %v2738_v7  ;;  %v6148_v59 = vld [vmem:[#allocation13_spill] sm:$0xff]  ;;  %v6150_v16 = vld [vmem:[#allocation10_spill] sm:$0xff] }
 0x118   : > { %v812_v51 = vpop.f32.mrf.mxu1  ;;  %v5336_v8 = vadd.f32 %v1089_v33, %v797_v4  ;;  %v2395_v4 = vrot.slane %v4640_v3, 3  ;;  %v2407_v33 = vrot.slane %v4443_v30, 3 }
 0x119   : > { %v813_v1 = vadd.f32 %v812_v51, %v5227_v50  ;;  %v4062_v13 = vpop.f32.mrf.mxu0  ;;  %v2393_v50 = vsel %vm2370_vm6, %v2388_v57, %v2392_v58 }
 0x11a   : > { %v4028_v9 = vpop.f32.mrf.mxu1  ;;  %v5339_v38 = vadd.f32 %v4062_v13, %v808_v32  ;;  %v2396_v42 = vor.u32 %v2395_v4, %v2394_v62  ;;  %v6146_v62 = vld [vmem:[#allocation9_spill] sm:$0xff] }
 0x11b   : > { %v824_v22 = vadd.f32 %v4028_v9, %v5234_v2  ;;  %v1092_v37 = vpop.f32.mrf.mxu0  ;;  %v2410_v4 = vrot.slane %v6146_v62, 2 }
 0x11c   : > { %v815_v5 = vpop.f32.mrf.mxu1  ;;  %v5347_v55 = vadd.f32 %v1092_v37, %v800_v6  ;;  %v2397_v60 = vsel %vm2370_vm6, %v2392_v58, %v2396_v42  ;;  %v2740_v58 = vrot.slane %v6117_v14, 3 }
 0x11d   : > { %v816_v53 = vadd.f32 %v815_v5, %v5238_v41  ;;  %v4065_v47 = vpop.f32.mrf.mxu0  ;;  %4280 = vmatmul.mubr.msk.bf16.vlgmr.msra.gmra.mxu0 %vm455_vm2, %v2733_v28 }
 0x11e   : > { %v4031_v2 = vpop.f32.mrf.mxu1  ;;  %v5354_v44 = vadd.f32 %v4065_v47, %v821_v36  ;;  %4246 = vmatmul.mubr.msk.bf16.gmra.mxu1 %vm455_vm2, %v2389_v45  ;;  %4283 = vmatprep.mubr.msk.bf16.mxu0 %vm455_vm2, %v2735_v24  ;;  %v2406_v36 = vrot.slane %v4446_v31, 2  ;;  %v6145_v31 = vld [vmem:[#allocation29_spill] sm:$0xff]  ;;  %v2741_v24 = vsel %vm2728_vm7, %v2738_v7, %v2740_v58  ;;  %v6149_v47 = vld [vmem:[#allocation11_spill] sm:$0xff]  ;;  %v6151_v7 = vld [vmem:[#allocation14_spill] sm:$0xff] }
 0x11f   : > { %v837_v3 = vadd.f32 %v4031_v2, %v5244_v39  ;;  %v1105_v32 = vpop.f32.mrf.mxu0  ;;  %4249 = vmatprep.mubr.msk.bf16.mxu1 %vm455_vm2, %v2393_v50  ;;  %v2402_v39 = vrot.slane %v4438_v26, 2  ;;  %v2742_v30 = vrot.slane %v6145_v31, 3  ;;  %v6147_v50 = vld [vmem:[#allocation6_spill] sm:$0xff]  ;;  %v2415_v2 = vrot.slane %v6149_v47, 3 }
 0x120   : > { %v828_v41 = vpop.f32.mrf.mxu1  ;;  %v5362_v40 = vadd.f32 %v1105_v32, %v813_v1  ;;  %v2408_v9 = vor.u32 %v2407_v33, %v2406_v36  ;;  %v2411_v19 = vrot.slane %v6147_v50, 3  ;;  %v6160_v47 = vld [vmem:[#allocation18_spill] sm:$0xff] }
 0x121   : > { %v829_v17 = vadd.f32 %v828_v41, %v5250_v61  ;;  %v4066_v46 = vpop.f32.mrf.mxu0  ;;  %v2401_v61 = vsel %vm2370_vm6, %v2396_v42, %v2400_v10  ;;  %v2404_v51 = vor.u32 %v2403_v21, %v2402_v39  ;;  %v2743_v5 = vsel %vm2728_vm7, %v2740_v58, %v2742_v30 }
 0x122   : > { %v4032_v49 = vpop.f32.mrf.mxu1  ;;  %v5365_v52 = vadd.f32 %v4066_v46, %v824_v22 }
 0x123   : > { %v840_v6 = vadd.f32 %v4032_v49, %v5257_v35  ;;  %v1108_v12 = vpop.f32.mrf.mxu0  ;;  %v2405_v37 = vsel %vm2370_vm6, %v2400_v10, %v2404_v51  ;;  %v2409_v41 = vsel %vm2370_vm6, %v2404_v51, %v2408_v9  ;;  %v6156_v51 = vld [vmem:[#allocation15_spill] sm:$0xff] }
 0x124   : > { %v831_v57 = vpop.f32.mrf.mxu1  ;;  %v5373_v15 = vadd.f32 %v1108_v12, %v816_v53  ;;  %v2414_v53 = vrot.slane %v6148_v59, 2  ;;  %v2419_v58 = vrot.slane %v6156_v51, 3  ;;  %v6159_v59 = vld [vmem:[#allocation21_spill] sm:$0xff] }
 0x125   : > { %v832_v26 = vadd.f32 %v831_v57, %v5260_v20  ;;  %v4069_v43 = vpop.f32.mrf.mxu0  ;;  %4284 = vmatmul.mubr.msk.bf16.gmra.mxu0 %vm455_vm2, %v2737_v48  ;;  %v6152_v48 = vld [vmem:[#allocation2_spill] sm:$0xff]  ;;  %v6154_v57 = vld [vmem:[#allocation19_spill] sm:$0xff] }
 0x126   : > { %v4035_v25 = vpop.f32.mrf.mxu1  ;;  %v5380_v35 = vadd.f32 %v4069_v43, %v837_v3  ;;  %4250 = vmatmul.mubr.msk.bf16.gmra.mxu1 %vm455_vm2, %v2397_v60  ;;  %4287 = vmatprep.mubr.msk.bf16.mxu0 %vm455_vm2, %v2739_v63  ;;  %v2744_v39 = vrot.slane %v6152_v48, 3  ;;  %v2416_v12 = vor.u32 %v2415_v2, %v2414_v53  ;;  %v6153_v60 = vld [vmem:[#allocation3_spill] sm:$0xff]  ;;  %v6155_v43 = vld [vmem:[#allocation17_spill] sm:$0xff]  ;;  %v2422_v53 = vrot.slane %v6159_v59, 2  ;;  %v6170_v59 = vld [vmem:[#allocation34_spill] sm:$0xff] }
 0x127   : > { %v1121_v1 = vpop.f32.mrf.mxu0  ;;  %4253 = vmatprep.mubr.msk.bf16.mxu1 %vm455_vm2, %v2401_v61  ;;  %v853_v3 = vadd.f32 %v4035_v25, %v6150_v16  ;;  %v2746_v63 = vrot.slane %v6153_v60, 3  ;;  %v2418_v25 = vrot.slane %v6155_v43, 2  ;;  %v2423_v2 = vrot.slane %v6160_v47, 3 }
 0x128   : > { %v844_v13 = vpop.f32.mrf.mxu1  ;;  %v5387_v20 = vadd.f32 %v1121_v1, %v829_v17  ;;  %v6157_v1 = vld [vmem:[#allocation23_spill] sm:$0xff] }
 0x129   : > { %v4070_v45 = vpop.f32.mrf.mxu0  ;;  %v845_v17 = vadd.f32 %v844_v13, %v6151_v7 }
 0x12a   : > { %v4036_v28 = vpop.f32.mrf.mxu1  ;;  %v5389_v22 = vadd.f32 %v4070_v45, %v840_v6  ;;  %v2412_v6 = vor.u32 %v2411_v19, %v2410_v4  ;;  %v2747_v4 = vsel %vm2728_vm7, %v2744_v39, %v2746_v63 }
 0x12b   : > { %v1124_v14 = vpop.f32.mrf.mxu0  ;;  %v856_v61 = vadd.f32 %v4036_v28, %v6154_v57  ;;  %v2424_v57 = vor.u32 %v2423_v2, %v2422_v53 }
 0x12c   : > { %v847_v32 = vpop.f32.mrf.mxu1  ;;  %v5399_v42 = vadd.f32 %v1124_v14, %v832_v26  ;;  %v2413_v62 = vsel %vm2370_vm6, %v2408_v9, %v2412_v6  ;;  %v2417_v28 = vsel %vm2370_vm6, %v2412_v6, %v2416_v12  ;;  %v6158_v14 = vld [vmem:[#allocation27_spill] sm:$0xff] }
 0x12d   : > { %v4073_v10 = vpop.f32.mrf.mxu0  ;;  %4288 = vmatmul.mubr.msk.bf16.gmra.mxu0 %vm455_vm2, %v2741_v24  ;;  %v848_v31 = vadd.f32 %v847_v32, %v6157_v1  ;;  %v6166_v1 = vld [vmem:[#allocation25_spill] sm:$0xff] }
 0x12e   : > { %v4039_v46 = vpop.f32.mrf.mxu1  ;;  %v5404_v49 = vadd.f32 %v4073_v10, %v853_v3  ;;  %4254 = vmatmul.mubr.msk.bf16.gmra.mxu1 %vm455_vm2, %v2405_v37  ;;  %4291 = vmatprep.mubr.msk.bf16.mxu0 %vm455_vm2, %v2743_v5  ;;  %v2745_v37 = vsel %vm2728_vm7, %v2742_v30, %v2744_v39  ;;  %v2420_v30 = vor.u32 %v2419_v58, %v2418_v25  ;;  %v6161_v3 = vld [vmem:[#allocation31_spill] sm:$0xff]  ;;  %v6162_v10 = vld [vmem:[#allocation4_spill] sm:$0xff] }
 0x12f   : > { %v1137_v21 = vpop.f32.mrf.mxu0  ;;  %4257 = vmatprep.mubr.msk.bf16.mxu1 %vm455_vm2, %v2409_v41  ;;  %v869_v5 = vadd.f32 %v4039_v46, %v6158_v14  ;;  %v2748_v7 = vrot.slane %v6162_v10, 3  ;;  %v6163_v46 = vld [vmem:[#allocation8_spill] sm:$0xff]  ;;  %v6169_v14 = vld [vmem:[#allocation26_spill] sm:$0xff] }
 0x130   : > { %v860_v36 = vpop.f32.mrf.mxu1  ;;  %v5412_v33 = vadd.f32 %v1137_v21, %v845_v17  ;;  %v2750_v48 = vrot.slane %v6163_v46, 3  ;;  %v6164_v39 = vld [vmem:[#allocation32_spill] sm:$0xff]  ;;  %v2425_v47 = vsel %vm2370_vm6, %v2420_v30, %v2424_v57 }
 0x131   : > { %v4074_v26 = vpop.f32.mrf.mxu0  ;;  %v861_v32 = vadd.f32 %v860_v36, %v6161_v3  ;;  %v2421_v36 = vsel %vm2370_vm6, %v2416_v12, %v2420_v30  ;;  %v2749_v58 = vsel %vm2728_vm7, %v2746_v63, %v2748_v7  ;;  %v6171_v63 = vld [vmem:[#allocation12_spill] sm:$0xff]  ;;  %v6172_v3 = vld [vmem:[#allocation35_spill] sm:$0xff] }
 0x132   : > { %v4040_v13 = vpop.f32.mrf.mxu1  ;;  %v5417_v45 = vadd.f32 %v4074_v26, %v856_v61  ;;  %v6165_v26 = vld [vmem:[#allocation33_spill] sm:$0xff]  ;;  %v6173_v30 = vld [vmem:[#allocation16_spill] sm:$0xff] }
 0x133   : > { %v1140_v24 = vpop.f32.mrf.mxu0  ;;  %v872_v21 = vadd.f32 %v4040_v13, %v6164_v39  ;;  %v6167_v13 = vld [vmem:[#allocation22_spill] sm:$0xff]  ;;  %v2754_v39 = vrot.slane %v6173_v30, 3 }
 0x134   : > { %v863_v50 = vpop.f32.mrf.mxu1  ;;  %v5424_v19 = vadd.f32 %v1140_v24, %v848_v31  ;;  %v2426_v31 = vrot.slane %v6166_v1, 2  ;;  %v2751_v24 = vsel %vm2728_vm7, %v2748_v7, %v2750_v48 }
 0x135   : > { %v4077_v16 = vpop.f32.mrf.mxu0  ;;  %4292 = vmatmul.mubr.msk.bf16.gmra.mxu0 %vm455_vm2, %v2745_v37  ;;  %v864_v43 = vadd.f32 %v863_v50, %v6165_v26 }
 0x136   : > { %v4043_v9 = vpop.f32.mrf.mxu1  ;;  %v5430_v41 = vadd.f32 %v4077_v16, %v869_v5  ;;  %4258 = vmatmul.mubr.msk.bf16.gmra.mxu1 %vm455_vm2, %v2413_v62  ;;  %4295 = vmatprep.mubr.msk.bf16.mxu0 %vm455_vm2, %v2747_v4  ;;  %v2427_v62 = vrot.slane %v6167_v13, 3  ;;  %v2431_v5 = vrot.slane %v6169_v14, 3  ;;  %v2752_v16 = vrot.slane %v6171_v63, 3  ;;  %v6180_v63 = vld [vmem:[#allocation38_spill] sm:$0xff] }
 0x137   : > { %v1153_v17 = vpop.f32.mrf.mxu0  ;;  %4261 = vmatprep.mubr.msk.bf16.mxu1 %vm455_vm2, %v2417_v28  ;;  %v6168_v28 = vld [vmem:[#allocation28_spill] sm:$0xff]  ;;  %v885_v12 = vadd.f32 %v4043_v9, %v6170_v59 }
 0x138   : > { %v876_v6 = vpop.f32.mrf.mxu1  ;;  %v5438_v60 = vadd.f32 %v1153_v17, %v861_v32  ;;  %v2430_v4 = vrot.slane %v6168_v28, 2  ;;  %v2428_v17 = vor.u32 %v2427_v62, %v2426_v31  ;;  %v6177_v31 = vld [vmem:[#allocation30_spill] sm:$0xff] }
 0x139   : > { %v4078_v61 = vpop.f32.mrf.mxu0  ;;  %v877_v32 = vadd.f32 %v876_v6, %v6172_v3  ;;  %v6175_v6 = vld [vmem:[#allocation42_spill] sm:$0xff]  ;;  %v6178_v62 = vshrl.u32 %v6177_v31, 16 }
 0x13a   : > { %v4044_v25 = vpop.f32.mrf.mxu1  ;;  %v5442_v51 = vadd.f32 %v4078_v61, %v872_v21  ;;  %v2432_v46 = vor.u32 %v2431_v5, %v2430_v4  ;;  %v6174_v21 = vld [vmem:[#allocation36_spill] sm:$0xff]  ;;  %v2442_v1 = vshll.u32 %v6175_v6, 16 }
 0x13b   : > { %v1156_v37 = vpop.f32.mrf.mxu0  ;;  %v888_v61 = vadd.f32 %v4044_v25, %v6174_v21  ;;  %v2434_v4 = vrot.slane %v6178_v62, 2  ;;  %v6179_v25 = vshll.u32 %v6177_v31, 16  ;;  %v6181_v21 = vld [vmem:[#allocation39_spill] sm:$0xff] }
 0x13c   : > { %v879_v53 = vpop.f32.mrf.mxu1  ;;  %v5451_v50 = vadd.f32 %v1156_v37, %v864_v43 }
 0x13d   : > { %v4081_v2 = vpop.f32.mrf.mxu0  ;;  %4296 = vmatmul.mubr.msk.bf16.gmra.mxu0 %vm455_vm2, %v2749_v58  ;;  %v2439_v58 = vshrl.u32 %v6175_v6, 16  ;;  %v2435_v5 = vrot.slane %v6179_v25, 3  ;;  %v6185_v25 = vld [vmem:[#allocation40_spill] sm:$0xff] }
 0x13e   : > { %v4047_v10 = vpop.f32.mrf.mxu1  ;;  %v5457_v7 = vadd.f32 %v4081_v2, %v885_v12  ;;  %4262 = vmatmul.mubr.msk.bf16.gmra.mxu1 %vm455_vm2, %v2421_v36  ;;  %4299 = vmatprep.mubr.msk.bf16.mxu0 %vm455_vm2, %v2751_v24  ;;  %v2753_v36 = vsel %vm2728_vm7, %v2750_v48, %v2752_v16  ;;  %v6176_v24 = vld [vmem:[#allocation37_spill] sm:$0xff]  ;;  %v2429_v12 = vsel %vm2370_vm6, %v2424_v57, %v2428_v17 }
 0x13f   : > { %v1169_v9 = vpop.f32.mrf.mxu0  ;;  %4265 = vmatprep.mubr.msk.bf16.mxu1 %vm455_vm2, %v2425_v47  ;;  %v880_v13 = vadd.f32 %v879_v53, %v6176_v24  ;;  %v2433_v47 = vsel %vm2370_vm6, %v2428_v17, %v2432_v46  ;;  %v2755_v2 = vsel %vm2728_vm7, %v2752_v16, %v2754_v39  ;;  %v901_v48 = vadd.f32 %v4047_v10, %v6180_v63  ;;  %v6182_v16 = vld [vmem:[#allocation20_spill] sm:$0xff]  ;;  %v6183_v17 = vld [vmem:[#allocation7_spill] sm:$0xff] }
 0x140   : > { %v892_v26 = vpop.f32.mrf.mxu1  ;;  %v5464_v43 = vadd.f32 %v1169_v9, %v877_v32  ;;  %v2441_v32 = vrot.slane %v2439_v58, 2  ;;  %v2444_v9 = vrot.slane %v2442_v1, 3  ;;  %v2436_v57 = vor.u32 %v2435_v5, %v2434_v4  ;;  %v6184_v58 = vld [vmem:[#allocation24_spill] sm:$0xff] }
 0x141   : > { %v4082_v37 = vpop.f32.mrf.mxu0  ;;  %v2756_v10 = vrot.slane %v6182_v16, 3  ;;  %v2758_v1 = vrot.slane %v6184_v58, 3 }
 0x142   : > { %v4048_v28 = vpop.f32.mrf.mxu1  ;;  %v5470_v14 = vadd.f32 %v4082_v37, %v888_v61  ;;  %v893_v61 = vadd.f32 %v892_v26, %v6181_v21  ;;  %v2451_v26 = vshll.u32 %v5287_v29, 16 }
 0x143   : > { %v1172_v59 = vpop.f32.mrf.mxu0  ;;  %v2757_v16 = vsel %vm2728_vm7, %v2754_v39, %v2756_v10 }
 0x144   : > { %v895_v3 = vpop.f32.mrf.mxu1  ;;  %v5480_v53 = vadd.f32 %v1172_v59, %v880_v13  ;;  %v904_v59 = vadd.f32 %v4048_v28, %v6185_v25  ;;  %v2759_v28 = vsel %vm2728_vm7, %v2756_v10, %v2758_v1 }
 0x145   : > { %v4085_v30 = vpop.f32.mrf.mxu0  ;;  %4300 = vmatmul.mubr.msk.bf16.gmra.mxu0 %vm455_vm2, %v2753_v36  ;;  %v2448_v36 = vshrl.u32 %v5287_v29, 16 }
 0x146   : > { %v5484_v37 = vadd.f32 %v4085_v30, %v901_v48  ;;  %v4091_v24 = vpop.f32.mrf.mxu1  ;;  %4266 = vmatmul.mubr.msk.bf16.gmra.mxu1 %vm455_vm2, %v2429_v12  ;;  %4303 = vmatprep.mubr.msk.bf16.mxu0 %vm455_vm2, %v2755_v2  ;;  %v2445_v2 = vor.u32 %v2444_v9, %v2441_v32  ;;  %v6186_v48 = vld [vmem:[#allocation41_spill] sm:$0xff] }
 0x147   : > { %v1434_v13 = vadd.f32 %v4091_v24, %v6183_v17  ;;  %v1185_v62 = vpop.f32.mrf.mxu0  ;;  %4269 = vmatprep.mubr.msk.bf16.mxu1 %vm455_vm2, %v2433_v47  ;;  %v896_v30 = vadd.f32 %v895_v3, %v6186_v48  ;;  %v2437_v24 = vsel %vm2370_vm6, %v2432_v46, %v2436_v57 }
 0x148   : > { %v5495_v63 = vadd.f32 %v1185_v62, %v893_v61  ;;  %v1289_v12 = vpop.f32.mrf.mxu1  ;;  %v2450_v61 = vrot.slane %v2448_v36, 2  ;;  %v2453_v62 = vrot.slane %v2451_v26, 3  ;;  %v2446_v9 = vsel %vm2370_vm6, %v2436_v57, %v2445_v2 }
 0x149   : > { %v1432_v4 = vadd.f32 %v1289_v12, %v5282_v11  ;;  %v4086_v5 = vpop.f32.mrf.mxu0 }
 0x14a   : > { %v5499_v21 = vadd.f32 %v4086_v5, %v904_v59  ;;  %v4092_v47 = vpop.f32.mrf.mxu1  ;;  %v2454_v57 = vor.u32 %v2453_v62, %v2450_v61 }
 0x14b   : > { %v1435_v17 = vadd.f32 %v4092_v47, %v5285_v27  ;;  %v1188_v58 = vpop.f32.mrf.mxu0  ;;  %v2760_v27 = vrot.slane %v6177_v31, 3 }
 0x14c   : > { %v5505_v32 = vadd.f32 %v1188_v58, %v896_v30  ;;  %v1292_v11 = vpop.f32.mrf.mxu1  ;;  %v2455_v47 = vsel %vm2370_vm6, %v2445_v2, %v2454_v57 }
 0x14d   : > { %v1433_v3 = vadd.f32 %v1292_v11, %v5292_v23  ;;  %v4129_v25 = vpop.f32.mrf.mxu0  ;;  %4304 = vmatmul.mubr.msk.bf16.gmra.mxu0 %vm455_vm2, %v2757_v16  ;;  %v2762_v23 = vrot.slane %v6175_v6, 3  ;;  %v2761_v30 = vsel %vm2728_vm7, %v2758_v1, %v2760_v27 }
 0x14e   : > { %v4095_v46 = vpop.f32.mrf.mxu1  ;;  %v5510_v59 = vadd.f32 %v4129_v25, %v1434_v13  ;;  %4270 = vmatmul.mubr.msk.bf16.gmra.mxu1 %vm455_vm2, %v2437_v24  ;;  %4307 = vmatprep.mubr.msk.bf16.mxu0 %vm455_vm2, %v2759_v28 }
 0x14f   : > { %v1438_v39 = vadd.f32 %v4095_v46, %v5299_v54  ;;  %v1647_v10 = vpop.f32.mrf.mxu0  ;;  %4273 = vmatprep.mubr.msk.bf16.mxu1 %vm455_vm2, %v2446_v9  ;;  %v2763_v24 = vsel %vm2728_vm7, %v2760_v27, %v2762_v23 }
 0x150   : > { %v1305_v36 = vpop.f32.mrf.mxu1  ;;  %v5518_v26 = vadd.f32 %v1647_v10, %v1432_v4 }
 0x151   : > { %v1436_v13 = vadd.f32 %v1305_v36, %v5308_v0  ;;  %v4130_v12 = vpop.f32.mrf.mxu0 }
 0x152   : > { %v4096_v5 = vpop.f32.mrf.mxu1  ;;  %v5521_v48 = vadd.f32 %v4130_v12, %v1435_v17 }
 0x153   : > { %v1439_v31 = vadd.f32 %v4096_v5, %v5311_v34  ;;  %v1650_v54 = vpop.f32.mrf.mxu0  ;;  %v2764_v34 = vrot.slane %v5287_v29, 3 }
 0x154   : > { %v1308_v16 = vpop.f32.mrf.mxu1  ;;  %v5527_v6 = vadd.f32 %v1650_v54, %v1433_v3 }
 0x155   : > { %v1437_v4 = vadd.f32 %v1308_v16, %v5320_v18  ;;  %v4133_v58 = vpop.f32.mrf.mxu0  ;;  %4308 = vmatmul.mubr.msk.bf16.gmra.mxu0 %vm455_vm2, %v2761_v30  ;;  %v2765_v3 = vsel %vm2728_vm7, %v2762_v23, %v2764_v34 }
 0x156   : > { %v4099_v0 = vpop.f32.mrf.mxu1  ;;  %v5531_v17 = vadd.f32 %v4133_v58, %v1438_v39  ;;  %4274 = vmatmul.mubr.msk.bf16.gmra.mxu1 %vm455_vm2, %v2455_v47  ;;  %4311 = vmatprep.mubr.msk.bf16.mxu0 %vm455_vm2, %v2763_v24 }
 0x157   : > { %v1442_v1 = vadd.f32 %v4099_v0, %v5328_v56  ;;  %v1663_v2 = vpop.f32.mrf.mxu0 }
 0x158   : > { %v1321_v28 = vpop.f32.mrf.mxu1  ;;  %v5537_v61 = vadd.f32 %v1663_v2, %v1436_v13 }
 0x159   : > { %v1440_v18 = vadd.f32 %v1321_v28, %v5336_v8  ;;  %v4134_v62 = vpop.f32.mrf.mxu0 }
 0x15a   : > { %v4100_v11 = vpop.f32.mrf.mxu1  ;;  %v5540_v9 = vadd.f32 %v4134_v62, %v1439_v31 }
 0x15b   : > { %v1443_v25 = vadd.f32 %v4100_v11, %v5339_v38  ;;  %v1666_v46 = vpop.f32.mrf.mxu0 }
 0x15c   : > { %v1324_v27 = vpop.f32.mrf.mxu1  ;;  %v5544_v39 = vadd.f32 %v1666_v46, %v1437_v4 }
 0x15d   : > { %v1441_v29 = vadd.f32 %v1324_v27, %v5347_v55  ;;  %v4137_v56 = vpop.f32.mrf.mxu0  ;;  %4312 = vmatmul.mubr.msk.bf16.gmra.mxu0 %vm455_vm2, %v2765_v3 }
 0x15e   : > { %v4103_v10 = vpop.f32.mrf.mxu1  ;;  %v5548_v57 = vadd.f32 %v4137_v56, %v1442_v1 }
 0x15f   : > { %v1446_v8 = vadd.f32 %v4103_v10, %v5354_v44  ;;  %v1679_v36 = vpop.f32.mrf.mxu0 }
 0x160   : > { %v1337_v13 = vpop.f32.mrf.mxu1  ;;  %v5551_v12 = vadd.f32 %v1679_v36, %v1440_v18 }
 0x161   : > { %v1444_v38 = vadd.f32 %v1337_v13, %v5362_v40  ;;  %v4138_v23 = vpop.f32.mrf.mxu0 }
 0x162   : > { %v4104_v5 = vpop.f32.mrf.mxu1  ;;  %v5554_v30 = vadd.f32 %v4138_v23, %v1443_v25 }
 0x163   : > { %v1447_v55 = vadd.f32 %v4104_v5, %v5365_v52  ;;  %v1682_v31 = vpop.f32.mrf.mxu0 }
 0x164   : > { %v1340_v54 = vpop.f32.mrf.mxu1  ;;  %v5557_v47 = vadd.f32 %v1682_v31, %v1441_v29 }
 0x165   : > { %v1445_v24 = vadd.f32 %v1340_v54, %v5373_v15  ;;  %v4141_v16 = vpop.f32.mrf.mxu0 }
 0x166   : > { %v4107_v44 = vpop.f32.mrf.mxu1  ;;  %v5560_v4 = vadd.f32 %v4141_v16, %v1446_v8 }
 0x167   : > { %v1450_v58 = vadd.f32 %v4107_v44, %v5380_v35  ;;  %v1695_v0 = vpop.f32.mrf.mxu0 }
 0x168   : > { %v1353_v40 = vpop.f32.mrf.mxu1  ;;  %v5563_v34 = vadd.f32 %v1695_v0, %v1444_v38 }
 0x169   : > { %v1448_v1 = vadd.f32 %v1353_v40, %v5387_v20  ;;  %v4142_v2 = vpop.f32.mrf.mxu0 }
 0x16a   : > { %v4108_v52 = vpop.f32.mrf.mxu1  ;;  %v5566_v28 = vadd.f32 %v4142_v2, %v1447_v55 }
 0x16b   : > { %v1451_v18 = vadd.f32 %v4108_v52, %v5389_v22  ;;  %v1698_v62 = vpop.f32.mrf.mxu0 }
 0x16c   : > { %v1356_v15 = vpop.f32.mrf.mxu1  ;;  %v5569_v11 = vadd.f32 %v1698_v62, %v1445_v24 }
 0x16d   : > { %v1449_v3 = vadd.f32 %v1356_v15, %v5399_v42  ;;  %v4145_v25 = vpop.f32.mrf.mxu0 }
 0x16e   : > { %v4111_v35 = vpop.f32.mrf.mxu1  ;;  %v5572_v46 = vadd.f32 %v4145_v25, %v1450_v58 }
 0x16f   : > { %v1454_v27 = vadd.f32 %v4111_v35, %v5404_v49  ;;  %v1711_v29 = vpop.f32.mrf.mxu0 }
 0x170   : > { %v1369_v20 = vpop.f32.mrf.mxu1  ;;  %v5575_v56 = vadd.f32 %v1711_v29, %v1448_v1 }
 0x171   : > { %v1452_v10 = vadd.f32 %v1369_v20, %v5412_v33  ;;  %v4146_v8 = vpop.f32.mrf.mxu0 }
 0x172   : > { %v4112_v22 = vpop.f32.mrf.mxu1  ;;  %v5578_v36 = vadd.f32 %v4146_v8, %v1451_v18 }
 0x173   : > { %v1455_v13 = vadd.f32 %v4112_v22, %v5417_v45  ;;  %v1714_v38 = vpop.f32.mrf.mxu0 }
 0x174   : > { %v1372_v42 = vpop.f32.mrf.mxu1  ;;  %v5581_v23 = vadd.f32 %v1714_v38, %v1449_v3 }
 0x175   : > { %v1453_v5 = vadd.f32 %v1372_v42, %v5424_v19  ;;  %v4149_v55 = vpop.f32.mrf.mxu0 }
 0x176   : > { %v4115_v49 = vpop.f32.mrf.mxu1  ;;  %v5584_v31 = vadd.f32 %v4149_v55, %v1454_v27 }
 0x177   : > { %v1458_v54 = vadd.f32 %v4115_v49, %v5430_v41  ;;  %v1727_v24 = vpop.f32.mrf.mxu0 }
 0x178   : > { %v1385_v33 = vpop.f32.mrf.mxu1  ;;  %v5587_v16 = vadd.f32 %v1727_v24, %v1452_v10 }
 0x179   : > { %v1456_v44 = vadd.f32 %v1385_v33, %v5438_v60  ;;  %v4150_v58 = vpop.f32.mrf.mxu0 }
 0x17a   : > { %v4116_v45 = vpop.f32.mrf.mxu1  ;;  %v5590_v0 = vadd.f32 %v4150_v58, %v1455_v13 }
 0x17b   : > { %v1459_v40 = vadd.f32 %v4116_v45, %v5442_v51  ;;  %v1730_v1 = vpop.f32.mrf.mxu0 }
 0x17c   : > { %v1388_v19 = vpop.f32.mrf.mxu1  ;;  %v5593_v2 = vadd.f32 %v1730_v1, %v1453_v5 }
 0x17d   : > { %v1457_v52 = vadd.f32 %v1388_v19, %v5451_v50  ;;  %v4153_v18 = vpop.f32.mrf.mxu0 }
 0x17e   : > { %v4119_v41 = vpop.f32.mrf.mxu1  ;;  %v5596_v62 = vadd.f32 %v4153_v18, %v1458_v54 }
 0x17f   : > { %v1462_v15 = vadd.f32 %v4119_v41, %v5457_v7  ;;  %v1743_v3 = vpop.f32.mrf.mxu0 }
 0x180   : > { %v1401_v60 = vpop.f32.mrf.mxu1  ;;  %v5599_v25 = vadd.f32 %v1743_v3, %v1456_v44 }
 0x181   : > { %v1460_v35 = vadd.f32 %v1401_v60, %v5464_v43  ;;  %v4154_v27 = vpop.f32.mrf.mxu0 }
 0x182   : > { %v4120_v51 = vpop.f32.mrf.mxu1  ;;  %v5602_v29 = vadd.f32 %v4154_v27, %v1459_v40 }
 0x183   : > { %v1463_v20 = vadd.f32 %v4120_v51, %v5470_v14  ;;  %v1746_v10 = vpop.f32.mrf.mxu0 }
 0x184   : > { %v1404_v50 = vpop.f32.mrf.mxu1  ;;  %v5605_v8 = vadd.f32 %v1746_v10, %v1457_v52 }
 0x185   : > { %v1461_v22 = vadd.f32 %v1404_v50, %v5480_v53  ;;  %v4157_v13 = vpop.f32.mrf.mxu0 }
 0x186   : > { %v4123_v7 = vpop.f32.mrf.mxu1  ;;  %v5608_v38 = vadd.f32 %v4157_v13, %v1462_v15 }
 0x187   : > { %v1466_v42 = vadd.f32 %v4123_v7, %v5484_v37  ;;  %v1759_v5 = vpop.f32.mrf.mxu0 }
 0x188   : > { %v1417_v43 = vpop.f32.mrf.mxu1  ;;  %v5611_v55 = vadd.f32 %v1759_v5, %v1460_v35 }
 0x189   : > { %v1464_v49 = vadd.f32 %v1417_v43, %v5495_v63  ;;  %v4158_v54 = vpop.f32.mrf.mxu0 }
 0x18a   : > { %v4124_v14 = vpop.f32.mrf.mxu1  ;;  %v5614_v24 = vadd.f32 %v4158_v54, %v1463_v20 }
 0x18b   : > { %v1467_v33 = vadd.f32 %v4124_v14, %v5499_v21  ;;  %v1762_v44 = vpop.f32.mrf.mxu0 }
 0x18c   : > { %v1420_v53 = vpop.f32.mrf.mxu1  ;;  %v5617_v58 = vadd.f32 %v1762_v44, %v1461_v22 }
 0x18d   : > { %v1465_v45 = vadd.f32 %v1420_v53, %v5505_v32  ;;  %v4161_v40 = vpop.f32.mrf.mxu0 }
 0x18e   : > { %v5620_v37 = vadd.f32 %v4161_v40, %v1466_v42  ;;  %v4167_v1 = vpop.f32.mrf.mxu1 }
 0x18f   : > { %v2102_v19 = vadd.f32 %v4167_v1, %v5510_v59  ;;  %v1775_v52 = vpop.f32.mrf.mxu0 }
 0x190   : > { %v5623_v63 = vadd.f32 %v1775_v52, %v1464_v49  ;;  %v1957_v18 = vpop.f32.mrf.mxu1 }
 0x191   : > { %v2100_v41 = vadd.f32 %v1957_v18, %v5518_v26  ;;  %v4162_v15 = vpop.f32.mrf.mxu0 }
 0x192   : > { %v5626_v21 = vadd.f32 %v4162_v15, %v1467_v33  ;;  %v4168_v3 = vpop.f32.mrf.mxu1 }
 0x193   : > { %v2103_v60 = vadd.f32 %v4168_v3, %v5521_v48  ;;  %v1778_v35 = vpop.f32.mrf.mxu0 }
 0x194   : > { %v5629_v32 = vadd.f32 %v1778_v35, %v1465_v45  ;;  %v1960_v27 = vpop.f32.mrf.mxu1 }
 0x195   : > { %v2101_v51 = vadd.f32 %v1960_v27, %v5527_v6  ;;  %v4205_v20 = vpop.f32.mrf.mxu0 }
 0x196   : > { %v4171_v59 = vpop.f32.mrf.mxu1  ;;  %v5632_v10 = vadd.f32 %v4205_v20, %v2102_v19 }
 0x197   : > { %v2106_v50 = vadd.f32 %v4171_v59, %v5531_v17  ;;  %v2189_v22 = vpop.f32.mrf.mxu0 }
 0x198   : > { %v1973_v26 = vpop.f32.mrf.mxu1  ;;  %v5635_v13 = vadd.f32 %v2189_v22, %v2100_v41 }
 0x199   : > { %v2104_v7 = vadd.f32 %v1973_v26, %v5537_v61  ;;  %v4206_v42 = vpop.f32.mrf.mxu0 }
 0x19a   : > { %v4172_v48 = vpop.f32.mrf.mxu1  ;;  %v5638_v5 = vadd.f32 %v4206_v42, %v2103_v60 }
 0x19b   : > { %v2107_v43 = vadd.f32 %v4172_v48, %v5540_v9  ;;  %v2192_v49 = vpop.f32.mrf.mxu0 }
 0x19c   : > { %v1976_v6 = vpop.f32.mrf.mxu1  ;;  %v5641_v54 = vadd.f32 %v2192_v49, %v2101_v51 }
 0x19d   : > { %v2105_v14 = vadd.f32 %v1976_v6, %v5544_v39  ;;  %v4209_v33 = vpop.f32.mrf.mxu0 }
 0x19e   : > { %v4175_v17 = vpop.f32.mrf.mxu1  ;;  %v5644_v44 = vadd.f32 %v4209_v33, %v2106_v50 }
 0x19f   : > { %v2110_v53 = vadd.f32 %v4175_v17, %v5548_v57  ;;  %v2205_v45 = vpop.f32.mrf.mxu0 }
 0x1a0   : > { %v1989_v61 = vpop.f32.mrf.mxu1  ;;  %v5647_v40 = vadd.f32 %v2205_v45, %v2104_v7 }
 0x1a1   : > { %v2108_v1 = vadd.f32 %v1989_v61, %v5551_v12  ;;  %v4210_v19 = vpop.f32.mrf.mxu0 }
 0x1a2   : > { %v4176_v9 = vpop.f32.mrf.mxu1  ;;  %v5650_v52 = vadd.f32 %v4210_v19, %v2107_v43 }
 0x1a3   : > { %v2111_v18 = vadd.f32 %v4176_v9, %v5554_v30  ;;  %v2208_v41 = vpop.f32.mrf.mxu0 }
 0x1a4   : > { %v1992_v39 = vpop.f32.mrf.mxu1  ;;  %v5653_v15 = vadd.f32 %v2208_v41, %v2105_v14 }
 0x1a5   : > { %v2109_v3 = vadd.f32 %v1992_v39, %v5557_v47  ;;  %v4213_v60 = vpop.f32.mrf.mxu0 }
 0x1a6   : > { %v4179_v57 = vpop.f32.mrf.mxu1  ;;  %v5656_v35 = vadd.f32 %v4213_v60, %v2110_v53 }
 0x1a7   : > { %v2114_v27 = vadd.f32 %v4179_v57, %v5560_v4  ;;  %v2221_v51 = vpop.f32.mrf.mxu0 }
 0x1a8   : > { %v2005_v12 = vpop.f32.mrf.mxu1  ;;  %v5659_v20 = vadd.f32 %v2221_v51, %v2108_v1 }
 0x1a9   : > { %v2112_v59 = vadd.f32 %v2005_v12, %v5563_v34  ;;  %v4214_v50 = vpop.f32.mrf.mxu0 }
 0x1aa   : > { %v4180_v30 = vpop.f32.mrf.mxu1  ;;  %v5662_v22 = vadd.f32 %v4214_v50, %v2111_v18 }
 0x1ab   : > { %v2115_v26 = vadd.f32 %v4180_v30, %v5566_v28  ;;  %v2224_v7 = vpop.f32.mrf.mxu0 }
 0x1ac   : > { %v2008_v47 = vpop.f32.mrf.mxu1  ;;  %v5665_v42 = vadd.f32 %v2224_v7, %v2109_v3 }
 0x1ad   : > { %v2113_v48 = vadd.f32 %v2008_v47, %v5569_v11  ;;  %v4217_v43 = vpop.f32.mrf.mxu0 }
 0x1ae   : > { %v4183_v4 = vpop.f32.mrf.mxu1  ;;  %v5668_v49 = vadd.f32 %v4217_v43, %v2114_v27  ;;  %v5697_v43 = vpop.permute.xlu1 %3121 }
 0x1af   : > { %v2118_v6 = vadd.f32 %v4183_v4, %v5572_v46  ;;  %v2237_v14 = vpop.f32.mrf.mxu0 }
 0x1b0   : > { %v2021_v34 = vpop.f32.mrf.mxu1  ;;  %v5671_v33 = vadd.f32 %v2237_v14, %v2112_v59 }
 0x1b1   : > { %v2116_v17 = vadd.f32 %v2021_v34, %v5575_v56  ;;  %v4218_v53 = vpop.f32.mrf.mxu0 }
 0x1b2   : > { %v4184_v28 = vpop.f32.mrf.mxu1  ;;  %v5674_v45 = vadd.f32 %v4218_v53, %v2115_v26 }
 0x1b3   : > { %v2119_v61 = vadd.f32 %v4184_v28, %v5578_v36  ;;  %v2240_v1 = vpop.f32.mrf.mxu0 }
 0x1b4   : > { %v2024_v11 = vpop.f32.mrf.mxu1  ;;  %v5677_v19 = vadd.f32 %v2240_v1, %v2113_v48 }
 0x1b5   : > { %v2117_v9 = vadd.f32 %v2024_v11, %v5581_v23  ;;  %v4221_v18 = vpop.f32.mrf.mxu0 }
 0x1b6   : > { %v4187_v46 = vpop.f32.mrf.mxu1  ;;  %v5680_v41 = vadd.f32 %v4221_v18, %v2118_v6 }
 0x1b7   : > { %v2122_v39 = vadd.f32 %v4187_v46, %v5584_v31  ;;  %v2253_v3 = vpop.f32.mrf.mxu0  ;;  %v5692_v31 = vpop.permute.xlu0 %3111 }
 0x1b8   : > { %v2037_v56 = vpop.f32.mrf.mxu1  ;;  %v5683_v60 = vadd.f32 %v2253_v3, %v2116_v17 }
 0x1b9   : > { %v2120_v57 = vadd.f32 %v2037_v56, %v5587_v16  ;;  %v4222_v27 = vpop.f32.mrf.mxu0 }
 0x1ba   : > { %v4188_v36 = vpop.f32.mrf.mxu1  ;;  %v5686_v51 = vadd.f32 %v4222_v27, %v2119_v61 }
 0x1bb   : > { %v2123_v12 = vadd.f32 %v4188_v36, %v5590_v0  ;;  %v2256_v59 = vpop.f32.mrf.mxu0  ;;  %v5705_v28 = vpop.permute.xlu0 %3116 }
 0x1bc   : > { %v2040_v23 = vpop.f32.mrf.mxu1  ;;  %v5689_v50 = vadd.f32 %v2256_v59, %v2117_v9  ;;  %v5710_v9 = vpop.permute.xlu1 %3126 }
 0x1bd   : > { %v2121_v30 = vadd.f32 %v2040_v23, %v5593_v2  ;;  %v4225_v26 = vpop.f32.mrf.mxu0 }
 0x1be   : > { %v4191_v7 = vpop.f32.mrf.mxu1  ;;  %v5694_v47 = vadd.f32 %v4225_v26, %v2122_v39 }
 0x1bf   : > { %v2126_v16 = vadd.f32 %v4191_v7, %v5596_v62  ;;  %v2269_v48 = vpop.f32.mrf.mxu0  ;;  %v5718_v27 = vpop.permute.xlu0 %3131 }
 0x1c0   : > { %v2053_v4 = vpop.f32.mrf.mxu1  ;;  %v5699_v6 = vadd.f32 %v2269_v48, %v2120_v57  ;;  %v5723_v23 = vpop.permute.xlu1 %3136 }
 0x1c1   : > { %v2124_v0 = vadd.f32 %v2053_v4, %v5599_v25  ;;  %v4226_v14 = vpop.f32.mrf.mxu0 }
 0x1c2   : > { %v4192_v34 = vpop.f32.mrf.mxu1  ;;  %v5702_v17 = vadd.f32 %v4226_v14, %v2123_v12 }
 0x1c3   : > { %v2127_v2 = vadd.f32 %v4192_v34, %v5602_v29  ;;  %v2272_v53 = vpop.f32.mrf.mxu0 }
 0x1c4   : > { %v2056_v61 = vpop.f32.mrf.mxu1  ;;  %v5707_v1 = vadd.f32 %v2272_v53, %v2121_v30  ;;  %v5736_v53 = vpop.permute.xlu1 %3146 }
 0x1c5   : > { %v2125_v62 = vadd.f32 %v2056_v61, %v5605_v8  ;;  %v4229_v11 = vpop.f32.mrf.mxu0 }
 0x1c6   : > { %v4195_v18 = vpop.f32.mrf.mxu1  ;;  %v5712_v46 = vadd.f32 %v4229_v11, %v2126_v16 }
 0x1c7   : > { %v2130_v25 = vadd.f32 %v4195_v18, %v5608_v38  ;;  %v2285_v39 = vpop.f32.mrf.mxu0 }
 0x1c8   : > { %v2069_v3 = vpop.f32.mrf.mxu1  ;;  %v5715_v56 = vadd.f32 %v2285_v39, %v2124_v0  ;;  %v5731_v0 = vpop.permute.xlu0 %3141 }
 0x1c9   : > { %v2128_v29 = vadd.f32 %v2069_v3, %v5611_v55  ;;  %v4230_v57 = vpop.f32.mrf.mxu0 }
 0x1ca   : > { %v4196_v36 = vpop.f32.mrf.mxu1  ;;  %v5720_v12 = vadd.f32 %v4230_v57, %v2127_v2 }
 0x1cb   : > { %v2131_v8 = vadd.f32 %v4196_v36, %v5614_v24  ;;  %v2288_v59 = vpop.f32.mrf.mxu0  ;;  %v5748_v36 = vpop.permute.xlu1 %3156 }
 0x1cc   : > { %v2072_v30 = vpop.f32.mrf.mxu1  ;;  %v5725_v26 = vadd.f32 %v2288_v59, %v2125_v62  ;;  %v5744_v3 = vpop.permute.xlu0 %3151 }
 0x1cd   : > { %v2129_v38 = vadd.f32 %v2072_v30, %v5617_v58  ;;  %v4233_v7 = vpop.f32.mrf.mxu0 }
 0x1ce   : > { %v4199_v16 = vpop.f32.mrf.mxu1  ;;  %v5728_v48 = vadd.f32 %v4233_v7, %v2130_v25 }
 0x1cf   : > { %v2134_v55 = vadd.f32 %v4199_v16, %v5620_v37  ;;  %v2301_v4 = vpop.f32.mrf.mxu0 }
 0x1d0   : > { %v2085_v14 = vpop.f32.mrf.mxu1  ;;  %v5733_v34 = vadd.f32 %v2301_v4, %v2128_v29  ;;  %v5755_v16 = vpop.permute.xlu0 %3161 }
 0x1d1   : > { %v2132_v24 = vadd.f32 %v2085_v14, %v5623_v63  ;;  %v4234_v2 = vpop.f32.mrf.mxu0 }
 0x1d2   : > { %v4200_v61 = vpop.f32.mrf.mxu1  ;;  %v5738_v58 = vadd.f32 %v4234_v2, %v2131_v8 }
 0x1d3   : > { %v2135_v62 = vadd.f32 %v4200_v61, %v5626_v21  ;;  %v2304_v11 = vpop.f32.mrf.mxu0 }
 0x1d4   : > { %v2088_v18 = vpop.f32.mrf.mxu1  ;;  %v5741_v37 = vadd.f32 %v2304_v11, %v2129_v38 }
 0x1d5   : > { %v2133_v25 = vadd.f32 %v2088_v18, %v5629_v32  ;;  %v4237_v39 = vpop.f32.mrf.mxu0 }
 0x1d6   : > { %v5746_v29 = vadd.f32 %v4237_v39, %v2134_v55  ;;  %v4243_v63 = vpop.f32.mrf.mxu1 }
 0x1d7   : > { %v2317_v57 = vpop.f32.mrf.mxu0  ;;  %v2692_v32 = vadd.f32 %v4243_v63, %v5632_v10  ;;  %v5771_v63 = vpop.permute.xlu0 %3171 }
 0x1d8   : > { %6187 = vst [vmem:[#allocation5_spill] sm:$0xff] %v5746_v29  ;;  %v5750_v59 = vadd.f32 %v2317_v57, %v2132_v24  ;;  %v2547_v8 = vpop.f32.mrf.mxu1  ;;  %v5765_v24 = vpop.permute.xlu1 %3166 }
 0x1d9   : > { %v4238_v30 = vpop.f32.mrf.mxu0  ;;  %v2690_v2 = vadd.f32 %v2547_v8, %v5635_v13 }
 0x1da   : > { %6188 = vst [vmem:[#allocation29_spill] sm:$0xff] %v5750_v59  ;;  %v5753_v21 = vadd.f32 %v4238_v30, %v2135_v62  ;;  %v4244_v38 = vpop.f32.mrf.mxu1 }
 0x1db   : > { %v2320_v7 = vpop.f32.mrf.mxu0  ;;  %v2693_v10 = vadd.f32 %v4244_v38, %v5638_v5 }
 0x1dc   : > { %6189 = vst [vmem:[#allocation9_spill] sm:$0xff] %v5753_v21  ;;  %v5758_v4 = vadd.f32 %v2320_v7, %v2133_v25  ;;  %v2550_v55 = vpop.f32.mrf.mxu1 }
 0x1dd   : > { %v4281_v14 = vpop.f32.mrf.mxu0  ;;  %v2691_v13 = vadd.f32 %v2550_v55, %v5641_v54 }
 0x1de   : > { %6190 = vst [vmem:[#allocation6_spill] sm:$0xff] %v5758_v4  ;;  %v4247_v61 = vpop.f32.mrf.mxu1  ;;  %v3002_v62 = vadd.f32 %v4281_v14, %v2692_v32  ;;  %v5777_v32 = vpop.permute.xlu1 %3176 }
 0x1df   : > { %v2857_v11 = vpop.f32.mrf.mxu0  ;;  %v2696_v5 = vadd.f32 %v4247_v61, %v5644_v44 }
 0x1e0   : > { %3039 = vst.msk [vmem:[%s5763_s27 + $0x10] sm:$0xff] %vm3036_vm8, %v3002_v62  ;;  %v2563_v18 = vpop.f32.mrf.mxu1  ;;  %v3000_v25 = vadd.f32 %v2857_v11, %v2690_v2  ;;  %v3291_v38 = vmul.f32 %v5697_v43, %v3002_v62  ;;  %v5788_v43 = vpop.permute.xlu0 %3181 }
 0x1e1   : > { %v4282_v39 = vpop.f32.mrf.mxu0 }
 0x1e2   : > { %3037 = vst.msk [vmem:[%s5763_s27] sm:$0xff] %vm3036_vm8, %v3000_v25  ;;  %v4248_v57 = vpop.f32.mrf.mxu1  ;;  %v3003_v30 = vadd.f32 %v4282_v39, %v2693_v10  ;;  %v3289_v8 = vmul.f32 %v5692_v31, %v3000_v25  ;;  %v2694_v10 = vadd.f32 %v2563_v18, %v5647_v40  ;;  %v3328_v61 = vsel %vm3036_vm8, %v3291_v38, 0.0 }
 0x1e3   : > { %v2860_v7 = vpop.f32.mrf.mxu0  ;;  %v3406_v21 = vmul.f32 %v3291_v38, %v3002_v62 }
 0x1e4   : > { %3040 = vst.msk [vmem:[%s5763_s27 + $0x18] sm:$0xff] %vm3036_vm8, %v3003_v30  ;;  %v2566_v14 = vpop.f32.mrf.mxu1  ;;  %v3001_v2 = vadd.f32 %v2860_v7, %v2691_v13  ;;  %v3404_v54 = vmul.f32 %v3289_v8, %v3000_v25  ;;  %v3292_v31 = vmul.f32 %v5710_v9, %v3003_v30  ;;  %v3325_v18 = vsel %vm3036_vm8, %v3289_v8, 0.0 }
 0x1e5   : > { %v4285_v11 = vpop.f32.mrf.mxu0  ;;  %v2697_v25 = vadd.f32 %v4248_v57, %v5650_v52 }
 0x1e6   : > { %v4251_v39 = vpop.f32.mrf.mxu1  ;;  %v3006_v4 = vadd.f32 %v4285_v11, %v2696_v5  ;;  %3038 = vst.msk [vmem:[%s5763_s27 + $0x8] sm:$0xff] %vm3036_vm8, %v3001_v2  ;;  %v3290_v55 = vmul.f32 %v5705_v28, %v3001_v2  ;;  %v5796_v28 = vpop.permute.xlu1 %3186  ;;  %v2695_v11 = vadd.f32 %v2566_v14, %v5653_v15  ;;  %v3440_v8 = vsel %vm3036_vm8, %v3404_v54, 0.0 }
 0x1e7   : > { %v2873_v44 = vpop.f32.mrf.mxu0  ;;  %v3407_v52 = vmul.f32 %v3292_v31, %v3003_v30  ;;  %v2700_v15 = vadd.f32 %v4251_v39, %v5656_v35  ;;  %v5810_v30 = vpop.permute.xlu0 %3191 }
 0x1e8   : > { %3043 = vst.msk [vmem:[%s5763_s27 + $0x30] sm:$0xff] %vm3036_vm8, %v3006_v4  ;;  %v2579_v13 = vpop.f32.mrf.mxu1  ;;  %v3004_v40 = vadd.f32 %v2873_v44, %v2694_v10  ;;  %v3326_v9 = vsel %vm3036_vm8, %v3290_v55, 0.0  ;;  %v3405_v7 = vmul.f32 %v3290_v55, %v3001_v2  ;;  %v3295_v29 = vmul.f32 %v5731_v0, %v3006_v4 }
 0x1e9   : > { %v4286_v5 = vpop.f32.mrf.mxu0  ;;  %v3327_v59 = vadd.f32 %v3326_v9, %v3325_v18  ;;  %v3443_v0 = vsel %vm3036_vm8, %v3406_v21, 0.0  ;;  %v3330_v18 = vsel %vm3036_vm8, %v3292_v31, 0.0  ;;  %v3445_v35 = vsel %vm3036_vm8, %v3407_v52, 0.0 }
 0x1ea   : > { %3041 = vst.msk [vmem:[%s5763_s27 + $0x20] sm:$0xff] %vm3036_vm8, %v3004_v40  ;;  %v3293_v62 = vmul.f32 %v5718_v27, %v3004_v40  ;;  %v4252_v38 = vpop.f32.mrf.mxu1  ;;  %v3441_v57 = vsel %vm3036_vm8, %v3405_v7, 0.0  ;;  %v3007_v2 = vadd.f32 %v4286_v5, %v2697_v25  ;;  %v3410_v25 = vmul.f32 %v3295_v29, %v3006_v4 }
 0x1eb   : > { %v2876_v10 = vpop.f32.mrf.mxu0  ;;  %v3329_v55 = vadd.f32 %v3328_v61, %v3327_v59  ;;  %v3442_v44 = vadd.f32 %v3441_v57, %v3440_v8  ;;  %v3336_v8 = vsel %vm3036_vm8, %v3295_v29, 0.0  ;;  %v2698_v4 = vadd.f32 %v2579_v13, %v5659_v20 }
 0x1ec   : > { %v2582_v14 = vpop.f32.mrf.mxu1  ;;  %v3408_v9 = vmul.f32 %v3293_v62, %v3004_v40  ;;  %3044 = vst.msk [vmem:[%s5763_s27 + $0x38] sm:$0xff] %vm3036_vm8, %v3007_v2  ;;  %v3005_v27 = vadd.f32 %v2876_v10, %v2695_v11  ;;  %v3332_v39 = vsel %vm3036_vm8, %v3293_v62, 0.0  ;;  %v3296_v21 = vmul.f32 %v5736_v53, %v3007_v2  ;;  %v5818_v11 = vpop.permute.xlu1 %3196 }
 0x1ed   : > { %v4289_v54 = vpop.f32.mrf.mxu0  ;;  %v3444_v7 = vadd.f32 %v3443_v0, %v3442_v44  ;;  %v3331_v59 = vadd.f32 %v3330_v18, %v3329_v55  ;;  %v2701_v53 = vadd.f32 %v4252_v38, %v5662_v22  ;;  %v2699_v29 = vadd.f32 %v2582_v14, %v5665_v42  ;;  %v5830_v22 = vpop.permute.xlu0 %3201 }
 0x1ee   : > { %v4255_v61 = vpop.f32.mrf.mxu1  ;;  %v3010_v5 = vadd.f32 %v4289_v54, %v2700_v15  ;;  %3042 = vst.msk [vmem:[%s5763_s27 + $0x28] sm:$0xff] %vm3036_vm8, %v3005_v27  ;;  %v3294_v31 = vmul.f32 %v5723_v23, %v3005_v27  ;;  %v3447_v62 = vsel %vm3036_vm8, %v3408_v9, 0.0  ;;  %v3451_v15 = vsel %vm3036_vm8, %v3410_v25, 0.0 }
 0x1ef   : > { %v2889_v40 = vpop.f32.mrf.mxu0  ;;  %v3333_v57 = vadd.f32 %v3332_v39, %v3331_v59  ;;  %v3446_v10 = vadd.f32 %v3445_v35, %v3444_v7  ;;  %v3411_v18 = vmul.f32 %v3296_v21, %v3007_v2  ;;  %v2704_v25 = vadd.f32 %v4255_v61, %v5668_v49 }
 0x1f0   : > { %3047 = vst.msk [vmem:[%s5763_s27 + $0x50] sm:$0xff] %vm3036_vm8, %v3010_v5  ;;  %v2595_v52 = vpop.f32.mrf.mxu1  ;;  %v3334_v55 = vsel %vm3036_vm8, %v3294_v31, 0.0  ;;  %v3409_v44 = vmul.f32 %v3294_v31, %v3005_v27  ;;  %v3008_v7 = vadd.f32 %v2889_v40, %v2698_v4  ;;  %v3338_v42 = vsel %vm3036_vm8, %v3296_v21, 0.0  ;;  %v5841_v4 = vpop.permute.xlu1 %3206 }
 0x1f1   : > { %v4290_v23 = vpop.f32.mrf.mxu0  ;;  %v3448_v0 = vadd.f32 %v3447_v62, %v3446_v10  ;;  %v3335_v20 = vadd.f32 %v3334_v55, %v3333_v57  ;;  %v3299_v14 = vmul.f32 %v5755_v16, %v3010_v5  ;;  %v3453_v57 = vsel %vm3036_vm8, %v3411_v18, 0.0 }
 0x1f2   : > { %v4256_v13 = vpop.f32.mrf.mxu1  ;;  %v3449_v54 = vsel %vm3036_vm8, %v3409_v44, 0.0  ;;  %v3011_v9 = vadd.f32 %v4290_v23, %v2701_v53  ;;  %3045 = vst.msk [vmem:[%s5763_s27 + $0x40] sm:$0xff] %vm3036_vm8, %v3008_v7  ;;  %v3297_v2 = vmul.f32 %v5744_v3, %v3008_v7  ;;  %v2702_v3 = vadd.f32 %v2595_v52, %v5671_v33  ;;  %v5855_v52 = vpop.permute.xlu0 %3211 }
 0x1f3   : > { %v2892_v59 = vpop.f32.mrf.mxu0  ;;  %v3337_v38 = vadd.f32 %v3336_v8, %v3335_v20  ;;  %v3450_v27 = vadd.f32 %v3449_v54, %v3448_v0  ;;  %v3414_v0 = vmul.f32 %v3299_v14, %v3010_v5 }
 0x1f4   : > { %v2598_v35 = vpop.f32.mrf.mxu1  ;;  %v3009_v39 = vadd.f32 %v2892_v59, %v2699_v29  ;;  %3048 = vst.msk [vmem:[%s5763_s27 + $0x58] sm:$0xff] %vm3036_vm8, %v3011_v9  ;;  %v3300_v31 = vmul.f32 %v5765_v24, %v3011_v9  ;;  %v3340_v10 = vsel %vm3036_vm8, %v3297_v2, 0.0  ;;  %v3412_v62 = vmul.f32 %v3297_v2, %v3008_v7 }
 0x1f5   : > { %v4293_v40 = vpop.f32.mrf.mxu0  ;;  %v3452_v8 = vadd.f32 %v3451_v15, %v3450_v27  ;;  %v3339_v49 = vadd.f32 %v3338_v42, %v3337_v38  ;;  %v2705_v29 = vadd.f32 %v4256_v13, %v5674_v45  ;;  %v2703_v20 = vadd.f32 %v2598_v35, %v5677_v19  ;;  %v5860_v45 = vpop.permute.xlu1 %3216 }
 0x1f6   : > { %3046 = vst.msk [vmem:[%s5763_s27 + $0x48] sm:$0xff] %vm3036_vm8, %v3009_v39  ;;  %v3298_v61 = vmul.f32 %v5748_v36, %v3009_v39  ;;  %v4259_v21 = vpop.f32.mrf.mxu1  ;;  %v3014_v16 = vadd.f32 %v4293_v40, %v2704_v25  ;;  %v3455_v36 = vsel %vm3036_vm8, %v3412_v62, 0.0  ;;  %v3415_v54 = vmul.f32 %v3300_v31, %v3011_v9 }
 0x1f7   : > { %v2905_v24 = vpop.f32.mrf.mxu0  ;;  %v3341_v53 = vadd.f32 %v3340_v10, %v3339_v49  ;;  %v3454_v55 = vadd.f32 %v3453_v57, %v3452_v8  ;;  %v3344_v27 = vsel %vm3036_vm8, %v3299_v14, 0.0  ;;  %v3459_v2 = vsel %vm3036_vm8, %v3414_v0, 0.0 }
 0x1f8   : > { %v3342_v44 = vsel %vm3036_vm8, %v3298_v61, 0.0  ;;  %v3413_v23 = vmul.f32 %v3298_v61, %v3009_v39  ;;  %3051 = vst.msk [vmem:[%s5763_s27 + $0x70] sm:$0xff] %vm3036_vm8, %v3014_v16  ;;  %v2611_v15 = vpop.f32.mrf.mxu1  ;;  %v3303_v5 = vmul.f32 %v5788_v43, %v3014_v16  ;;  %v3012_v25 = vadd.f32 %v2905_v24, %v2702_v3  ;;  %v5876_v24 = vpop.permute.xlu0 %3221 }
 0x1f9   : > { %v4294_v33 = vpop.f32.mrf.mxu0  ;;  %v3456_v18 = vadd.f32 %v3455_v36, %v3454_v55  ;;  %v3343_v7 = vadd.f32 %v3342_v44, %v3341_v53  ;;  %v3346_v40 = vsel %vm3036_vm8, %v3300_v31, 0.0  ;;  %v2708_v8 = vadd.f32 %v4259_v21, %v5680_v41 }
 0x1fa   : > { %v3457_v59 = vsel %vm3036_vm8, %v3413_v23, 0.0  ;;  %v4260_v38 = vpop.f32.mrf.mxu1  ;;  %v3015_v35 = vadd.f32 %v4294_v33, %v2705_v29  ;;  %3049 = vst.msk [vmem:[%s5763_s27 + $0x60] sm:$0xff] %vm3036_vm8, %v3012_v25  ;;  %v3301_v43 = vmul.f32 %v5771_v63, %v3012_v25  ;;  %v3461_v49 = vsel %vm3036_vm8, %v3415_v54, 0.0  ;;  %v5884_v33 = vpop.permute.xlu1 %3226 }
 0x1fb   : > { %v2908_v39 = vpop.f32.mrf.mxu0  ;;  %v3345_v19 = vadd.f32 %v3344_v27, %v3343_v7  ;;  %v3458_v13 = vadd.f32 %v3457_v59, %v3456_v18  ;;  %v3352_v53 = vsel %vm3036_vm8, %v3303_v5, 0.0  ;;  %v2706_v55 = vadd.f32 %v2611_v15, %v5683_v60 }
 0x1fc   : > { %v2614_v42 = vpop.f32.mrf.mxu1  ;;  %v3013_v9 = vadd.f32 %v2908_v39, %v2703_v20  ;;  %3052 = vst.msk [vmem:[%s5763_s27 + $0x78] sm:$0xff] %vm3036_vm8, %v3015_v35  ;;  %v3348_v31 = vsel %vm3036_vm8, %v3301_v43, 0.0  ;;  %v3416_v41 = vmul.f32 %v3301_v43, %v3012_v25  ;;  %v3304_v21 = vmul.f32 %v5796_v28, %v3015_v35 }
 0x1fd   : > { %v4297_v14 = vpop.f32.mrf.mxu0  ;;  %v3460_v61 = vadd.f32 %v3459_v2, %v3458_v13  ;;  %v3347_v57 = vadd.f32 %v3346_v40, %v3345_v19  ;;  %v3418_v36 = vmul.f32 %v3303_v5, %v3014_v16  ;;  %v2709_v54 = vadd.f32 %v4260_v38, %v5686_v51 }
 0x1fe   : > { %3050 = vst.msk [vmem:[%s5763_s27 + $0x68] sm:$0xff] %vm3036_vm8, %v3013_v9  ;;  %v3302_v3 = vmul.f32 %v5777_v32, %v3013_v9  ;;  %v4263_v10 = vpop.f32.mrf.mxu1  ;;  %v3018_v62 = vadd.f32 %v4297_v14, %v2708_v8  ;;  %v3463_v32 = vsel %vm3036_vm8, %v3416_v41, 0.0  ;;  %v2707_v60 = vadd.f32 %v2614_v42, %v5689_v50  ;;  %v5896_v42 = vpop.permute.xlu0 %3231 }
 0x1ff   : > { %v2921_v63 = vpop.f32.mrf.mxu0  ;;  %v3349_v44 = vadd.f32 %v3348_v31, %v3347_v57  ;;  %v3462_v23 = vadd.f32 %v3461_v49, %v3460_v61  ;;  %v3419_v59 = vmul.f32 %v3304_v21, %v3015_v35  ;;  %v2712_v27 = vadd.f32 %v4263_v10, %v5694_v47  ;;  %v5906_v10 = vpop.permute.xlu1 %3236 }
 0x200   : > { %v2627_v0 = vpop.f32.mrf.mxu1  ;;  %v3350_v29 = vsel %vm3036_vm8, %v3302_v3, 0.0  ;;  %v3417_v20 = vmul.f32 %v3302_v3, %v3013_v9  ;;  %3055 = vst.msk [vmem:[%s5763_s27 + $0x90] sm:$0xff] %vm3036_vm8, %v3018_v62  ;;  %v3016_v5 = vadd.f32 %v2921_v63, %v2706_v55  ;;  %v3307_v13 = vmul.f32 %v5830_v22, %v3018_v62 }
 0x201   : > { %v4298_v28 = vpop.f32.mrf.mxu0  ;;  %v3464_v18 = vadd.f32 %v3463_v32, %v3462_v23  ;;  %v3351_v15 = vadd.f32 %v3350_v29, %v3349_v44  ;;  %v3467_v51 = vsel %vm3036_vm8, %v3418_v36, 0.0  ;;  %v3354_v50 = vsel %vm3036_vm8, %v3304_v21, 0.0 }
 0x202   : > { %v4264_v7 = vpop.f32.mrf.mxu1  ;;  %v3465_v16 = vsel %vm3036_vm8, %v3417_v20, 0.0  ;;  %v3019_v9 = vadd.f32 %v4298_v28, %v2709_v54  ;;  %3053 = vst.msk [vmem:[%s5763_s27 + $0x80] sm:$0xff] %vm3036_vm8, %v3016_v5  ;;  %v3305_v38 = vmul.f32 %v5810_v30, %v3016_v5  ;;  %v3469_v49 = vsel %vm3036_vm8, %v3419_v59, 0.0 }
 0x203   : > { %v2924_v25 = vpop.f32.mrf.mxu0  ;;  %v3353_v39 = vadd.f32 %v3352_v53, %v3351_v15  ;;  %v3466_v19 = vadd.f32 %v3465_v16, %v3464_v18  ;;  %v3360_v31 = vsel %vm3036_vm8, %v3307_v13, 0.0  ;;  %v2710_v41 = vadd.f32 %v2627_v0, %v5699_v6 }
 0x204   : > { %v2630_v2 = vpop.f32.mrf.mxu1  ;;  %v3017_v35 = vadd.f32 %v2924_v25, %v2707_v60  ;;  %3056 = vst.msk [vmem:[%s5763_s27 + $0x98] sm:$0xff] %vm3036_vm8, %v3019_v9  ;;  %v3308_v22 = vmul.f32 %v5841_v4, %v3019_v9  ;;  %v3356_v61 = vsel %vm3036_vm8, %v3305_v38, 0.0  ;;  %v3420_v57 = vmul.f32 %v3305_v38, %v3016_v5  ;;  %v3242_v60 = vpop.permute.xlu0 %3241 }
 0x205   : > { %v4301_v47 = vpop.f32.mrf.mxu0  ;;  %v3468_v40 = vadd.f32 %v3467_v51, %v3466_v19  ;;  %v3355_v8 = vadd.f32 %v3354_v50, %v3353_v39  ;;  %v3422_v53 = vmul.f32 %v3307_v13, %v3018_v62  ;;  %v2713_v32 = vadd.f32 %v4264_v7, %v5702_v17  ;;  %v3247_v39 = vpop.permute.xlu1 %3246 }
 0x206   : > { %v4267_v43 = vpop.f32.mrf.mxu1  ;;  %v3022_v14 = vadd.f32 %v4301_v47, %v2712_v27  ;;  %3054 = vst.msk [vmem:[%s5763_s27 + $0x88] sm:$0xff] %vm3036_vm8, %v3017_v35  ;;  %v3306_v30 = vmul.f32 %v5818_v11, %v3017_v35  ;;  %v3471_v55 = vsel %vm3036_vm8, %v3420_v57, 0.0  ;;  %v3423_v29 = vmul.f32 %v3308_v22, %v3019_v9 }
 0x207   : > { %v2937_v3 = vpop.f32.mrf.mxu0  ;;  %v3357_v21 = vadd.f32 %v3356_v61, %v3355_v8  ;;  %v3470_v4 = vadd.f32 %v3469_v49, %v3468_v40  ;;  %v2711_v6 = vadd.f32 %v2630_v2, %v5707_v1  ;;  %v2716_v18 = vadd.f32 %v4267_v43, %v5712_v46 }
 0x208   : > { %3059 = vst.msk [vmem:[%s5763_s27 + $0xb0] sm:$0xff] %vm3036_vm8, %v3022_v14  ;;  %v2643_v63 = vpop.f32.mrf.mxu1  ;;  %v3358_v44 = vsel %vm3036_vm8, %v3306_v30, 0.0  ;;  %v3421_v23 = vmul.f32 %v3306_v30, %v3017_v35  ;;  %v3020_v62 = vadd.f32 %v2937_v3, %v2710_v41  ;;  %v3311_v16 = vmul.f32 %v5876_v24, %v3022_v14  ;;  %v5938_v3 = vpop.permute.xlu0 %3251 }
 0x209   : > { %v4302_v36 = vpop.f32.mrf.mxu0  ;;  %v3472_v11 = vadd.f32 %v3471_v55, %v3470_v4  ;;  %v3359_v20 = vadd.f32 %v3358_v44, %v3357_v21  ;;  %v3475_v7 = vsel %vm3036_vm8, %v3422_v53, 0.0  ;;  %v3362_v5 = vsel %vm3036_vm8, %v3308_v22, 0.0  ;;  %v5944_v44 = vpop.permute.xlu1 %3256 }
 0x20a   : > { %v4268_v28 = vpop.f32.mrf.mxu1  ;;  %v3473_v0 = vsel %vm3036_vm8, %v3421_v23, 0.0  ;;  %v3023_v27 = vadd.f32 %v4302_v36, %v2713_v32  ;;  %3057 = vst.msk [vmem:[%s5763_s27 + $0xa0] sm:$0xff] %vm3036_vm8, %v3020_v62  ;;  %v3309_v1 = vmul.f32 %v5855_v52, %v3020_v62  ;;  %v3477_v19 = vsel %vm3036_vm8, %v3423_v29, 0.0 }
 0x20b   : > { %v2940_v54 = vpop.f32.mrf.mxu0  ;;  %v3361_v15 = vadd.f32 %v3360_v31, %v3359_v20  ;;  %v3474_v59 = vadd.f32 %v3473_v0, %v3472_v11  ;;  %v3368_v47 = vsel %vm3036_vm8, %v3311_v16, 0.0  ;;  %v2714_v40 = vadd.f32 %v2643_v63, %v5715_v56 }
 0x20c   : > { %v2646_v17 = vpop.f32.mrf.mxu1  ;;  %v3021_v46 = vadd.f32 %v2940_v54, %v2711_v6  ;;  %3060 = vst.msk [vmem:[%s5763_s27 + $0xb8] sm:$0xff] %vm3036_vm8, %v3023_v27  ;;  %v3364_v51 = vsel %vm3036_vm8, %v3309_v1, 0.0  ;;  %v3424_v50 = vmul.f32 %v3309_v1, %v3020_v62  ;;  %v3312_v38 = vmul.f32 %v5884_v33, %v3023_v27 }
 0x20d   : > { %v4305_v25 = vpop.f32.mrf.mxu0  ;;  %v3476_v13 = vadd.f32 %v3475_v7, %v3474_v59  ;;  %v3363_v9 = vadd.f32 %v3362_v5, %v3361_v15  ;;  %v3426_v49 = vmul.f32 %v3311_v16, %v3022_v14  ;;  %v2717_v31 = vadd.f32 %v4268_v28, %v5720_v12 }
 0x20e   : > { %v4271_v24 = vpop.f32.mrf.mxu1  ;;  %v3026_v2 = vadd.f32 %v4305_v25, %v2716_v18  ;;  %3058 = vst.msk [vmem:[%s5763_s27 + $0xa8] sm:$0xff] %vm3036_vm8, %v3021_v46  ;;  %v3310_v52 = vmul.f32 %v5860_v45, %v3021_v46  ;;  %v3479_v61 = vsel %vm3036_vm8, %v3424_v50, 0.0  ;;  %v2715_v41 = vadd.f32 %v2646_v17, %v5725_v26 }
 0x20f   : > { %v2953_v35 = vpop.f32.mrf.mxu0  ;;  %v3365_v8 = vadd.f32 %v3364_v51, %v3363_v9  ;;  %v3478_v22 = vadd.f32 %v3477_v19, %v3476_v13  ;;  %v3427_v4 = vmul.f32 %v3312_v38, %v3023_v27  ;;  %v2720_v14 = vadd.f32 %v4271_v24, %v5728_v48  ;;  %v3262_v27 = vpop.permute.xlu0 %3261 }
 0x210   : > { %3063 = vst.msk [vmem:[%s5763_s27 + $0xd0] sm:$0xff] %vm3036_vm8, %v3026_v2  ;;  %v2659_v43 = vpop.f32.mrf.mxu1  ;;  %v3366_v57 = vsel %vm3036_vm8, %v3310_v52, 0.0  ;;  %v3425_v33 = vmul.f32 %v3310_v52, %v3021_v46  ;;  %v3024_v53 = vadd.f32 %v2953_v35, %v2714_v40  ;;  %v3315_v11 = vmul.f32 %v3242_v60, %v3026_v2  ;;  %v3267_v24 = vpop.permute.xlu1 %3266  ;;  %v6191_v35 = vld [vmem:[#allocation5_spill] sm:$0xff] }
 0x211   : > { %v4306_v30 = vpop.f32.mrf.mxu0  ;;  %v3480_v45 = vadd.f32 %v3479_v61, %v3478_v22  ;;  %v3367_v56 = vadd.f32 %v3366_v57, %v3365_v8  ;;  %v3483_v26 = vsel %vm3036_vm8, %v3426_v49, 0.0  ;;  %v3370_v29 = vsel %vm3036_vm8, %v3312_v38, 0.0 }
 0x212   : > { %v4272_v21 = vpop.f32.mrf.mxu1  ;;  %v3481_v63 = vsel %vm3036_vm8, %v3425_v33, 0.0  ;;  %v3027_v32 = vadd.f32 %v4306_v30, %v2717_v31  ;;  %3061 = vst.msk [vmem:[%s5763_s27 + $0xc0] sm:$0xff] %vm3036_vm8, %v3024_v53  ;;  %v3313_v20 = vmul.f32 %v5896_v42, %v3024_v53  ;;  %v3485_v60 = vsel %vm3036_vm8, %v3427_v4, 0.0 }
 0x213   : > { %v2956_v55 = vpop.f32.mrf.mxu0  ;;  %v3369_v23 = vadd.f32 %v3368_v47, %v3367_v56  ;;  %v3482_v36 = vadd.f32 %v3481_v63, %v3480_v45  ;;  %v3376_v17 = vsel %vm3036_vm8, %v3315_v11, 0.0  ;;  %v2718_v7 = vadd.f32 %v2659_v43, %v5733_v34  ;;  %v3272_v45 = vpop.permute.xlu0 %3271 }
 0x214   : > { %v2662_v12 = vpop.f32.mrf.mxu1  ;;  %v3025_v48 = vadd.f32 %v2956_v55, %v2715_v41  ;;  %3064 = vst.msk [vmem:[%s5763_s27 + $0xd8] sm:$0xff] %vm3036_vm8, %v3027_v32  ;;  %v3316_v18 = vmul.f32 %v3247_v39, %v3027_v32  ;;  %v3372_v15 = vsel %vm3036_vm8, %v3313_v20, 0.0  ;;  %v3428_v59 = vmul.f32 %v3313_v20, %v3024_v53  ;;  %v6193_v20 = vld [vmem:[#allocation9_spill] sm:$0xff] }
 0x215   : > { %v4309_v28 = vpop.f32.mrf.mxu0  ;;  %v3484_v6 = vadd.f32 %v3483_v26, %v3482_v36  ;;  %v3371_v0 = vadd.f32 %v3370_v29, %v3369_v23  ;;  %v3430_v25 = vmul.f32 %v3315_v11, %v3026_v2  ;;  %v2721_v51 = vadd.f32 %v4272_v21, %v5738_v58  ;;  %v3277_v23 = vpop.permute.xlu1 %3276  ;;  %v6192_v11 = vld [vmem:[#allocation29_spill] sm:$0xff] }
 0x216   : > { %v4275_v62 = vpop.f32.mrf.mxu1  ;;  %v3030_v54 = vadd.f32 %v4309_v28, %v2720_v14  ;;  %3062 = vst.msk [vmem:[%s5763_s27 + $0xc8] sm:$0xff] %vm3036_vm8, %v3025_v48  ;;  %v3314_v16 = vmul.f32 %v5906_v10, %v3025_v48  ;;  %v3487_v39 = vsel %vm3036_vm8, %v3428_v59, 0.0  ;;  %v3431_v50 = vmul.f32 %v3316_v18, %v3027_v32 }
 0x217   : > { %v2969_v42 = vpop.f32.mrf.mxu0  ;;  %v3373_v5 = vadd.f32 %v3372_v15, %v3371_v0  ;;  %v3486_v1 = vadd.f32 %v3485_v60, %v3484_v6  ;;  %v2719_v34 = vadd.f32 %v2662_v12, %v5741_v37  ;;  %v2724_v47 = vadd.f32 %v4275_v62, %v6191_v35 }
 0x218   : > { %3067 = vst.msk [vmem:[%s5763_s27 + $0xf0] sm:$0xff] %vm3036_vm8, %v3030_v54  ;;  %v2675_v46 = vpop.f32.mrf.mxu1  ;;  %v3374_v19 = vsel %vm3036_vm8, %v3314_v16, 0.0  ;;  %v3429_v13 = vmul.f32 %v3314_v16, %v3025_v48  ;;  %v3028_v2 = vadd.f32 %v2969_v42, %v2718_v7  ;;  %v3319_v49 = vmul.f32 %v3262_v27, %v3030_v54 }
 0x219   : > { %v4310_v9 = vpop.f32.mrf.mxu0  ;;  %v3488_v10 = vadd.f32 %v3487_v39, %v3486_v1  ;;  %v3375_v38 = vadd.f32 %v3374_v19, %v3373_v5  ;;  %v3491_v57 = vsel %vm3036_vm8, %v3430_v25, 0.0  ;;  %v3378_v58 = vsel %vm3036_vm8, %v3316_v18, 0.0 }
 0x21a   : > { %v3489_v52 = vsel %vm3036_vm8, %v3429_v13, 0.0  ;;  %v4276_v40 = vpop.f32.mrf.mxu1  ;;  %v3031_v61 = vadd.f32 %v4310_v9, %v2721_v51  ;;  %3065 = vst.msk [vmem:[%s5763_s27 + $0xe0] sm:$0xff] %vm3036_vm8, %v3028_v2  ;;  %v3317_v37 = vmul.f32 %v5938_v3, %v3028_v2  ;;  %v3493_v31 = vsel %vm3036_vm8, %v3431_v50, 0.0  ;;  %v3287_v13 = vpop.permute.xlu1 %3286 }
 0x21b   : > { %v2972_v8 = vpop.f32.mrf.mxu0  ;;  %v3377_v22 = vadd.f32 %v3376_v17, %v3375_v38  ;;  %v3490_v43 = vadd.f32 %v3489_v52, %v3488_v10  ;;  %v3434_v36 = vmul.f32 %v3319_v49, %v3030_v54  ;;  %v2722_v32 = vadd.f32 %v2675_v46, %v6192_v11  ;;  %v3282_v17 = vpop.permute.xlu0 %3281 }
 0x21c   : > { %v3029_v33 = vadd.f32 %v2972_v8, %v2719_v34  ;;  %3068 = vst.msk [vmem:[%s5763_s27 + $0xf8] sm:$0xff] %vm3036_vm8, %v3031_v61  ;;  %v3380_v4 = vsel %vm3036_vm8, %v3317_v37, 0.0  ;;  %v3432_v63 = vmul.f32 %v3317_v37, %v3028_v2  ;;  %v3320_v14 = vmul.f32 %v3267_v24, %v3031_v61  ;;  %v2678_v53 = vpop.f32.mrf.mxu1 }
 0x21d   : > { %v4313_v30 = vpop.f32.mrf.mxu0  ;;  %v3492_v41 = vadd.f32 %v3491_v57, %v3490_v43  ;;  %v3379_v56 = vadd.f32 %v3378_v58, %v3377_v22  ;;  %v2725_v48 = vadd.f32 %v4276_v40, %v6193_v20  ;;  %v3384_v15 = vsel %vm3036_vm8, %v3319_v49, 0.0 }
 0x21e   : > { %v3034_v21 = vadd.f32 %v4313_v30, %v2724_v47  ;;  %3066 = vst.msk [vmem:[%s5763_s27 + $0xe8] sm:$0xff] %vm3036_vm8, %v3029_v33  ;;  %v3318_v3 = vmul.f32 %v5944_v44, %v3029_v33  ;;  %v3495_v29 = vsel %vm3036_vm8, %v3432_v63, 0.0  ;;  %v6194_v44 = vld [vmem:[#allocation6_spill] sm:$0xff]  ;;  %v3435_v59 = vmul.f32 %v3320_v14, %v3031_v61 }
 0x21f   : > { %v2985_v55 = vpop.f32.mrf.mxu0  ;;  %v3381_v12 = vadd.f32 %v3380_v4, %v3379_v56  ;;  %v3494_v26 = vadd.f32 %v3493_v31, %v3492_v41  ;;  %v2723_v62 = vadd.f32 %v2678_v53, %v6194_v44  ;;  %v3499_v25 = vsel %vm3036_vm8, %v3434_v36, 0.0 }
 0x220   : > { %3071 = vst.msk [vmem:[%s5763_s27 + $0x110] sm:$0xff] %vm3036_vm8, %v3034_v21  ;;  %v3382_v28 = vsel %vm3036_vm8, %v3318_v3, 0.0  ;;  %v3433_v6 = vmul.f32 %v3318_v3, %v3029_v33  ;;  %v3032_v54 = vadd.f32 %v2985_v55, %v2722_v32  ;;  %v3386_v39 = vsel %vm3036_vm8, %v3320_v14, 0.0 }
 0x221   : > { %v4314_v0 = vpop.f32.mrf.mxu0  ;;  %v3496_v18 = vadd.f32 %v3495_v29, %v3494_v26  ;;  %v3383_v60 = vadd.f32 %v3382_v28, %v3381_v12  ;;  %v3323_v19 = vmul.f32 %v3282_v17, %v3034_v21  ;;  %v3501_v51 = vsel %vm3036_vm8, %v3435_v59, 0.0 }
 0x222   : > { %v3497_v16 = vsel %vm3036_vm8, %v3433_v6, 0.0  ;;  %v3035_v42 = vadd.f32 %v4314_v0, %v2725_v48  ;;  %3069 = vst.msk [vmem:[%s5763_s27 + $0x100] sm:$0xff] %vm3036_vm8, %v3032_v54  ;;  %v3321_v1 = vmul.f32 %v3272_v45, %v3032_v54 }
 0x223   : > { %v2988_v27 = vpop.f32.mrf.mxu0  ;;  %v3385_v7 = vadd.f32 %v3384_v15, %v3383_v60  ;;  %v3498_v5 = vadd.f32 %v3497_v16, %v3496_v18  ;;  %v3438_v47 = vmul.f32 %v3323_v19, %v3034_v21  ;;  %v3392_v49 = vsel %vm3036_vm8, %v3323_v19, 0.0 }
 0x224   : > { %v3033_v46 = vadd.f32 %v2988_v27, %v2723_v62  ;;  %3072 = vst.msk [vmem:[%s5763_s27 + $0x118] sm:$0xff] %vm3036_vm8, %v3035_v42  ;;  %v3436_v10 = vmul.f32 %v3321_v1, %v3032_v54  ;;  %v3388_v50 = vsel %vm3036_vm8, %v3321_v1, 0.0  ;;  %v3324_v38 = vmul.f32 %v3287_v13, %v3035_v42 }
 0x225   : > { %v3500_v9 = vadd.f32 %v3499_v25, %v3498_v5  ;;  %v3387_v24 = vadd.f32 %v3386_v39, %v3385_v7  ;;  %v3507_v33 = vsel %vm3036_vm8, %v3438_v47, 0.0 }
 0x226   : > { %3070 = vst.msk [vmem:[%s5763_s27 + $0x108] sm:$0xff] %vm3036_vm8, %v3033_v46  ;;  %v3322_v34 = vmul.f32 %v3277_v23, %v3033_v46  ;;  %v3503_v2 = vsel %vm3036_vm8, %v3436_v10, 0.0  ;;  %v3439_v61 = vmul.f32 %v3324_v38, %v3035_v42  ;;  %v3394_v30 = vsel %vm3036_vm8, %v3324_v38, 0.0 }
 0x227   : > { %v3389_v52 = vadd.f32 %v3388_v50, %v3387_v24  ;;  %v3502_v35 = vadd.f32 %v3501_v51, %v3500_v9 }
 0x228   : > { %v3390_v40 = vsel %vm3036_vm8, %v3322_v34, 0.0  ;;  %v3437_v8 = vmul.f32 %v3322_v34, %v3033_v46  ;;  %v3509_v41 = vsel %vm3036_vm8, %v3439_v61, 0.0 }
 0x229   : > { %v3504_v22 = vadd.f32 %v3503_v2, %v3502_v35  ;;  %v3391_v43 = vadd.f32 %v3390_v40, %v3389_v52 }
 0x22a   : > { %v3505_v57 = vsel %vm3036_vm8, %v3437_v8, 0.0 }
 0x22b   : > { %v3393_v58 = vadd.f32 %v3392_v49, %v3391_v43  ;;  %v3506_v37 = vadd.f32 %v3505_v57, %v3504_v22 }
 0x22d   : > { %v3395_v45 = vadd.f32 %v3394_v30, %v3393_v58  ;;  %v3508_v31 = vadd.f32 %v3507_v33, %v3506_v37 }
 0x22f   : > { %v3396_v56 = vrot.slane %v3395_v45, 4  ;;  %v3510_v21 = vadd.f32 %v3509_v41, %v3508_v31 }
 0x231   : > { %v3397_v4 = vadd.f32 %v3396_v56, %v3395_v45  ;;  %v3511_v63 = vrot.slane %v3510_v21, 4 }
 0x233   : > { %v3398_v14 = vrot.slane %v3397_v4, 2  ;;  %v3512_v53 = vadd.f32 %v3511_v63, %v3510_v21 }
 0x235   : > { %v3399_v3 = vadd.f32 %v3398_v14, %v3397_v4  ;;  %v3513_v55 = vrot.slane %v3512_v53, 2 }
 0x237   : > { %v3400_v23 = vrot.slane %v3399_v3, 1  ;;  %v3514_v36 = vadd.f32 %v3513_v55, %v3512_v53 }
 0x239   : > { %v3401_v11 = vadd.f32 %v3400_v23, %v3399_v3  ;;  %v3515_v32 = vrot.slane %v3514_v36, 1 }
 0x23b   : > { %3403 = vst.msk [vmem:[%s238_s6] sm:$0x1] %vm3402_vm9, %v3401_v11  ;;  %v3516_v12 = vadd.f32 %v3515_v32, %v3514_v36 }
 0x23d   : > { %3517 = vst.msk [vmem:[%s241_s9] sm:$0x1] %vm3402_vm9, %v3516_v12 }
 0x23e PF: > { %s16_s18 = sadd.s32 1, %s4346_s18  }
 0x23f   : > { %p13_p4 = scmp.ge.s32.totalorder %s16_s18, 4  }
 0x241   :  { %15 = sbr.rel (!%p13_p4) target bundleno = 1 (0x1), region = 94 }

// kernel: encoder_forward.7
= control target key start
LH: loop header
LB: loop body
LE: loop exit
PB: predicated region body
PF: predicated region fallthrough
CT: control target
= control target key end

     0   :  { %s854_s27 = smov 0   ;;  %s1406_s0 = inlined_call_operand.vmem [shape: f32[2,64,8], index: 0, kind: input, shape index: {}]   ;;  %s1407_s1 = inlined_call_operand.vmem [shape: f32[2,64,8], index: 1, kind: input, shape index: {}]   ;;  %s1408_s2 = inlined_call_operand.vmem [shape: f32[2,64,8], index: 2, kind: input, shape index: {}]   ;;  %s1409_s3 = inlined_call_operand.vmem [shape: f32[2,64,8], index: 3, kind: input, shape index: {}]   ;;  %s1410_s4 = inlined_call_operand.vmem [shape: f32[1,8], index: 4, kind: input, shape index: {}]   ;;  %s1411_s5 = inlined_call_operand.vmem [shape: f32[1,8], index: 5, kind: input, shape index: {}]   ;;  %s1412_s6 = inlined_call_operand.vmem [shape: s32[1,64,8], index: 6, kind: input, shape index: {}]   ;;  %s1413_s7 = inlined_call_operand.vmem [shape: f32[2,64,8], index: 7, kind: output, shape index: {0}]   ;;  %s1414_s8 = inlined_call_operand.vmem [shape: s32[2,64,8], index: 8, kind: output, shape index: {1}]  }
   0x1 LB: > { %s766_s28 = sadd.s32 4294967295, %s807_s27   ;;  %p770_p0 = scmp.ge.s32.totalorder %s807_s27, 1  ;;  %s807_s27 = sphi %s854_s27, %s19_s27  }
   0x2   : > { %p295_p1 = scmp.lt.s32.totalorder %s807_s27, 3 }
   0x4   : > { %p296_p2 = pnand %p770_p0, %p295_p1 }
   0x6   : > { %299 = sbr.rel (%p296_p2) target bundleno = 70 (0x46), region = 48 }
   0xb   : > { %p349_p3 = scmp.lt.s32.totalorder %s766_s28, 1  ;;  %v865_v0 = vld [vmem:[%s1412_s6] sm:$0xff]  ;;  %v870_v1 = vld [vmem:[%s1412_s6 + $0x8] sm:$0xff]  ;;  %v875_v2 = vld [vmem:[%s1412_s6 + $0x10] sm:$0xff]  ;;  %vm625_vm0 = vcmask 64512  }
   0xc   : > { %v880_v3 = vld [vmem:[%s1410_s4] ss:$0 sm:$0xff]  ;;  %v883_v4 = vadd.s32 1, %v865_v0  ;;  %v886_v5 = vadd.s32 16, %v865_v0  ;;  %v889_v6 = vadd.s32 1, %v870_v1  ;;  %v892_v7 = vadd.s32 16, %v870_v1 }
   0xd   : > { %s1493_s28 = smov (!%p349_p3, %s766_s28), 1  ;;  %v897_v8 = vld [vmem:[%s1412_s6 + $0x18] sm:$0xff]  ;;  %v900_v9 = vadd.s32 1, %v875_v2  ;;  %v903_v10 = vadd.s32 16, %v875_v2  ;;  %v914_v13 = vld [vmem:[%s1412_s6 + $0x20] sm:$0xff]  ;;  %v919_v14 = vld [vmem:[%s1412_s6 + $0x28] sm:$0xff] }
   0xe   : > { %v906_v11 = vadd.s32 1, %v897_v8  ;;  %v909_v12 = vadd.s32 16, %v897_v8  ;;  %1433 = vst [vmem:[#allocation2_spill] sm:$0xff] %v914_v13  ;;  %1434 = vst [vmem:[#allocation3_spill] sm:$0xff] %v919_v14  ;;  %s921_s21 = sshll.u32 %s1493_s28, 6  ;;  %v924_v15 = vadd.s32 1, %v886_v5 }
   0xf   : > { %v927_v16 = vadd.s32 1, %v892_v7  ;;  %v930_v17 = vadd.s32 1, %v914_v13  ;;  %v933_v18 = vadd.s32 16, %v914_v13  ;;  %v938_v19 = vld [vmem:[%s1412_s6 + $0x30] sm:$0xff]  ;;  %s944_s26 = scalar_lea.vmem %s1406_s0, %s921_s21  ;;  %s950_s30 = scalar_lea.vmem %s1407_s1, %s921_s21  ;;  %v955_v20 = vld [vmem:[%s1411_s5] ss:$0 sm:$0xff] }
  0x10   : > { %1435 = vst [vmem:[#allocation4_spill] sm:$0xff] %v938_v19  ;;  %v958_v21 = vadd.s32 1, %v903_v10  ;;  %v961_v22 = vadd.s32 1, %v909_v12  ;;  %v964_v23 = vadd.s32 1, %v919_v14  ;;  %v967_v24 = vadd.s32 16, %v919_v14  ;;  %s973_s13 = scalar_lea.vmem %s1408_s2, %s921_s21  ;;  %s979_s16 = scalar_lea.vmem %s1409_s3, %s921_s21  ;;  %v381_v25 = vld [vmem:[%s944_s26] sm:$0xff] }
  0x11   : > { %v425_v26 = vld [vmem:[%s950_s30] sm:$0xff]  ;;  %v382_v27 = vld [vmem:[%s944_s26 + $0x8] sm:$0xff]  ;;  %v985_v28 = vadd.s32 1, %v933_v18  ;;  %v988_v29 = vadd.s32 1, %v938_v19  ;;  %v991_v30 = vadd.s32 16, %v938_v19  ;;  %v395_v31 = vmul.f32 %v880_v3, %v381_v25  ;;  %v383_v52 = vld [vmem:[%s944_s26 + $0x10] sm:$0xff]  ;;  %s1061_s19 = scalar_lea.vmem %s1413_s7, %s921_s21  ;;  %s1260_s23 = scalar_lea.vmem %s1414_s8, %s921_s21 }
  0x12   : > { %1436 = vst [vmem:[#allocation5_spill] sm:$0xff] %v964_v23  ;;  %1437 = vst [vmem:[#allocation6_spill] sm:$0xff] %v967_v24  ;;  %v433_v32 = vmul.f32 %v880_v3, %v425_v26  ;;  %v457_v33 = vld [vmem:[%s973_s13] sm:$0xff]  ;;  %v396_v35 = vmul.f32 %v880_v3, %v382_v27  ;;  %v426_v36 = vld [vmem:[%s950_s30 + $0x8] sm:$0xff]  ;;  %v1000_v37 = vadd.s32 1, %v967_v24 }
  0x13   : > { %1438 = vst [vmem:[#allocation7_spill] sm:$0xff] %v988_v29  ;;  %1439 = vst [vmem:[#allocation8_spill] sm:$0xff] %v991_v30  ;;  %v489_v34 = vld [vmem:[%s979_s16] sm:$0xff]  ;;  %v465_v38 = vmul.f32 %v880_v3, %v457_v33  ;;  %v434_v40 = vmul.f32 %v880_v3, %v426_v36  ;;  %v458_v41 = vld [vmem:[%s973_s13 + $0x8] sm:$0xff]  ;;  %v1008_v43 = vadd.s32 1, %v991_v30  ;;  %v1011_v44 = vadd.f32 %v955_v20, %v395_v31 }
  0x14   : > { %1440 = vst [vmem:[#allocation9_spill] sm:$0xff] %v1000_v37  ;;  %v497_v39 = vmul.f32 %v880_v3, %v489_v34  ;;  %v490_v42 = vld [vmem:[%s979_s16 + $0x8] sm:$0xff]  ;;  %v1014_v45 = vadd.f32 %v955_v20, %v433_v32  ;;  %v1017_v46 = vadd.f32 %v955_v20, %v396_v35  ;;  %v466_v47 = vmul.f32 %v880_v3, %v458_v41  ;;  %v427_v53 = vld [vmem:[%s950_s30 + $0x10] sm:$0xff]  ;;  %v384_v25 = vld [vmem:[%s944_s26 + $0x18] sm:$0xff] }
  0x15   : > { %1441 = vst [vmem:[#allocation10_spill] sm:$0xff] %v1008_v43  ;;  %v1021_v48 = vadd.f32 %v955_v20, %v465_v38  ;;  %v1025_v50 = vadd.f32 %v955_v20, %v434_v40  ;;  %v498_v51 = vmul.f32 %v880_v3, %v490_v42  ;;  %v1423_v54 = vmax.f32 %v1011_v44, 0.0  ;;  %v459_v58 = vld [vmem:[%s973_s13 + $0x10] sm:$0xff]  ;;  %v428_v33 = vld [vmem:[%s950_s30 + $0x18] sm:$0xff] }
  0x16   : > { %v505_v49 = vadd.f32 %v955_v20, %v497_v39  ;;  %v1421_v55 = vmax.f32 %v1014_v45, 0.0  ;;  %v1419_v56 = vmax.f32 %v1017_v46, 0.0  ;;  %v1034_v57 = vadd.f32 %v955_v20, %v466_v47  ;;  %v491_v63 = vld [vmem:[%s979_s16 + $0x10] sm:$0xff]  ;;  %v460_v47 = vld [vmem:[%s973_s13 + $0x18] sm:$0xff] }
  0x17   : > { %v1420_v59 = vmax.f32 %v1021_v48, 0.0  ;;  %v1416_v61 = vmax.f32 %v1025_v50, 0.0  ;;  %v506_v62 = vadd.f32 %v955_v20, %v498_v51  ;;  %v397_v31 = vmul.f32 %v880_v3, %v383_v52  ;;  %v387_v19 = vld [vmem:[%s944_s26 + $0x30] sm:$0xff]  ;;  %v432_v14 = vld [vmem:[%s950_s30 + $0x38] sm:$0xff] }
  0x18   : > { %v513_v60 = vmax.f32 %v505_v49, 0.0  ;;  %v521_v26 = vmax.f32 %v1423_v54, %v1421_v55  ;;  %v1415_v27 = vmax.f32 %v1034_v57, 0.0  ;;  %v435_v32 = vmul.f32 %v880_v3, %v427_v53  ;;  %v430_v55 = vld [vmem:[%s950_s30 + $0x28] sm:$0xff] }
  0x19   : > { %v514_v35 = vmax.f32 %v506_v62, 0.0  ;;  %v522_v36 = vmax.f32 %v1419_v56, %v1416_v61  ;;  %v467_v38 = vmul.f32 %v880_v3, %v459_v58  ;;  %v1064_v39 = vadd.f32 %v955_v20, %v397_v31  ;;  %v492_v58 = vld [vmem:[%s979_s16 + $0x18] sm:$0xff]  ;;  %v429_v31 = vld [vmem:[%s950_s30 + $0x20] sm:$0xff] }
  0x1a   : > { %v529_v34 = vmax.f32 %v1420_v59, %v513_v60  ;;  %v1067_v40 = vadd.f32 %v955_v20, %v435_v32  ;;  %v499_v41 = vmul.f32 %v880_v3, %v491_v63  ;;  %v398_v42 = vmul.f32 %v880_v3, %v384_v25  ;;  %v386_v59 = vld [vmem:[%s944_s26 + $0x28] sm:$0xff] }
  0x1b   : > { %v530_v51 = vmax.f32 %v1415_v27, %v514_v35  ;;  %v1077_v52 = vadd.f32 %v955_v20, %v467_v38  ;;  %v436_v53 = vmul.f32 %v880_v3, %v428_v33  ;;  %v1418_v60 = vmax.f32 %v1064_v39, 0.0  ;;  %v461_v38 = vld [vmem:[%s973_s13 + $0x20] sm:$0xff] }
  0x1c   : > { %v1072_v49 = vmax.f32 %v521_v26, %v529_v34  ;;  %v1417_v62 = vmax.f32 %v1067_v40, 0.0  ;;  %v507_v63 = vadd.f32 %v955_v20, %v499_v41  ;;  %v1085_v25 = vadd.f32 %v955_v20, %v398_v42  ;;  %v385_v26 = vld [vmem:[%s944_s26 + $0x20] sm:$0xff] }
  0x1d   : > { %v1092_v32 = vmax.f32 %v522_v36, %v530_v51  ;;  %v1422_v33 = vmax.f32 %v1077_v52, 0.0  ;;  %v1096_v34 = vadd.f32 %v955_v20, %v436_v53  ;;  %v468_v35 = vmul.f32 %v880_v3, %v460_v47  ;;  %v493_v41 = vld [vmem:[%s979_s16 + $0x20] sm:$0xff] }
  0x1e   : > { %626 = vst.msk [vmem:[%s1061_s19] sm:$0xff] %vm625_vm0, %v1072_v49  ;;  %v515_v42 = vmax.f32 %v507_v63, 0.0  ;;  %v523_v27 = vmax.f32 %v1418_v60, %v1417_v62  ;;  %v1425_v36 = vmax.f32 %v1085_v25, 0.0  ;;  %v500_v51 = vmul.f32 %v880_v3, %v492_v58 }
  0x1f   : > { %627 = vst.msk [vmem:[%s1061_s19 + $0x8] sm:$0xff] %vm625_vm0, %v1092_v32  ;;  %v1424_v47 = vmax.f32 %v1096_v34, 0.0  ;;  %v1112_v53 = vadd.f32 %v955_v20, %v468_v35  ;;  %v399_v63 = vmul.f32 %v880_v3, %v385_v26  ;;  %v437_v61 = vmul.f32 %v880_v3, %v429_v31  ;;  %v494_v35 = vld [vmem:[%s979_s16 + $0x28] sm:$0xff] }
  0x20   : > { %v531_v62 = vmax.f32 %v1422_v33, %v515_v42  ;;  %v508_v60 = vadd.f32 %v955_v20, %v500_v51  ;;  %v469_v58 = vmul.f32 %v880_v3, %v461_v38  ;;  %v501_v56 = vmul.f32 %v880_v3, %v493_v41  ;;  %v462_v38 = vld [vmem:[%s973_s13 + $0x28] sm:$0xff] }
  0x21   : > { %v524_v26 = vmax.f32 %v1425_v36, %v1424_v47  ;;  %v1129_v31 = vadd.f32 %v955_v20, %v399_v63  ;;  %v1132_v42 = vadd.f32 %v955_v20, %v437_v61  ;;  %v400_v36 = vmul.f32 %v880_v3, %v386_v59  ;;  %v431_v47 = vld [vmem:[%s950_s30 + $0x30] sm:$0xff] }
  0x22   : > { %v1135_v41 = vmax.f32 %v523_v27, %v531_v62  ;;  %v516_v51 = vmax.f32 %v508_v60, 0.0  ;;  %v1138_v33 = vadd.f32 %v955_v20, %v469_v58  ;;  %v509_v54 = vadd.f32 %v955_v20, %v501_v56 }
  0x23   : > { %v1428_v63 = vmax.f32 %v1132_v42, 0.0  ;;  %v438_v61 = vmul.f32 %v880_v3, %v430_v55  ;;  %v1442_v27 = vmax.f32 %v1112_v53, 0.0  ;;  %v470_v58 = vmul.f32 %v880_v3, %v462_v38 }
  0x24   : > { %628 = vst.msk [vmem:[%s1061_s19 + $0x10] sm:$0xff] %vm625_vm0, %v1135_v41  ;;  %v1430_v56 = vmax.f32 %v1138_v33, 0.0  ;;  %v517_v62 = vmax.f32 %v509_v54, 0.0  ;;  %v1443_v59 = vmax.f32 %v1129_v31, 0.0  ;;  %v1160_v29 = vadd.f32 %v955_v20, %v400_v36  ;;  %v463_v54 = vld [vmem:[%s973_s13 + $0x30] sm:$0xff]  ;;  %v464_v36 = vld [vmem:[%s973_s13 + $0x38] sm:$0xff] }
  0x25   : > { %v532_v60 = vmax.f32 %v1442_v27, %v516_v51  ;;  %v1163_v30 = vadd.f32 %v955_v20, %v438_v61  ;;  %v502_v51 = vmul.f32 %v880_v3, %v494_v35  ;;  %v1172_v43 = vadd.f32 %v955_v20, %v470_v58 }
  0x26   : > { %v525_v55 = vmax.f32 %v1443_v59, %v1428_v63  ;;  %v533_v38 = vmax.f32 %v1430_v56, %v517_v62  ;;  %v401_v59 = vmul.f32 %v880_v3, %v387_v19  ;;  %v495_v63 = vld [vmem:[%s979_s16 + $0x30] sm:$0xff]  ;;  %v471_v56 = vmul.f32 %v880_v3, %v463_v54 }
  0x27   : > { %v1167_v27 = vmax.f32 %v524_v26, %v532_v60  ;;  %v510_v35 = vadd.f32 %v955_v20, %v502_v51  ;;  %v439_v26 = vmul.f32 %v880_v3, %v431_v47  ;;  %v388_v60 = vld [vmem:[%s944_s26 + $0x38] sm:$0xff]  ;;  %v1444_v51 = vmax.f32 %v1163_v30, 0.0 }
  0x28   : > { %v1185_v62 = vmax.f32 %v525_v55, %v533_v38  ;;  %v1189_v58 = vadd.f32 %v955_v20, %v401_v59  ;;  %v1445_v47 = vmax.f32 %v1160_v29, 0.0  ;;  %v503_v55 = vmul.f32 %v880_v3, %v495_v63  ;;  %v496_v38 = vld [vmem:[%s979_s16 + $0x38] sm:$0xff] }
  0x29   : > { %629 = vst.msk [vmem:[%s1061_s19 + $0x18] sm:$0xff] %vm625_vm0, %v1167_v27  ;;  %v518_v61 = vmax.f32 %v510_v35, 0.0  ;;  %v1198_v13 = vadd.f32 %v955_v20, %v439_v26  ;;  %v1207_v54 = vadd.f32 %v955_v20, %v471_v56  ;;  %v402_v35 = vmul.f32 %v880_v3, %v388_v60 }
  0x2a   : > { %v526_v23 = vmax.f32 %v1445_v47, %v1444_v51  ;;  %630 = vst.msk [vmem:[%s1061_s19 + $0x20] sm:$0xff] %vm625_vm0, %v1185_v62  ;;  %v440_v19 = vmul.f32 %v880_v3, %v432_v14  ;;  %v1446_v51 = vmax.f32 %v1172_v43, 0.0  ;;  %v511_v63 = vadd.f32 %v955_v20, %v503_v55 }
  0x2b   : > { %v455_v26 = vmax.f32 %v1198_v13, 0.0  ;;  %v472_v24 = vmul.f32 %v880_v3, %v464_v36  ;;  %v1218_v59 = vadd.f32 %v955_v20, %v402_v35  ;;  %v504_v14 = vmul.f32 %v880_v3, %v496_v38  ;;  %v1491_v13 = vld [vmem:[#allocation4_spill] sm:$0xff] }
  0x2c   : > { %v534_v47 = vmax.f32 %v1446_v51, %v518_v61  ;;  %v1221_v56 = vadd.f32 %v955_v20, %v440_v19  ;;  %v519_v61 = vmax.f32 %v511_v63, 0.0  ;;  %v1447_v51 = vmax.f32 %v1189_v58, 0.0 }
  0x2d   : > { %v1229_v36 = vadd.f32 %v955_v20, %v472_v24  ;;  %v424_v37 = vmax.f32 %v1218_v59, 0.0  ;;  %v512_v19 = vadd.f32 %v955_v20, %v504_v14  ;;  %v1448_v3 = vmax.f32 %v1011_v44, 0.0 }
  0x2e   : > { %v542_v60 = vmax.f32 %v526_v23, %v534_v47  ;;  %v527_v55 = vmax.f32 %v1447_v51, %v455_v26  ;;  %v456_v35 = vmax.f32 %v1221_v56, 0.0  ;;  %v1451_v38 = vmax.f32 %v1207_v54, 0.0 }
  0x2f   : > { %vm1237_vm1 = vcmp.eq.f32.partialorder %v1448_v3, %v1072_v49  ;;  %v488_v24 = vmax.f32 %v1229_v36, 0.0  ;;  %v1452_v63 = vmax.f32 %v1014_v45, 0.0  ;;  %v1453_v20 = vmax.f32 %v1021_v48, 0.0 }
  0x30   : > { %631 = vst.msk [vmem:[%s1061_s19 + $0x28] sm:$0xff] %vm625_vm0, %v542_v60  ;;  %v535_v47 = vmax.f32 %v1451_v38, %v519_v61  ;;  %v520_v44 = vmax.f32 %v512_v19, 0.0  ;;  %v528_v14 = vmax.f32 %v424_v37, %v456_v35  ;;  %v1454_v61 = vmax.f32 %v1017_v46, 0.0 }
  0x31   : > { %vm561_vm2 = vcmp.eq.f32.partialorder %v1452_v63, %v1072_v49  ;;  %vm577_vm3 = vcmp.eq.f32.partialorder %v1453_v20, %v1072_v49  ;;  %v1457_v36 = vmax.f32 %v1025_v50, 0.0  ;;  %v1458_v19 = vmax.f32 %v1034_v57, 0.0  ;;  %v1490_v20 = vld [vmem:[#allocation7_spill] sm:$0xff] }
  0x32   : > { %v601_v45 = vsel %vm577_vm3, %v886_v5, %v924_v15  ;;  %vm1267_vm4 = vcmp.eq.f32.partialorder %v1454_v61, %v1092_v32  ;;  %v543_v49 = vmax.f32 %v527_v55, %v535_v47  ;;  %v536_v5 = vmax.f32 %v488_v24, %v520_v44  ;;  %v1489_v47 = vld [vmem:[#allocation8_spill] sm:$0xff] }
  0x33   : > { %v609_v51 = vsel %vm561_vm2, %v883_v4, %v601_v45  ;;  %vm562_vm5 = vcmp.eq.f32.partialorder %v1457_v36, %v1092_v32  ;;  %vm578_vm6 = vcmp.eq.f32.partialorder %v1458_v19, %v1092_v32  ;;  %v1459_v4 = vmax.f32 %v1064_v39, 0.0 }
  0x34   : > { %v617_v15 = vsel %vm1237_vm1, %v865_v0, %v609_v51  ;;  %v602_v46 = vsel %vm578_vm6, %v892_v7, %v927_v16  ;;  %632 = vst.msk [vmem:[%s1061_s19 + $0x30] sm:$0xff] %vm625_vm0, %v543_v49  ;;  %v1462_v0 = vmax.f32 %v1067_v40, 0.0  ;;  %v1463_v7 = vmax.f32 %v1077_v52, 0.0 }
  0x35   : > { %vm1286_vm7 = vcmp.eq.f32.partialorder %v1459_v4, %v1135_v41  ;;  %634 = vst.msk [vmem:[%s1260_s23] sm:$0xff] %vm625_vm0, %v617_v15  ;;  %v610_v50 = vsel %vm562_vm5, %v889_v6, %v602_v46  ;;  %v1464_v16 = vmax.f32 %v1085_v25, 0.0  ;;  %v544_v39 = vmax.f32 %v528_v14, %v536_v5 }
  0x36   : > { %vm563_vm8 = vcmp.eq.f32.partialorder %v1462_v0, %v1135_v41  ;;  %vm579_vm9 = vcmp.eq.f32.partialorder %v1463_v7, %v1135_v41  ;;  %v618_v6 = vsel %vm1267_vm4, %v870_v1, %v610_v50  ;;  %v1467_v52 = vmax.f32 %v1096_v34, 0.0 }
  0x37   : > { %vm1304_vm10 = vcmp.eq.f32.partialorder %v1464_v16, %v1167_v27  ;;  %v603_v40 = vsel %vm579_vm9, %v903_v10, %v958_v21  ;;  %635 = vst.msk [vmem:[%s1260_s23 + $0x8] sm:$0xff] %vm625_vm0, %v618_v6  ;;  %v1468_v32 = vmax.f32 %v1112_v53, 0.0  ;;  %v1469_v41 = vmax.f32 %v1129_v31, 0.0  ;;  %633 = vst.msk [vmem:[%s1061_s19 + $0x38] sm:$0xff] %vm625_vm0, %v544_v39 }
  0x38   : > { %vm564_vm11 = vcmp.eq.f32.partialorder %v1467_v52, %v1167_v27  ;;  %v611_v25 = vsel %vm563_vm8, %v900_v9, %v603_v40  ;;  %v1472_v10 = vmax.f32 %v1132_v42, 0.0  ;;  %v1473_v34 = vmax.f32 %v1138_v33, 0.0 }
  0x39   : > { %vm580_vm12 = vcmp.eq.f32.partialorder %v1468_v32, %v1167_v27  ;;  %vm1325_vm13 = vcmp.eq.f32.partialorder %v1469_v41, %v1185_v62  ;;  %v619_v9 = vsel %vm1286_vm7, %v875_v2, %v611_v25  ;;  %v1474_v53 = vmax.f32 %v1160_v29, 0.0  ;;  %v1479_v27 = vld [vmem:[#allocation9_spill] sm:$0xff] }
  0x3a   : > { %vm565_vm14 = vcmp.eq.f32.partialorder %v1472_v10, %v1185_v62  ;;  %v604_v21 = vsel %vm580_vm12, %v909_v12, %v961_v22  ;;  %vm581_vm15 = vcmp.eq.f32.partialorder %v1473_v34, %v1185_v62  ;;  %636 = vst.msk [vmem:[%s1260_s23 + $0x10] sm:$0xff] %vm625_vm0, %v619_v9  ;;  %v1477_v12 = vmax.f32 %v1163_v30, 0.0  ;;  %v1480_v62 = vld [vmem:[#allocation6_spill] sm:$0xff] }
  0x3b   : > { %vm1344_vm1 = vcmp.eq.f32.partialorder %v1474_v53, %v542_v60  ;;  %v612_v42 = vsel %vm564_vm11, %v906_v11, %v604_v21  ;;  %v605_v2 = vsel %vm581_vm15, %v933_v18, %v985_v28  ;;  %v1478_v22 = vmax.f32 %v1172_v43, 0.0  ;;  %v552_v28 = vld [vmem:[%s1412_s6 + $0x38] sm:$0xff]  ;;  %v1484_v30 = vld [vmem:[#allocation2_spill] sm:$0xff] }
  0x3c   : > { %vm566_vm2 = vcmp.eq.f32.partialorder %v1477_v12, %v542_v60  ;;  %v620_v29 = vsel %vm1304_vm10, %v897_v8, %v612_v42  ;;  %v613_v33 = vsel %vm565_vm14, %v930_v17, %v605_v2  ;;  %v1481_v11 = vmax.f32 %v1189_v58, 0.0  ;;  %v1485_v17 = vld [vmem:[#allocation5_spill] sm:$0xff] }
  0x3d   : > { %vm582_vm3 = vcmp.eq.f32.partialorder %v1478_v22, %v542_v60  ;;  %637 = vst.msk [vmem:[%s1260_s23 + $0x18] sm:$0xff] %vm625_vm0, %v620_v29  ;;  %v621_v8 = vsel %vm1325_vm13, %v1484_v30, %v613_v33  ;;  %vm567_vm5 = vcmp.eq.f32.partialorder %v455_v26, %v543_v49  ;;  %v1486_v58 = vmov %v1451_v38  ;;  %v1487_v60 = vld [vmem:[#allocation3_spill] sm:$0xff]  ;;  %v1488_v38 = vld [vmem:[#allocation10_spill] sm:$0xff] }
  0x3e   : > { %v606_v3 = vsel %vm582_vm3, %v1480_v62, %v1479_v27  ;;  %vm1365_vm4 = vcmp.eq.f32.partialorder %v1481_v11, %v543_v49  ;;  %vm583_vm6 = vcmp.eq.f32.partialorder %v1486_v58, %v543_v49  ;;  %638 = vst.msk [vmem:[%s1260_s23 + $0x20] sm:$0xff] %vm625_vm0, %v621_v8  ;;  %v592_v14 = vadd.s32 16, %v552_v28 }
  0x3f   : > { %v614_v43 = vsel %vm566_vm2, %v1485_v17, %v606_v3  ;;  %v607_v63 = vsel %vm583_vm6, %v1489_v47, %v1488_v38  ;;  %v576_v26 = vadd.s32 1, %v552_v28  ;;  %vm584_vm7 = vcmp.eq.f32.partialorder %v488_v24, %v544_v39 }
  0x40   : > { %v622_v23 = vsel %vm1344_vm1, %v1487_v60, %v614_v43  ;;  %v615_v44 = vsel %vm567_vm5, %v1490_v20, %v607_v63  ;;  %vm568_vm8 = vcmp.eq.f32.partialorder %v456_v35, %v544_v39  ;;  %v600_v45 = vadd.s32 1, %v592_v14 }
  0x41   : > { %639 = vst.msk [vmem:[%s1260_s23 + $0x28] sm:$0xff] %vm625_vm0, %v622_v23  ;;  %v623_v54 = vsel %vm1365_vm4, %v1491_v13, %v615_v44  ;;  %vm560_vm9 = vcmp.eq.f32.partialorder %v424_v37, %v544_v39 }
  0x42   : > { %640 = vst.msk [vmem:[%s1260_s23 + $0x30] sm:$0xff] %vm625_vm0, %v623_v54  ;;  %v608_v61 = vsel %vm584_vm7, %v592_v14, %v600_v45 }
  0x43   : > { %v616_v48 = vsel %vm568_vm8, %v576_v26, %v608_v61 }
  0x44   : > { %v624_v49 = vsel %vm560_vm9, %v552_v28, %v616_v48 }
  0x45   : > { %641 = vst.msk [vmem:[%s1260_s23 + $0x38] sm:$0xff] %vm625_vm0, %v624_v49 }
  0x46 PF: > { %s19_s27 = sadd.s32 1, %s807_s27  }
  0x47   : > { %p16_p4 = scmp.ge.s32.totalorder %s19_s27, 4  }
  0x49   :  { %18 = sbr.rel (!%p16_p4) target bundleno = 1 (0x1), region = 99 }

// kernel: encoder_forward.6
= control target key start
LH: loop header
LB: loop body
LE: loop exit
PB: predicated region body
PF: predicated region fallthrough
CT: control target
= control target key end

     0   :  { %s4378_s18 = smov 0   ;;  %s6016_s0 = inlined_call_operand.vmem [shape: f32[2,326,8], index: 0, kind: input, shape index: {}]   ;;  %s6017_s1 = inlined_call_operand.vmem [shape: bf16[9,8,8], index: 1, kind: input, shape index: {}]   ;;  %s6018_s2 = inlined_call_operand.vmem [shape: f32[1,288,1], index: 2, kind: input, shape index: {}]   ;;  %s6019_s3 = inlined_call_operand.vmem [shape: f32[2,288,8], index: 3, kind: output, shape index: {0}]   ;;  %s6020_s4 = inlined_call_operand.vmem [shape: f32[2,1,8], index: 4, kind: output, shape index: {1}]   ;;  %s6021_s5 = inlined_call_operand.vmem [shape: f32[2,1,8], index: 5, kind: output, shape index: {2}]  }
   0x1 LB: > { %s3622_s19 = sadd.s32 4294967295, %s4345_s18   ;;  %p3626_p0 = scmp.ge.s32.totalorder %s4345_s18, 1  ;;  %s4345_s18 = sphi %s4378_s18, %s16_s18  }
   0x2   : > { %p192_p1 = scmp.lt.s32.totalorder %s4345_s18, 3 }
   0x4   : > { %p193_p2 = pnand %p3626_p0, %p192_p1 }
   0x6   : > { %196 = sbr.rel (%p193_p2) target bundleno = 574 (0x23e), region = 32 }
   0xb   : > { %v3629_v0 = vld [vmem:[%s6017_s1 + $0x4] sm:$0xf]  ;;  %vm510_vm0 = vcmask 1043456   ;;  %p226_p3 = scmp.lt.s32.totalorder %s3622_s19, 1  ;;  %v3666_v2 = vld [vmem:[%s6017_s1 + $0x8] sm:$0xf] }
   0xc   : > { %4316 = vmatprep.subr.msk.bf16.mxu0 %vm510_vm0, %v3629_v0  ;;  %4317 = vmatprep.subr.msk.bf16.mxu1 %vm510_vm0, %v3629_v0  ;;  %v512_v1 = vsel %vm510_vm0, %v3629_v0, 0  ;;  %v302_v3 = vld [vmem:[%s6017_s1] sm:$0xf]  ;;  %vm306_vm1 = vsmask.f32 7424  ;;  %vm455_vm2 = vcmask 64512  }
   0xd   : > { %3973 = vmatpush3.bf16.msra.mxu0 %v512_v1  ;;  %4315 = vmatpush3.bf16.msra.mxu1 %v512_v1  ;;  %s6195_s19 = smov (!%p226_p3, %s3622_s19), 1  ;;  %v1021_v22 = vsel %vm510_vm0, %v3666_v2, 0  ;;  %v728_v36 = vsel %vm510_vm0, %v302_v3, 0  ;;  %v4503_v1 = vld [vmem:[%s6017_s1 + $0xc] sm:$0xf]  ;;  %vm928_vm3 = vcmask 1046528  }
   0xe   : > { %4319 = vmatprep.subr.msk.bf16.mxu0 %vm510_vm0, %v3666_v2  ;;  %4318 = vmatprep.subr.msk.bf16.mxu1 %vm510_vm0, %v302_v3  ;;  %s4326_s26 = smul.u32 328, %s6195_s19  ;;  %vm1470_vm4 = vsmask.f32 6400  ;;  %vm1828_vm5 = vcmask 1045504   ;;  %vm2370_vm6 = vsmask.f32 5376  ;;  %s238_s6 = scalar_lea.vmem %s6020_s4, %s6195_s19 }
   0xf   : > { %vm2728_vm7 = vcmask 1044480   ;;  %vm3401_vm8 = vcmask 57344   ;;  %s241_s9 = scalar_lea.vmem %s6021_s5, %s6195_s19 }
  0x10   : > { %s4406_s29 = scalar_lea.vmem %s6016_s0, %s4326_s26 }
  0x11   : > { %v243_v4 = vld [vmem:[%s4406_s29] sm:$0xff]  ;;  %v244_v5 = vld [vmem:[%s4406_s29 + $0x8] sm:$0xff]  ;;  %v245_v6 = vld [vmem:[%s4406_s29 + $0x10] sm:$0xff] }
  0x12   : > { %v246_v7 = vld [vmem:[%s4406_s29 + $0x18] sm:$0xff]  ;;  %v4412_v8 = vpack.c.bf16 %v244_v5, %v243_v4  ;;  %v263_v9 = vld [vmem:[%s4406_s29 + $0xa0] sm:$0xff]  ;;  %v264_v10 = vld [vmem:[%s4406_s29 + $0xa8] sm:$0xff] }
  0x13   : > { %v4416_v11 = vpack.c.bf16 %v246_v7, %v245_v6  ;;  %v265_v12 = vld [vmem:[%s4406_s29 + $0xb0] sm:$0xff]  ;;  %v266_v13 = vld [vmem:[%s4406_s29 + $0xb8] sm:$0xff]  ;;  %v4420_v14 = vpack.c.bf16 %v264_v10, %v263_v9  ;;  %v247_v15 = vld [vmem:[%s4406_s29 + $0x20] sm:$0xff] }
  0x14   : > { %v308_v16 = vshrl.u32 %v4412_v8, 16  ;;  %v310_v17 = vshll.u32 %v4412_v8, 16  ;;  %v4425_v18 = vpack.c.bf16 %v266_v13, %v265_v12  ;;  %v248_v19 = vld [vmem:[%s4406_s29 + $0x28] sm:$0xff]  ;;  %v267_v20 = vld [vmem:[%s4406_s29 + $0xc0] sm:$0xff]  ;;  %v249_v27 = vld [vmem:[%s4406_s29 + $0x30] sm:$0xff] }
  0x15   : > { %6075 = vst [vmem:[#allocation2_spill] sm:$0xff] %v4420_v14  ;;  %v268_v21 = vld [vmem:[%s4406_s29 + $0xc8] sm:$0xff]  ;;  %v6024_v23 = vshll.u32 %v4416_v11, 16  ;;  %v6023_v24 = vshrl.u32 %v4416_v11, 16  ;;  %v4434_v25 = vshll.u32 %v4420_v14, 16  ;;  %v4437_v26 = vshrl.u32 %v4420_v14, 16 }
  0x16   : > { %6076 = vst [vmem:[#allocation3_spill] sm:$0xff] %v4425_v18  ;;  %v250_v28 = vld [vmem:[%s4406_s29 + $0x38] sm:$0xff]  ;;  %v312_v29 = vrot.slane %v310_v17, 1  ;;  %v4442_v30 = vshll.u32 %v4425_v18, 16  ;;  %v4445_v31 = vshrl.u32 %v4425_v18, 16  ;;  %v4447_v32 = vpack.c.bf16 %v248_v19, %v247_v15  ;;  %v269_v41 = vld [vmem:[%s4406_s29 + $0xd0] sm:$0xff] }
  0x17   : > { %v317_v33 = vrot.slane %v6024_v23, 1  ;;  %v6022_v34 = vrot.slane %v4434_v25, 1  ;;  %v4452_v35 = vpack.c.bf16 %v268_v21, %v267_v20  ;;  %v4459_v40 = vpack.c.bf16 %v250_v28, %v249_v27  ;;  %v270_v42 = vld [vmem:[%s4406_s29 + $0xd8] sm:$0xff]  ;;  %v251_v47 = vld [vmem:[%s4406_s29 + $0x40] sm:$0xff]  ;;  %v252_v48 = vld [vmem:[%s4406_s29 + $0x48] sm:$0xff] }
  0x18   : > { %v313_v37 = vor.u32 %v312_v29, %v308_v16  ;;  %v397_v38 = vrot.slane %v4442_v30, 1  ;;  %v4457_v39 = vshll.u32 %v4447_v32, 16  ;;  %v4472_v46 = vshrl.u32 %v4447_v32, 16  ;;  %v271_v57 = vld [vmem:[%s4406_s29 + $0xe0] sm:$0xff]  ;;  %v272_v58 = vld [vmem:[%s4406_s29 + $0xe8] sm:$0xff]  ;;  %v253_v63 = vld [vmem:[%s4406_s29 + $0x50] sm:$0xff] }
  0x19   : > { %6077 = vst [vmem:[#allocation4_spill] sm:$0xff] %v4452_v35  ;;  %v321_v43 = vor.u32 %v6023_v24, %v317_v33  ;;  %v393_v44 = vor.u32 %v4437_v26, %v6022_v34  ;;  %v4469_v45 = vshll.u32 %v4452_v35, 16  ;;  %v4480_v52 = vshll.u32 %v4459_v40, 16  ;;  %v254_v0 = vld [vmem:[%s4406_s29 + $0x58] sm:$0xff]  ;;  %v273_v6 = vld [vmem:[%s4406_s29 + $0xf0] sm:$0xff]  ;;  %v255_v28 = vld [vmem:[%s4406_s29 + $0x60] sm:$0xff] }
  0x1a   : > { %6078 = vst [vmem:[#allocation5_spill] sm:$0xff] %v4457_v39  ;;  %6080 = vst [vmem:[#allocation7_spill] sm:$0xff] %v4472_v46  ;;  %v318_v49 = vsel %vm306_vm1, %v313_v37, %v317_v33  ;;  %v401_v50 = vor.u32 %v4445_v31, %v397_v38  ;;  %v325_v51 = vrot.slane %v4457_v39, 1  ;;  %v4485_v55 = vpack.c.bf16 %v270_v42, %v269_v41  ;;  %v274_v7 = vld [vmem:[%s4406_s29 + $0xf8] sm:$0xff]  ;;  %v4519_v9 = vld [vmem:[%s6017_s1 + $0x10] sm:$0xf] }
  0x1b   : > { %6079 = vst [vmem:[#allocation6_spill] sm:$0xff] %v4469_v45  ;;  %3974 = vmatprep.mubr.msk.bf16.mxu0 %vm455_vm2, %v318_v49  ;;  %v398_v53 = vsel %vm306_vm1, %v393_v44, %v397_v38  ;;  %v405_v54 = vrot.slane %v4469_v45, 1  ;;  %v4488_v56 = vshrl.u32 %v4452_v35, 16  ;;  %v333_v61 = vrot.slane %v4480_v52, 1  ;;  %v256_v29 = vld [vmem:[%s4406_s29 + $0x68] sm:$0xff]  ;;  %v275_v38 = vld [vmem:[%s4406_s29 + $0x100] sm:$0xff] }
  0x1c   : > { %6081 = vst [vmem:[#allocation8_spill] sm:$0xff] %v4485_v55  ;;  %3994 = vmatprep.mubr.msk.bf16.mxu1 %vm455_vm2, %v398_v53  ;;  %v326_v59 = vsel %vm306_vm1, %v321_v43, %v325_v51  ;;  %v329_v60 = vor.u32 %v4472_v46, %v325_v51  ;;  %v4496_v62 = vpack.c.bf16 %v252_v48, %v251_v47  ;;  %v4509_v4 = vshll.u32 %v4485_v55, 16  ;;  %v276_v41 = vld [vmem:[%s4406_s29 + $0x108] sm:$0xff]  ;;  %v257_v48 = vld [vmem:[%s4406_s29 + $0x70] sm:$0xff] }
  0x1d   : > { %6082 = vst [vmem:[#allocation9_spill] sm:$0xff] %v4488_v56  ;;  %3975 = vmatmul.mubr.msk.bf16.vlgmr.msra.gmra.mxu0 %vm455_vm2, %v326_v59  ;;  %v406_v2 = vsel %vm306_vm1, %v401_v50, %v405_v54  ;;  %v409_v3 = vor.u32 %v4488_v56, %v405_v54  ;;  %v4512_v5 = vshrl.u32 %v4459_v40, 16  ;;  %v4526_v13 = vpack.c.bf16 %v272_v58, %v271_v57  ;;  %v258_v54 = vld [vmem:[%s4406_s29 + $0x78] sm:$0xff]  ;;  %v277_v57 = vld [vmem:[%s4406_s29 + $0x110] sm:$0xff] }
  0x1e   : > { %6083 = vst [vmem:[#allocation10_spill] sm:$0xff] %v4496_v62  ;;  %6084 = vst [vmem:[#allocation11_spill] sm:$0xff] %v4509_v4  ;;  %3995 = vmatmul.mubr.msk.bf16.vlgmr.msra.gmra.mxu1 %vm455_vm2, %v406_v2  ;;  %4049 = vmatpush3.bf16.msra.mxu0 %v1021_v22  ;;  %v334_v10 = vsel %vm306_vm1, %v329_v60, %v333_v61  ;;  %v4524_v12 = vshll.u32 %v4496_v62, 16  ;;  %v4529_v15 = vshrl.u32 %v4485_v55, 16  ;;  %v413_v16 = vrot.slane %v4509_v4, 1  ;;  %v278_v58 = vld [vmem:[%s4406_s29 + $0x118] sm:$0xff] }
  0x1f   : > { %6085 = vst [vmem:[#allocation12_spill] sm:$0xff] %v4526_v13  ;;  %4011 = vmatpush3.bf16.msra.mxu1 %v728_v36  ;;  %3978 = vmatprep.mubr.msk.bf16.mxu0 %vm455_vm2, %v334_v10  ;;  %v337_v17 = vor.u32 %v4512_v5, %v333_v61  ;;  %v4534_v19 = vpack.c.bf16 %v254_v0, %v253_v63  ;;  %v4537_v20 = vshrl.u32 %v4496_v62, 16  ;;  %v4541_v22 = vshll.u32 %v4526_v13, 16  ;;  %v260_v10 = vld [vmem:[%s4406_s29 + $0x88] sm:$0xff] }
  0x20   : > { %6086 = vst [vmem:[#allocation13_spill] sm:$0xff] %v4529_v15  ;;  %v341_v21 = vrot.slane %v4524_v12, 1  ;;  %v4543_v27 = vpack.c.bf16 %v274_v7, %v273_v6  ;;  %4320 = vmatprep.subr.msk.bf16.mxu1 %vm510_vm0, %v4503_v1  ;;  %4321 = vmatprep.subr.msk.bf16.mxu0 %vm510_vm0, %v4519_v9  ;;  %v414_v33 = vsel %vm306_vm1, %v409_v3, %v413_v16  ;;  %v4563_v47 = vshrl.u32 %v4526_v13, 16  ;;  %v259_v7 = vld [vmem:[%s4406_s29 + $0x80] sm:$0xff] }
  0x21   : > { %6087 = vst [vmem:[#allocation14_spill] sm:$0xff] %v4534_v19  ;;  %6088 = vst [vmem:[#allocation15_spill] sm:$0xff] %v4541_v22  ;;  %v417_v36 = vor.u32 %v4529_v15, %v413_v16  ;;  %v4554_v37 = vshll.u32 %v4534_v19, 16  ;;  %3998 = vmatprep.mubr.msk.bf16.mxu1 %vm455_vm2, %v414_v33  ;;  %v421_v43 = vrot.slane %v4541_v22, 1  ;;  %v4570_v51 = vpack.c.bf16 %v256_v29, %v255_v28  ;;  %v4607_v29 = vld [vmem:[%s4406_s29 + $0x120] sm:$0xff] }
  0x22   : > { %6089 = vst [vmem:[#allocation16_spill] sm:$0xff] %v4543_v27  ;;  %v342_v42 = vsel %vm306_vm1, %v337_v17, %v341_v21  ;;  %v345_v44 = vor.u32 %v4537_v20, %v341_v21  ;;  %6090 = vst [vmem:[#allocation17_spill] sm:$0xff] %v4563_v47  ;;  %v4568_v50 = vshll.u32 %v4543_v27, 16  ;;  %v4573_v53 = vshrl.u32 %v4534_v19, 16 }
  0x23   : > { %v349_v49 = vrot.slane %v4554_v37, 1  ;;  %6092 = vst [vmem:[#allocation19_spill] sm:$0xff] %v4570_v51  ;;  %v422_v59 = vsel %vm306_vm1, %v417_v36, %v421_v43  ;;  %v425_v60 = vor.u32 %v4563_v47, %v421_v43  ;;  %v4580_v61 = vpack.c.bf16 %v276_v41, %v275_v38 }
  0x24   : > { %6091 = vst [vmem:[#allocation18_spill] sm:$0xff] %v4568_v50  ;;  %v4583_v63 = vshrl.u32 %v4543_v27, 16  ;;  %v429_v2 = vrot.slane %v4568_v50, 1  ;;  %v4590_v6 = vshll.u32 %v4570_v51, 16  ;;  %v4599_v17 = vpack.c.bf16 %v258_v54, %v257_v48 }
  0x25   : > { %6093 = vst [vmem:[#allocation20_spill] sm:$0xff] %v4580_v61  ;;  %3979 = vmatmul.mubr.msk.bf16.gmra.mxu0 %vm455_vm2, %v342_v42  ;;  %v350_v0 = vsel %vm306_vm1, %v345_v44, %v349_v49  ;;  %v353_v3 = vor.u32 %v4573_v53, %v349_v49  ;;  %v4597_v16 = vshll.u32 %v4580_v61, 16  ;;  %v4602_v21 = vshrl.u32 %v4570_v51, 16 }
  0x26   : > { %6094 = vst [vmem:[#allocation21_spill] sm:$0xff] %v4583_v63  ;;  %3999 = vmatmul.mubr.msk.bf16.gmra.mxu1 %vm455_vm2, %v422_v59  ;;  %3982 = vmatprep.mubr.msk.bf16.mxu0 %vm455_vm2, %v350_v0  ;;  %6096 = vst [vmem:[#allocation23_spill] sm:$0xff] %v4599_v17  ;;  %v4604_v28 = vpack.c.bf16 %v278_v58, %v277_v57  ;;  %v430_v33 = vsel %vm306_vm1, %v425_v60, %v429_v2  ;;  %v357_v36 = vrot.slane %v4590_v6, 1  ;;  %v261_v58 = vld [vmem:[%s4406_s29 + $0x90] sm:$0xff]  ;;  %v262_v59 = vld [vmem:[%s4406_s29 + $0x98] sm:$0xff] }
  0x27   : > { %6095 = vst [vmem:[#allocation22_spill] sm:$0xff] %v4597_v16  ;;  %v433_v38 = vor.u32 %v4583_v63, %v429_v2  ;;  %v4613_v41 = vshrl.u32 %v4580_v61, 16  ;;  %4002 = vmatprep.mubr.msk.bf16.mxu1 %vm455_vm2, %v430_v33  ;;  %v437_v42 = vrot.slane %v4597_v16, 1  ;;  %v4618_v43 = vshll.u32 %v4599_v17, 16 }
  0x28   : > { %6097 = vst [vmem:[#allocation24_spill] sm:$0xff] %v4604_v28  ;;  %v4621_v44 = vshll.u32 %v4604_v28, 16  ;;  %v4623_v48 = vpack.c.bf16 %v260_v10, %v259_v7  ;;  %v358_v49 = vsel %vm306_vm1, %v353_v3, %v357_v36  ;;  %v361_v54 = vor.u32 %v4602_v21, %v357_v36 }
  0x29   : > { %6098 = vst [vmem:[#allocation25_spill] sm:$0xff] %v4613_v41  ;;  %v303_v57 = vpack.c.bf16 %v4607_v29, %v4607_v29  ;;  %v365_v60 = vrot.slane %v4618_v43, 1  ;;  %v441_v0 = vor.u32 %v4613_v41, %v437_v42  ;;  %v4635_v33 = vshrl.u32 %v4599_v17, 16 }
  0x2a   : > { %6099 = vst [vmem:[#allocation26_spill] sm:$0xff] %v4621_v44  ;;  %6100 = vst [vmem:[#allocation27_spill] sm:$0xff] %v4623_v48  ;;  %v445_v2 = vrot.slane %v4621_v44, 1  ;;  %v438_v7 = vsel %vm306_vm1, %v433_v38, %v437_v42  ;;  %v4639_v3 = vshll.u32 %v4623_v48, 16  ;;  %v4642_v10 = vshrl.u32 %v4604_v28, 16 }
  0x2b   : > { %v451_v36 = vshll.u32 %v303_v57, 16  ;;  %v366_v34 = vsel %vm306_vm1, %v361_v54, %v365_v60  ;;  %v4646_v23 = vpack.c.bf16 %v262_v59, %v261_v58  ;;  %v4651_v16 = vshrl.u32 %v4623_v48, 16 }
  0x2c   : > { %6101 = vst [vmem:[#allocation28_spill] sm:$0xff] %v4642_v10  ;;  %v446_v24 = vsel %vm306_vm1, %v441_v0, %v445_v2  ;;  %v373_v44 = vrot.slane %v4639_v3, 1  ;;  %v369_v38 = vor.u32 %v4635_v33, %v365_v60  ;;  %v449_v54 = vor.u32 %v4642_v10, %v445_v2 }
  0x2d   : > { %6102 = vst [vmem:[#allocation29_spill] sm:$0xff] %v4646_v23  ;;  %3983 = vmatmul.mubr.msk.bf16.gmra.mxu0 %vm455_vm2, %v358_v49  ;;  %v4657_v42 = vshll.u32 %v4646_v23, 16  ;;  %v453_v58 = vrot.slane %v451_v36, 1  ;;  %v930_v36 = vrot.slane %v4416_v11, 1 }
  0x2e   : > { %4003 = vmatmul.mubr.msk.bf16.gmra.mxu1 %vm455_vm2, %v438_v7  ;;  %3986 = vmatprep.mubr.msk.bf16.mxu0 %vm455_vm2, %v366_v34  ;;  %v377_v49 = vor.u32 %v4651_v16, %v373_v44  ;;  %v374_v0 = vsel %vm306_vm1, %v369_v38, %v373_v44  ;;  %v4665_v7 = vshrl.u32 %v4646_v23, 16  ;;  %v929_v44 = vrot.slane %v4412_v8, 1 }
  0x2f   : > { %4006 = vmatprep.mubr.msk.bf16.mxu1 %vm455_vm2, %v446_v24  ;;  %v381_v59 = vrot.slane %v4657_v42, 1  ;;  %v454_v34 = vsel %vm306_vm1, %v449_v54, %v453_v58  ;;  %v6103_v24 = vshll.u32 %v4416_v11, 16  ;;  %v4682_v38 = vrot.slane %v4604_v28, 1 }
  0x30   : > { %v964_v54 = vrot.slane %v303_v57, 1  ;;  %v6104_v58 = vshrl.u32 %v4416_v11, 16  ;;  %v1483_v57 = vrot.slane %v4524_v12, 2 }
  0x31   : > { %v382_v60 = vsel %vm306_vm1, %v377_v49, %v381_v59  ;;  %v4672_v41 = vrot.slane %v6103_v24, 2  ;;  %v385_v2 = vor.u32 %v4665_v7, %v381_v59  ;;  %v931_v24 = vsel %vm928_vm3, %v929_v44, %v930_v36 }
  0x32   : > { %v4686_v49 = vrot.slane %v6104_v58, 1  ;;  %v1253_v58 = vsel %vm510_vm0, %v4503_v1, 0  ;;  %v932_v44 = vrot.slane %v4447_v32, 1  ;;  %v934_v1 = vrot.slane %v4459_v40, 1 }
  0x35   : > { %3987 = vmatmul.mubr.msk.bf16.gmra.mxu0 %vm455_vm2, %v374_v0  ;;  %v6105_v0 = vrot.slane %v4434_v25, 1 }
  0x36   : > { %4007 = vmatmul.mubr.msk.bf16.gmra.mxu1 %vm455_vm2, %v454_v34  ;;  %3990 = vmatprep.mubr.msk.bf16.mxu0 %vm455_vm2, %v382_v60  ;;  %v4693_v34 = vsel %vm928_vm3, %v4682_v38, %v964_v54  ;;  %v1482_v60 = vrot.slane %v4537_v20, 1 }
  0x37   : > { %4012 = vmatprep.mubr.msk.bf16.mxu1 %vm455_vm2, %v4412_v8  ;;  %v390_v59 = vsel %vm306_vm1, %v385_v2, %v6105_v0  ;;  %v4706_v2 = vld [vmem:[%s6017_s1 + $0x14] sm:$0xf]  ;;  %v280_v0 = vld [vmem:[%s4406_s29 + $0x128] sm:$0xff]  ;;  %v940_v8 = vrot.slane %v4570_v51, 1 }
  0x38   : > { %v4708_v54 = vor.u32 %v1483_v57, %v1482_v60  ;;  %v4724_v60 = vsel %vm928_vm3, %v930_v36, %v932_v44  ;;  %v4729_v57 = vsel %vm928_vm3, %v932_v44, %v934_v1 }
  0x3d   : > { %3991 = vmatmul.mubr.msk.bf16.gmra.mxu0 %vm455_vm2, %v390_v59  ;;  %v4721_v59 = vpack.c.bf16 %v280_v0, %v4607_v29  ;;  %v936_v29 = vrot.slane %v4496_v62, 1 }
  0x3e   : > { %4013 = vmatmul.mubr.msk.bf16.vlgmr.msra.gmra.mxu1 %vm455_vm2, %v4416_v11  ;;  %4050 = vmatprep.mubr.msk.bf16.mxu0 %vm455_vm2, %v931_v24  ;;  %v1611_v24 = vsel %vm510_vm0, %v4519_v9, 0  ;;  %v938_v9 = vrot.slane %v4534_v19, 1 }
  0x3f   : > { %4087 = vmatpush3.bf16.msra.mxu1 %v1253_v58  ;;  %4016 = vmatprep.mubr.msk.bf16.mxu1 %vm455_vm2, %v4447_v32  ;;  %6106 = vst [vmem:[#allocation30_spill] sm:$0xff] %v4721_v59  ;;  %v4736_v58 = vld [vmem:[%s6017_s1 + $0x18] sm:$0xf]  ;;  %v6031_v36 = vrot.slane %v4721_v59, 1  ;;  %v4756_v0 = vsel %vm928_vm3, %v934_v1, %v936_v29  ;;  %v942_v1 = vrot.slane %v4599_v17, 1 }
  0x40   : > { %4322 = vmatprep.subr.msk.bf16.mxu1 %vm510_vm0, %v4706_v2 }
  0x41   : > { %v4753_v44 = vsel %vm928_vm3, %v4682_v38, %v6031_v36  ;;  %v4772_v36 = vsel %vm928_vm3, %v938_v9, %v940_v8 }
  0x45   : > { %4051 = vmatmul.mubr.msk.bf16.vlgmr.msra.gmra.mxu0 %vm455_vm2, %v4724_v60 }
  0x46   : > { %4017 = vmatmul.mubr.msk.bf16.gmra.mxu1 %vm455_vm2, %v4459_v40  ;;  %4125 = vmatpush3.bf16.msra.mxu0 %v1611_v24  ;;  %v4759_v24 = vsel %vm928_vm3, %v936_v29, %v938_v9  ;;  %v4775_v29 = vsel %vm928_vm3, %v940_v8, %v942_v1  ;;  %v946_v9 = vrot.slane %v4646_v23, 1 }
  0x47   : > { %4020 = vmatprep.mubr.msk.bf16.mxu1 %vm455_vm2, %v4496_v62  ;;  %4054 = vmatprep.mubr.msk.bf16.mxu0 %vm455_vm2, %v4729_v57  ;;  %v1475_v62 = vrot.slane %v4457_v39, 2  ;;  %v6107_v39 = vor.u32 %v4672_v41, %v4686_v49  ;;  %v1486_v41 = vrot.slane %v4573_v53, 1  ;;  %v1487_v49 = vrot.slane %v4554_v37, 2 }
  0x48   : > { %4323 = vmatprep.subr.msk.bf16.mxu0 %vm510_vm0, %v4736_v58 }
  0x4d   : > { %4055 = vmatmul.mubr.msk.bf16.gmra.mxu0 %vm455_vm2, %v4756_v0 }
  0x4e   : > { %4021 = vmatmul.mubr.msk.bf16.gmra.mxu1 %vm455_vm2, %v4534_v19  ;;  %4058 = vmatprep.mubr.msk.bf16.mxu0 %vm455_vm2, %v4759_v24  ;;  %v944_v19 = vrot.slane %v4623_v48, 1 }
  0x4f   : > { %4024 = vmatprep.mubr.msk.bf16.mxu1 %vm455_vm2, %v4570_v51 }
  0x50   : > { %v4788_v51 = vsel %vm928_vm3, %v942_v1, %v944_v19  ;;  %v4791_v8 = vsel %vm928_vm3, %v944_v19, %v946_v9  ;;  %v950_v1 = vrot.slane %v4425_v18, 1 }
  0x55   : > { %4059 = vmatmul.mubr.msk.bf16.gmra.mxu0 %vm455_vm2, %v4772_v36 }
  0x56   : > { %4025 = vmatmul.mubr.msk.bf16.gmra.mxu1 %vm455_vm2, %v4599_v17  ;;  %4062 = vmatprep.mubr.msk.bf16.mxu0 %vm455_vm2, %v4775_v29  ;;  %v948_v17 = vrot.slane %v4420_v14, 1 }
  0x57   : > { %4028 = vmatprep.mubr.msk.bf16.mxu1 %vm455_vm2, %v4623_v48 }
  0x58   : > { %v4804_v48 = vsel %vm928_vm3, %v946_v9, %v948_v17  ;;  %v4807_v19 = vsel %vm928_vm3, %v948_v17, %v950_v1  ;;  %v954_v9 = vrot.slane %v4485_v55, 1 }
  0x5d   : > { %4063 = vmatmul.mubr.msk.bf16.gmra.mxu0 %vm455_vm2, %v4788_v51 }
  0x5e   : > { %4029 = vmatmul.mubr.msk.bf16.gmra.mxu1 %vm455_vm2, %v4646_v23  ;;  %4066 = vmatprep.mubr.msk.bf16.mxu0 %vm455_vm2, %v4791_v8  ;;  %v952_v23 = vrot.slane %v4452_v35, 1 }
  0x5f   : > { %4032 = vmatprep.mubr.msk.bf16.mxu1 %vm455_vm2, %v4420_v14 }
  0x60   : > { %v4820_v14 = vsel %vm928_vm3, %v950_v1, %v952_v23  ;;  %v4823_v17 = vsel %vm928_vm3, %v952_v23, %v954_v9  ;;  %v958_v1 = vrot.slane %v4543_v27, 1 }
  0x65   : > { %4067 = vmatmul.mubr.msk.bf16.gmra.mxu0 %vm455_vm2, %v4804_v48 }
  0x66   : > { %4033 = vmatmul.mubr.msk.bf16.gmra.mxu1 %vm455_vm2, %v4425_v18  ;;  %4070 = vmatprep.mubr.msk.bf16.mxu0 %vm455_vm2, %v4807_v19  ;;  %v956_v18 = vrot.slane %v4526_v13, 1 }
  0x67   : > { %4036 = vmatprep.mubr.msk.bf16.mxu1 %vm455_vm2, %v4452_v35 }
  0x68   : > { %v4836_v35 = vsel %vm928_vm3, %v954_v9, %v956_v18  ;;  %v4839_v23 = vsel %vm928_vm3, %v956_v18, %v958_v1 }
  0x6d   : > { %4071 = vmatmul.mubr.msk.bf16.gmra.mxu0 %vm455_vm2, %v4820_v14 }
  0x6e   : > { %4037 = vmatmul.mubr.msk.bf16.gmra.mxu1 %vm455_vm2, %v4485_v55  ;;  %4074 = vmatprep.mubr.msk.bf16.mxu0 %vm455_vm2, %v4823_v17  ;;  %v960_v55 = vrot.slane %v4580_v61, 1 }
  0x6f   : > { %4040 = vmatprep.mubr.msk.bf16.mxu1 %vm455_vm2, %v4526_v13  ;;  %v1474_v13 = vrot.slane %v4472_v46, 1 }
  0x70   : > { %v4851_v9 = vsel %vm928_vm3, %v958_v1, %v960_v55  ;;  %v4855_v18 = vsel %vm928_vm3, %v960_v55, %v4682_v38  ;;  %v1478_v55 = vrot.slane %v4512_v5, 1  ;;  %v1479_v38 = vrot.slane %v4480_v52, 2 }
  0x71   : > { %v1476_v1 = vor.u32 %v1475_v62, %v1474_v13  ;;  %v4880_v62 = vld [vmem:[%s6017_s1 + $0x1c] sm:$0xf] }
  0x72   : > { %v1480_v13 = vor.u32 %v1479_v38, %v1478_v55  ;;  %v1495_v38 = vrot.slane %v4618_v43, 2 }
  0x73   : > { %v1477_v46 = vsel %vm1470_vm4, %v6107_v39, %v1476_v1 }
  0x74   : > { %v1481_v39 = vsel %vm1470_vm4, %v1476_v1, %v1480_v13 }
  0x75   : > { %4075 = vmatmul.mubr.msk.bf16.gmra.mxu0 %vm455_vm2, %v4836_v35 }
  0x76   : > { %4041 = vmatmul.mubr.msk.bf16.gmra.mxu1 %vm455_vm2, %v4543_v27  ;;  %4078 = vmatprep.mubr.msk.bf16.mxu0 %vm455_vm2, %v4839_v23 }
  0x77   : > { %4044 = vmatprep.mubr.msk.bf16.mxu1 %vm455_vm2, %v4580_v61 }
  0x7d   : > { %4079 = vmatmul.mubr.msk.bf16.gmra.mxu0 %vm455_vm2, %v4851_v9 }
  0x7e   : > { %4045 = vmatmul.mubr.msk.bf16.gmra.mxu1 %vm455_vm2, %v4604_v28  ;;  %4082 = vmatprep.mubr.msk.bf16.mxu0 %vm455_vm2, %v4855_v18  ;;  %v1921_v28 = vsel %vm510_vm0, %v4706_v2, 0  ;;  %v1490_v2 = vrot.slane %v4602_v21, 1 }
  0x7f   : > { %4088 = vmatprep.mubr.msk.bf16.mxu1 %vm455_vm2, %v4724_v60  ;;  %v4902_v60 = vld [vmem:[%s6017_s1 + $0x20] sm:$0xf] }
  0x85   : > { %4083 = vmatmul.mubr.msk.bf16.gmra.mxu0 %vm455_vm2, %v4693_v34  ;;  %v2153_v34 = vsel %vm510_vm0, %v4736_v58, 0  ;;  %v2379_v58 = vrot.slane %v4524_v12, 3 }
  0x86   : > { %4089 = vmatmul.mubr.msk.bf16.vlgmr.msra.gmra.mxu1 %vm455_vm2, %v4729_v57  ;;  %4126 = vmatprep.mubr.msk.bf16.mxu0 %vm455_vm2, %v1477_v46  ;;  %v1491_v46 = vrot.slane %v4590_v6, 2  ;;  %v1488_v57 = vor.u32 %v1487_v49, %v1486_v41  ;;  %v1502_v49 = vrot.slane %v4665_v7, 1 }
  0x87   : > { %4163 = vmatpush3.bf16.msra.mxu1 %v1921_v28  ;;  %4092 = vmatprep.mubr.msk.bf16.mxu1 %vm455_vm2, %v4756_v0  ;;  %v1485_v28 = vsel %vm1470_vm4, %v1480_v13, %v4708_v54  ;;  %v2378_v0 = vrot.slane %v4537_v20, 2  ;;  %v1498_v20 = vrot.slane %v4651_v16, 1  ;;  %v1499_v13 = vrot.slane %v4639_v3, 2 }
  0x88   : > { %4324 = vmatprep.subr.msk.bf16.mxu1 %vm510_vm0, %v4880_v62  ;;  %v1492_v1 = vor.u32 %v1491_v46, %v1490_v2  ;;  %v1489_v55 = vsel %vm1470_vm4, %v4708_v54, %v1488_v57  ;;  %v1506_v46 = vrot.slane %v4437_v26, 1 }
  0x8a   : > { %v1493_v12 = vsel %vm1470_vm4, %v1488_v57, %v1492_v1 }
  0x8d   : > { %4127 = vmatmul.mubr.msk.bf16.vlgmr.msra.gmra.mxu0 %vm455_vm2, %v1481_v39  ;;  %v1500_v39 = vor.u32 %v1499_v13, %v1498_v20  ;;  %v3073_v20 = vld [vmem:[%s6018_s2 + $0x8] sm:$0xff] }
  0x8e   : > { %4093 = vmatmul.mubr.msk.bf16.gmra.mxu1 %vm455_vm2, %v4759_v24  ;;  %4201 = vmatpush3.bf16.msra.mxu0 %v2153_v34  ;;  %v1494_v24 = vrot.slane %v4635_v33, 1  ;;  %v1503_v34 = vrot.slane %v4657_v42, 2 }
  0x8f   : > { %4096 = vmatprep.mubr.msk.bf16.mxu1 %vm455_vm2, %v4772_v36  ;;  %4130 = vmatprep.mubr.msk.bf16.mxu0 %vm455_vm2, %v1485_v28  ;;  %v4920_v36 = vor.u32 %v2379_v58, %v2378_v0  ;;  %v1507_v28 = vrot.slane %v4434_v25, 2  ;;  %v1510_v58 = vrot.slane %v4445_v31, 1  ;;  %v1511_v0 = vrot.slane %v4442_v30, 2 }
  0x90   : > { %4325 = vmatprep.subr.msk.bf16.mxu0 %vm510_vm0, %v4902_v60  ;;  %v1496_v54 = vor.u32 %v1495_v38, %v1494_v24  ;;  %v1514_v24 = vrot.slane %v4488_v56, 1  ;;  %v2375_v56 = vrot.slane %v4480_v52, 3 }
  0x91   : > { %v1512_v38 = vor.u32 %v1511_v0, %v1510_v58  ;;  %v1527_v58 = vrot.slane %v4568_v50, 2  ;;  %v3079_v0 = vld [vmem:[%s6018_s2 + $0x38] sm:$0xff] }
  0x92   : > { %v1497_v41 = vsel %vm1470_vm4, %v1492_v1, %v1496_v54  ;;  %v1501_v2 = vsel %vm1470_vm4, %v1496_v54, %v1500_v39  ;;  %v4347_v1 = vmov 0  }
  0x93   : > { %4337 = vset.pattern.permute.xlu0 %v4347_v1  ;;  %4338 = vset.pattern.permute.xlu1 %v4347_v1  ;;  %v3080_v1 = vld [vmem:[%s6018_s2 + $0x40] sm:$0xff] }
  0x95   : > { %4131 = vmatmul.mubr.msk.bf16.gmra.mxu0 %vm455_vm2, %v1489_v55  ;;  %v3072_v55 = vld [vmem:[%s6018_s2] sm:$0xff] }
  0x96   : > { %4097 = vmatmul.mubr.msk.bf16.gmra.mxu1 %vm455_vm2, %v4775_v29  ;;  %4134 = vmatprep.mubr.msk.bf16.mxu0 %vm455_vm2, %v1493_v12  ;;  %v1508_v29 = vor.u32 %v1507_v28, %v1506_v46  ;;  %v3074_v12 = vld [vmem:[%s6018_s2 + $0x10] sm:$0xff]  ;;  %v3077_v28 = vld [vmem:[%s6018_s2 + $0x28] sm:$0xff] }
  0x97   : > { %4100 = vmatprep.mubr.msk.bf16.mxu1 %vm455_vm2, %v4788_v51  ;;  %v1504_v51 = vor.u32 %v1503_v34, %v1502_v49  ;;  %3110 = vperm.xlu0 %4337, %v3072_v55   ;;  %v3076_v49 = vld [vmem:[%s6018_s2 + $0x20] sm:$0xff] }
  0x98   : > { %3120 = vperm.xlu1 %4338, %v3074_v12   ;;  %v1513_v54 = vsel %vm1470_vm4, %v1508_v29, %v1512_v38  ;;  %v3081_v12 = vld [vmem:[%s6018_s2 + $0x48] sm:$0xff] }
  0x99   : > { %v1505_v57 = vsel %vm1470_vm4, %v1500_v39, %v1504_v51  ;;  %v1519_v39 = vrot.slane %v4509_v4, 2 }
  0x9b   : > { %3115 = vperm.xlu0 %4337, %v3073_v20   ;;  %v3082_v20 = vld [vmem:[%s6018_s2 + $0x50] sm:$0xff] }
  0x9d   : > { %4135 = vmatmul.mubr.msk.bf16.gmra.mxu0 %vm455_vm2, %v1497_v41  ;;  %v3075_v41 = vld [vmem:[%s6018_s2 + $0x18] sm:$0xff] }
  0x9e   : > { %4101 = vmatmul.mubr.msk.bf16.gmra.mxu1 %vm455_vm2, %v4791_v8  ;;  %4138 = vmatprep.mubr.msk.bf16.mxu0 %vm455_vm2, %v1501_v2  ;;  %v1509_v8 = vsel %vm1470_vm4, %v1504_v51, %v1508_v29  ;;  %v1523_v2 = vrot.slane %v4541_v22, 2  ;;  %v3078_v51 = vld [vmem:[%s6018_s2 + $0x30] sm:$0xff] }
  0x9f   : > { %4104 = vmatprep.mubr.msk.bf16.mxu1 %vm455_vm2, %v4804_v48  ;;  %v1515_v48 = vrot.slane %v4469_v45, 2  ;;  %3125 = vperm.xlu1 %4338, %v3075_v41   ;;  %v1534_v41 = vrot.slane %v4642_v10, 1  ;;  %v3107_v10 = vld [vmem:[%s6018_s2 + $0x118] sm:$0xff] }
  0xa0   : > { %3130 = vperm.xlu0 %4337, %v3076_v49   ;;  %v6110_v49 = vld [vmem:[#allocation26_spill] sm:$0xff]  ;;  %v6142_v45 = vld [vmem:[#allocation5_spill] sm:$0xff] }
  0xa1   : > { %v1516_v13 = vor.u32 %v1515_v48, %v1514_v24  ;;  %v6109_v24 = vld [vmem:[#allocation22_spill] sm:$0xff] }
  0xa2   : > { %v1531_v48 = vrot.slane %v6109_v24, 2 }
  0xa3   : > { %v1517_v34 = vsel %vm1470_vm4, %v1512_v38, %v1516_v13  ;;  %3135 = vperm.xlu1 %4338, %v3077_v28  }
  0xa4   : > { %3140 = vperm.xlu0 %4337, %v3078_v51  }
  0xa5   : > { %4139 = vmatmul.mubr.msk.bf16.gmra.mxu0 %vm455_vm2, %v1505_v57 }
  0xa6   : > { %4105 = vmatmul.mubr.msk.bf16.gmra.mxu1 %vm455_vm2, %v4807_v19  ;;  %4142 = vmatprep.mubr.msk.bf16.mxu0 %vm455_vm2, %v1509_v8  ;;  %v1518_v19 = vrot.slane %v4529_v15, 1 }
  0xa7   : > { %4108 = vmatprep.mubr.msk.bf16.mxu1 %vm455_vm2, %v4820_v14  ;;  %v1522_v14 = vrot.slane %v4563_v47, 1  ;;  %3145 = vperm.xlu1 %4338, %v3079_v0   ;;  %v3086_v0 = vld [vmem:[%s6018_s2 + $0x70] sm:$0xff] }
  0xa8   : > { %v1520_v46 = vor.u32 %v1519_v39, %v1518_v19  ;;  %3150 = vperm.xlu0 %4337, %v3080_v1   ;;  %v6058_v19 = vshll.u32 %v4721_v59, 16 }
  0xa9   : > { %v1524_v29 = vor.u32 %v1523_v2, %v1522_v14  ;;  %v3083_v14 = vld [vmem:[%s6018_s2 + $0x58] sm:$0xff] }
  0xaa   : > { %v1521_v57 = vsel %vm1470_vm4, %v1516_v13, %v1520_v46  ;;  %v1544_v51 = vrot.slane %v6058_v19, 2  ;;  %v6126_v19 = vld [vmem:[#allocation4_spill] sm:$0xff] }
  0xab   : > { %v1525_v55 = vsel %vm1470_vm4, %v1520_v46, %v1524_v29  ;;  %3155 = vperm.xlu1 %4338, %v3081_v12  }
  0xac   : > { %3160 = vperm.xlu0 %4337, %v3082_v20   ;;  %v3087_v20 = vld [vmem:[%s6018_s2 + $0x78] sm:$0xff] }
  0xad   : > { %4143 = vmatmul.mubr.msk.bf16.gmra.mxu0 %vm455_vm2, %v1513_v54  ;;  %v6059_v54 = vshrl.u32 %v4721_v59, 16 }
  0xae   : > { %4109 = vmatmul.mubr.msk.bf16.gmra.mxu1 %vm455_vm2, %v4823_v17  ;;  %4146 = vmatprep.mubr.msk.bf16.mxu0 %vm455_vm2, %v1517_v34  ;;  %v1526_v17 = vrot.slane %v4583_v63, 1  ;;  %v1535_v34 = vrot.slane %v6110_v49, 2 }
  0xaf   : > { %4112 = vmatprep.mubr.msk.bf16.mxu1 %vm455_vm2, %v4836_v35  ;;  %v6108_v35 = vld [vmem:[#allocation25_spill] sm:$0xff]  ;;  %v1541_v28 = vrot.slane %v6059_v54, 1  ;;  %3165 = vperm.xlu1 %4338, %v3083_v14   ;;  %v3089_v14 = vld [vmem:[%s6018_s2 + $0x88] sm:$0xff]  ;;  %v1850_v54 = vrot.slane %v6126_v19, 2 }
  0xb0   : > { %v1530_v8 = vrot.slane %v6108_v35, 1  ;;  %v1528_v38 = vor.u32 %v1527_v58, %v1526_v17  ;;  %v3085_v58 = vld [vmem:[%s6018_s2 + $0x68] sm:$0xff] }
  0xb1   : > { %v1545_v1 = vor.u32 %v1544_v51, %v1541_v28  ;;  %v6112_v28 = vld [vmem:[#allocation10_spill] sm:$0xff] }
  0xb2   : > { %v1532_v13 = vor.u32 %v1531_v48, %v1530_v8  ;;  %v1529_v39 = vsel %vm1470_vm4, %v1524_v29, %v1528_v38  ;;  %v1536_v29 = vor.u32 %v1535_v34, %v1534_v41  ;;  %v1830_v8 = vrot.slane %v4447_v32, 2 }
  0xb3   : > { %3175 = vperm.xlu1 %4338, %v3085_v58   ;;  %v1834_v51 = vrot.slane %v6112_v28, 2 }
  0xb4   : > { %v1533_v2 = vsel %vm1470_vm4, %v1528_v38, %v1532_v13  ;;  %v1537_v48 = vsel %vm1470_vm4, %v1532_v13, %v1536_v29  ;;  %v1546_v41 = vsel %vm1470_vm4, %v1536_v29, %v1545_v1 }
  0xb5   : > { %4147 = vmatmul.mubr.msk.bf16.gmra.mxu0 %vm455_vm2, %v1521_v57 }
  0xb6   : > { %4113 = vmatmul.mubr.msk.bf16.gmra.mxu1 %vm455_vm2, %v4839_v23  ;;  %4150 = vmatprep.mubr.msk.bf16.mxu0 %vm455_vm2, %v1525_v55  ;;  %v5012_v23 = vld [vmem:[%s4406_s29 + $0x130] sm:$0xff]  ;;  %v1829_v55 = vrot.slane %v4416_v11, 2 }
  0xb7   : > { %4116 = vmatprep.mubr.msk.bf16.mxu1 %vm455_vm2, %v4851_v9  ;;  %v3084_v9 = vld [vmem:[%s6018_s2 + $0x60] sm:$0xff]  ;;  %v5026_v46 = vpack.c.bf16 %v5012_v23, %v5012_v23  ;;  %3185 = vperm.xlu1 %4338, %v3087_v20  }
  0xb8   : > { %3170 = vperm.xlu0 %4337, %v3084_v9   ;;  %v1831_v34 = vsel %vm1828_vm5, %v1829_v55, %v1830_v8  ;;  %v3090_v9 = vld [vmem:[%s6018_s2 + $0x90] sm:$0xff]  ;;  %v3096_v20 = vld [vmem:[%s6018_s2 + $0xc0] sm:$0xff] }
  0xb9   : > { %v1548_v57 = vshrl.u32 %v5026_v46, 16  ;;  %v1551_v17 = vshll.u32 %v5026_v46, 16  ;;  %v3094_v55 = vld [vmem:[%s6018_s2 + $0xb0] sm:$0xff] }
  0xbb   : > { %v1550_v38 = vrot.slane %v1548_v57, 1  ;;  %v1553_v12 = vrot.slane %v1551_v17, 2  ;;  %3195 = vperm.xlu1 %4338, %v3089_v14   ;;  %v3091_v57 = vld [vmem:[%s6018_s2 + $0x98] sm:$0xff]  ;;  %v3092_v17 = vld [vmem:[%s6018_s2 + $0xa0] sm:$0xff]  ;;  %v6116_v14 = vld [vmem:[#allocation27_spill] sm:$0xff] }
  0xbc   : > { %3180 = vperm.xlu0 %4337, %v3086_v0   ;;  %v2511_v0 = vsel %vm510_vm0, %v4880_v62, 0  ;;  %v6113_v62 = vld [vmem:[#allocation14_spill] sm:$0xff] }
  0xbd   : > { %4151 = vmatmul.mubr.msk.bf16.gmra.mxu0 %vm455_vm2, %v1529_v39  ;;  %v6111_v39 = vrot.slane %v4721_v59, 1  ;;  %v1554_v13 = vor.u32 %v1553_v12, %v1550_v38  ;;  %v3095_v12 = vld [vmem:[%s6018_s2 + $0xb8] sm:$0xff] }
  0xbe   : > { %4117 = vmatmul.mubr.msk.bf16.gmra.mxu1 %vm455_vm2, %v4855_v18  ;;  %4154 = vmatprep.mubr.msk.bf16.mxu0 %vm455_vm2, %v1533_v2  ;;  %v1244_v18 = vrot.slane %v5026_v46, 1  ;;  %v1832_v2 = vrot.slane %v4459_v40, 2 }
  0xbf   : > { %4120 = vmatprep.mubr.msk.bf16.mxu1 %vm455_vm2, %v4753_v44  ;;  %v3088_v44 = vld [vmem:[%s6018_s2 + $0x80] sm:$0xff]  ;;  %v1555_v29 = vsel %vm1470_vm4, %v1545_v1, %v1554_v13  ;;  %3205 = vperm.xlu1 %4338, %v3091_v57   ;;  %v3093_v1 = vld [vmem:[%s6018_s2 + $0xa8] sm:$0xff] }
  0xc0   : > { %v1245_v11 = vsel %vm928_vm3, %v6111_v39, %v1244_v18  ;;  %3190 = vperm.xlu0 %4337, %v3088_v44   ;;  %v1833_v58 = vsel %vm1828_vm5, %v1830_v8, %v1832_v2  ;;  %v1835_v18 = vsel %vm1828_vm5, %v1832_v2, %v1834_v51  ;;  %v1836_v8 = vrot.slane %v6113_v62, 2  ;;  %v3099_v2 = vld [vmem:[%s6018_s2 + $0xd8] sm:$0xff] }
  0xc1   : > { %v2821_v39 = vsel %vm510_vm0, %v4902_v60, 0  ;;  %v6115_v60 = vld [vmem:[#allocation23_spill] sm:$0xff] }
  0xc2   : > { %v1837_v44 = vsel %vm1828_vm5, %v1834_v51, %v1836_v8  ;;  %v1840_v13 = vrot.slane %v6115_v60, 2  ;;  %v3100_v51 = vld [vmem:[%s6018_s2 + $0xe0] sm:$0xff] }
  0xc3   : > { %3215 = vperm.xlu1 %4338, %v3093_v1  }
  0xc4   : > { %3200 = vperm.xlu0 %4337, %v3090_v9   ;;  %v1842_v9 = vrot.slane %v6116_v14, 2 }
  0xc5   : > { %4155 = vmatmul.mubr.msk.bf16.gmra.mxu0 %vm455_vm2, %v1537_v48  ;;  %v6114_v48 = vld [vmem:[#allocation19_spill] sm:$0xff] }
  0xc6   : > { %4121 = vmatmul.mubr.msk.bf16.gmra.mxu1 %vm455_vm2, %v1245_v11  ;;  %4158 = vmatprep.mubr.msk.bf16.mxu0 %vm455_vm2, %v1546_v41  ;;  %v1838_v38 = vrot.slane %v6114_v48, 2  ;;  %v3097_v41 = vld [vmem:[%s6018_s2 + $0xc8] sm:$0xff]  ;;  %v1843_v57 = vsel %vm1828_vm5, %v1840_v13, %v1842_v9 }
  0xc7   : > { %4164 = vmatprep.mubr.msk.bf16.mxu1 %vm455_vm2, %v1831_v34  ;;  %3225 = vperm.xlu1 %4338, %v3095_v12   ;;  %v3098_v34 = vld [vmem:[%s6018_s2 + $0xd0] sm:$0xff]  ;;  %v6120_v12 = vld [vmem:[#allocation2_spill] sm:$0xff] }
  0xc8   : > { %3210 = vperm.xlu0 %4337, %v3092_v17   ;;  %v1839_v11 = vsel %vm1828_vm5, %v1836_v8, %v1838_v38 }
  0xcb   : > { %3235 = vperm.xlu1 %4338, %v3097_v41   ;;  %v3104_v41 = vld [vmem:[%s6018_s2 + $0x100] sm:$0xff] }
  0xcc   : > { %3220 = vperm.xlu0 %4337, %v3094_v55   ;;  %v6118_v55 = vld [vmem:[#allocation29_spill] sm:$0xff] }
  0xcd   : > { %4159 = vmatmul.mubr.msk.bf16.gmra.mxu0 %vm455_vm2, %v1555_v29  ;;  %v1841_v29 = vsel %vm1828_vm5, %v1838_v38, %v1840_v13  ;;  %v1844_v8 = vrot.slane %v6118_v55, 2 }
  0xce   : > { %4165 = vmatmul.mubr.msk.bf16.vlgmr.msra.gmra.mxu1 %vm455_vm2, %v1833_v58  ;;  %4202 = vmatprep.mubr.msk.bf16.mxu0 %vm455_vm2, %v1833_v58 }
  0xcf   : > { %4239 = vmatpush3.bf16.msra.mxu1 %v2511_v0  ;;  %4168 = vmatprep.mubr.msk.bf16.mxu1 %vm455_vm2, %v1835_v18  ;;  %v3101_v0 = vld [vmem:[%s6018_s2 + $0xe8] sm:$0xff]  ;;  %v1845_v13 = vsel %vm1828_vm5, %v1842_v9, %v1844_v8 }
  0xd0   : > { %3230 = vperm.xlu0 %4337, %v3096_v20   ;;  %3245 = vperm.xlu1 %4338, %v3099_v2   ;;  %v1846_v20 = vrot.slane %v6120_v12, 2  ;;  %v3105_v9 = vld [vmem:[%s6018_s2 + $0x108] sm:$0xff] }
  0xd4   : > { %3240 = vperm.xlu0 %4337, %v3098_v34   ;;  %3255 = vperm.xlu1 %4338, %v3101_v0  }
  0xd5   : > { %4203 = vmatmul.mubr.msk.bf16.vlgmr.msra.gmra.mxu0 %vm455_vm2, %v1835_v18  ;;  %v3102_v18 = vld [vmem:[%s6018_s2 + $0xf0] sm:$0xff] }
  0xd6   : > { %4169 = vmatmul.mubr.msk.bf16.gmra.mxu1 %vm455_vm2, %v1837_v44  ;;  %4277 = vmatpush3.bf16.msra.mxu0 %v2821_v39 }
  0xd7   : > { %4172 = vmatprep.mubr.msk.bf16.mxu1 %vm455_vm2, %v1839_v11  ;;  %4206 = vmatprep.mubr.msk.bf16.mxu0 %vm455_vm2, %v1837_v44 }
  0xd8   : > { %3250 = vperm.xlu0 %4337, %v3100_v51   ;;  %v1847_v51 = vsel %vm1828_vm5, %v1844_v8, %v1846_v20 }
  0xdc   : > { %3260 = vperm.xlu0 %4337, %v3102_v18   ;;  %v3106_v18 = vld [vmem:[%s6018_s2 + $0x110] sm:$0xff] }
  0xdd   : > { %v5126_v17 = vpop.f32.mrf.mxu0  ;;  %4207 = vmatmul.mubr.msk.bf16.gmra.mxu0 %vm455_vm2, %v1839_v11  ;;  %v3103_v11 = vld [vmem:[%s6018_s2 + $0xf8] sm:$0xff] }
  0xde   : > { %v5129_v58 = vpop.f32.mrf.mxu1  ;;  %4173 = vmatmul.mubr.msk.bf16.gmra.mxu1 %vm455_vm2, %v1841_v29  ;;  %4210 = vmatprep.mubr.msk.bf16.mxu0 %vm455_vm2, %v1841_v29 }
  0xdf   : > { %6117 = vst [vmem:[#allocation10_spill] sm:$0xff] %v5129_v58  ;;  %v5139_v1 = vpop.f32.mrf.mxu0  ;;  %4176 = vmatprep.mubr.msk.bf16.mxu1 %vm455_vm2, %v1843_v57  ;;  %3265 = vperm.xlu1 %4338, %v3103_v11   ;;  %v6124_v11 = vld [vmem:[#allocation3_spill] sm:$0xff] }
  0xe0   : > { %v5143_v38 = vpop.f32.mrf.mxu1  ;;  %3270 = vperm.xlu0 %4337, %v3104_v41  }
  0xe1   : > { %6119 = vst [vmem:[#allocation14_spill] sm:$0xff] %v5143_v38  ;;  %v5146_v44 = vpop.f32.mrf.mxu0 }
  0xe2   : > { %v5148_v39 = vpop.f32.mrf.mxu1 }
  0xe3   : > { %6121 = vst [vmem:[#allocation19_spill] sm:$0xff] %v5148_v39  ;;  %v5156_v34 = vpop.f32.mrf.mxu0  ;;  %3275 = vperm.xlu1 %4338, %v3105_v9  }
  0xe4   : > { %v5159_v2 = vpop.f32.mrf.mxu1  ;;  %3280 = vperm.xlu0 %4337, %v3106_v18  }
  0xe5   : > { %6122 = vst [vmem:[#allocation23_spill] sm:$0xff] %v5159_v2  ;;  %v5162_v29 = vpop.f32.mrf.mxu0  ;;  %4211 = vmatmul.mubr.msk.bf16.gmra.mxu0 %vm455_vm2, %v1843_v57  ;;  %v1848_v57 = vrot.slane %v6124_v11, 2  ;;  %v282_v11 = vld [vmem:[%s4406_s29 + $0x138] sm:$0xff] }
  0xe6   : > { %v5165_v0 = vpop.f32.mrf.mxu1  ;;  %4177 = vmatmul.mubr.msk.bf16.gmra.mxu1 %vm455_vm2, %v1845_v13  ;;  %4214 = vmatprep.mubr.msk.bf16.mxu0 %vm455_vm2, %v1845_v13  ;;  %v5264_v4 = vpack.c.bf16 %v282_v11, %v5012_v23 }
  0xe7   : > { %6123 = vst [vmem:[#allocation27_spill] sm:$0xff] %v5165_v0  ;;  %v5175_v8 = vpop.f32.mrf.mxu0  ;;  %4180 = vmatprep.mubr.msk.bf16.mxu1 %vm455_vm2, %v1847_v51  ;;  %v1849_v35 = vsel %vm1828_vm5, %v1846_v20, %v1848_v57  ;;  %3285 = vperm.xlu1 %4338, %v3107_v10   ;;  %v6130_v20 = vld [vmem:[#allocation8_spill] sm:$0xff] }
  0xe8   : > { %v5179_v41 = vpop.f32.mrf.mxu1  ;;  %6140 = vst [vmem:[#allocation42_spill] sm:$0xff] %v5264_v4  ;;  %v2142_v52 = vrot.slane %v5264_v4, 2 }
  0xe9   : > { %6125 = vst [vmem:[#allocation31_spill] sm:$0xff] %v5179_v41  ;;  %v5182_v13 = vpop.f32.mrf.mxu0  ;;  %v1851_v41 = vsel %vm1828_vm5, %v1848_v57, %v1850_v54  ;;  %v6132_v57 = vld [vmem:[#allocation12_spill] sm:$0xff] }
  0xea   : > { %v5184_v49 = vpop.f32.mrf.mxu1  ;;  %v1854_v10 = vrot.slane %v6132_v57, 2 }
  0xeb   : > { %6127 = vst [vmem:[#allocation32_spill] sm:$0xff] %v5184_v49  ;;  %v5189_v24 = vpop.f32.mrf.mxu0  ;;  %v1852_v49 = vrot.slane %v6130_v20, 2 }
  0xec   : > { %v5192_v50 = vpop.f32.mrf.mxu1 }
  0xed   : > { %6128 = vst [vmem:[#allocation33_spill] sm:$0xff] %v5192_v50  ;;  %v5195_v19 = vpop.f32.mrf.mxu0  ;;  %4215 = vmatmul.mubr.msk.bf16.gmra.mxu0 %vm455_vm2, %v1847_v51 }
  0xee   : > { %v5198_v9 = vpop.f32.mrf.mxu1  ;;  %4181 = vmatmul.mubr.msk.bf16.gmra.mxu1 %vm455_vm2, %v1849_v35  ;;  %4218 = vmatprep.mubr.msk.bf16.mxu0 %vm455_vm2, %v1849_v35  ;;  %v1855_v35 = vsel %vm1828_vm5, %v1852_v49, %v1854_v10 }
  0xef   : > { %6129 = vst [vmem:[#allocation34_spill] sm:$0xff] %v5198_v9  ;;  %v5202_v18 = vpop.f32.mrf.mxu0  ;;  %4184 = vmatprep.mubr.msk.bf16.mxu1 %vm455_vm2, %v1851_v41  ;;  %v1853_v9 = vsel %vm1828_vm5, %v1850_v54, %v1852_v49  ;;  %v1856_v54 = vrot.slane %v4543_v27, 2  ;;  %v1858_v49 = vrot.slane %v4580_v61, 2 }
  0xf0   : > { %v5206_v50 = vpop.f32.mrf.mxu1 }
  0xf1   : > { %6131 = vst [vmem:[#allocation35_spill] sm:$0xff] %v5206_v50  ;;  %v5209_v63 = vpop.f32.mrf.mxu0  ;;  %v1859_v47 = vsel %vm1828_vm5, %v1856_v54, %v1858_v49 }
  0xf2   : > { %v5211_v0 = vpop.f32.mrf.mxu1 }
  0xf3   : > { %6133 = vst [vmem:[#allocation36_spill] sm:$0xff] %v5211_v0  ;;  %v5213_v51 = vpop.f32.mrf.mxu0 }
  0xf4   : > { %v5216_v2 = vpop.f32.mrf.mxu1 }
  0xf5   : > { %6134 = vst [vmem:[#allocation37_spill] sm:$0xff] %v5216_v2  ;;  %v5219_v22 = vpop.f32.mrf.mxu0  ;;  %4219 = vmatmul.mubr.msk.bf16.gmra.mxu0 %vm455_vm2, %v1851_v41 }
  0xf6   : > { %v5222_v20 = vpop.f32.mrf.mxu1  ;;  %4185 = vmatmul.mubr.msk.bf16.gmra.mxu1 %vm455_vm2, %v1853_v9  ;;  %4222 = vmatprep.mubr.msk.bf16.mxu0 %vm455_vm2, %v1853_v9 }
  0xf7   : > { %6135 = vst [vmem:[#allocation38_spill] sm:$0xff] %v5222_v20  ;;  %v5226_v50 = vpop.f32.mrf.mxu0  ;;  %4188 = vmatprep.mubr.msk.bf16.mxu1 %vm455_vm2, %v1855_v35  ;;  %v1857_v20 = vsel %vm1828_vm5, %v1854_v10, %v1856_v54  ;;  %v6139_v10 = vld [vmem:[#allocation24_spill] sm:$0xff] }
  0xf8   : > { %v5230_v0 = vpop.f32.mrf.mxu1  ;;  %v1860_v27 = vrot.slane %v6139_v10, 2 }
  0xf9   : > { %6136 = vst [vmem:[#allocation39_spill] sm:$0xff] %v5230_v0  ;;  %v5233_v2 = vpop.f32.mrf.mxu0 }
  0xfa   : > { %v5235_v57 = vpop.f32.mrf.mxu1 }
  0xfb   : > { %6137 = vst [vmem:[#allocation40_spill] sm:$0xff] %v5235_v57  ;;  %v5237_v41 = vpop.f32.mrf.mxu0 }
  0xfc   : > { %v5240_v9 = vpop.f32.mrf.mxu1 }
  0xfd   : > { %6138 = vst [vmem:[#allocation41_spill] sm:$0xff] %v5240_v9  ;;  %v5243_v39 = vpop.f32.mrf.mxu0  ;;  %4223 = vmatmul.mubr.msk.bf16.gmra.mxu0 %vm455_vm2, %v1855_v35  ;;  %v1862_v9 = vrot.slane %v4721_v59, 2  ;;  %v6141_v59 = vld [vmem:[#allocation7_spill] sm:$0xff] }
  0xfe   : > { %v4014_v0 = vpop.f32.mrf.mxu1  ;;  %4189 = vmatmul.mubr.msk.bf16.gmra.mxu1 %vm455_vm2, %v1857_v20  ;;  %4226 = vmatprep.mubr.msk.bf16.mxu0 %vm455_vm2, %v1857_v20  ;;  %v2371_v15 = vrot.slane %v6141_v59, 2 }
  0xff   : > { %v773_v57 = vadd.f32 %v4014_v0, %v5126_v17  ;;  %v5249_v61 = vpop.f32.mrf.mxu0  ;;  %4192 = vmatprep.mubr.msk.bf16.mxu1 %vm455_vm2, %v1859_v47  ;;  %v1861_v17 = vsel %vm1828_vm5, %v1858_v49, %v1860_v27  ;;  %v1863_v0 = vsel %vm1828_vm5, %v1860_v27, %v1862_v9  ;;  %v2143_v55 = vsel %vm1828_vm5, %v1862_v9, %v2142_v52 }
 0x100   : > { %v764_v54 = vpop.f32.mrf.mxu1 }
 0x101   : > { %v765_v12 = vadd.f32 %v764_v54, %v5139_v1  ;;  %v5256_v35 = vpop.f32.mrf.mxu0  ;;  %v2372_v1 = vrot.slane %v6142_v45, 3  ;;  %v2374_v54 = vrot.slane %v4512_v5, 2  ;;  %v1864_v45 = vrot.slane %v5026_v46, 2  ;;  %v283_v5 = vld [vmem:[%s4406_s29 + $0x140] sm:$0x3f]  ;;  %s4327_s29 = smul.u32 288, %s6195_s19 }
 0x102   : > { %v4015_v38 = vpop.f32.mrf.mxu1 }
 0x103   : > { %v776_v58 = vadd.f32 %v4015_v38, %v5146_v44  ;;  %v5259_v20 = vpop.f32.mrf.mxu0  ;;  %v1865_v4 = vsel %vm1828_vm5, %v1862_v9, %v1864_v45  ;;  %s5762_s27 = scalar_lea.vmem %s6019_s3, %s4327_s29 }
 0x104   : > { %v767_v10 = vpop.f32.mrf.mxu1 }
 0x105   : > { %v768_v38 = vadd.f32 %v767_v10, %v5156_v34  ;;  %v4052_v44 = vpop.f32.mrf.mxu0  ;;  %4227 = vmatmul.mubr.msk.bf16.gmra.mxu0 %vm455_vm2, %v1859_v47  ;;  %v2373_v47 = vor.u32 %v2372_v1, %v2371_v15  ;;  %v2382_v15 = vrot.slane %v4573_v53, 2  ;;  %v2730_v53 = vrot.slane %v4459_v40, 3 }
 0x106   : > { %v4018_v49 = vpop.f32.mrf.mxu1  ;;  %v5272_v27 = vadd.f32 %v4052_v44, %v773_v57  ;;  %4193 = vmatmul.mubr.msk.bf16.gmra.mxu1 %vm455_vm2, %v1861_v17  ;;  %4230 = vmatprep.mubr.msk.bf16.mxu0 %vm455_vm2, %v1861_v17  ;;  %v2376_v57 = vor.u32 %v2375_v56, %v2374_v54 }
 0x107   : > { %v789_v59 = vadd.f32 %v4018_v49, %v5162_v29  ;;  %v1057_v23 = vpop.f32.mrf.mxu0  ;;  %4196 = vmatprep.mubr.msk.bf16.mxu1 %vm455_vm2, %v1863_v0  ;;  %v5286_v29 = vpack.c.bf16 %v283_v5, %v283_v5 }
 0x108   : > { %6143 = vst [vmem:[#allocation7_spill] sm:$0xff] %v5272_v27  ;;  %v780_v34 = vpop.f32.mrf.mxu1  ;;  %v5281_v11 = vadd.f32 %v1057_v23, %v765_v12  ;;  %v2377_v56 = vsel %vm2370_vm6, %v2373_v47, %v2376_v57  ;;  %v2386_v47 = vrot.slane %v4602_v21, 2  ;;  %v2391_v21 = vrot.slane %v4618_v43, 3 }
 0x109   : > { %v781_v10 = vadd.f32 %v780_v34, %v5175_v8  ;;  %v4053_v44 = vpop.f32.mrf.mxu0  ;;  %v2383_v8 = vrot.slane %v4554_v37, 3  ;;  %v2144_v9 = vrot.slane %v5286_v29, 2  ;;  %v2729_v37 = vrot.slane %v4447_v32, 3 }
 0x10a   : > { %v4019_v17 = vpop.f32.mrf.mxu1  ;;  %v5284_v27 = vadd.f32 %v4053_v44, %v776_v58  ;;  %v2387_v44 = vrot.slane %v4590_v6, 3  ;;  %v2734_v43 = vrot.slane %v6113_v62, 3  ;;  %v2394_v62 = vrot.slane %v4651_v16, 2 }
 0x10b   : > { %v792_v49 = vadd.f32 %v4019_v17, %v5182_v13  ;;  %v1060_v46 = vpop.f32.mrf.mxu0  ;;  %v2731_v17 = vsel %vm2728_vm7, %v2729_v37, %v2730_v53  ;;  %v2736_v16 = vrot.slane %v6114_v48, 3 }
 0x10c   : > { %v783_v12 = vpop.f32.mrf.mxu1  ;;  %v5291_v23 = vadd.f32 %v1060_v46, %v768_v38 }
 0x10d   : > { %v784_v58 = vadd.f32 %v783_v12, %v5189_v24  ;;  %v4056_v1 = vpop.f32.mrf.mxu0  ;;  %4231 = vmatmul.mubr.msk.bf16.gmra.mxu0 %vm455_vm2, %v1863_v0  ;;  %v2737_v48 = vsel %vm2728_vm7, %v2734_v43, %v2736_v16 }
 0x10e   : > { %v4022_v13 = vpop.f32.mrf.mxu1  ;;  %v5298_v54 = vadd.f32 %v4056_v1, %v789_v59  ;;  %4197 = vmatmul.mubr.msk.bf16.gmra.mxu1 %vm455_vm2, %v1865_v4  ;;  %4234 = vmatprep.mubr.msk.bf16.mxu0 %vm455_vm2, %v2143_v55  ;;  %v2384_v59 = vor.u32 %v2383_v8, %v2382_v15  ;;  %v2732_v15 = vrot.slane %v6112_v28, 3 }
 0x10f   : > { %v805_v38 = vadd.f32 %v4022_v13, %v5195_v19  ;;  %v1073_v45 = vpop.f32.mrf.mxu0  ;;  %4240 = vmatprep.mubr.msk.bf16.mxu1 %vm455_vm2, %v2377_v56  ;;  %v2145_v19 = vsel %vm1828_vm5, %v2142_v52, %v2144_v9  ;;  %v2390_v52 = vrot.slane %v4635_v33, 2 }
 0x110   : > { %v796_v24 = vpop.f32.mrf.mxu1  ;;  %v5307_v0 = vadd.f32 %v1073_v45, %v781_v10  ;;  %v2381_v10 = vsel %vm2370_vm6, %v2376_v57, %v4920_v36  ;;  %v2388_v57 = vor.u32 %v2387_v44, %v2386_v47  ;;  %v2733_v28 = vsel %vm2728_vm7, %v2730_v53, %v2732_v15 }
 0x111   : > { %v797_v4 = vadd.f32 %v796_v24, %v5202_v18  ;;  %v4057_v5 = vpop.f32.mrf.mxu0  ;;  %v2735_v24 = vsel %vm2728_vm7, %v2732_v15, %v2734_v43 }
 0x112   : > { %v4023_v55 = vpop.f32.mrf.mxu1  ;;  %v5310_v34 = vadd.f32 %v4057_v5, %v792_v49  ;;  %v2385_v49 = vsel %vm2370_vm6, %v4920_v36, %v2384_v59  ;;  %v2389_v45 = vsel %vm2370_vm6, %v2384_v59, %v2388_v57  ;;  %v2399_v59 = vrot.slane %v4657_v42, 3 }
 0x113   : > { %v808_v32 = vadd.f32 %v4023_v55, %v5209_v63  ;;  %v1076_v40 = vpop.f32.mrf.mxu0 }
 0x114   : > { %v799_v46 = vpop.f32.mrf.mxu1  ;;  %v5319_v18 = vadd.f32 %v1076_v40, %v784_v58  ;;  %v2392_v58 = vor.u32 %v2391_v21, %v2390_v52  ;;  %v2403_v21 = vrot.slane %v4434_v25, 3 }
 0x115   : > { %v800_v6 = vadd.f32 %v799_v46, %v5213_v51  ;;  %v4060_v12 = vpop.f32.mrf.mxu0  ;;  %4235 = vmatmul.mubr.msk.bf16.gmra.mxu0 %vm455_vm2, %v2145_v19  ;;  %v2398_v19 = vrot.slane %v4665_v7, 2  ;;  %v2738_v7 = vrot.slane %v6115_v60, 3 }
 0x116   : > { %v4026_v63 = vpop.f32.mrf.mxu1  ;;  %v5327_v56 = vadd.f32 %v4060_v12, %v805_v38  ;;  %4241 = vmatmul.mubr.msk.bf16.vlgmr.msra.gmra.mxu1 %vm455_vm2, %v2381_v10  ;;  %4278 = vmatprep.mubr.msk.bf16.mxu0 %vm455_vm2, %v2731_v17 }
 0x117   : > { %v821_v36 = vadd.f32 %v4026_v63, %v5219_v22  ;;  %v1089_v33 = vpop.f32.mrf.mxu0  ;;  %4244 = vmatprep.mubr.msk.bf16.mxu1 %vm455_vm2, %v2385_v49  ;;  %v2400_v10 = vor.u32 %v2399_v59, %v2398_v19  ;;  %v2739_v63 = vsel %vm2728_vm7, %v2736_v16, %v2738_v7  ;;  %v6147_v59 = vld [vmem:[#allocation13_spill] sm:$0xff]  ;;  %v6149_v16 = vld [vmem:[#allocation10_spill] sm:$0xff] }
 0x118   : > { %v812_v51 = vpop.f32.mrf.mxu1  ;;  %v5335_v8 = vadd.f32 %v1089_v33, %v797_v4  ;;  %v2395_v4 = vrot.slane %v4639_v3, 3  ;;  %v2407_v33 = vrot.slane %v4442_v30, 3 }
 0x119   : > { %v813_v1 = vadd.f32 %v812_v51, %v5226_v50  ;;  %v4061_v13 = vpop.f32.mrf.mxu0  ;;  %v2393_v50 = vsel %vm2370_vm6, %v2388_v57, %v2392_v58 }
 0x11a   : > { %v4027_v9 = vpop.f32.mrf.mxu1  ;;  %v5338_v38 = vadd.f32 %v4061_v13, %v808_v32  ;;  %v2396_v42 = vor.u32 %v2395_v4, %v2394_v62  ;;  %v6145_v62 = vld [vmem:[#allocation9_spill] sm:$0xff] }
 0x11b   : > { %v824_v22 = vadd.f32 %v4027_v9, %v5233_v2  ;;  %v1092_v37 = vpop.f32.mrf.mxu0  ;;  %v2410_v4 = vrot.slane %v6145_v62, 2 }
 0x11c   : > { %v815_v5 = vpop.f32.mrf.mxu1  ;;  %v5346_v55 = vadd.f32 %v1092_v37, %v800_v6  ;;  %v2397_v60 = vsel %vm2370_vm6, %v2392_v58, %v2396_v42  ;;  %v2740_v58 = vrot.slane %v6116_v14, 3 }
 0x11d   : > { %v816_v53 = vadd.f32 %v815_v5, %v5237_v41  ;;  %v4064_v47 = vpop.f32.mrf.mxu0  ;;  %4279 = vmatmul.mubr.msk.bf16.vlgmr.msra.gmra.mxu0 %vm455_vm2, %v2733_v28 }
 0x11e   : > { %v4030_v2 = vpop.f32.mrf.mxu1  ;;  %v5353_v44 = vadd.f32 %v4064_v47, %v821_v36  ;;  %4245 = vmatmul.mubr.msk.bf16.gmra.mxu1 %vm455_vm2, %v2389_v45  ;;  %4282 = vmatprep.mubr.msk.bf16.mxu0 %vm455_vm2, %v2735_v24  ;;  %v2406_v36 = vrot.slane %v4445_v31, 2  ;;  %v6144_v31 = vld [vmem:[#allocation29_spill] sm:$0xff]  ;;  %v2741_v24 = vsel %vm2728_vm7, %v2738_v7, %v2740_v58  ;;  %v6148_v47 = vld [vmem:[#allocation11_spill] sm:$0xff]  ;;  %v6150_v7 = vld [vmem:[#allocation14_spill] sm:$0xff] }
 0x11f   : > { %v837_v3 = vadd.f32 %v4030_v2, %v5243_v39  ;;  %v1105_v32 = vpop.f32.mrf.mxu0  ;;  %4248 = vmatprep.mubr.msk.bf16.mxu1 %vm455_vm2, %v2393_v50  ;;  %v2402_v39 = vrot.slane %v4437_v26, 2  ;;  %v2742_v30 = vrot.slane %v6144_v31, 3  ;;  %v6146_v50 = vld [vmem:[#allocation6_spill] sm:$0xff]  ;;  %v2415_v2 = vrot.slane %v6148_v47, 3 }
 0x120   : > { %v828_v41 = vpop.f32.mrf.mxu1  ;;  %v5361_v40 = vadd.f32 %v1105_v32, %v813_v1  ;;  %v2408_v9 = vor.u32 %v2407_v33, %v2406_v36  ;;  %v2411_v19 = vrot.slane %v6146_v50, 3  ;;  %v6159_v47 = vld [vmem:[#allocation18_spill] sm:$0xff] }
 0x121   : > { %v829_v17 = vadd.f32 %v828_v41, %v5249_v61  ;;  %v4065_v46 = vpop.f32.mrf.mxu0  ;;  %v2401_v61 = vsel %vm2370_vm6, %v2396_v42, %v2400_v10  ;;  %v2404_v51 = vor.u32 %v2403_v21, %v2402_v39  ;;  %v2743_v5 = vsel %vm2728_vm7, %v2740_v58, %v2742_v30 }
 0x122   : > { %v4031_v49 = vpop.f32.mrf.mxu1  ;;  %v5364_v52 = vadd.f32 %v4065_v46, %v824_v22 }
 0x123   : > { %v840_v6 = vadd.f32 %v4031_v49, %v5256_v35  ;;  %v1108_v12 = vpop.f32.mrf.mxu0  ;;  %v2405_v37 = vsel %vm2370_vm6, %v2400_v10, %v2404_v51  ;;  %v2409_v41 = vsel %vm2370_vm6, %v2404_v51, %v2408_v9  ;;  %v6155_v51 = vld [vmem:[#allocation15_spill] sm:$0xff] }
 0x124   : > { %v831_v57 = vpop.f32.mrf.mxu1  ;;  %v5372_v15 = vadd.f32 %v1108_v12, %v816_v53  ;;  %v2414_v53 = vrot.slane %v6147_v59, 2  ;;  %v2419_v58 = vrot.slane %v6155_v51, 3  ;;  %v6158_v59 = vld [vmem:[#allocation21_spill] sm:$0xff] }
 0x125   : > { %v832_v26 = vadd.f32 %v831_v57, %v5259_v20  ;;  %v4068_v43 = vpop.f32.mrf.mxu0  ;;  %4283 = vmatmul.mubr.msk.bf16.gmra.mxu0 %vm455_vm2, %v2737_v48  ;;  %v6151_v48 = vld [vmem:[#allocation2_spill] sm:$0xff]  ;;  %v6153_v57 = vld [vmem:[#allocation19_spill] sm:$0xff] }
 0x126   : > { %v4034_v25 = vpop.f32.mrf.mxu1  ;;  %v5379_v35 = vadd.f32 %v4068_v43, %v837_v3  ;;  %4249 = vmatmul.mubr.msk.bf16.gmra.mxu1 %vm455_vm2, %v2397_v60  ;;  %4286 = vmatprep.mubr.msk.bf16.mxu0 %vm455_vm2, %v2739_v63  ;;  %v2744_v39 = vrot.slane %v6151_v48, 3  ;;  %v2416_v12 = vor.u32 %v2415_v2, %v2414_v53  ;;  %v6152_v60 = vld [vmem:[#allocation3_spill] sm:$0xff]  ;;  %v6154_v43 = vld [vmem:[#allocation17_spill] sm:$0xff]  ;;  %v2422_v53 = vrot.slane %v6158_v59, 2  ;;  %v6169_v59 = vld [vmem:[#allocation34_spill] sm:$0xff] }
 0x127   : > { %v1121_v1 = vpop.f32.mrf.mxu0  ;;  %4252 = vmatprep.mubr.msk.bf16.mxu1 %vm455_vm2, %v2401_v61  ;;  %v853_v3 = vadd.f32 %v4034_v25, %v6149_v16  ;;  %v2746_v63 = vrot.slane %v6152_v60, 3  ;;  %v2418_v25 = vrot.slane %v6154_v43, 2  ;;  %v2423_v2 = vrot.slane %v6159_v47, 3 }
 0x128   : > { %v844_v13 = vpop.f32.mrf.mxu1  ;;  %v5386_v20 = vadd.f32 %v1121_v1, %v829_v17  ;;  %v6156_v1 = vld [vmem:[#allocation23_spill] sm:$0xff] }
 0x129   : > { %v4069_v45 = vpop.f32.mrf.mxu0  ;;  %v845_v17 = vadd.f32 %v844_v13, %v6150_v7 }
 0x12a   : > { %v4035_v28 = vpop.f32.mrf.mxu1  ;;  %v5388_v22 = vadd.f32 %v4069_v45, %v840_v6  ;;  %v2412_v6 = vor.u32 %v2411_v19, %v2410_v4  ;;  %v2747_v4 = vsel %vm2728_vm7, %v2744_v39, %v2746_v63 }
 0x12b   : > { %v1124_v14 = vpop.f32.mrf.mxu0  ;;  %v856_v61 = vadd.f32 %v4035_v28, %v6153_v57  ;;  %v2424_v57 = vor.u32 %v2423_v2, %v2422_v53 }
 0x12c   : > { %v847_v32 = vpop.f32.mrf.mxu1  ;;  %v5398_v42 = vadd.f32 %v1124_v14, %v832_v26  ;;  %v2413_v62 = vsel %vm2370_vm6, %v2408_v9, %v2412_v6  ;;  %v2417_v28 = vsel %vm2370_vm6, %v2412_v6, %v2416_v12  ;;  %v6157_v14 = vld [vmem:[#allocation27_spill] sm:$0xff] }
 0x12d   : > { %v4072_v10 = vpop.f32.mrf.mxu0  ;;  %4287 = vmatmul.mubr.msk.bf16.gmra.mxu0 %vm455_vm2, %v2741_v24  ;;  %v848_v31 = vadd.f32 %v847_v32, %v6156_v1  ;;  %v6165_v1 = vld [vmem:[#allocation25_spill] sm:$0xff] }
 0x12e   : > { %v4038_v46 = vpop.f32.mrf.mxu1  ;;  %v5403_v49 = vadd.f32 %v4072_v10, %v853_v3  ;;  %4253 = vmatmul.mubr.msk.bf16.gmra.mxu1 %vm455_vm2, %v2405_v37  ;;  %4290 = vmatprep.mubr.msk.bf16.mxu0 %vm455_vm2, %v2743_v5  ;;  %v2745_v37 = vsel %vm2728_vm7, %v2742_v30, %v2744_v39  ;;  %v2420_v30 = vor.u32 %v2419_v58, %v2418_v25  ;;  %v6160_v3 = vld [vmem:[#allocation31_spill] sm:$0xff]  ;;  %v6161_v10 = vld [vmem:[#allocation4_spill] sm:$0xff] }
 0x12f   : > { %v1137_v21 = vpop.f32.mrf.mxu0  ;;  %4256 = vmatprep.mubr.msk.bf16.mxu1 %vm455_vm2, %v2409_v41  ;;  %v869_v5 = vadd.f32 %v4038_v46, %v6157_v14  ;;  %v2748_v7 = vrot.slane %v6161_v10, 3  ;;  %v6162_v46 = vld [vmem:[#allocation8_spill] sm:$0xff]  ;;  %v6168_v14 = vld [vmem:[#allocation26_spill] sm:$0xff] }
 0x130   : > { %v860_v36 = vpop.f32.mrf.mxu1  ;;  %v5411_v33 = vadd.f32 %v1137_v21, %v845_v17  ;;  %v2750_v48 = vrot.slane %v6162_v46, 3  ;;  %v6163_v39 = vld [vmem:[#allocation32_spill] sm:$0xff]  ;;  %v2425_v47 = vsel %vm2370_vm6, %v2420_v30, %v2424_v57 }
 0x131   : > { %v4073_v26 = vpop.f32.mrf.mxu0  ;;  %v861_v32 = vadd.f32 %v860_v36, %v6160_v3  ;;  %v2421_v36 = vsel %vm2370_vm6, %v2416_v12, %v2420_v30  ;;  %v2749_v58 = vsel %vm2728_vm7, %v2746_v63, %v2748_v7  ;;  %v6170_v63 = vld [vmem:[#allocation12_spill] sm:$0xff]  ;;  %v6171_v3 = vld [vmem:[#allocation35_spill] sm:$0xff] }
 0x132   : > { %v4039_v13 = vpop.f32.mrf.mxu1  ;;  %v5416_v45 = vadd.f32 %v4073_v26, %v856_v61  ;;  %v6164_v26 = vld [vmem:[#allocation33_spill] sm:$0xff]  ;;  %v6172_v30 = vld [vmem:[#allocation16_spill] sm:$0xff] }
 0x133   : > { %v1140_v24 = vpop.f32.mrf.mxu0  ;;  %v872_v21 = vadd.f32 %v4039_v13, %v6163_v39  ;;  %v6166_v13 = vld [vmem:[#allocation22_spill] sm:$0xff]  ;;  %v2754_v39 = vrot.slane %v6172_v30, 3 }
 0x134   : > { %v863_v50 = vpop.f32.mrf.mxu1  ;;  %v5423_v19 = vadd.f32 %v1140_v24, %v848_v31  ;;  %v2426_v31 = vrot.slane %v6165_v1, 2  ;;  %v2751_v24 = vsel %vm2728_vm7, %v2748_v7, %v2750_v48 }
 0x135   : > { %v4076_v16 = vpop.f32.mrf.mxu0  ;;  %4291 = vmatmul.mubr.msk.bf16.gmra.mxu0 %vm455_vm2, %v2745_v37  ;;  %v864_v43 = vadd.f32 %v863_v50, %v6164_v26 }
 0x136   : > { %v4042_v9 = vpop.f32.mrf.mxu1  ;;  %v5429_v41 = vadd.f32 %v4076_v16, %v869_v5  ;;  %4257 = vmatmul.mubr.msk.bf16.gmra.mxu1 %vm455_vm2, %v2413_v62  ;;  %4294 = vmatprep.mubr.msk.bf16.mxu0 %vm455_vm2, %v2747_v4  ;;  %v2427_v62 = vrot.slane %v6166_v13, 3  ;;  %v2431_v5 = vrot.slane %v6168_v14, 3  ;;  %v2752_v16 = vrot.slane %v6170_v63, 3  ;;  %v6179_v63 = vld [vmem:[#allocation38_spill] sm:$0xff] }
 0x137   : > { %v1153_v17 = vpop.f32.mrf.mxu0  ;;  %4260 = vmatprep.mubr.msk.bf16.mxu1 %vm455_vm2, %v2417_v28  ;;  %v6167_v28 = vld [vmem:[#allocation28_spill] sm:$0xff]  ;;  %v885_v12 = vadd.f32 %v4042_v9, %v6169_v59 }
 0x138   : > { %v876_v6 = vpop.f32.mrf.mxu1  ;;  %v5437_v60 = vadd.f32 %v1153_v17, %v861_v32  ;;  %v2430_v4 = vrot.slane %v6167_v28, 2  ;;  %v2428_v17 = vor.u32 %v2427_v62, %v2426_v31  ;;  %v6176_v31 = vld [vmem:[#allocation30_spill] sm:$0xff] }
 0x139   : > { %v4077_v61 = vpop.f32.mrf.mxu0  ;;  %v877_v32 = vadd.f32 %v876_v6, %v6171_v3  ;;  %v6174_v6 = vld [vmem:[#allocation42_spill] sm:$0xff]  ;;  %v6177_v62 = vshrl.u32 %v6176_v31, 16 }
 0x13a   : > { %v4043_v25 = vpop.f32.mrf.mxu1  ;;  %v5441_v51 = vadd.f32 %v4077_v61, %v872_v21  ;;  %v2432_v46 = vor.u32 %v2431_v5, %v2430_v4  ;;  %v6173_v21 = vld [vmem:[#allocation36_spill] sm:$0xff]  ;;  %v2442_v1 = vshll.u32 %v6174_v6, 16 }
 0x13b   : > { %v1156_v37 = vpop.f32.mrf.mxu0  ;;  %v888_v61 = vadd.f32 %v4043_v25, %v6173_v21  ;;  %v2434_v4 = vrot.slane %v6177_v62, 2  ;;  %v6178_v25 = vshll.u32 %v6176_v31, 16  ;;  %v6180_v21 = vld [vmem:[#allocation39_spill] sm:$0xff] }
 0x13c   : > { %v879_v53 = vpop.f32.mrf.mxu1  ;;  %v5450_v50 = vadd.f32 %v1156_v37, %v864_v43 }
 0x13d   : > { %v4080_v2 = vpop.f32.mrf.mxu0  ;;  %4295 = vmatmul.mubr.msk.bf16.gmra.mxu0 %vm455_vm2, %v2749_v58  ;;  %v2439_v58 = vshrl.u32 %v6174_v6, 16  ;;  %v2435_v5 = vrot.slane %v6178_v25, 3  ;;  %v6184_v25 = vld [vmem:[#allocation40_spill] sm:$0xff] }
 0x13e   : > { %v4046_v10 = vpop.f32.mrf.mxu1  ;;  %v5456_v7 = vadd.f32 %v4080_v2, %v885_v12  ;;  %4261 = vmatmul.mubr.msk.bf16.gmra.mxu1 %vm455_vm2, %v2421_v36  ;;  %4298 = vmatprep.mubr.msk.bf16.mxu0 %vm455_vm2, %v2751_v24  ;;  %v2753_v36 = vsel %vm2728_vm7, %v2750_v48, %v2752_v16  ;;  %v6175_v24 = vld [vmem:[#allocation37_spill] sm:$0xff]  ;;  %v2429_v12 = vsel %vm2370_vm6, %v2424_v57, %v2428_v17 }
 0x13f   : > { %v1169_v9 = vpop.f32.mrf.mxu0  ;;  %4264 = vmatprep.mubr.msk.bf16.mxu1 %vm455_vm2, %v2425_v47  ;;  %v880_v13 = vadd.f32 %v879_v53, %v6175_v24  ;;  %v2433_v47 = vsel %vm2370_vm6, %v2428_v17, %v2432_v46  ;;  %v2755_v2 = vsel %vm2728_vm7, %v2752_v16, %v2754_v39  ;;  %v901_v48 = vadd.f32 %v4046_v10, %v6179_v63  ;;  %v6181_v16 = vld [vmem:[#allocation20_spill] sm:$0xff]  ;;  %v6182_v17 = vld [vmem:[#allocation7_spill] sm:$0xff] }
 0x140   : > { %v892_v26 = vpop.f32.mrf.mxu1  ;;  %v5463_v43 = vadd.f32 %v1169_v9, %v877_v32  ;;  %v2441_v32 = vrot.slane %v2439_v58, 2  ;;  %v2444_v9 = vrot.slane %v2442_v1, 3  ;;  %v2436_v57 = vor.u32 %v2435_v5, %v2434_v4  ;;  %v6183_v58 = vld [vmem:[#allocation24_spill] sm:$0xff] }
 0x141   : > { %v4081_v37 = vpop.f32.mrf.mxu0  ;;  %v2756_v10 = vrot.slane %v6181_v16, 3  ;;  %v2758_v1 = vrot.slane %v6183_v58, 3 }
 0x142   : > { %v4047_v28 = vpop.f32.mrf.mxu1  ;;  %v5469_v14 = vadd.f32 %v4081_v37, %v888_v61  ;;  %v893_v61 = vadd.f32 %v892_v26, %v6180_v21  ;;  %v2451_v26 = vshll.u32 %v5286_v29, 16 }
 0x143   : > { %v1172_v59 = vpop.f32.mrf.mxu0  ;;  %v2757_v16 = vsel %vm2728_vm7, %v2754_v39, %v2756_v10 }
 0x144   : > { %v895_v3 = vpop.f32.mrf.mxu1  ;;  %v5479_v53 = vadd.f32 %v1172_v59, %v880_v13  ;;  %v904_v59 = vadd.f32 %v4047_v28, %v6184_v25  ;;  %v2759_v28 = vsel %vm2728_vm7, %v2756_v10, %v2758_v1 }
 0x145   : > { %v4084_v30 = vpop.f32.mrf.mxu0  ;;  %4299 = vmatmul.mubr.msk.bf16.gmra.mxu0 %vm455_vm2, %v2753_v36  ;;  %v2448_v36 = vshrl.u32 %v5286_v29, 16 }
 0x146   : > { %v5483_v37 = vadd.f32 %v4084_v30, %v901_v48  ;;  %v4090_v24 = vpop.f32.mrf.mxu1  ;;  %4265 = vmatmul.mubr.msk.bf16.gmra.mxu1 %vm455_vm2, %v2429_v12  ;;  %4302 = vmatprep.mubr.msk.bf16.mxu0 %vm455_vm2, %v2755_v2  ;;  %v2445_v2 = vor.u32 %v2444_v9, %v2441_v32  ;;  %v6185_v48 = vld [vmem:[#allocation41_spill] sm:$0xff] }
 0x147   : > { %v1434_v13 = vadd.f32 %v4090_v24, %v6182_v17  ;;  %v1185_v62 = vpop.f32.mrf.mxu0  ;;  %4268 = vmatprep.mubr.msk.bf16.mxu1 %vm455_vm2, %v2433_v47  ;;  %v896_v30 = vadd.f32 %v895_v3, %v6185_v48  ;;  %v2437_v24 = vsel %vm2370_vm6, %v2432_v46, %v2436_v57 }
 0x148   : > { %v5494_v63 = vadd.f32 %v1185_v62, %v893_v61  ;;  %v1289_v12 = vpop.f32.mrf.mxu1  ;;  %v2450_v61 = vrot.slane %v2448_v36, 2  ;;  %v2453_v62 = vrot.slane %v2451_v26, 3  ;;  %v2446_v9 = vsel %vm2370_vm6, %v2436_v57, %v2445_v2 }
 0x149   : > { %v1432_v4 = vadd.f32 %v1289_v12, %v5281_v11  ;;  %v4085_v5 = vpop.f32.mrf.mxu0 }
 0x14a   : > { %v5498_v21 = vadd.f32 %v4085_v5, %v904_v59  ;;  %v4091_v47 = vpop.f32.mrf.mxu1  ;;  %v2454_v57 = vor.u32 %v2453_v62, %v2450_v61 }
 0x14b   : > { %v1435_v17 = vadd.f32 %v4091_v47, %v5284_v27  ;;  %v1188_v58 = vpop.f32.mrf.mxu0  ;;  %v2760_v27 = vrot.slane %v6176_v31, 3 }
 0x14c   : > { %v5504_v32 = vadd.f32 %v1188_v58, %v896_v30  ;;  %v1292_v11 = vpop.f32.mrf.mxu1  ;;  %v2455_v47 = vsel %vm2370_vm6, %v2445_v2, %v2454_v57 }
 0x14d   : > { %v1433_v3 = vadd.f32 %v1292_v11, %v5291_v23  ;;  %v4128_v25 = vpop.f32.mrf.mxu0  ;;  %4303 = vmatmul.mubr.msk.bf16.gmra.mxu0 %vm455_vm2, %v2757_v16  ;;  %v2762_v23 = vrot.slane %v6174_v6, 3  ;;  %v2761_v30 = vsel %vm2728_vm7, %v2758_v1, %v2760_v27 }
 0x14e   : > { %v4094_v46 = vpop.f32.mrf.mxu1  ;;  %v5509_v59 = vadd.f32 %v4128_v25, %v1434_v13  ;;  %4269 = vmatmul.mubr.msk.bf16.gmra.mxu1 %vm455_vm2, %v2437_v24  ;;  %4306 = vmatprep.mubr.msk.bf16.mxu0 %vm455_vm2, %v2759_v28 }
 0x14f   : > { %v1438_v39 = vadd.f32 %v4094_v46, %v5298_v54  ;;  %v1647_v10 = vpop.f32.mrf.mxu0  ;;  %4272 = vmatprep.mubr.msk.bf16.mxu1 %vm455_vm2, %v2446_v9  ;;  %v2763_v24 = vsel %vm2728_vm7, %v2760_v27, %v2762_v23 }
 0x150   : > { %v1305_v36 = vpop.f32.mrf.mxu1  ;;  %v5517_v26 = vadd.f32 %v1647_v10, %v1432_v4 }
 0x151   : > { %v1436_v13 = vadd.f32 %v1305_v36, %v5307_v0  ;;  %v4129_v12 = vpop.f32.mrf.mxu0 }
 0x152   : > { %v4095_v5 = vpop.f32.mrf.mxu1  ;;  %v5520_v48 = vadd.f32 %v4129_v12, %v1435_v17 }
 0x153   : > { %v1439_v31 = vadd.f32 %v4095_v5, %v5310_v34  ;;  %v1650_v54 = vpop.f32.mrf.mxu0  ;;  %v2764_v34 = vrot.slane %v5286_v29, 3 }
 0x154   : > { %v1308_v16 = vpop.f32.mrf.mxu1  ;;  %v5526_v6 = vadd.f32 %v1650_v54, %v1433_v3 }
 0x155   : > { %v1437_v4 = vadd.f32 %v1308_v16, %v5319_v18  ;;  %v4132_v58 = vpop.f32.mrf.mxu0  ;;  %4307 = vmatmul.mubr.msk.bf16.gmra.mxu0 %vm455_vm2, %v2761_v30  ;;  %v2765_v3 = vsel %vm2728_vm7, %v2762_v23, %v2764_v34 }
 0x156   : > { %v4098_v0 = vpop.f32.mrf.mxu1  ;;  %v5530_v17 = vadd.f32 %v4132_v58, %v1438_v39  ;;  %4273 = vmatmul.mubr.msk.bf16.gmra.mxu1 %vm455_vm2, %v2455_v47  ;;  %4310 = vmatprep.mubr.msk.bf16.mxu0 %vm455_vm2, %v2763_v24 }
 0x157   : > { %v1442_v1 = vadd.f32 %v4098_v0, %v5327_v56  ;;  %v1663_v2 = vpop.f32.mrf.mxu0 }
 0x158   : > { %v1321_v28 = vpop.f32.mrf.mxu1  ;;  %v5536_v61 = vadd.f32 %v1663_v2, %v1436_v13 }
 0x159   : > { %v1440_v18 = vadd.f32 %v1321_v28, %v5335_v8  ;;  %v4133_v62 = vpop.f32.mrf.mxu0 }
 0x15a   : > { %v4099_v11 = vpop.f32.mrf.mxu1  ;;  %v5539_v9 = vadd.f32 %v4133_v62, %v1439_v31 }
 0x15b   : > { %v1443_v25 = vadd.f32 %v4099_v11, %v5338_v38  ;;  %v1666_v46 = vpop.f32.mrf.mxu0 }
 0x15c   : > { %v1324_v27 = vpop.f32.mrf.mxu1  ;;  %v5543_v39 = vadd.f32 %v1666_v46, %v1437_v4 }
 0x15d   : > { %v1441_v29 = vadd.f32 %v1324_v27, %v5346_v55  ;;  %v4136_v56 = vpop.f32.mrf.mxu0  ;;  %4311 = vmatmul.mubr.msk.bf16.gmra.mxu0 %vm455_vm2, %v2765_v3 }
 0x15e   : > { %v4102_v10 = vpop.f32.mrf.mxu1  ;;  %v5547_v57 = vadd.f32 %v4136_v56, %v1442_v1 }
 0x15f   : > { %v1446_v8 = vadd.f32 %v4102_v10, %v5353_v44  ;;  %v1679_v36 = vpop.f32.mrf.mxu0 }
 0x160   : > { %v1337_v13 = vpop.f32.mrf.mxu1  ;;  %v5550_v12 = vadd.f32 %v1679_v36, %v1440_v18 }
 0x161   : > { %v1444_v38 = vadd.f32 %v1337_v13, %v5361_v40  ;;  %v4137_v23 = vpop.f32.mrf.mxu0 }
 0x162   : > { %v4103_v5 = vpop.f32.mrf.mxu1  ;;  %v5553_v30 = vadd.f32 %v4137_v23, %v1443_v25 }
 0x163   : > { %v1447_v55 = vadd.f32 %v4103_v5, %v5364_v52  ;;  %v1682_v31 = vpop.f32.mrf.mxu0 }
 0x164   : > { %v1340_v54 = vpop.f32.mrf.mxu1  ;;  %v5556_v47 = vadd.f32 %v1682_v31, %v1441_v29 }
 0x165   : > { %v1445_v24 = vadd.f32 %v1340_v54, %v5372_v15  ;;  %v4140_v16 = vpop.f32.mrf.mxu0 }
 0x166   : > { %v4106_v44 = vpop.f32.mrf.mxu1  ;;  %v5559_v4 = vadd.f32 %v4140_v16, %v1446_v8 }
 0x167   : > { %v1450_v58 = vadd.f32 %v4106_v44, %v5379_v35  ;;  %v1695_v0 = vpop.f32.mrf.mxu0 }
 0x168   : > { %v1353_v40 = vpop.f32.mrf.mxu1  ;;  %v5562_v34 = vadd.f32 %v1695_v0, %v1444_v38 }
 0x169   : > { %v1448_v1 = vadd.f32 %v1353_v40, %v5386_v20  ;;  %v4141_v2 = vpop.f32.mrf.mxu0 }
 0x16a   : > { %v4107_v52 = vpop.f32.mrf.mxu1  ;;  %v5565_v28 = vadd.f32 %v4141_v2, %v1447_v55 }
 0x16b   : > { %v1451_v18 = vadd.f32 %v4107_v52, %v5388_v22  ;;  %v1698_v62 = vpop.f32.mrf.mxu0 }
 0x16c   : > { %v1356_v15 = vpop.f32.mrf.mxu1  ;;  %v5568_v11 = vadd.f32 %v1698_v62, %v1445_v24 }
 0x16d   : > { %v1449_v3 = vadd.f32 %v1356_v15, %v5398_v42  ;;  %v4144_v25 = vpop.f32.mrf.mxu0 }
 0x16e   : > { %v4110_v35 = vpop.f32.mrf.mxu1  ;;  %v5571_v46 = vadd.f32 %v4144_v25, %v1450_v58 }
 0x16f   : > { %v1454_v27 = vadd.f32 %v4110_v35, %v5403_v49  ;;  %v1711_v29 = vpop.f32.mrf.mxu0 }
 0x170   : > { %v1369_v20 = vpop.f32.mrf.mxu1  ;;  %v5574_v56 = vadd.f32 %v1711_v29, %v1448_v1 }
 0x171   : > { %v1452_v10 = vadd.f32 %v1369_v20, %v5411_v33  ;;  %v4145_v8 = vpop.f32.mrf.mxu0 }
 0x172   : > { %v4111_v22 = vpop.f32.mrf.mxu1  ;;  %v5577_v36 = vadd.f32 %v4145_v8, %v1451_v18 }
 0x173   : > { %v1455_v13 = vadd.f32 %v4111_v22, %v5416_v45  ;;  %v1714_v38 = vpop.f32.mrf.mxu0 }
 0x174   : > { %v1372_v42 = vpop.f32.mrf.mxu1  ;;  %v5580_v23 = vadd.f32 %v1714_v38, %v1449_v3 }
 0x175   : > { %v1453_v5 = vadd.f32 %v1372_v42, %v5423_v19  ;;  %v4148_v55 = vpop.f32.mrf.mxu0 }
 0x176   : > { %v4114_v49 = vpop.f32.mrf.mxu1  ;;  %v5583_v31 = vadd.f32 %v4148_v55, %v1454_v27 }
 0x177   : > { %v1458_v54 = vadd.f32 %v4114_v49, %v5429_v41  ;;  %v1727_v24 = vpop.f32.mrf.mxu0 }
 0x178   : > { %v1385_v33 = vpop.f32.mrf.mxu1  ;;  %v5586_v16 = vadd.f32 %v1727_v24, %v1452_v10 }
 0x179   : > { %v1456_v44 = vadd.f32 %v1385_v33, %v5437_v60  ;;  %v4149_v58 = vpop.f32.mrf.mxu0 }
 0x17a   : > { %v4115_v45 = vpop.f32.mrf.mxu1  ;;  %v5589_v0 = vadd.f32 %v4149_v58, %v1455_v13 }
 0x17b   : > { %v1459_v40 = vadd.f32 %v4115_v45, %v5441_v51  ;;  %v1730_v1 = vpop.f32.mrf.mxu0 }
 0x17c   : > { %v1388_v19 = vpop.f32.mrf.mxu1  ;;  %v5592_v2 = vadd.f32 %v1730_v1, %v1453_v5 }
 0x17d   : > { %v1457_v52 = vadd.f32 %v1388_v19, %v5450_v50  ;;  %v4152_v18 = vpop.f32.mrf.mxu0 }
 0x17e   : > { %v4118_v41 = vpop.f32.mrf.mxu1  ;;  %v5595_v62 = vadd.f32 %v4152_v18, %v1458_v54 }
 0x17f   : > { %v1462_v15 = vadd.f32 %v4118_v41, %v5456_v7  ;;  %v1743_v3 = vpop.f32.mrf.mxu0 }
 0x180   : > { %v1401_v60 = vpop.f32.mrf.mxu1  ;;  %v5598_v25 = vadd.f32 %v1743_v3, %v1456_v44 }
 0x181   : > { %v1460_v35 = vadd.f32 %v1401_v60, %v5463_v43  ;;  %v4153_v27 = vpop.f32.mrf.mxu0 }
 0x182   : > { %v4119_v51 = vpop.f32.mrf.mxu1  ;;  %v5601_v29 = vadd.f32 %v4153_v27, %v1459_v40 }
 0x183   : > { %v1463_v20 = vadd.f32 %v4119_v51, %v5469_v14  ;;  %v1746_v10 = vpop.f32.mrf.mxu0 }
 0x184   : > { %v1404_v50 = vpop.f32.mrf.mxu1  ;;  %v5604_v8 = vadd.f32 %v1746_v10, %v1457_v52 }
 0x185   : > { %v1461_v22 = vadd.f32 %v1404_v50, %v5479_v53  ;;  %v4156_v13 = vpop.f32.mrf.mxu0 }
 0x186   : > { %v4122_v7 = vpop.f32.mrf.mxu1  ;;  %v5607_v38 = vadd.f32 %v4156_v13, %v1462_v15 }
 0x187   : > { %v1466_v42 = vadd.f32 %v4122_v7, %v5483_v37  ;;  %v1759_v5 = vpop.f32.mrf.mxu0 }
 0x188   : > { %v1417_v43 = vpop.f32.mrf.mxu1  ;;  %v5610_v55 = vadd.f32 %v1759_v5, %v1460_v35 }
 0x189   : > { %v1464_v49 = vadd.f32 %v1417_v43, %v5494_v63  ;;  %v4157_v54 = vpop.f32.mrf.mxu0 }
 0x18a   : > { %v4123_v14 = vpop.f32.mrf.mxu1  ;;  %v5613_v24 = vadd.f32 %v4157_v54, %v1463_v20 }
 0x18b   : > { %v1467_v33 = vadd.f32 %v4123_v14, %v5498_v21  ;;  %v1762_v44 = vpop.f32.mrf.mxu0 }
 0x18c   : > { %v1420_v53 = vpop.f32.mrf.mxu1  ;;  %v5616_v58 = vadd.f32 %v1762_v44, %v1461_v22 }
 0x18d   : > { %v1465_v45 = vadd.f32 %v1420_v53, %v5504_v32  ;;  %v4160_v40 = vpop.f32.mrf.mxu0 }
 0x18e   : > { %v5619_v37 = vadd.f32 %v4160_v40, %v1466_v42  ;;  %v4166_v1 = vpop.f32.mrf.mxu1 }
 0x18f   : > { %v2102_v19 = vadd.f32 %v4166_v1, %v5509_v59  ;;  %v1775_v52 = vpop.f32.mrf.mxu0 }
 0x190   : > { %v5622_v63 = vadd.f32 %v1775_v52, %v1464_v49  ;;  %v1957_v18 = vpop.f32.mrf.mxu1 }
 0x191   : > { %v2100_v41 = vadd.f32 %v1957_v18, %v5517_v26  ;;  %v4161_v15 = vpop.f32.mrf.mxu0 }
 0x192   : > { %v5625_v21 = vadd.f32 %v4161_v15, %v1467_v33  ;;  %v4167_v3 = vpop.f32.mrf.mxu1 }
 0x193   : > { %v2103_v60 = vadd.f32 %v4167_v3, %v5520_v48  ;;  %v1778_v35 = vpop.f32.mrf.mxu0 }
 0x194   : > { %v5628_v32 = vadd.f32 %v1778_v35, %v1465_v45  ;;  %v1960_v27 = vpop.f32.mrf.mxu1 }
 0x195   : > { %v2101_v51 = vadd.f32 %v1960_v27, %v5526_v6  ;;  %v4204_v20 = vpop.f32.mrf.mxu0 }
 0x196   : > { %v4170_v59 = vpop.f32.mrf.mxu1  ;;  %v5631_v10 = vadd.f32 %v4204_v20, %v2102_v19 }
 0x197   : > { %v2106_v50 = vadd.f32 %v4170_v59, %v5530_v17  ;;  %v2189_v22 = vpop.f32.mrf.mxu0 }
 0x198   : > { %v1973_v26 = vpop.f32.mrf.mxu1  ;;  %v5634_v13 = vadd.f32 %v2189_v22, %v2100_v41 }
 0x199   : > { %v2104_v7 = vadd.f32 %v1973_v26, %v5536_v61  ;;  %v4205_v42 = vpop.f32.mrf.mxu0 }
 0x19a   : > { %v4171_v48 = vpop.f32.mrf.mxu1  ;;  %v5637_v5 = vadd.f32 %v4205_v42, %v2103_v60 }
 0x19b   : > { %v2107_v43 = vadd.f32 %v4171_v48, %v5539_v9  ;;  %v2192_v49 = vpop.f32.mrf.mxu0 }
 0x19c   : > { %v1976_v6 = vpop.f32.mrf.mxu1  ;;  %v5640_v54 = vadd.f32 %v2192_v49, %v2101_v51 }
 0x19d   : > { %v2105_v14 = vadd.f32 %v1976_v6, %v5543_v39  ;;  %v4208_v33 = vpop.f32.mrf.mxu0 }
 0x19e   : > { %v4174_v17 = vpop.f32.mrf.mxu1  ;;  %v5643_v44 = vadd.f32 %v4208_v33, %v2106_v50 }
 0x19f   : > { %v2110_v53 = vadd.f32 %v4174_v17, %v5547_v57  ;;  %v2205_v45 = vpop.f32.mrf.mxu0 }
 0x1a0   : > { %v1989_v61 = vpop.f32.mrf.mxu1  ;;  %v5646_v40 = vadd.f32 %v2205_v45, %v2104_v7 }
 0x1a1   : > { %v2108_v1 = vadd.f32 %v1989_v61, %v5550_v12  ;;  %v4209_v19 = vpop.f32.mrf.mxu0 }
 0x1a2   : > { %v4175_v9 = vpop.f32.mrf.mxu1  ;;  %v5649_v52 = vadd.f32 %v4209_v19, %v2107_v43 }
 0x1a3   : > { %v2111_v18 = vadd.f32 %v4175_v9, %v5553_v30  ;;  %v2208_v41 = vpop.f32.mrf.mxu0 }
 0x1a4   : > { %v1992_v39 = vpop.f32.mrf.mxu1  ;;  %v5652_v15 = vadd.f32 %v2208_v41, %v2105_v14 }
 0x1a5   : > { %v2109_v3 = vadd.f32 %v1992_v39, %v5556_v47  ;;  %v4212_v60 = vpop.f32.mrf.mxu0 }
 0x1a6   : > { %v4178_v57 = vpop.f32.mrf.mxu1  ;;  %v5655_v35 = vadd.f32 %v4212_v60, %v2110_v53 }
 0x1a7   : > { %v2114_v27 = vadd.f32 %v4178_v57, %v5559_v4  ;;  %v2221_v51 = vpop.f32.mrf.mxu0 }
 0x1a8   : > { %v2005_v12 = vpop.f32.mrf.mxu1  ;;  %v5658_v20 = vadd.f32 %v2221_v51, %v2108_v1 }
 0x1a9   : > { %v2112_v59 = vadd.f32 %v2005_v12, %v5562_v34  ;;  %v4213_v50 = vpop.f32.mrf.mxu0 }
 0x1aa   : > { %v4179_v30 = vpop.f32.mrf.mxu1  ;;  %v5661_v22 = vadd.f32 %v4213_v50, %v2111_v18 }
 0x1ab   : > { %v2115_v26 = vadd.f32 %v4179_v30, %v5565_v28  ;;  %v2224_v7 = vpop.f32.mrf.mxu0 }
 0x1ac   : > { %v2008_v47 = vpop.f32.mrf.mxu1  ;;  %v5664_v42 = vadd.f32 %v2224_v7, %v2109_v3 }
 0x1ad   : > { %v2113_v48 = vadd.f32 %v2008_v47, %v5568_v11  ;;  %v4216_v43 = vpop.f32.mrf.mxu0 }
 0x1ae   : > { %v4182_v4 = vpop.f32.mrf.mxu1  ;;  %v5667_v49 = vadd.f32 %v4216_v43, %v2114_v27  ;;  %v5696_v43 = vpop.permute.xlu1 %3120 }
 0x1af   : > { %v2118_v6 = vadd.f32 %v4182_v4, %v5571_v46  ;;  %v2237_v14 = vpop.f32.mrf.mxu0 }
 0x1b0   : > { %v2021_v34 = vpop.f32.mrf.mxu1  ;;  %v5670_v33 = vadd.f32 %v2237_v14, %v2112_v59 }
 0x1b1   : > { %v2116_v17 = vadd.f32 %v2021_v34, %v5574_v56  ;;  %v4217_v53 = vpop.f32.mrf.mxu0 }
 0x1b2   : > { %v4183_v28 = vpop.f32.mrf.mxu1  ;;  %v5673_v45 = vadd.f32 %v4217_v53, %v2115_v26 }
 0x1b3   : > { %v2119_v61 = vadd.f32 %v4183_v28, %v5577_v36  ;;  %v2240_v1 = vpop.f32.mrf.mxu0 }
 0x1b4   : > { %v2024_v11 = vpop.f32.mrf.mxu1  ;;  %v5676_v19 = vadd.f32 %v2240_v1, %v2113_v48 }
 0x1b5   : > { %v2117_v9 = vadd.f32 %v2024_v11, %v5580_v23  ;;  %v4220_v18 = vpop.f32.mrf.mxu0 }
 0x1b6   : > { %v4186_v46 = vpop.f32.mrf.mxu1  ;;  %v5679_v41 = vadd.f32 %v4220_v18, %v2118_v6 }
 0x1b7   : > { %v2122_v39 = vadd.f32 %v4186_v46, %v5583_v31  ;;  %v2253_v3 = vpop.f32.mrf.mxu0  ;;  %v5691_v31 = vpop.permute.xlu0 %3110 }
 0x1b8   : > { %v2037_v56 = vpop.f32.mrf.mxu1  ;;  %v5682_v60 = vadd.f32 %v2253_v3, %v2116_v17 }
 0x1b9   : > { %v2120_v57 = vadd.f32 %v2037_v56, %v5586_v16  ;;  %v4221_v27 = vpop.f32.mrf.mxu0 }
 0x1ba   : > { %v4187_v36 = vpop.f32.mrf.mxu1  ;;  %v5685_v51 = vadd.f32 %v4221_v27, %v2119_v61 }
 0x1bb   : > { %v2123_v12 = vadd.f32 %v4187_v36, %v5589_v0  ;;  %v2256_v59 = vpop.f32.mrf.mxu0  ;;  %v5704_v28 = vpop.permute.xlu0 %3115 }
 0x1bc   : > { %v2040_v23 = vpop.f32.mrf.mxu1  ;;  %v5688_v50 = vadd.f32 %v2256_v59, %v2117_v9  ;;  %v5709_v9 = vpop.permute.xlu1 %3125 }
 0x1bd   : > { %v2121_v30 = vadd.f32 %v2040_v23, %v5592_v2  ;;  %v4224_v26 = vpop.f32.mrf.mxu0 }
 0x1be   : > { %v4190_v7 = vpop.f32.mrf.mxu1  ;;  %v5693_v47 = vadd.f32 %v4224_v26, %v2122_v39 }
 0x1bf   : > { %v2126_v16 = vadd.f32 %v4190_v7, %v5595_v62  ;;  %v2269_v48 = vpop.f32.mrf.mxu0  ;;  %v5717_v27 = vpop.permute.xlu0 %3130 }
 0x1c0   : > { %v2053_v4 = vpop.f32.mrf.mxu1  ;;  %v5698_v6 = vadd.f32 %v2269_v48, %v2120_v57  ;;  %v5722_v23 = vpop.permute.xlu1 %3135 }
 0x1c1   : > { %v2124_v0 = vadd.f32 %v2053_v4, %v5598_v25  ;;  %v4225_v14 = vpop.f32.mrf.mxu0 }
 0x1c2   : > { %v4191_v34 = vpop.f32.mrf.mxu1  ;;  %v5701_v17 = vadd.f32 %v4225_v14, %v2123_v12 }
 0x1c3   : > { %v2127_v2 = vadd.f32 %v4191_v34, %v5601_v29  ;;  %v2272_v53 = vpop.f32.mrf.mxu0 }
 0x1c4   : > { %v2056_v61 = vpop.f32.mrf.mxu1  ;;  %v5706_v1 = vadd.f32 %v2272_v53, %v2121_v30  ;;  %v5735_v53 = vpop.permute.xlu1 %3145 }
 0x1c5   : > { %v2125_v62 = vadd.f32 %v2056_v61, %v5604_v8  ;;  %v4228_v11 = vpop.f32.mrf.mxu0 }
 0x1c6   : > { %v4194_v18 = vpop.f32.mrf.mxu1  ;;  %v5711_v46 = vadd.f32 %v4228_v11, %v2126_v16 }
 0x1c7   : > { %v2130_v25 = vadd.f32 %v4194_v18, %v5607_v38  ;;  %v2285_v39 = vpop.f32.mrf.mxu0 }
 0x1c8   : > { %v2069_v3 = vpop.f32.mrf.mxu1  ;;  %v5714_v56 = vadd.f32 %v2285_v39, %v2124_v0  ;;  %v5730_v0 = vpop.permute.xlu0 %3140 }
 0x1c9   : > { %v2128_v29 = vadd.f32 %v2069_v3, %v5610_v55  ;;  %v4229_v57 = vpop.f32.mrf.mxu0 }
 0x1ca   : > { %v4195_v36 = vpop.f32.mrf.mxu1  ;;  %v5719_v12 = vadd.f32 %v4229_v57, %v2127_v2 }
 0x1cb   : > { %v2131_v8 = vadd.f32 %v4195_v36, %v5613_v24  ;;  %v2288_v59 = vpop.f32.mrf.mxu0  ;;  %v5747_v36 = vpop.permute.xlu1 %3155 }
 0x1cc   : > { %v2072_v30 = vpop.f32.mrf.mxu1  ;;  %v5724_v26 = vadd.f32 %v2288_v59, %v2125_v62  ;;  %v5743_v3 = vpop.permute.xlu0 %3150 }
 0x1cd   : > { %v2129_v38 = vadd.f32 %v2072_v30, %v5616_v58  ;;  %v4232_v7 = vpop.f32.mrf.mxu0 }
 0x1ce   : > { %v4198_v16 = vpop.f32.mrf.mxu1  ;;  %v5727_v48 = vadd.f32 %v4232_v7, %v2130_v25 }
 0x1cf   : > { %v2134_v55 = vadd.f32 %v4198_v16, %v5619_v37  ;;  %v2301_v4 = vpop.f32.mrf.mxu0 }
 0x1d0   : > { %v2085_v14 = vpop.f32.mrf.mxu1  ;;  %v5732_v34 = vadd.f32 %v2301_v4, %v2128_v29  ;;  %v5754_v16 = vpop.permute.xlu0 %3160 }
 0x1d1   : > { %v2132_v24 = vadd.f32 %v2085_v14, %v5622_v63  ;;  %v4233_v2 = vpop.f32.mrf.mxu0 }
 0x1d2   : > { %v4199_v61 = vpop.f32.mrf.mxu1  ;;  %v5737_v58 = vadd.f32 %v4233_v2, %v2131_v8 }
 0x1d3   : > { %v2135_v62 = vadd.f32 %v4199_v61, %v5625_v21  ;;  %v2304_v11 = vpop.f32.mrf.mxu0 }
 0x1d4   : > { %v2088_v18 = vpop.f32.mrf.mxu1  ;;  %v5740_v37 = vadd.f32 %v2304_v11, %v2129_v38 }
 0x1d5   : > { %v2133_v25 = vadd.f32 %v2088_v18, %v5628_v32  ;;  %v4236_v39 = vpop.f32.mrf.mxu0 }
 0x1d6   : > { %v5745_v29 = vadd.f32 %v4236_v39, %v2134_v55  ;;  %v4242_v63 = vpop.f32.mrf.mxu1 }
 0x1d7   : > { %v2317_v57 = vpop.f32.mrf.mxu0  ;;  %v2692_v32 = vadd.f32 %v4242_v63, %v5631_v10  ;;  %v5770_v63 = vpop.permute.xlu0 %3170 }
 0x1d8   : > { %6186 = vst [vmem:[#allocation5_spill] sm:$0xff] %v5745_v29  ;;  %v5749_v59 = vadd.f32 %v2317_v57, %v2132_v24  ;;  %v2547_v8 = vpop.f32.mrf.mxu1  ;;  %v5764_v24 = vpop.permute.xlu1 %3165 }
 0x1d9   : > { %v4237_v30 = vpop.f32.mrf.mxu0  ;;  %v2690_v2 = vadd.f32 %v2547_v8, %v5634_v13 }
 0x1da   : > { %6187 = vst [vmem:[#allocation29_spill] sm:$0xff] %v5749_v59  ;;  %v5752_v21 = vadd.f32 %v4237_v30, %v2135_v62  ;;  %v4243_v38 = vpop.f32.mrf.mxu1 }
 0x1db   : > { %v2320_v7 = vpop.f32.mrf.mxu0  ;;  %v2693_v10 = vadd.f32 %v4243_v38, %v5637_v5 }
 0x1dc   : > { %6188 = vst [vmem:[#allocation9_spill] sm:$0xff] %v5752_v21  ;;  %v5757_v4 = vadd.f32 %v2320_v7, %v2133_v25  ;;  %v2550_v55 = vpop.f32.mrf.mxu1 }
 0x1dd   : > { %v4280_v14 = vpop.f32.mrf.mxu0  ;;  %v2691_v13 = vadd.f32 %v2550_v55, %v5640_v54 }
 0x1de   : > { %6189 = vst [vmem:[#allocation6_spill] sm:$0xff] %v5757_v4  ;;  %v4246_v61 = vpop.f32.mrf.mxu1  ;;  %v3002_v62 = vadd.f32 %v4280_v14, %v2692_v32  ;;  %v5776_v32 = vpop.permute.xlu1 %3175 }
 0x1df   : > { %v2857_v11 = vpop.f32.mrf.mxu0  ;;  %v2696_v5 = vadd.f32 %v4246_v61, %v5643_v44 }
 0x1e0   : > { %3038 = vst.msk [vmem:[%s5762_s27 + $0x10] sm:$0xff] %vm455_vm2, %v3002_v62  ;;  %v2563_v18 = vpop.f32.mrf.mxu1  ;;  %v3000_v25 = vadd.f32 %v2857_v11, %v2690_v2  ;;  %v3290_v38 = vmul.f32 %v5696_v43, %v3002_v62  ;;  %v5787_v43 = vpop.permute.xlu0 %3180 }
 0x1e1   : > { %v4281_v39 = vpop.f32.mrf.mxu0 }
 0x1e2   : > { %3036 = vst.msk [vmem:[%s5762_s27] sm:$0xff] %vm455_vm2, %v3000_v25  ;;  %v4247_v57 = vpop.f32.mrf.mxu1  ;;  %v3003_v30 = vadd.f32 %v4281_v39, %v2693_v10  ;;  %v3288_v8 = vmul.f32 %v5691_v31, %v3000_v25  ;;  %v2694_v10 = vadd.f32 %v2563_v18, %v5646_v40  ;;  %v3327_v61 = vsel %vm455_vm2, %v3290_v38, 0.0 }
 0x1e3   : > { %v2860_v7 = vpop.f32.mrf.mxu0  ;;  %v3405_v21 = vmul.f32 %v3290_v38, %v3002_v62 }
 0x1e4   : > { %3039 = vst.msk [vmem:[%s5762_s27 + $0x18] sm:$0xff] %vm455_vm2, %v3003_v30  ;;  %v2566_v14 = vpop.f32.mrf.mxu1  ;;  %v3001_v2 = vadd.f32 %v2860_v7, %v2691_v13  ;;  %v3403_v54 = vmul.f32 %v3288_v8, %v3000_v25  ;;  %v3291_v31 = vmul.f32 %v5709_v9, %v3003_v30  ;;  %v3324_v18 = vsel %vm455_vm2, %v3288_v8, 0.0 }
 0x1e5   : > { %v4284_v11 = vpop.f32.mrf.mxu0  ;;  %v2697_v25 = vadd.f32 %v4247_v57, %v5649_v52 }
 0x1e6   : > { %v4250_v39 = vpop.f32.mrf.mxu1  ;;  %v3006_v4 = vadd.f32 %v4284_v11, %v2696_v5  ;;  %3037 = vst.msk [vmem:[%s5762_s27 + $0x8] sm:$0xff] %vm455_vm2, %v3001_v2  ;;  %v3289_v55 = vmul.f32 %v5704_v28, %v3001_v2  ;;  %v5795_v28 = vpop.permute.xlu1 %3185  ;;  %v2695_v11 = vadd.f32 %v2566_v14, %v5652_v15  ;;  %v3439_v8 = vsel %vm455_vm2, %v3403_v54, 0.0 }
 0x1e7   : > { %v2873_v44 = vpop.f32.mrf.mxu0  ;;  %v3406_v52 = vmul.f32 %v3291_v31, %v3003_v30  ;;  %v2700_v15 = vadd.f32 %v4250_v39, %v5655_v35  ;;  %v5809_v30 = vpop.permute.xlu0 %3190 }
 0x1e8   : > { %3042 = vst.msk [vmem:[%s5762_s27 + $0x30] sm:$0xff] %vm455_vm2, %v3006_v4  ;;  %v2579_v13 = vpop.f32.mrf.mxu1  ;;  %v3004_v40 = vadd.f32 %v2873_v44, %v2694_v10  ;;  %v3325_v9 = vsel %vm455_vm2, %v3289_v55, 0.0  ;;  %v3404_v7 = vmul.f32 %v3289_v55, %v3001_v2  ;;  %v3294_v29 = vmul.f32 %v5730_v0, %v3006_v4 }
 0x1e9   : > { %v4285_v5 = vpop.f32.mrf.mxu0  ;;  %v3326_v59 = vadd.f32 %v3325_v9, %v3324_v18  ;;  %v3442_v0 = vsel %vm455_vm2, %v3405_v21, 0.0  ;;  %v3329_v18 = vsel %vm455_vm2, %v3291_v31, 0.0  ;;  %v3444_v35 = vsel %vm455_vm2, %v3406_v52, 0.0 }
 0x1ea   : > { %3040 = vst.msk [vmem:[%s5762_s27 + $0x20] sm:$0xff] %vm455_vm2, %v3004_v40  ;;  %v3292_v62 = vmul.f32 %v5717_v27, %v3004_v40  ;;  %v4251_v38 = vpop.f32.mrf.mxu1  ;;  %v3440_v57 = vsel %vm455_vm2, %v3404_v7, 0.0  ;;  %v3007_v2 = vadd.f32 %v4285_v5, %v2697_v25  ;;  %v3409_v25 = vmul.f32 %v3294_v29, %v3006_v4 }
 0x1eb   : > { %v2876_v10 = vpop.f32.mrf.mxu0  ;;  %v3328_v55 = vadd.f32 %v3327_v61, %v3326_v59  ;;  %v3441_v44 = vadd.f32 %v3440_v57, %v3439_v8  ;;  %v3335_v8 = vsel %vm455_vm2, %v3294_v29, 0.0  ;;  %v2698_v4 = vadd.f32 %v2579_v13, %v5658_v20 }
 0x1ec   : > { %v2582_v14 = vpop.f32.mrf.mxu1  ;;  %v3407_v9 = vmul.f32 %v3292_v62, %v3004_v40  ;;  %3043 = vst.msk [vmem:[%s5762_s27 + $0x38] sm:$0xff] %vm455_vm2, %v3007_v2  ;;  %v3005_v27 = vadd.f32 %v2876_v10, %v2695_v11  ;;  %v3331_v39 = vsel %vm455_vm2, %v3292_v62, 0.0  ;;  %v3295_v21 = vmul.f32 %v5735_v53, %v3007_v2  ;;  %v5817_v11 = vpop.permute.xlu1 %3195 }
 0x1ed   : > { %v4288_v54 = vpop.f32.mrf.mxu0  ;;  %v3443_v7 = vadd.f32 %v3442_v0, %v3441_v44  ;;  %v3330_v59 = vadd.f32 %v3329_v18, %v3328_v55  ;;  %v2701_v53 = vadd.f32 %v4251_v38, %v5661_v22  ;;  %v2699_v29 = vadd.f32 %v2582_v14, %v5664_v42  ;;  %v5829_v22 = vpop.permute.xlu0 %3200 }
 0x1ee   : > { %v4254_v61 = vpop.f32.mrf.mxu1  ;;  %v3010_v5 = vadd.f32 %v4288_v54, %v2700_v15  ;;  %3041 = vst.msk [vmem:[%s5762_s27 + $0x28] sm:$0xff] %vm455_vm2, %v3005_v27  ;;  %v3293_v31 = vmul.f32 %v5722_v23, %v3005_v27  ;;  %v3446_v62 = vsel %vm455_vm2, %v3407_v9, 0.0  ;;  %v3450_v15 = vsel %vm455_vm2, %v3409_v25, 0.0 }
 0x1ef   : > { %v2889_v40 = vpop.f32.mrf.mxu0  ;;  %v3332_v57 = vadd.f32 %v3331_v39, %v3330_v59  ;;  %v3445_v10 = vadd.f32 %v3444_v35, %v3443_v7  ;;  %v3410_v18 = vmul.f32 %v3295_v21, %v3007_v2  ;;  %v2704_v25 = vadd.f32 %v4254_v61, %v5667_v49 }
 0x1f0   : > { %3046 = vst.msk [vmem:[%s5762_s27 + $0x50] sm:$0xff] %vm455_vm2, %v3010_v5  ;;  %v2595_v52 = vpop.f32.mrf.mxu1  ;;  %v3333_v55 = vsel %vm455_vm2, %v3293_v31, 0.0  ;;  %v3408_v44 = vmul.f32 %v3293_v31, %v3005_v27  ;;  %v3008_v7 = vadd.f32 %v2889_v40, %v2698_v4  ;;  %v3337_v42 = vsel %vm455_vm2, %v3295_v21, 0.0  ;;  %v5840_v4 = vpop.permute.xlu1 %3205 }
 0x1f1   : > { %v4289_v23 = vpop.f32.mrf.mxu0  ;;  %v3447_v0 = vadd.f32 %v3446_v62, %v3445_v10  ;;  %v3334_v20 = vadd.f32 %v3333_v55, %v3332_v57  ;;  %v3298_v14 = vmul.f32 %v5754_v16, %v3010_v5  ;;  %v3452_v57 = vsel %vm455_vm2, %v3410_v18, 0.0 }
 0x1f2   : > { %v4255_v13 = vpop.f32.mrf.mxu1  ;;  %v3448_v54 = vsel %vm455_vm2, %v3408_v44, 0.0  ;;  %v3011_v9 = vadd.f32 %v4289_v23, %v2701_v53  ;;  %3044 = vst.msk [vmem:[%s5762_s27 + $0x40] sm:$0xff] %vm455_vm2, %v3008_v7  ;;  %v3296_v2 = vmul.f32 %v5743_v3, %v3008_v7  ;;  %v2702_v3 = vadd.f32 %v2595_v52, %v5670_v33  ;;  %v5854_v52 = vpop.permute.xlu0 %3210 }
 0x1f3   : > { %v2892_v59 = vpop.f32.mrf.mxu0  ;;  %v3336_v38 = vadd.f32 %v3335_v8, %v3334_v20  ;;  %v3449_v27 = vadd.f32 %v3448_v54, %v3447_v0  ;;  %v3413_v0 = vmul.f32 %v3298_v14, %v3010_v5 }
 0x1f4   : > { %v2598_v35 = vpop.f32.mrf.mxu1  ;;  %v3009_v39 = vadd.f32 %v2892_v59, %v2699_v29  ;;  %3047 = vst.msk [vmem:[%s5762_s27 + $0x58] sm:$0xff] %vm455_vm2, %v3011_v9  ;;  %v3299_v31 = vmul.f32 %v5764_v24, %v3011_v9  ;;  %v3339_v10 = vsel %vm455_vm2, %v3296_v2, 0.0  ;;  %v3411_v62 = vmul.f32 %v3296_v2, %v3008_v7 }
 0x1f5   : > { %v4292_v40 = vpop.f32.mrf.mxu0  ;;  %v3451_v8 = vadd.f32 %v3450_v15, %v3449_v27  ;;  %v3338_v49 = vadd.f32 %v3337_v42, %v3336_v38  ;;  %v2705_v29 = vadd.f32 %v4255_v13, %v5673_v45  ;;  %v2703_v20 = vadd.f32 %v2598_v35, %v5676_v19  ;;  %v5859_v45 = vpop.permute.xlu1 %3215 }
 0x1f6   : > { %3045 = vst.msk [vmem:[%s5762_s27 + $0x48] sm:$0xff] %vm455_vm2, %v3009_v39  ;;  %v3297_v61 = vmul.f32 %v5747_v36, %v3009_v39  ;;  %v4258_v21 = vpop.f32.mrf.mxu1  ;;  %v3014_v16 = vadd.f32 %v4292_v40, %v2704_v25  ;;  %v3454_v36 = vsel %vm455_vm2, %v3411_v62, 0.0  ;;  %v3414_v54 = vmul.f32 %v3299_v31, %v3011_v9 }
 0x1f7   : > { %v2905_v24 = vpop.f32.mrf.mxu0  ;;  %v3340_v53 = vadd.f32 %v3339_v10, %v3338_v49  ;;  %v3453_v55 = vadd.f32 %v3452_v57, %v3451_v8  ;;  %v3343_v27 = vsel %vm455_vm2, %v3298_v14, 0.0  ;;  %v3458_v2 = vsel %vm455_vm2, %v3413_v0, 0.0 }
 0x1f8   : > { %v3341_v44 = vsel %vm455_vm2, %v3297_v61, 0.0  ;;  %v3412_v23 = vmul.f32 %v3297_v61, %v3009_v39  ;;  %3050 = vst.msk [vmem:[%s5762_s27 + $0x70] sm:$0xff] %vm455_vm2, %v3014_v16  ;;  %v2611_v15 = vpop.f32.mrf.mxu1  ;;  %v3302_v5 = vmul.f32 %v5787_v43, %v3014_v16  ;;  %v3012_v25 = vadd.f32 %v2905_v24, %v2702_v3  ;;  %v5875_v24 = vpop.permute.xlu0 %3220 }
 0x1f9   : > { %v4293_v33 = vpop.f32.mrf.mxu0  ;;  %v3455_v18 = vadd.f32 %v3454_v36, %v3453_v55  ;;  %v3342_v7 = vadd.f32 %v3341_v44, %v3340_v53  ;;  %v3345_v40 = vsel %vm455_vm2, %v3299_v31, 0.0  ;;  %v2708_v8 = vadd.f32 %v4258_v21, %v5679_v41 }
 0x1fa   : > { %v3456_v59 = vsel %vm455_vm2, %v3412_v23, 0.0  ;;  %v4259_v38 = vpop.f32.mrf.mxu1  ;;  %v3015_v35 = vadd.f32 %v4293_v33, %v2705_v29  ;;  %3048 = vst.msk [vmem:[%s5762_s27 + $0x60] sm:$0xff] %vm455_vm2, %v3012_v25  ;;  %v3300_v43 = vmul.f32 %v5770_v63, %v3012_v25  ;;  %v3460_v49 = vsel %vm455_vm2, %v3414_v54, 0.0  ;;  %v5883_v33 = vpop.permute.xlu1 %3225 }
 0x1fb   : > { %v2908_v39 = vpop.f32.mrf.mxu0  ;;  %v3344_v19 = vadd.f32 %v3343_v27, %v3342_v7  ;;  %v3457_v13 = vadd.f32 %v3456_v59, %v3455_v18  ;;  %v3351_v53 = vsel %vm455_vm2, %v3302_v5, 0.0  ;;  %v2706_v55 = vadd.f32 %v2611_v15, %v5682_v60 }
 0x1fc   : > { %v2614_v42 = vpop.f32.mrf.mxu1  ;;  %v3013_v9 = vadd.f32 %v2908_v39, %v2703_v20  ;;  %3051 = vst.msk [vmem:[%s5762_s27 + $0x78] sm:$0xff] %vm455_vm2, %v3015_v35  ;;  %v3347_v31 = vsel %vm455_vm2, %v3300_v43, 0.0  ;;  %v3415_v41 = vmul.f32 %v3300_v43, %v3012_v25  ;;  %v3303_v21 = vmul.f32 %v5795_v28, %v3015_v35 }
 0x1fd   : > { %v4296_v14 = vpop.f32.mrf.mxu0  ;;  %v3459_v61 = vadd.f32 %v3458_v2, %v3457_v13  ;;  %v3346_v57 = vadd.f32 %v3345_v40, %v3344_v19  ;;  %v3417_v36 = vmul.f32 %v3302_v5, %v3014_v16  ;;  %v2709_v54 = vadd.f32 %v4259_v38, %v5685_v51 }
 0x1fe   : > { %3049 = vst.msk [vmem:[%s5762_s27 + $0x68] sm:$0xff] %vm455_vm2, %v3013_v9  ;;  %v3301_v3 = vmul.f32 %v5776_v32, %v3013_v9  ;;  %v4262_v10 = vpop.f32.mrf.mxu1  ;;  %v3018_v62 = vadd.f32 %v4296_v14, %v2708_v8  ;;  %v3462_v32 = vsel %vm455_vm2, %v3415_v41, 0.0  ;;  %v2707_v60 = vadd.f32 %v2614_v42, %v5688_v50  ;;  %v5895_v42 = vpop.permute.xlu0 %3230 }
 0x1ff   : > { %v2921_v63 = vpop.f32.mrf.mxu0  ;;  %v3348_v44 = vadd.f32 %v3347_v31, %v3346_v57  ;;  %v3461_v23 = vadd.f32 %v3460_v49, %v3459_v61  ;;  %v3418_v59 = vmul.f32 %v3303_v21, %v3015_v35  ;;  %v2712_v27 = vadd.f32 %v4262_v10, %v5693_v47  ;;  %v5905_v10 = vpop.permute.xlu1 %3235 }
 0x200   : > { %v2627_v0 = vpop.f32.mrf.mxu1  ;;  %v3349_v29 = vsel %vm455_vm2, %v3301_v3, 0.0  ;;  %v3416_v20 = vmul.f32 %v3301_v3, %v3013_v9  ;;  %3054 = vst.msk [vmem:[%s5762_s27 + $0x90] sm:$0xff] %vm455_vm2, %v3018_v62  ;;  %v3016_v5 = vadd.f32 %v2921_v63, %v2706_v55  ;;  %v3306_v13 = vmul.f32 %v5829_v22, %v3018_v62 }
 0x201   : > { %v4297_v28 = vpop.f32.mrf.mxu0  ;;  %v3463_v18 = vadd.f32 %v3462_v32, %v3461_v23  ;;  %v3350_v15 = vadd.f32 %v3349_v29, %v3348_v44  ;;  %v3466_v51 = vsel %vm455_vm2, %v3417_v36, 0.0  ;;  %v3353_v50 = vsel %vm455_vm2, %v3303_v21, 0.0 }
 0x202   : > { %v4263_v7 = vpop.f32.mrf.mxu1  ;;  %v3464_v16 = vsel %vm455_vm2, %v3416_v20, 0.0  ;;  %v3019_v9 = vadd.f32 %v4297_v28, %v2709_v54  ;;  %3052 = vst.msk [vmem:[%s5762_s27 + $0x80] sm:$0xff] %vm455_vm2, %v3016_v5  ;;  %v3304_v38 = vmul.f32 %v5809_v30, %v3016_v5  ;;  %v3468_v49 = vsel %vm455_vm2, %v3418_v59, 0.0 }
 0x203   : > { %v2924_v25 = vpop.f32.mrf.mxu0  ;;  %v3352_v39 = vadd.f32 %v3351_v53, %v3350_v15  ;;  %v3465_v19 = vadd.f32 %v3464_v16, %v3463_v18  ;;  %v3359_v31 = vsel %vm455_vm2, %v3306_v13, 0.0  ;;  %v2710_v41 = vadd.f32 %v2627_v0, %v5698_v6 }
 0x204   : > { %v2630_v2 = vpop.f32.mrf.mxu1  ;;  %v3017_v35 = vadd.f32 %v2924_v25, %v2707_v60  ;;  %3055 = vst.msk [vmem:[%s5762_s27 + $0x98] sm:$0xff] %vm455_vm2, %v3019_v9  ;;  %v3307_v22 = vmul.f32 %v5840_v4, %v3019_v9  ;;  %v3355_v61 = vsel %vm455_vm2, %v3304_v38, 0.0  ;;  %v3419_v57 = vmul.f32 %v3304_v38, %v3016_v5  ;;  %v3241_v60 = vpop.permute.xlu0 %3240 }
 0x205   : > { %v4300_v47 = vpop.f32.mrf.mxu0  ;;  %v3467_v40 = vadd.f32 %v3466_v51, %v3465_v19  ;;  %v3354_v8 = vadd.f32 %v3353_v50, %v3352_v39  ;;  %v3421_v53 = vmul.f32 %v3306_v13, %v3018_v62  ;;  %v2713_v32 = vadd.f32 %v4263_v7, %v5701_v17  ;;  %v3246_v39 = vpop.permute.xlu1 %3245 }
 0x206   : > { %v4266_v43 = vpop.f32.mrf.mxu1  ;;  %v3022_v14 = vadd.f32 %v4300_v47, %v2712_v27  ;;  %3053 = vst.msk [vmem:[%s5762_s27 + $0x88] sm:$0xff] %vm455_vm2, %v3017_v35  ;;  %v3305_v30 = vmul.f32 %v5817_v11, %v3017_v35  ;;  %v3470_v55 = vsel %vm455_vm2, %v3419_v57, 0.0  ;;  %v3422_v29 = vmul.f32 %v3307_v22, %v3019_v9 }
 0x207   : > { %v2937_v3 = vpop.f32.mrf.mxu0  ;;  %v3356_v21 = vadd.f32 %v3355_v61, %v3354_v8  ;;  %v3469_v4 = vadd.f32 %v3468_v49, %v3467_v40  ;;  %v2711_v6 = vadd.f32 %v2630_v2, %v5706_v1  ;;  %v2716_v18 = vadd.f32 %v4266_v43, %v5711_v46 }
 0x208   : > { %3058 = vst.msk [vmem:[%s5762_s27 + $0xb0] sm:$0xff] %vm455_vm2, %v3022_v14  ;;  %v2643_v63 = vpop.f32.mrf.mxu1  ;;  %v3357_v44 = vsel %vm455_vm2, %v3305_v30, 0.0  ;;  %v3420_v23 = vmul.f32 %v3305_v30, %v3017_v35  ;;  %v3020_v62 = vadd.f32 %v2937_v3, %v2710_v41  ;;  %v3310_v16 = vmul.f32 %v5875_v24, %v3022_v14  ;;  %v5937_v3 = vpop.permute.xlu0 %3250 }
 0x209   : > { %v4301_v36 = vpop.f32.mrf.mxu0  ;;  %v3471_v11 = vadd.f32 %v3470_v55, %v3469_v4  ;;  %v3358_v20 = vadd.f32 %v3357_v44, %v3356_v21  ;;  %v3474_v7 = vsel %vm455_vm2, %v3421_v53, 0.0  ;;  %v3361_v5 = vsel %vm455_vm2, %v3307_v22, 0.0  ;;  %v5943_v44 = vpop.permute.xlu1 %3255 }
 0x20a   : > { %v4267_v28 = vpop.f32.mrf.mxu1  ;;  %v3472_v0 = vsel %vm455_vm2, %v3420_v23, 0.0  ;;  %v3023_v27 = vadd.f32 %v4301_v36, %v2713_v32  ;;  %3056 = vst.msk [vmem:[%s5762_s27 + $0xa0] sm:$0xff] %vm455_vm2, %v3020_v62  ;;  %v3308_v1 = vmul.f32 %v5854_v52, %v3020_v62  ;;  %v3476_v19 = vsel %vm455_vm2, %v3422_v29, 0.0 }
 0x20b   : > { %v2940_v54 = vpop.f32.mrf.mxu0  ;;  %v3360_v15 = vadd.f32 %v3359_v31, %v3358_v20  ;;  %v3473_v59 = vadd.f32 %v3472_v0, %v3471_v11  ;;  %v3367_v47 = vsel %vm455_vm2, %v3310_v16, 0.0  ;;  %v2714_v40 = vadd.f32 %v2643_v63, %v5714_v56 }
 0x20c   : > { %v2646_v17 = vpop.f32.mrf.mxu1  ;;  %v3021_v46 = vadd.f32 %v2940_v54, %v2711_v6  ;;  %3059 = vst.msk [vmem:[%s5762_s27 + $0xb8] sm:$0xff] %vm455_vm2, %v3023_v27  ;;  %v3363_v51 = vsel %vm455_vm2, %v3308_v1, 0.0  ;;  %v3423_v50 = vmul.f32 %v3308_v1, %v3020_v62  ;;  %v3311_v38 = vmul.f32 %v5883_v33, %v3023_v27 }
 0x20d   : > { %v4304_v25 = vpop.f32.mrf.mxu0  ;;  %v3475_v13 = vadd.f32 %v3474_v7, %v3473_v59  ;;  %v3362_v9 = vadd.f32 %v3361_v5, %v3360_v15  ;;  %v3425_v49 = vmul.f32 %v3310_v16, %v3022_v14  ;;  %v2717_v31 = vadd.f32 %v4267_v28, %v5719_v12 }
 0x20e   : > { %v4270_v24 = vpop.f32.mrf.mxu1  ;;  %v3026_v2 = vadd.f32 %v4304_v25, %v2716_v18  ;;  %3057 = vst.msk [vmem:[%s5762_s27 + $0xa8] sm:$0xff] %vm455_vm2, %v3021_v46  ;;  %v3309_v52 = vmul.f32 %v5859_v45, %v3021_v46  ;;  %v3478_v61 = vsel %vm455_vm2, %v3423_v50, 0.0  ;;  %v2715_v41 = vadd.f32 %v2646_v17, %v5724_v26 }
 0x20f   : > { %v2953_v35 = vpop.f32.mrf.mxu0  ;;  %v3364_v8 = vadd.f32 %v3363_v51, %v3362_v9  ;;  %v3477_v22 = vadd.f32 %v3476_v19, %v3475_v13  ;;  %v3426_v4 = vmul.f32 %v3311_v38, %v3023_v27  ;;  %v2720_v14 = vadd.f32 %v4270_v24, %v5727_v48  ;;  %v3261_v27 = vpop.permute.xlu0 %3260 }
 0x210   : > { %3062 = vst.msk [vmem:[%s5762_s27 + $0xd0] sm:$0xff] %vm455_vm2, %v3026_v2  ;;  %v2659_v43 = vpop.f32.mrf.mxu1  ;;  %v3365_v57 = vsel %vm455_vm2, %v3309_v52, 0.0  ;;  %v3424_v33 = vmul.f32 %v3309_v52, %v3021_v46  ;;  %v3024_v53 = vadd.f32 %v2953_v35, %v2714_v40  ;;  %v3314_v11 = vmul.f32 %v3241_v60, %v3026_v2  ;;  %v3266_v24 = vpop.permute.xlu1 %3265  ;;  %v6190_v35 = vld [vmem:[#allocation5_spill] sm:$0xff] }
 0x211   : > { %v4305_v30 = vpop.f32.mrf.mxu0  ;;  %v3479_v45 = vadd.f32 %v3478_v61, %v3477_v22  ;;  %v3366_v56 = vadd.f32 %v3365_v57, %v3364_v8  ;;  %v3482_v26 = vsel %vm455_vm2, %v3425_v49, 0.0  ;;  %v3369_v29 = vsel %vm455_vm2, %v3311_v38, 0.0 }
 0x212   : > { %v4271_v21 = vpop.f32.mrf.mxu1  ;;  %v3480_v63 = vsel %vm455_vm2, %v3424_v33, 0.0  ;;  %v3027_v32 = vadd.f32 %v4305_v30, %v2717_v31  ;;  %3060 = vst.msk [vmem:[%s5762_s27 + $0xc0] sm:$0xff] %vm455_vm2, %v3024_v53  ;;  %v3312_v20 = vmul.f32 %v5895_v42, %v3024_v53  ;;  %v3484_v60 = vsel %vm455_vm2, %v3426_v4, 0.0 }
 0x213   : > { %v2956_v55 = vpop.f32.mrf.mxu0  ;;  %v3368_v23 = vadd.f32 %v3367_v47, %v3366_v56  ;;  %v3481_v36 = vadd.f32 %v3480_v63, %v3479_v45  ;;  %v3375_v17 = vsel %vm455_vm2, %v3314_v11, 0.0  ;;  %v2718_v7 = vadd.f32 %v2659_v43, %v5732_v34  ;;  %v3271_v45 = vpop.permute.xlu0 %3270 }
 0x214   : > { %v2662_v12 = vpop.f32.mrf.mxu1  ;;  %v3025_v48 = vadd.f32 %v2956_v55, %v2715_v41  ;;  %3063 = vst.msk [vmem:[%s5762_s27 + $0xd8] sm:$0xff] %vm455_vm2, %v3027_v32  ;;  %v3315_v18 = vmul.f32 %v3246_v39, %v3027_v32  ;;  %v3371_v15 = vsel %vm455_vm2, %v3312_v20, 0.0  ;;  %v3427_v59 = vmul.f32 %v3312_v20, %v3024_v53  ;;  %v6192_v20 = vld [vmem:[#allocation9_spill] sm:$0xff] }
 0x215   : > { %v4308_v28 = vpop.f32.mrf.mxu0  ;;  %v3483_v6 = vadd.f32 %v3482_v26, %v3481_v36  ;;  %v3370_v0 = vadd.f32 %v3369_v29, %v3368_v23  ;;  %v3429_v25 = vmul.f32 %v3314_v11, %v3026_v2  ;;  %v2721_v51 = vadd.f32 %v4271_v21, %v5737_v58  ;;  %v3276_v23 = vpop.permute.xlu1 %3275  ;;  %v6191_v11 = vld [vmem:[#allocation29_spill] sm:$0xff] }
 0x216   : > { %v4274_v62 = vpop.f32.mrf.mxu1  ;;  %v3030_v54 = vadd.f32 %v4308_v28, %v2720_v14  ;;  %3061 = vst.msk [vmem:[%s5762_s27 + $0xc8] sm:$0xff] %vm455_vm2, %v3025_v48  ;;  %v3313_v16 = vmul.f32 %v5905_v10, %v3025_v48  ;;  %v3486_v39 = vsel %vm455_vm2, %v3427_v59, 0.0  ;;  %v3430_v50 = vmul.f32 %v3315_v18, %v3027_v32 }
 0x217   : > { %v2969_v42 = vpop.f32.mrf.mxu0  ;;  %v3372_v5 = vadd.f32 %v3371_v15, %v3370_v0  ;;  %v3485_v1 = vadd.f32 %v3484_v60, %v3483_v6  ;;  %v2719_v34 = vadd.f32 %v2662_v12, %v5740_v37  ;;  %v2724_v47 = vadd.f32 %v4274_v62, %v6190_v35 }
 0x218   : > { %3066 = vst.msk [vmem:[%s5762_s27 + $0xf0] sm:$0xff] %vm455_vm2, %v3030_v54  ;;  %v2675_v46 = vpop.f32.mrf.mxu1  ;;  %v3373_v19 = vsel %vm455_vm2, %v3313_v16, 0.0  ;;  %v3428_v13 = vmul.f32 %v3313_v16, %v3025_v48  ;;  %v3028_v2 = vadd.f32 %v2969_v42, %v2718_v7  ;;  %v3318_v49 = vmul.f32 %v3261_v27, %v3030_v54 }
 0x219   : > { %v4309_v9 = vpop.f32.mrf.mxu0  ;;  %v3487_v10 = vadd.f32 %v3486_v39, %v3485_v1  ;;  %v3374_v38 = vadd.f32 %v3373_v19, %v3372_v5  ;;  %v3490_v57 = vsel %vm455_vm2, %v3429_v25, 0.0  ;;  %v3377_v58 = vsel %vm455_vm2, %v3315_v18, 0.0 }
 0x21a   : > { %v3488_v52 = vsel %vm455_vm2, %v3428_v13, 0.0  ;;  %v4275_v40 = vpop.f32.mrf.mxu1  ;;  %v3031_v61 = vadd.f32 %v4309_v9, %v2721_v51  ;;  %3064 = vst.msk [vmem:[%s5762_s27 + $0xe0] sm:$0xff] %vm455_vm2, %v3028_v2  ;;  %v3316_v37 = vmul.f32 %v5937_v3, %v3028_v2  ;;  %v3492_v31 = vsel %vm455_vm2, %v3430_v50, 0.0  ;;  %v3286_v13 = vpop.permute.xlu1 %3285 }
 0x21b   : > { %v2972_v8 = vpop.f32.mrf.mxu0  ;;  %v3376_v22 = vadd.f32 %v3375_v17, %v3374_v38  ;;  %v3489_v43 = vadd.f32 %v3488_v52, %v3487_v10  ;;  %v3433_v36 = vmul.f32 %v3318_v49, %v3030_v54  ;;  %v2722_v32 = vadd.f32 %v2675_v46, %v6191_v11  ;;  %v3281_v17 = vpop.permute.xlu0 %3280 }
 0x21c   : > { %v3029_v33 = vadd.f32 %v2972_v8, %v2719_v34  ;;  %3067 = vst.msk [vmem:[%s5762_s27 + $0xf8] sm:$0xff] %vm455_vm2, %v3031_v61  ;;  %v3379_v4 = vsel %vm455_vm2, %v3316_v37, 0.0  ;;  %v3431_v63 = vmul.f32 %v3316_v37, %v3028_v2  ;;  %v3319_v14 = vmul.f32 %v3266_v24, %v3031_v61  ;;  %v2678_v53 = vpop.f32.mrf.mxu1 }
 0x21d   : > { %v4312_v30 = vpop.f32.mrf.mxu0  ;;  %v3491_v41 = vadd.f32 %v3490_v57, %v3489_v43  ;;  %v3378_v56 = vadd.f32 %v3377_v58, %v3376_v22  ;;  %v2725_v48 = vadd.f32 %v4275_v40, %v6192_v20  ;;  %v3383_v15 = vsel %vm455_vm2, %v3318_v49, 0.0 }
 0x21e   : > { %v3034_v21 = vadd.f32 %v4312_v30, %v2724_v47  ;;  %3065 = vst.msk [vmem:[%s5762_s27 + $0xe8] sm:$0xff] %vm455_vm2, %v3029_v33  ;;  %v3317_v3 = vmul.f32 %v5943_v44, %v3029_v33  ;;  %v3494_v29 = vsel %vm455_vm2, %v3431_v63, 0.0  ;;  %v6193_v44 = vld [vmem:[#allocation6_spill] sm:$0xff]  ;;  %v3434_v59 = vmul.f32 %v3319_v14, %v3031_v61 }
 0x21f   : > { %v2985_v55 = vpop.f32.mrf.mxu0  ;;  %v3380_v12 = vadd.f32 %v3379_v4, %v3378_v56  ;;  %v3493_v26 = vadd.f32 %v3492_v31, %v3491_v41  ;;  %v2723_v62 = vadd.f32 %v2678_v53, %v6193_v44  ;;  %v3498_v25 = vsel %vm455_vm2, %v3433_v36, 0.0 }
 0x220   : > { %3070 = vst.msk [vmem:[%s5762_s27 + $0x110] sm:$0xff] %vm455_vm2, %v3034_v21  ;;  %v3381_v28 = vsel %vm455_vm2, %v3317_v3, 0.0  ;;  %v3432_v6 = vmul.f32 %v3317_v3, %v3029_v33  ;;  %v3032_v54 = vadd.f32 %v2985_v55, %v2722_v32  ;;  %v3385_v39 = vsel %vm455_vm2, %v3319_v14, 0.0 }
 0x221   : > { %v4313_v0 = vpop.f32.mrf.mxu0  ;;  %v3495_v18 = vadd.f32 %v3494_v29, %v3493_v26  ;;  %v3382_v60 = vadd.f32 %v3381_v28, %v3380_v12  ;;  %v3322_v19 = vmul.f32 %v3281_v17, %v3034_v21  ;;  %v3500_v51 = vsel %vm455_vm2, %v3434_v59, 0.0 }
 0x222   : > { %v3496_v16 = vsel %vm455_vm2, %v3432_v6, 0.0  ;;  %v3035_v42 = vadd.f32 %v4313_v0, %v2725_v48  ;;  %3068 = vst.msk [vmem:[%s5762_s27 + $0x100] sm:$0xff] %vm455_vm2, %v3032_v54  ;;  %v3320_v1 = vmul.f32 %v3271_v45, %v3032_v54 }
 0x223   : > { %v2988_v27 = vpop.f32.mrf.mxu0  ;;  %v3384_v7 = vadd.f32 %v3383_v15, %v3382_v60  ;;  %v3497_v5 = vadd.f32 %v3496_v16, %v3495_v18  ;;  %v3437_v47 = vmul.f32 %v3322_v19, %v3034_v21  ;;  %v3391_v49 = vsel %vm455_vm2, %v3322_v19, 0.0 }
 0x224   : > { %v3033_v46 = vadd.f32 %v2988_v27, %v2723_v62  ;;  %3071 = vst.msk [vmem:[%s5762_s27 + $0x118] sm:$0xff] %vm455_vm2, %v3035_v42  ;;  %v3435_v10 = vmul.f32 %v3320_v1, %v3032_v54  ;;  %v3387_v50 = vsel %vm455_vm2, %v3320_v1, 0.0  ;;  %v3323_v38 = vmul.f32 %v3286_v13, %v3035_v42 }
 0x225   : > { %v3499_v9 = vadd.f32 %v3498_v25, %v3497_v5  ;;  %v3386_v24 = vadd.f32 %v3385_v39, %v3384_v7  ;;  %v3506_v33 = vsel %vm455_vm2, %v3437_v47, 0.0 }
 0x226   : > { %3069 = vst.msk [vmem:[%s5762_s27 + $0x108] sm:$0xff] %vm455_vm2, %v3033_v46  ;;  %v3321_v34 = vmul.f32 %v3276_v23, %v3033_v46  ;;  %v3502_v2 = vsel %vm455_vm2, %v3435_v10, 0.0  ;;  %v3438_v61 = vmul.f32 %v3323_v38, %v3035_v42  ;;  %v3393_v30 = vsel %vm455_vm2, %v3323_v38, 0.0 }
 0x227   : > { %v3388_v52 = vadd.f32 %v3387_v50, %v3386_v24  ;;  %v3501_v35 = vadd.f32 %v3500_v51, %v3499_v9 }
 0x228   : > { %v3389_v40 = vsel %vm455_vm2, %v3321_v34, 0.0  ;;  %v3436_v8 = vmul.f32 %v3321_v34, %v3033_v46  ;;  %v3508_v41 = vsel %vm455_vm2, %v3438_v61, 0.0 }
 0x229   : > { %v3503_v22 = vadd.f32 %v3502_v2, %v3501_v35  ;;  %v3390_v43 = vadd.f32 %v3389_v40, %v3388_v52 }
 0x22a   : > { %v3504_v57 = vsel %vm455_vm2, %v3436_v8, 0.0 }
 0x22b   : > { %v3392_v58 = vadd.f32 %v3391_v49, %v3390_v43  ;;  %v3505_v37 = vadd.f32 %v3504_v57, %v3503_v22 }
 0x22d   : > { %v3394_v45 = vadd.f32 %v3393_v30, %v3392_v58  ;;  %v3507_v31 = vadd.f32 %v3506_v33, %v3505_v37 }
 0x22f   : > { %v3395_v56 = vrot.slane %v3394_v45, 4  ;;  %v3509_v21 = vadd.f32 %v3508_v41, %v3507_v31 }
 0x231   : > { %v3396_v4 = vadd.f32 %v3395_v56, %v3394_v45  ;;  %v3510_v63 = vrot.slane %v3509_v21, 4 }
 0x233   : > { %v3397_v14 = vrot.slane %v3396_v4, 2  ;;  %v3511_v53 = vadd.f32 %v3510_v63, %v3509_v21 }
 0x235   : > { %v3398_v3 = vadd.f32 %v3397_v14, %v3396_v4  ;;  %v3512_v55 = vrot.slane %v3511_v53, 2 }
 0x237   : > { %v3399_v23 = vrot.slane %v3398_v3, 1  ;;  %v3513_v36 = vadd.f32 %v3512_v55, %v3511_v53 }
 0x239   : > { %v3400_v11 = vadd.f32 %v3399_v23, %v3398_v3  ;;  %v3514_v32 = vrot.slane %v3513_v36, 1 }
 0x23b   : > { %3402 = vst.msk [vmem:[%s238_s6] sm:$0x1] %vm3401_vm8, %v3400_v11  ;;  %v3515_v12 = vadd.f32 %v3514_v32, %v3513_v36 }
 0x23d   : > { %3516 = vst.msk [vmem:[%s241_s9] sm:$0x1] %vm3401_vm8, %v3515_v12 }
 0x23e PF: > { %s16_s18 = sadd.s32 1, %s4345_s18  }
 0x23f   : > { %p13_p4 = scmp.ge.s32.totalorder %s16_s18, 4  }
 0x241   :  { %15 = sbr.rel (!%p13_p4) target bundleno = 1 (0x1), region = 94 }

</bundles_post_ra>
